<compile_context>
chip_gen: v6e
topology: v6e:2x2x1
jax: 0.10.0
libtpu: 0.0.40
codegen_flags: <defaults>
</compile_context>

<pallas_src>
import math
from functools import partial

import jax
import jax.numpy as jnp
from jax.experimental import pallas as pl
from jax.experimental.pallas import tpu as pltpu

_PARALLEL_1D = pltpu.CompilerParams(dimension_semantics=("parallel",))


def _pick_tile(length):
    """Largest lane tile (multiple of 128, works on v5e/v6e/v7x MXU) dividing L."""
    for t in (512, 256, 128):
        if length % t == 0:
            return t
    return length


# ----------------------------------------------------------------------------
# Pallas kernels
# ----------------------------------------------------------------------------
def _conv_kernel(x_ref, w_ref, b_ref, o_ref, *, act, cast_bf16):
    """1x1 conv (BN scale pre-folded into w) + bias + optional ReLU on (Cin, TL)."""
    x = x_ref[...]
    if cast_bf16:
        x = x.astype(jnp.bfloat16)          # weights already bf16 (cast in wrapper)
    y = jnp.dot(w_ref[...], x, preferred_element_type=jnp.float32)
    y = y + b_ref[...]
    if act:
        y = jnp.maximum(y, 0.0)
    o_ref[...] = y.astype(o_ref.dtype)


def conv1x1(x2d, w, b, act=True, bf16=True):
    """Pointwise conv on a lane-dense (Cin, L) slab -> (Cout, L)."""
    cin, length = x2d.shape
    cout = w.shape[0]
    use_bf16 = bf16 and cin >= 8            # keep the tiny xyz conv (Cin=3) in f32
    wk = w.astype(jnp.bfloat16) if use_bf16 else w
    tl = _pick_tile(length)
    return pl.pallas_call(
        partial(_conv_kernel, act=act, cast_bf16=use_bf16),
        out_shape=jax.ShapeDtypeStruct((cout, length), jnp.float32),
        grid=(length // tl,),
        in_specs=[
            pl.BlockSpec((cin, tl), lambda i: (0, i)),
            pl.BlockSpec((cout, cin), lambda i: (0, 0)),
            pl.BlockSpec((cout, 1), lambda i: (0, 0)),
        ],
        out_specs=pl.BlockSpec((cout, tl), lambda i: (0, i)),
        compiler_params=_PARALLEL_1D,
    )(x2d, wk, b)


def conv_bn_act(x, w, b, act=True, bf16=True):
    """x: (B, Cin, N) -> (B, Cout, N). Pointwise conv: batch flattened into lanes."""
    B, cin, n = x.shape
    cout = w.shape[0]
    x2d = jnp.transpose(x, (1, 0, 2)).reshape(cin, B * n)
    y2d = conv1x1(x2d, w, b, act=act, bf16=bf16)
    return jnp.transpose(y2d.reshape(cout, B, n), (1, 0, 2))


def _local_op_kernel(x_ref, w1_ref, b1_ref, w2_ref, b2_ref, o_ref, *, kb, cast_bf16):
    """Fused Local_op: conv1+ReLU, conv2+ReLU, max over neighbors.

    x_ref block: (kb, Cin, TM); o_ref block: (Cout, TM), revisited over grid
    axis 1 (the neighbor-chunk axis, marked 'arbitrary') as a max accumulator.
    """
    @pl.when(pl.program_id(1) == 0)
    def _():
        o_ref[...] = jnp.zeros_like(o_ref)   # ReLU output >= 0, so 0 is a valid identity

    w1 = w1_ref[...]
    w2 = w2_ref[...]
    cout, tm = o_ref.shape
    hid = w1.shape[0]
    # Hoist bias broadcasts out of the unrolled neighbor loop (no CSE of broadcasts).
    b1 = jnp.broadcast_to(b1_ref[...], (hid, tm))
    b2 = jnp.broadcast_to(b2_ref[...], (cout, tm))

    acc = o_ref[...]
    for q in range(kb):                      # static unroll over neighbors in this chunk
        x = x_ref[q]                         # (Cin, TM)
        if cast_bf16:
            x = x.astype(jnp.bfloat16)
        h = jnp.maximum(jnp.dot(w1, x, preferred_element_type=jnp.float32) + b1, 0.0)
        if cast_bf16:
            h = h.astype(jnp.bfloat16)
        y = jnp.maximum(jnp.dot(w2, h, preferred_element_type=jnp.float32) + b2, 0.0)
        acc = jnp.maximum(acc, y)
    o_ref[...] = acc


def local_op(new_feature, w1, b1, w2, b2, bf16=True):
    """Local_op: shared MLP over grouped features + max over K neighbors.

    new_feature: (B, S, K, D) -> (B, Cout, S).
    """
    B, S, K, D = new_feature.shape
    cout = w2.shape[0]
    M = B * S
    # (B, S, K, D) -> (K, D, B*S): lane-dense point axis, neighbor axis leading.
    xg = jnp.transpose(new_feature, (2, 3, 0, 1)).reshape(K, D, M)
    tm = _pick_tile(M)
    kb = 8 if K % 8 == 0 else K
    w1c = w1.astype(jnp.bfloat16) if bf16 else w1
    w2c = w2.astype(jnp.bfloat16) if bf16 else w2
    hid = w1.shape[0]
    y = pl.pallas_call(
        partial(_local_op_kernel, kb=kb, cast_bf16=bf16),
        out_shape=jax.ShapeDtypeStruct((cout, M), jnp.float32),
        grid=(M // tm, K // kb),
        in_specs=[
            pl.BlockSpec((kb, D, tm), lambda m, k: (k, 0, m)),
            pl.BlockSpec((hid, D), lambda m, k: (0, 0)),
            pl.BlockSpec((hid, 1), lambda m, k: (0, 0)),
            pl.BlockSpec((cout, hid), lambda m, k: (0, 0)),
            pl.BlockSpec((cout, 1), lambda m, k: (0, 0)),
        ],
        out_specs=pl.BlockSpec((cout, tm), lambda m, k: (0, m)),
        compiler_params=pltpu.CompilerParams(
            dimension_semantics=("parallel", "arbitrary")),
    )(xg, w1c, b1, w2c, b2)
    return jnp.transpose(y.reshape(cout, B, S), (1, 0, 2))


def _sa_layer_kernel(x_ref, wq_ref, wv_ref, bv_ref, wt_ref, bt_ref, o_ref, *, cast_bf16):
    """Offset-attention SA_Layer (q/k share weights, with_oa=True), one cloud."""
    x = x_ref[0]                                                     # (C, n)
    xm = x.astype(jnp.bfloat16) if cast_bf16 else x
    q = jnp.dot(wq_ref[...], xm, preferred_element_type=jnp.float32)   # (C/4, n) == k
    v = jnp.dot(wv_ref[...], xm, preferred_element_type=jnp.float32) + bv_ref[...]
    qm = q.astype(jnp.bfloat16) if cast_bf16 else q
    energy = jax.lax.dot_general(qm, qm, (((0,), (0,)), ((), ())),
                                 preferred_element_type=jnp.float32)   # (n, n) = q^T k
    e = jnp.exp(energy - jnp.max(energy, axis=-1, keepdims=True))
    attn = e * pl.reciprocal(jnp.sum(e, axis=-1, keepdims=True), approx=True)    # softmax(-1)
    attn = attn * pl.reciprocal(1e-9 + jnp.sum(attn, axis=0, keepdims=True),
                                approx=True)                          # L1 over dim=1
    vm = v.astype(jnp.bfloat16) if cast_bf16 else v
    am = attn.astype(jnp.bfloat16) if cast_bf16 else attn
    x_r = jnp.dot(vm, am, preferred_element_type=jnp.float32)          # (C, n)
    d = x - x_r
    dm = d.astype(jnp.bfloat16) if cast_bf16 else d
    x_r = jnp.dot(wt_ref[...], dm, preferred_element_type=jnp.float32) + bt_ref[...]
    x_r = jnp.maximum(x_r, 0.0)            # after_norm folded into wt/bt, then ReLU
    o_ref[0] = (x + x_r).astype(o_ref.dtype)


def sa_layer(x, wq, wv, bv, wt, bt, bf16=True):
    B, C, n = x.shape
    C4 = wq.shape[0]
    wdt = jnp.bfloat16 if bf16 else jnp.float32
    return pl.pallas_call(
        partial(_sa_layer_kernel, cast_bf16=bf16),
        out_shape=jax.ShapeDtypeStruct((B, C, n), jnp.float32),
        grid=(B,),
        in_specs=[
            pl.BlockSpec((1, C, n), lambda b: (b, 0, 0)),
            pl.BlockSpec((C4, C), lambda b: (0, 0)),
            pl.BlockSpec((C, C), lambda b: (0, 0)),
            pl.BlockSpec((C, 1), lambda b: (0, 0)),
            pl.BlockSpec((C, C), lambda b: (0, 0)),
            pl.BlockSpec((C, 1), lambda b: (0, 0)),
        ],
        out_specs=pl.BlockSpec((1, C, n), lambda b: (b, 0, 0)),
        compiler_params=_PARALLEL_1D,
    )(x, wq.astype(wdt), wv.astype(wdt), bv, wt.astype(wdt), bt)


def _sqdist_kernel(a_ref, b_ref, o_ref):
    # dist[n, m] = ||s_n||^2 - 2 s_n . d_m + ||d_m||^2  as one K=5 transposed matmul.
    o_ref[0] = jax.lax.dot_general(a_ref[0], b_ref[0], (((0,), (0,)), ((), ())),
                                   preferred_element_type=jnp.float32)


def square_distance(src, dst):
    """src: (B, N, 3), dst: (B, M, 3) -> (B, N, M) pairwise squared distances."""
    B, N, _ = src.shape
    M = dst.shape[1]
    src_t = jnp.transpose(src, (0, 2, 1))                       # (B, 3, N)
    dst_t = jnp.transpose(dst, (0, 2, 1))                       # (B, 3, M)
    ss = jnp.sum(src * src, axis=-1)[:, None, :]                # (B, 1, N)
    dd = jnp.sum(dst * dst, axis=-1)[:, None, :]                # (B, 1, M)
    a = jnp.concatenate([ss, -2.0 * src_t, jnp.ones_like(ss)], axis=1)   # (B, 5, N)
    bm = jnp.concatenate([jnp.ones_like(dd), dst_t, dd], axis=1)         # (B, 5, M)
    return pl.pallas_call(
        _sqdist_kernel,
        out_shape=jax.ShapeDtypeStruct((B, N, M), jnp.float32),
        grid=(B,),
        in_specs=[pl.BlockSpec((1, 5, N), lambda b: (b, 0, 0)),
                  pl.BlockSpec((1, 5, M), lambda b: (b, 0, 0))],
        out_specs=pl.BlockSpec((1, N, M), lambda b: (b, 0, 0)),
        compiler_params=_PARALLEL_1D,
    )(a, bm)


# ----------------------------------------------------------------------------
# JAX glue (sampling / gathers / kNN selection) -- data-dependent indexing
# ----------------------------------------------------------------------------
def index_points(points, idx):
    """points: (B, N, C), idx: (B, ...) int -> (B, ..., C)."""
    B = points.shape[0]
    batch_idx = jnp.arange(B).reshape((B,) + (1,) * (idx.ndim - 1))
    return points[batch_idx, idx]


def farthest_point_sample(xyz, npoint):
    """Deterministic FPS (starts at point 0 instead of torch's randint)."""
    # TODO(synk): torch picks a random start index; we start at 0 for determinism.
    B, N, _ = xyz.shape

    def body(i, carry):
        centroids, distance, farthest = carry
        centroids = centroids.at[:, i].set(farthest)
        centroid = index_points(xyz, farthest[:, None])          # (B, 1, 3)
        dist = jnp.sum((xyz - centroid) ** 2, axis=-1)           # (B, N)
        distance = jnp.minimum(distance, dist)
        farthest = jnp.argmax(distance, axis=-1).astype(jnp.int32)
        return centroids, distance, farthest

    init = (jnp.zeros((B, npoint), jnp.int32),
            jnp.full((B, N), 1e10, jnp.float32),
            jnp.zeros((B,), jnp.int32))
    centroids, _, _ = jax.lax.fori_loop(0, npoint, body, init)
    return centroids


def sample_and_group(npoint, nsample, xyz, points):
    """xyz: (B, N, 3), points: (B, N, D) -> new_xyz (B,S,3), new_feat (B,S,K,2D)."""
    fps_idx = farthest_point_sample(xyz, npoint)                 # (B, S)
    new_xyz = index_points(xyz, fps_idx)                         # (B, S, 3)
    new_points = index_points(points, fps_idx)                   # (B, S, D)
    dists = square_distance(new_xyz, xyz)                        # (B, S, N)  [Pallas]
    _, idx = jax.lax.top_k(-dists, nsample)                      # kNN (cheaper than argsort)
    grouped = index_points(points, idx)                          # (B, S, K, D)
    grouped_norm = grouped - new_points[:, :, None, :]
    center = jnp.broadcast_to(new_points[:, :, None, :], grouped_norm.shape)
    return new_xyz, jnp.concatenate([grouped_norm, center], axis=-1)


def stacked_attention(x, pt):
    x = conv_bn_act(x, *pt['conv1'], act=True)
    x = conv_bn_act(x, *pt['conv2'], act=True)
    outs = []
    for lp in pt['sa']:
        x = sa_layer(x, lp['wq'], lp['wv'], lp['bv'], lp['wt'], lp['bt'])
        outs.append(x)
    return jnp.concatenate(outs, axis=1)


def feature_propagation(xyz1, xyz2, points1, points2, mlp_params):
    """PointNetFeaturePropagation: inverse-distance 3-NN interpolation + MLP.

    xyz1: (B, N, 3), xyz2: (B, S, 3), points1: (B, D1, N), points2: (B, D2, S).
    """
    dists = square_distance(xyz1, xyz2)                          # (B, N, S)  [Pallas]
    neg_d, idx = jax.lax.top_k(-dists, 3)                        # 3 nearest
    dist_recip = 1.0 / (-neg_d + 1e-8)
    weight = dist_recip / jnp.sum(dist_recip, axis=-1, keepdims=True)
    pts2 = jnp.transpose(points2, (0, 2, 1))                     # (B, S, D2)
    interp = jnp.sum(index_points(pts2, idx) * weight[..., None], axis=2)   # (B, N, D2)
    new = jnp.concatenate([jnp.transpose(points1, (0, 2, 1)), interp], axis=-1)
    new = jnp.transpose(new, (0, 2, 1))                          # (B, D1+D2, N)
    for (wgt, bias) in mlp_params:
        new = conv_bn_act(new, wgt, bias, act=True)
    return new


# ----------------------------------------------------------------------------
# Parameters (deterministic synthetic init matching module shapes, BN folded)
# ----------------------------------------------------------------------------
def init_params(embd, key):
    keys = iter(jax.random.split(key, 64))

    def w(shape, scale=0.1):
        return (scale * jax.random.normal(next(keys), shape)).astype(jnp.float32)

    def fold_conv_bn(weight, conv_bias=None, eps=1e-5):
        """Fold eval-mode BatchNorm (gamma=1, beta=0, mean=0, var=1) + conv bias
        into (weight', bias') so kernels only do matmul + bias (+ReLU)."""
        c = weight.shape[0]
        gamma = jnp.ones((c,), jnp.float32)
        beta = jnp.zeros((c,), jnp.float32)
        mean = jnp.zeros((c,), jnp.float32)
        var = jnp.ones((c,), jnp.float32)
        if conv_bias is None:
            conv_bias = jnp.zeros((c,), jnp.float32)
        s = gamma * jax.lax.rsqrt(var + eps)
        return weight * s[:, None], ((conv_bias - mean) * s + beta)[:, None]

    e = embd
    p = {}
    p['conv1'] = fold_conv_bn(w((e, 3)))                          # Conv1d(3->e, no bias)+BN

    def local_params(c):
        w1, b1 = fold_conv_bn(w((c, c)))
        w2, b2 = fold_conv_bn(w((c, c)))
        return (w1, b1, w2, b2)

    p['gl1'] = local_params(2 * e)
    p['gl2'] = local_params(4 * e)

    c = 4 * e
    sa_layers = []
    for _ in range(4):
        wt, bt = fold_conv_bn(w((c, c)), w((c,), 0.05))           # trans_conv + after_norm
        sa_layers.append(dict(wq=w((c // 4, c)), wv=w((c, c)),
                              bv=w((c,), 0.05)[:, None], wt=wt, bt=bt))
    p['pt'] = dict(conv1=fold_conv_bn(w((c, c))),
                   conv2=fold_conv_bn(w((c, c))), sa=sa_layers)

    p['fuse'] = fold_conv_bn(w((8 * e, 32 * e)), w((8 * e,), 0.05))
    p['fp2'] = [fold_conv_bn(w((4 * e, 10 * e)), w((4 * e,), 0.05))]   # 8e + 2e -> 4e
    p['fp1'] = [fold_conv_bn(w((2 * e, 5 * e)), w((2 * e,), 0.05))]    # 4e + e  -> 2e
    p['logits'] = (w((8, 2 * e)), w((8,), 0.05)[:, None])              # no BN
    return p


# ----------------------------------------------------------------------------
# Forward pass
# ----------------------------------------------------------------------------
def forward(x, params):
    """x: (B, N, 3) -> logits (B, N, 8)."""
    B, N, _ = x.shape
    xyz0 = x
    feature_0 = conv_bn_act(jnp.transpose(x, (0, 2, 1)), *params['conv1'], act=True)

    xyz1, nf = sample_and_group(N // 8, 32, xyz0, jnp.transpose(feature_0, (0, 2, 1)))
    feature_1 = local_op(nf, *params['gl1'])                       # (B, 2e, N/8)

    xyz2, nf = sample_and_group(N // 64, 32, xyz1, jnp.transpose(feature_1, (0, 2, 1)))
    feature_2 = local_op(nf, *params['gl2'])                       # (B, 4e, N/64)
    # TODO(synk): dropout layers (dp2/dp3/dp5, FP-internal dropout) are identity in eval mode.

    x_att = stacked_attention(feature_2, params['pt'])             # (B, 16e, N/64)
    gmax = jnp.max(x_att, axis=-1, keepdims=True)                  # tiny (B,16e,1): JAX glue
    x_cat = jnp.concatenate([x_att, jnp.broadcast_to(gmax, x_att.shape)], axis=1)
    x_f = conv_bn_act(x_cat, *params['fuse'], act=True)            # (B, 8e, N/64)

    x_f = feature_propagation(xyz1, xyz2, feature_1, x_f, params['fp2'])    # (B, 4e, N/8)
    x_f = feature_propagation(xyz0, xyz1, feature_0, x_f, params['fp1'])    # (B, 2e, N)

    logits = conv_bn_act(x_f, *params['logits'], act=False)        # (B, 8, N)
    return jnp.transpose(logits, (0, 2, 1))                        # (B, N, 8)


# ----------------------------------------------------------------------------
if __name__ == "__main__":
    B, N, EMBD = 2, 512, 16
    root = jax.random.PRNGKey(0)
    k_in, k_par = jax.random.split(root)
    x = jax.random.normal(k_in, (B, N, 3), dtype=jnp.float32)
    params = init_params(EMBD, k_par)

    out = jax.jit(lambda inp: forward(inp, params))(x)
    out = jax.block_until_ready(out)
    assert out.shape == (B, N, 8), out.shape
    assert bool(jnp.all(jnp.isfinite(out)))
    print("KERNEL_OK")
</pallas_src>

<mosaic_0001>
module attributes {stable_mosaic.version = 11 : i64} {
  func.func @_sqdist_kernel(%arg0: i32, %arg1: memref<1x5x8xf32, #tpu.memory_space<vmem>>, %arg2: memref<1x5x64xf32, #tpu.memory_space<vmem>>, %arg3: memref<1x8x64xf32, #tpu.memory_space<vmem>>) attributes {dimension_semantics = [#tpu.dimension_semantics<parallel>], iteration_bounds = array<i64: 2>, scalar_prefetch = 0 : i64, scratch_operands = 0 : i64, tpu.core_type = #tpu.core_type<tc>, window_params = [{transform_indices = @transform_0, window_bounds = array<i64: 1, 5, 8>}, {transform_indices = @transform_1, window_bounds = array<i64: 1, 5, 64>}, {transform_indices = @transform_2, window_bounds = array<i64: 1, 8, 64>}]} {
    %c0 = arith.constant 0 : index
    %c0_0 = arith.constant 0 : index
    %c0_1 = arith.constant 0 : index
    %0 = vector.load %arg1[%c0, %c0_0, %c0_1] : memref<1x5x8xf32, #tpu.memory_space<vmem>>, vector<1x5x8xf32>
    %1 = vector.shape_cast %0 : vector<1x5x8xf32> to vector<5x8xf32>
    %c0_2 = arith.constant 0 : index
    %c0_3 = arith.constant 0 : index
    %c0_4 = arith.constant 0 : index
    %2 = vector.load %arg2[%c0_2, %c0_3, %c0_4] : memref<1x5x64xf32, #tpu.memory_space<vmem>>, vector<1x5x64xf32>
    %3 = vector.shape_cast %2 : vector<1x5x64xf32> to vector<5x64xf32>
    %cst = arith.constant dense<0.000000e+00> : vector<8x64xf32>
    %4 = tpu.matmul %1, %3, %cst {dimension_numbers = #tpu.dot_dimension_numbers<[0], [0], [1], [1], [0, 1, 1, 1], [], []>} : vector<5x8xf32>, vector<5x64xf32>, vector<8x64xf32> -> vector<8x64xf32>
    %c0_5 = arith.constant 0 : index
    %c0_6 = arith.constant 0 : index
    %c0_7 = arith.constant 0 : index
    %5 = vector.load %arg3[%c0_5, %c0_6, %c0_7] : memref<1x8x64xf32, #tpu.memory_space<vmem>>, vector<1x8x64xf32>
    %6 = vector.shape_cast %5 : vector<1x8x64xf32> to vector<8x64xf32>
    %7 = vector.shape_cast %4 : vector<8x64xf32> to vector<1x8x64xf32>
    tpu.vector_store %arg3[%c0_5, %c0_6, %c0_7], %7 {strides = array<i32>} : memref<1x8x64xf32, #tpu.memory_space<vmem>>, vector<1x8x64xf32>,
    return
  }
  func.func @transform_0(%arg0: i32) -> (i32, i32, i32) {
    %c0_i32 = arith.constant 0 : i32
    %c0_i32_0 = arith.constant 0 : i32
    %c0_i32_1 = arith.constant 0 : i32
    return %arg0, %c0_i32, %c0_i32_0 : i32, i32, i32
  }
  func.func @transform_1(%arg0: i32) -> (i32, i32, i32) {
    %c0_i32 = arith.constant 0 : i32
    %c0_i32_0 = arith.constant 0 : i32
    %c0_i32_1 = arith.constant 0 : i32
    return %arg0, %c0_i32, %c0_i32_0 : i32, i32, i32
  }
  func.func @transform_2(%arg0: i32) -> (i32, i32, i32) {
    %c0_i32 = arith.constant 0 : i32
    %c0_i32_0 = arith.constant 0 : i32
    %c0_i32_1 = arith.constant 0 : i32
    return %arg0, %c0_i32, %c0_i32_0 : i32, i32, i32
  }
}

module attributes {stable_mosaic.version = 11 : i64} {
  func.func @_sqdist_kernel(%arg0: i32, %arg1: memref<1x5x64xf32, #tpu.memory_space<vmem>>, %arg2: memref<1x5x512xf32, #tpu.memory_space<vmem>>, %arg3: memref<1x64x512xf32, #tpu.memory_space<vmem>>) attributes {dimension_semantics = [#tpu.dimension_semantics<parallel>], iteration_bounds = array<i64: 2>, scalar_prefetch = 0 : i64, scratch_operands = 0 : i64, tpu.core_type = #tpu.core_type<tc>, window_params = [{transform_indices = @transform_0, window_bounds = array<i64: 1, 5, 64>}, {transform_indices = @transform_1, window_bounds = array<i64: 1, 5, 512>}, {transform_indices = @transform_2, window_bounds = array<i64: 1, 64, 512>}]} {
    %c0 = arith.constant 0 : index
    %c0_0 = arith.constant 0 : index
    %c0_1 = arith.constant 0 : index
    %0 = vector.load %arg1[%c0, %c0_0, %c0_1] : memref<1x5x64xf32, #tpu.memory_space<vmem>>, vector<1x5x64xf32>
    %1 = vector.shape_cast %0 : vector<1x5x64xf32> to vector<5x64xf32>
    %c0_2 = arith.constant 0 : index
    %c0_3 = arith.constant 0 : index
    %c0_4 = arith.constant 0 : index
    %2 = vector.load %arg2[%c0_2, %c0_3, %c0_4] : memref<1x5x512xf32, #tpu.memory_space<vmem>>, vector<1x5x512xf32>
    %3 = vector.shape_cast %2 : vector<1x5x512xf32> to vector<5x512xf32>
    %cst = arith.constant dense<0.000000e+00> : vector<64x512xf32>
    %4 = tpu.matmul %1, %3, %cst {dimension_numbers = #tpu.dot_dimension_numbers<[0], [0], [1], [1], [0, 1, 1, 1], [], []>} : vector<5x64xf32>, vector<5x512xf32>, vector<64x512xf32> -> vector<64x512xf32>
    %c0_5 = arith.constant 0 : index
    %c0_6 = arith.constant 0 : index
    %c0_7 = arith.constant 0 : index
    %5 = vector.load %arg3[%c0_5, %c0_6, %c0_7] : memref<1x64x512xf32, #tpu.memory_space<vmem>>, vector<1x64x512xf32>
    %6 = vector.shape_cast %5 : vector<1x64x512xf32> to vector<64x512xf32>
    %7 = vector.shape_cast %4 : vector<64x512xf32> to vector<1x64x512xf32>
    tpu.vector_store %arg3[%c0_5, %c0_6, %c0_7], %7 {strides = array<i32>} : memref<1x64x512xf32, #tpu.memory_space<vmem>>, vector<1x64x512xf32>,
    return
  }
  func.func @transform_0(%arg0: i32) -> (i32, i32, i32) {
    %c0_i32 = arith.constant 0 : i32
    %c0_i32_0 = arith.constant 0 : i32
    %c0_i32_1 = arith.constant 0 : i32
    return %arg0, %c0_i32, %c0_i32_0 : i32, i32, i32
  }
  func.func @transform_1(%arg0: i32) -> (i32, i32, i32) {
    %c0_i32 = arith.constant 0 : i32
    %c0_i32_0 = arith.constant 0 : i32
    %c0_i32_1 = arith.constant 0 : i32
    return %arg0, %c0_i32, %c0_i32_0 : i32, i32, i32
  }
  func.func @transform_2(%arg0: i32) -> (i32, i32, i32) {
    %c0_i32 = arith.constant 0 : i32
    %c0_i32_0 = arith.constant 0 : i32
    %c0_i32_1 = arith.constant 0 : i32
    return %arg0, %c0_i32, %c0_i32_0 : i32, i32, i32
  }
}

module attributes {stable_mosaic.version = 11 : i64} {
  func.func @_conv_kernel(%arg0: i32, %arg1: memref<3x512xf32, #tpu.memory_space<vmem>>, %arg2: memref<16x3xf32, #tpu.memory_space<vmem>>, %arg3: memref<16x1xf32, #tpu.memory_space<vmem>>, %arg4: memref<16x512xf32, #tpu.memory_space<vmem>>) attributes {dimension_semantics = [#tpu.dimension_semantics<parallel>], iteration_bounds = array<i64: 2>, scalar_prefetch = 0 : i64, scratch_operands = 0 : i64, tpu.core_type = #tpu.core_type<tc>, window_params = [{transform_indices = @transform_0, window_bounds = array<i64: 3, 512>}, {pipeline_mode = #tpu.pipeline_mode<synchronous>, transform_indices = @transform_1, window_bounds = array<i64: 16, 3>}, {pipeline_mode = #tpu.pipeline_mode<synchronous>, transform_indices = @transform_2, window_bounds = array<i64: 16, 1>}, {transform_indices = @transform_3, window_bounds = array<i64: 16, 512>}]} {
    %c0 = arith.constant 0 : index
    %c0_0 = arith.constant 0 : index
    %0 = vector.load %arg1[%c0, %c0_0] : memref<3x512xf32, #tpu.memory_space<vmem>>, vector<3x512xf32>
    %c0_1 = arith.constant 0 : index
    %c0_2 = arith.constant 0 : index
    %1 = vector.load %arg2[%c0_1, %c0_2] : memref<16x3xf32, #tpu.memory_space<vmem>>, vector<16x3xf32>
    %cst = arith.constant dense<0.000000e+00> : vector<16x512xf32>
    %2 = tpu.matmul %1, %0, %cst {dimension_numbers = #tpu.dot_dimension_numbers<[1], [0], [0], [1], [0, 0, 1, 1], [], []>} : vector<16x3xf32>, vector<3x512xf32>, vector<16x512xf32> -> vector<16x512xf32>
    %c0_3 = arith.constant 0 : index
    %c0_4 = arith.constant 0 : index
    %3 = vector.load %arg3[%c0_3, %c0_4] : memref<16x1xf32, #tpu.memory_space<vmem>>, vector<16x1xf32>
    %4 = vector.broadcast %3 : vector<16x1xf32> to vector<16x512xf32>
    %5 = arith.addf %2, %4 : vector<16x512xf32>
    %cst_5 = arith.constant 0.000000e+00 : f32
    %6 = vector.broadcast %cst_5 : f32 to vector<16x512xf32>
    %7 = arith.maximumf %5, %6 : vector<16x512xf32>
    %c0_6 = arith.constant 0 : index
    %c0_7 = arith.constant 0 : index
    %8 = vector.load %arg4[%c0_6, %c0_7] : memref<16x512xf32, #tpu.memory_space<vmem>>, vector<16x512xf32>
    tpu.vector_store %arg4[%c0_6, %c0_7], %7 {strides = array<i32>} : memref<16x512xf32, #tpu.memory_space<vmem>>, vector<16x512xf32>,
    return
  }
  func.func @transform_0(%arg0: i32) -> (i32, i32) {
    %c0_i32 = arith.constant 0 : i32
    %c0_i32_0 = arith.constant 0 : i32
    return %c0_i32, %arg0 : i32, i32
  }
  func.func @transform_1(%arg0: i32) -> (i32, i32) {
    %c0_i32 = arith.constant 0 : i32
    %c0_i32_0 = arith.constant 0 : i32
    %c0_i32_1 = arith.constant 0 : i32
    return %c0_i32, %c0_i32_0 : i32, i32
  }
  func.func @transform_2(%arg0: i32) -> (i32, i32) {
    %c0_i32 = arith.constant 0 : i32
    %c0_i32_0 = arith.constant 0 : i32
    %c0_i32_1 = arith.constant 0 : i32
    return %c0_i32, %c0_i32_0 : i32, i32
  }
  func.func @transform_3(%arg0: i32) -> (i32, i32) {
    %c0_i32 = arith.constant 0 : i32
    %c0_i32_0 = arith.constant 0 : i32
    return %c0_i32, %arg0 : i32, i32
  }
}

module attributes {stable_mosaic.version = 11 : i64} {
  func.func @_local_op_kernel(%arg0: i32, %arg1: i32, %arg2: memref<8x32x128xf32, #tpu.memory_space<vmem>>, %arg3: memref<32x32xbf16, #tpu.memory_space<vmem>>, %arg4: memref<32x1xf32, #tpu.memory_space<vmem>>, %arg5: memref<32x32xbf16, #tpu.memory_space<vmem>>, %arg6: memref<32x1xf32, #tpu.memory_space<vmem>>, %arg7: memref<32x128xf32, #tpu.memory_space<vmem>>) attributes {dimension_semantics = [#tpu.dimension_semantics<parallel>, #tpu.dimension_semantics<arbitrary>], iteration_bounds = array<i64: 1, 4>, scalar_prefetch = 0 : i64, scratch_operands = 0 : i64, tpu.core_type = #tpu.core_type<tc>, window_params = [{transform_indices = @transform_0, window_bounds = array<i64: 8, 32, 128>}, {pipeline_mode = #tpu.pipeline_mode<synchronous>, transform_indices = @transform_1, window_bounds = array<i64: 32, 32>}, {pipeline_mode = #tpu.pipeline_mode<synchronous>, transform_indices = @transform_2, window_bounds = array<i64: 32, 1>}, {pipeline_mode = #tpu.pipeline_mode<synchronous>, transform_indices = @transform_3, window_bounds = array<i64: 32, 32>}, {pipeline_mode = #tpu.pipeline_mode<synchronous>, transform_indices = @transform_4, window_bounds = array<i64: 32, 1>}, {transform_indices = @transform_5, window_bounds = array<i64: 32, 128>}]} {
    %c0_i32 = arith.constant 0 : i32
    %0 = arith.cmpi eq, %arg1, %c0_i32 : i32
    %1 = arith.extui %0 : i1 to i32
    %c0_i32_0 = arith.constant 0 : i32
    %2 = arith.cmpi ne, %1, %c0_i32_0 : i32
    scf.if %2 {
      %cst_60 = arith.constant 0.000000e+00 : f32
      %117 = vector.broadcast %cst_60 : f32 to vector<32x128xf32>
      %c0_61 = arith.constant 0 : index
      %c0_62 = arith.constant 0 : index
      %118 = vector.load %arg7[%c0_61, %c0_62] : memref<32x128xf32, #tpu.memory_space<vmem>>, vector<32x128xf32>
      tpu.vector_store %arg7[%c0_61, %c0_62], %117 {strides = array<i32>} : memref<32x128xf32, #tpu.memory_space<vmem>>, vector<32x128xf32>,
    } else {
    }
    %c0 = arith.constant 0 : index
    %c0_1 = arith.constant 0 : index
    %3 = vector.load %arg3[%c0, %c0_1] : memref<32x32xbf16, #tpu.memory_space<vmem>>, vector<32x32xbf16>
    %c0_2 = arith.constant 0 : index
    %c0_3 = arith.constant 0 : index
    %4 = vector.load %arg5[%c0_2, %c0_3] : memref<32x32xbf16, #tpu.memory_space<vmem>>, vector<32x32xbf16>
    %c0_4 = arith.constant 0 : index
    %c0_5 = arith.constant 0 : index
    %5 = vector.load %arg4[%c0_4, %c0_5] : memref<32x1xf32, #tpu.memory_space<vmem>>, vector<32x1xf32>
    %6 = vector.shape_cast %5 : vector<32x1xf32> to vector<32x1xf32>
    %7 = vector.broadcast %6 : vector<32x1xf32> to vector<32x128xf32>
    %c0_6 = arith.constant 0 : index
    %c0_7 = arith.constant 0 : index
    %8 = vector.load %arg6[%c0_6, %c0_7] : memref<32x1xf32, #tpu.memory_space<vmem>>, vector<32x1xf32>
    %9 = vector.shape_cast %8 : vector<32x1xf32> to vector<32x1xf32>
    %10 = vector.broadcast %9 : vector<32x1xf32> to vector<32x128xf32>
    %c0_8 = arith.constant 0 : index
    %c0_9 = arith.constant 0 : index
    %11 = vector.load %arg7[%c0_8, %c0_9] : memref<32x128xf32, #tpu.memory_space<vmem>>, vector<32x128xf32>
    %c0_10 = arith.constant 0 : index
    %c0_11 = arith.constant 0 : index
    %c0_12 = arith.constant 0 : index
    %12 = vector.load %arg2[%c0_10, %c0_11, %c0_12] : memref<8x32x128xf32, #tpu.memory_space<vmem>>, vector<1x32x128xf32>
    %13 = vector.shape_cast %12 : vector<1x32x128xf32> to vector<32x128xf32>
    %14 = arith.truncf %13 : vector<32x128xf32> to vector<32x128xbf16>
    %cst = arith.constant dense<0.000000e+00> : vector<32x128xf32>
    %15 = tpu.matmul %3, %14, %cst {dimension_numbers = #tpu.dot_dimension_numbers<[1], [0], [0], [1], [0, 0, 1, 1], [], []>} : vector<32x32xbf16>, vector<32x128xbf16>, vector<32x128xf32> -> vector<32x128xf32>
    %16 = arith.addf %15, %7 : vector<32x128xf32>
    %cst_13 = arith.constant 0.000000e+00 : f32
    %17 = vector.broadcast %cst_13 : f32 to vector<32x128xf32>
    %18 = arith.maximumf %16, %17 : vector<32x128xf32>
    %19 = arith.truncf %18 : vector<32x128xf32> to vector<32x128xbf16>
    %cst_14 = arith.constant dense<0.000000e+00> : vector<32x128xf32>
    %20 = tpu.matmul %4, %19, %cst_14 {dimension_numbers = #tpu.dot_dimension_numbers<[1], [0], [0], [1], [0, 0, 1, 1], [], []>} : vector<32x32xbf16>, vector<32x128xbf16>, vector<32x128xf32> -> vector<32x128xf32>
    %21 = arith.addf %20, %10 : vector<32x128xf32>
    %cst_15 = arith.constant 0.000000e+00 : f32
    %22 = vector.broadcast %cst_15 : f32 to vector<32x128xf32>
    %23 = arith.maximumf %21, %22 : vector<32x128xf32>
    %24 = arith.maximumf %11, %23 : vector<32x128xf32>
    %c1 = arith.constant 1 : index
    %c0_16 = arith.constant 0 : index
    %c0_17 = arith.constant 0 : index
    %25 = vector.load %arg2[%c1, %c0_16, %c0_17] : memref<8x32x128xf32, #tpu.memory_space<vmem>>, vector<1x32x128xf32>
    %26 = vector.shape_cast %25 : vector<1x32x128xf32> to vector<32x128xf32>
    %27 = arith.truncf %26 : vector<32x128xf32> to vector<32x128xbf16>
    %cst_18 = arith.constant dense<0.000000e+00> : vector<32x128xf32>
    %28 = tpu.matmul %3, %27, %cst_18 {dimension_numbers = #tpu.dot_dimension_numbers<[1], [0], [0], [1], [0, 0, 1, 1], [], []>} : vector<32x32xbf16>, vector<32x128xbf16>, vector<32x128xf32> -> vector<32x128xf32>
    %29 = arith.addf %28, %7 : vector<32x128xf32>
    %cst_19 = arith.constant 0.000000e+00 : f32
    %30 = vector.broadcast %cst_19 : f32 to vector<32x128xf32>
    %31 = arith.maximumf %29, %30 : vector<32x128xf32>
    %32 = arith.truncf %31 : vector<32x128xf32> to vector<32x128xbf16>
    %cst_20 = arith.constant dense<0.000000e+00> : vector<32x128xf32>
    %33 = tpu.matmul %4, %32, %cst_20 {dimension_numbers = #tpu.dot_dimension_numbers<[1], [0], [0], [1], [0, 0, 1, 1], [], []>} : vector<32x32xbf16>, vector<32x128xbf16>, vector<32x128xf32> -> vector<32x128xf32>
    %34 = arith.addf %33, %10 : vector<32x128xf32>
    %cst_21 = arith.constant 0.000000e+00 : f32
    %35 = vector.broadcast %cst_21 : f32 to vector<32x128xf32>
    %36 = arith.maximumf %34, %35 : vector<32x128xf32>
    %37 = arith.maximumf %24, %36 : vector<32x128xf32>
    %c2 = arith.constant 2 : index
    %c0_22 = arith.constant 0 : index
    %c0_23 = arith.constant 0 : index
    %38 = vector.load %arg2[%c2, %c0_22, %c0_23] : memref<8x32x128xf32, #tpu.memory_space<vmem>>, vector<1x32x128xf32>
    %39 = vector.shape_cast %38 : vector<1x32x128xf32> to vector<32x128xf32>
    %40 = arith.truncf %39 : vector<32x128xf32> to vector<32x128xbf16>
    %cst_24 = arith.constant dense<0.000000e+00> : vector<32x128xf32>
    %41 = tpu.matmul %3, %40, %cst_24 {dimension_numbers = #tpu.dot_dimension_numbers<[1], [0], [0], [1], [0, 0, 1, 1], [], []>} : vector<32x32xbf16>, vector<32x128xbf16>, vector<32x128xf32> -> vector<32x128xf32>
    %42 = arith.addf %41, %7 : vector<32x128xf32>
    %cst_25 = arith.constant 0.000000e+00 : f32
    %43 = vector.broadcast %cst_25 : f32 to vector<32x128xf32>
    %44 = arith.maximumf %42, %43 : vector<32x128xf32>
    %45 = arith.truncf %44 : vector<32x128xf32> to vector<32x128xbf16>
    %cst_26 = arith.constant dense<0.000000e+00> : vector<32x128xf32>
    %46 = tpu.matmul %4, %45, %cst_26 {dimension_numbers = #tpu.dot_dimension_numbers<[1], [0], [0], [1], [0, 0, 1, 1], [], []>} : vector<32x32xbf16>, vector<32x128xbf16>, vector<32x128xf32> -> vector<32x128xf32>
    %47 = arith.addf %46, %10 : vector<32x128xf32>
    %cst_27 = arith.constant 0.000000e+00 : f32
    %48 = vector.broadcast %cst_27 : f32 to vector<32x128xf32>
    %49 = arith.maximumf %47, %48 : vector<32x128xf32>
    %50 = arith.maximumf %37, %49 : vector<32x128xf32>
    %c3 = arith.constant 3 : index
    %c0_28 = arith.constant 0 : index
    %c0_29 = arith.constant 0 : index
    %51 = vector.load %arg2[%c3, %c0_28, %c0_29] : memref<8x32x128xf32, #tpu.memory_space<vmem>>, vector<1x32x128xf32>
    %52 = vector.shape_cast %51 : vector<1x32x128xf32> to vector<32x128xf32>
    %53 = arith.truncf %52 : vector<32x128xf32> to vector<32x128xbf16>
    %cst_30 = arith.constant dense<0.000000e+00> : vector<32x128xf32>
    %54 = tpu.matmul %3, %53, %cst_30 {dimension_numbers = #tpu.dot_dimension_numbers<[1], [0], [0], [1], [0, 0, 1, 1], [], []>} : vector<32x32xbf16>, vector<32x128xbf16>, vector<32x128xf32> -> vector<32x128xf32>
    %55 = arith.addf %54, %7 : vector<32x128xf32>
    %cst_31 = arith.constant 0.000000e+00 : f32
    %56 = vector.broadcast %cst_31 : f32 to vector<32x128xf32>
    %57 = arith.maximumf %55, %56 : vector<32x128xf32>
    %58 = arith.truncf %57 : vector<32x128xf32> to vector<32x128xbf16>
    %cst_32 = arith.constant dense<0.000000e+00> : vector<32x128xf32>
    %59 = tpu.matmul %4, %58, %cst_32 {dimension_numbers = #tpu.dot_dimension_numbers<[1], [0], [0], [1], [0, 0, 1, 1], [], []>} : vector<32x32xbf16>, vector<32x128xbf16>, vector<32x128xf32> -> vector<32x128xf32>
    %60 = arith.addf %59, %10 : vector<32x128xf32>
    %cst_33 = arith.constant 0.000000e+00 : f32
    %61 = vector.broadcast %cst_33 : f32 to vector<32x128xf32>
    %62 = arith.maximumf %60, %61 : vector<32x128xf32>
    %63 = arith.maximumf %50, %62 : vector<32x128xf32>
    %c4 = arith.constant 4 : index
    %c0_34 = arith.constant 0 : index
    %c0_35 = arith.constant 0 : index
    %64 = vector.load %arg2[%c4, %c0_34, %c0_35] : memref<8x32x128xf32, #tpu.memory_space<vmem>>, vector<1x32x128xf32>
    %65 = vector.shape_cast %64 : vector<1x32x128xf32> to vector<32x128xf32>
    %66 = arith.truncf %65 : vector<32x128xf32> to vector<32x128xbf16>
    %cst_36 = arith.constant dense<0.000000e+00> : vector<32x128xf32>
    %67 = tpu.matmul %3, %66, %cst_36 {dimension_numbers = #tpu.dot_dimension_numbers<[1], [0], [0], [1], [0, 0, 1, 1], [], []>} : vector<32x32xbf16>, vector<32x128xbf16>, vector<32x128xf32> -> vector<32x128xf32>
    %68 = arith.addf %67, %7 : vector<32x128xf32>
    %cst_37 = arith.constant 0.000000e+00 : f32
    %69 = vector.broadcast %cst_37 : f32 to vector<32x128xf32>
    %70 = arith.maximumf %68, %69 : vector<32x128xf32>
    %71 = arith.truncf %70 : vector<32x128xf32> to vector<32x128xbf16>
    %cst_38 = arith.constant dense<0.000000e+00> : vector<32x128xf32>
    %72 = tpu.matmul %4, %71, %cst_38 {dimension_numbers = #tpu.dot_dimension_numbers<[1], [0], [0], [1], [0, 0, 1, 1], [], []>} : vector<32x32xbf16>, vector<32x128xbf16>, vector<32x128xf32> -> vector<32x128xf32>
    %73 = arith.addf %72, %10 : vector<32x128xf32>
    %cst_39 = arith.constant 0.000000e+00 : f32
    %74 = vector.broadcast %cst_39 : f32 to vector<32x128xf32>
    %75 = arith.maximumf %73, %74 : vector<32x128xf32>
    %76 = arith.maximumf %63, %75 : vector<32x128xf32>
    %c5 = arith.constant 5 : index
    %c0_40 = arith.constant 0 : index
    %c0_41 = arith.constant 0 : index
    %77 = vector.load %arg2[%c5, %c0_40, %c0_41] : memref<8x32x128xf32, #tpu.memory_space<vmem>>, vector<1x32x128xf32>
    %78 = vector.shape_cast %77 : vector<1x32x128xf32> to vector<32x128xf32>
    %79 = arith.truncf %78 : vector<32x128xf32> to vector<32x128xbf16>
    %cst_42 = arith.constant dense<0.000000e+00> : vector<32x128xf32>
    %80 = tpu.matmul %3, %79, %cst_42 {dimension_numbers = #tpu.dot_dimension_numbers<[1], [0], [0], [1], [0, 0, 1, 1], [], []>} : vector<32x32xbf16>, vector<32x128xbf16>, vector<32x128xf32> -> vector<32x128xf32>
    %81 = arith.addf %80, %7 : vector<32x128xf32>
    %cst_43 = arith.constant 0.000000e+00 : f32
    %82 = vector.broadcast %cst_43 : f32 to vector<32x128xf32>
    %83 = arith.maximumf %81, %82 : vector<32x128xf32>
    %84 = arith.truncf %83 : vector<32x128xf32> to vector<32x128xbf16>
    %cst_44 = arith.constant dense<0.000000e+00> : vector<32x128xf32>
    %85 = tpu.matmul %4, %84, %cst_44 {dimension_numbers = #tpu.dot_dimension_numbers<[1], [0], [0], [1], [0, 0, 1, 1], [], []>} : vector<32x32xbf16>, vector<32x128xbf16>, vector<32x128xf32> -> vector<32x128xf32>
    %86 = arith.addf %85, %10 : vector<32x128xf32>
    %cst_45 = arith.constant 0.000000e+00 : f32
    %87 = vector.broadcast %cst_45 : f32 to vector<32x128xf32>
    %88 = arith.maximumf %86, %87 : vector<32x128xf32>
    %89 = arith.maximumf %76, %88 : vector<32x128xf32>
    %c6 = arith.constant 6 : index
    %c0_46 = arith.constant 0 : index
    %c0_47 = arith.constant 0 : index
    %90 = vector.load %arg2[%c6, %c0_46, %c0_47] : memref<8x32x128xf32, #tpu.memory_space<vmem>>, vector<1x32x128xf32>
    %91 = vector.shape_cast %90 : vector<1x32x128xf32> to vector<32x128xf32>
    %92 = arith.truncf %91 : vector<32x128xf32> to vector<32x128xbf16>
    %cst_48 = arith.constant dense<0.000000e+00> : vector<32x128xf32>
    %93 = tpu.matmul %3, %92, %cst_48 {dimension_numbers = #tpu.dot_dimension_numbers<[1], [0], [0], [1], [0, 0, 1, 1], [], []>} : vector<32x32xbf16>, vector<32x128xbf16>, vector<32x128xf32> -> vector<32x128xf32>
    %94 = arith.addf %93, %7 : vector<32x128xf32>
    %cst_49 = arith.constant 0.000000e+00 : f32
    %95 = vector.broadcast %cst_49 : f32 to vector<32x128xf32>
    %96 = arith.maximumf %94, %95 : vector<32x128xf32>
    %97 = arith.truncf %96 : vector<32x128xf32> to vector<32x128xbf16>
    %cst_50 = arith.constant dense<0.000000e+00> : vector<32x128xf32>
    %98 = tpu.matmul %4, %97, %cst_50 {dimension_numbers = #tpu.dot_dimension_numbers<[1], [0], [0], [1], [0, 0, 1, 1], [], []>} : vector<32x32xbf16>, vector<32x128xbf16>, vector<32x128xf32> -> vector<32x128xf32>
    %99 = arith.addf %98, %10 : vector<32x128xf32>
    %cst_51 = arith.constant 0.000000e+00 : f32
    %100 = vector.broadcast %cst_51 : f32 to vector<32x128xf32>
    %101 = arith.maximumf %99, %100 : vector<32x128xf32>
    %102 = arith.maximumf %89, %101 : vector<32x128xf32>
    %c7 = arith.constant 7 : index
    %c0_52 = arith.constant 0 : index
    %c0_53 = arith.constant 0 : index
    %103 = vector.load %arg2[%c7, %c0_52, %c0_53] : memref<8x32x128xf32, #tpu.memory_space<vmem>>, vector<1x32x128xf32>
    %104 = vector.shape_cast %103 : vector<1x32x128xf32> to vector<32x128xf32>
    %105 = arith.truncf %104 : vector<32x128xf32> to vector<32x128xbf16>
    %cst_54 = arith.constant dense<0.000000e+00> : vector<32x128xf32>
    %106 = tpu.matmul %3, %105, %cst_54 {dimension_numbers = #tpu.dot_dimension_numbers<[1], [0], [0], [1], [0, 0, 1, 1], [], []>} : vector<32x32xbf16>, vector<32x128xbf16>, vector<32x128xf32> -> vector<32x128xf32>
    %107 = arith.addf %106, %7 : vector<32x128xf32>
    %cst_55 = arith.constant 0.000000e+00 : f32
    %108 = vector.broadcast %cst_55 : f32 to vector<32x128xf32>
    %109 = arith.maximumf %107, %108 : vector<32x128xf32>
    %110 = arith.truncf %109 : vector<32x128xf32> to vector<32x128xbf16>
    %cst_56 = arith.constant dense<0.000000e+00> : vector<32x128xf32>
    %111 = tpu.matmul %4, %110, %cst_56 {dimension_numbers = #tpu.dot_dimension_numbers<[1], [0], [0], [1], [0, 0, 1, 1], [], []>} : vector<32x32xbf16>, vector<32x128xbf16>, vector<32x128xf32> -> vector<32x128xf32>
    %112 = arith.addf %111, %10 : vector<32x128xf32>
    %cst_57 = arith.constant 0.000000e+00 : f32
    %113 = vector.broadcast %cst_57 : f32 to vector<32x128xf32>
    %114 = arith.maximumf %112, %113 : vector<32x128xf32>
    %115 = arith.maximumf %102, %114 : vector<32x128xf32>
    %c0_58 = arith.constant 0 : index
    %c0_59 = arith.constant 0 : index
    %116 = vector.load %arg7[%c0_58, %c0_59] : memref<32x128xf32, #tpu.memory_space<vmem>>, vector<32x128xf32>
    tpu.vector_store %arg7[%c0_58, %c0_59], %115 {strides = array<i32>} : memref<32x128xf32, #tpu.memory_space<vmem>>, vector<32x128xf32>,
    return
  }
  func.func @transform_0(%arg0: i32, %arg1: i32) -> (i32, i32, i32) {
    %c0_i32 = arith.constant 0 : i32
    %c0_i32_0 = arith.constant 0 : i32
    return %arg1, %c0_i32, %arg0 : i32, i32, i32
  }
  func.func @transform_1(%arg0: i32, %arg1: i32) -> (i32, i32) {
    %c0_i32 = arith.constant 0 : i32
    %c0_i32_0 = arith.constant 0 : i32
    %c0_i32_1 = arith.constant 0 : i32
    return %c0_i32, %c0_i32_0 : i32, i32
  }
  func.func @transform_2(%arg0: i32, %arg1: i32) -> (i32, i32) {
    %c0_i32 = arith.constant 0 : i32
    %c0_i32_0 = arith.constant 0 : i32
    %c0_i32_1 = arith.constant 0 : i32
    return %c0_i32, %c0_i32_0 : i32, i32
  }
  func.func @transform_3(%arg0: i32, %arg1: i32) -> (i32, i32) {
    %c0_i32 = arith.constant 0 : i32
    %c0_i32_0 = arith.constant 0 : i32
    %c0_i32_1 = arith.constant 0 : i32
    return %c0_i32, %c0_i32_0 : i32, i32
  }
  func.func @transform_4(%arg0: i32, %arg1: i32) -> (i32, i32) {
    %c0_i32 = arith.constant 0 : i32
    %c0_i32_0 = arith.constant 0 : i32
    %c0_i32_1 = arith.constant 0 : i32
    return %c0_i32, %c0_i32_0 : i32, i32
  }
  func.func @transform_5(%arg0: i32, %arg1: i32) -> (i32, i32) {
    %c0_i32 = arith.constant 0 : i32
    %c0_i32_0 = arith.constant 0 : i32
    return %c0_i32, %arg0 : i32, i32
  }
}

module attributes {stable_mosaic.version = 11 : i64} {
  func.func @_local_op_kernel(%arg0: i32, %arg1: i32, %arg2: memref<8x64x16xf32, #tpu.memory_space<vmem>>, %arg3: memref<64x64xbf16, #tpu.memory_space<vmem>>, %arg4: memref<64x1xf32, #tpu.memory_space<vmem>>, %arg5: memref<64x64xbf16, #tpu.memory_space<vmem>>, %arg6: memref<64x1xf32, #tpu.memory_space<vmem>>, %arg7: memref<64x16xf32, #tpu.memory_space<vmem>>) attributes {dimension_semantics = [#tpu.dimension_semantics<parallel>, #tpu.dimension_semantics<arbitrary>], iteration_bounds = array<i64: 1, 4>, scalar_prefetch = 0 : i64, scratch_operands = 0 : i64, tpu.core_type = #tpu.core_type<tc>, window_params = [{transform_indices = @transform_0, window_bounds = array<i64: 8, 64, 16>}, {pipeline_mode = #tpu.pipeline_mode<synchronous>, transform_indices = @transform_1, window_bounds = array<i64: 64, 64>}, {pipeline_mode = #tpu.pipeline_mode<synchronous>, transform_indices = @transform_2, window_bounds = array<i64: 64, 1>}, {pipeline_mode = #tpu.pipeline_mode<synchronous>, transform_indices = @transform_3, window_bounds = array<i64: 64, 64>}, {pipeline_mode = #tpu.pipeline_mode<synchronous>, transform_indices = @transform_4, window_bounds = array<i64: 64, 1>}, {transform_indices = @transform_5, window_bounds = array<i64: 64, 16>}]} {
    %c0_i32 = arith.constant 0 : i32
    %0 = arith.cmpi eq, %arg1, %c0_i32 : i32
    %1 = arith.extui %0 : i1 to i32
    %c0_i32_0 = arith.constant 0 : i32
    %2 = arith.cmpi ne, %1, %c0_i32_0 : i32
    scf.if %2 {
      %cst_60 = arith.constant 0.000000e+00 : f32
      %117 = vector.broadcast %cst_60 : f32 to vector<64x16xf32>
      %c0_61 = arith.constant 0 : index
      %c0_62 = arith.constant 0 : index
      %118 = vector.load %arg7[%c0_61, %c0_62] : memref<64x16xf32, #tpu.memory_space<vmem>>, vector<64x16xf32>
      tpu.vector_store %arg7[%c0_61, %c0_62], %117 {strides = array<i32>} : memref<64x16xf32, #tpu.memory_space<vmem>>, vector<64x16xf32>,
    } else {
    }
    %c0 = arith.constant 0 : index
    %c0_1 = arith.constant 0 : index
    %3 = vector.load %arg3[%c0, %c0_1] : memref<64x64xbf16, #tpu.memory_space<vmem>>, vector<64x64xbf16>
    %c0_2 = arith.constant 0 : index
    %c0_3 = arith.constant 0 : index
    %4 = vector.load %arg5[%c0_2, %c0_3] : memref<64x64xbf16, #tpu.memory_space<vmem>>, vector<64x64xbf16>
    %c0_4 = arith.constant 0 : index
    %c0_5 = arith.constant 0 : index
    %5 = vector.load %arg4[%c0_4, %c0_5] : memref<64x1xf32, #tpu.memory_space<vmem>>, vector<64x1xf32>
    %6 = vector.shape_cast %5 : vector<64x1xf32> to vector<64x1xf32>
    %7 = vector.broadcast %6 : vector<64x1xf32> to vector<64x16xf32>
    %c0_6 = arith.constant 0 : index
    %c0_7 = arith.constant 0 : index
    %8 = vector.load %arg6[%c0_6, %c0_7] : memref<64x1xf32, #tpu.memory_space<vmem>>, vector<64x1xf32>
    %9 = vector.shape_cast %8 : vector<64x1xf32> to vector<64x1xf32>
    %10 = vector.broadcast %9 : vector<64x1xf32> to vector<64x16xf32>
    %c0_8 = arith.constant 0 : index
    %c0_9 = arith.constant 0 : index
    %11 = vector.load %arg7[%c0_8, %c0_9] : memref<64x16xf32, #tpu.memory_space<vmem>>, vector<64x16xf32>
    %c0_10 = arith.constant 0 : index
    %c0_11 = arith.constant 0 : index
    %c0_12 = arith.constant 0 : index
    %12 = vector.load %arg2[%c0_10, %c0_11, %c0_12] : memref<8x64x16xf32, #tpu.memory_space<vmem>>, vector<1x64x16xf32>
    %13 = vector.shape_cast %12 : vector<1x64x16xf32> to vector<64x16xf32>
    %14 = arith.truncf %13 : vector<64x16xf32> to vector<64x16xbf16>
    %cst = arith.constant dense<0.000000e+00> : vector<64x16xf32>
    %15 = tpu.matmul %3, %14, %cst {dimension_numbers = #tpu.dot_dimension_numbers<[1], [0], [0], [1], [0, 0, 1, 1], [], []>} : vector<64x64xbf16>, vector<64x16xbf16>, vector<64x16xf32> -> vector<64x16xf32>
    %16 = arith.addf %15, %7 : vector<64x16xf32>
    %cst_13 = arith.constant 0.000000e+00 : f32
    %17 = vector.broadcast %cst_13 : f32 to vector<64x16xf32>
    %18 = arith.maximumf %16, %17 : vector<64x16xf32>
    %19 = arith.truncf %18 : vector<64x16xf32> to vector<64x16xbf16>
    %cst_14 = arith.constant dense<0.000000e+00> : vector<64x16xf32>
    %20 = tpu.matmul %4, %19, %cst_14 {dimension_numbers = #tpu.dot_dimension_numbers<[1], [0], [0], [1], [0, 0, 1, 1], [], []>} : vector<64x64xbf16>, vector<64x16xbf16>, vector<64x16xf32> -> vector<64x16xf32>
    %21 = arith.addf %20, %10 : vector<64x16xf32>
    %cst_15 = arith.constant 0.000000e+00 : f32
    %22 = vector.broadcast %cst_15 : f32 to vector<64x16xf32>
    %23 = arith.maximumf %21, %22 : vector<64x16xf32>
    %24 = arith.maximumf %11, %23 : vector<64x16xf32>
    %c1 = arith.constant 1 : index
    %c0_16 = arith.constant 0 : index
    %c0_17 = arith.constant 0 : index
    %25 = vector.load %arg2[%c1, %c0_16, %c0_17] : memref<8x64x16xf32, #tpu.memory_space<vmem>>, vector<1x64x16xf32>
    %26 = vector.shape_cast %25 : vector<1x64x16xf32> to vector<64x16xf32>
    %27 = arith.truncf %26 : vector<64x16xf32> to vector<64x16xbf16>
    %cst_18 = arith.constant dense<0.000000e+00> : vector<64x16xf32>
    %28 = tpu.matmul %3, %27, %cst_18 {dimension_numbers = #tpu.dot_dimension_numbers<[1], [0], [0], [1], [0, 0, 1, 1], [], []>} : vector<64x64xbf16>, vector<64x16xbf16>, vector<64x16xf32> -> vector<64x16xf32>
    %29 = arith.addf %28, %7 : vector<64x16xf32>
    %cst_19 = arith.constant 0.000000e+00 : f32
    %30 = vector.broadcast %cst_19 : f32 to vector<64x16xf32>
    %31 = arith.maximumf %29, %30 : vector<64x16xf32>
    %32 = arith.truncf %31 : vector<64x16xf32> to vector<64x16xbf16>
    %cst_20 = arith.constant dense<0.000000e+00> : vector<64x16xf32>
    %33 = tpu.matmul %4, %32, %cst_20 {dimension_numbers = #tpu.dot_dimension_numbers<[1], [0], [0], [1], [0, 0, 1, 1], [], []>} : vector<64x64xbf16>, vector<64x16xbf16>, vector<64x16xf32> -> vector<64x16xf32>
    %34 = arith.addf %33, %10 : vector<64x16xf32>
    %cst_21 = arith.constant 0.000000e+00 : f32
    %35 = vector.broadcast %cst_21 : f32 to vector<64x16xf32>
    %36 = arith.maximumf %34, %35 : vector<64x16xf32>
    %37 = arith.maximumf %24, %36 : vector<64x16xf32>
    %c2 = arith.constant 2 : index
    %c0_22 = arith.constant 0 : index
    %c0_23 = arith.constant 0 : index
    %38 = vector.load %arg2[%c2, %c0_22, %c0_23] : memref<8x64x16xf32, #tpu.memory_space<vmem>>, vector<1x64x16xf32>
    %39 = vector.shape_cast %38 : vector<1x64x16xf32> to vector<64x16xf32>
    %40 = arith.truncf %39 : vector<64x16xf32> to vector<64x16xbf16>
    %cst_24 = arith.constant dense<0.000000e+00> : vector<64x16xf32>
    %41 = tpu.matmul %3, %40, %cst_24 {dimension_numbers = #tpu.dot_dimension_numbers<[1], [0], [0], [1], [0, 0, 1, 1], [], []>} : vector<64x64xbf16>, vector<64x16xbf16>, vector<64x16xf32> -> vector<64x16xf32>
    %42 = arith.addf %41, %7 : vector<64x16xf32>
    %cst_25 = arith.constant 0.000000e+00 : f32
    %43 = vector.broadcast %cst_25 : f32 to vector<64x16xf32>
    %44 = arith.maximumf %42, %43 : vector<64x16xf32>
    %45 = arith.truncf %44 : vector<64x16xf32> to vector<64x16xbf16>
    %cst_26 = arith.constant dense<0.000000e+00> : vector<64x16xf32>
    %46 = tpu.matmul %4, %45, %cst_26 {dimension_numbers = #tpu.dot_dimension_numbers<[1], [0], [0], [1], [0, 0, 1, 1], [], []>} : vector<64x64xbf16>, vector<64x16xbf16>, vector<64x16xf32> -> vector<64x16xf32>
    %47 = arith.addf %46, %10 : vector<64x16xf32>
    %cst_27 = arith.constant 0.000000e+00 : f32
    %48 = vector.broadcast %cst_27 : f32 to vector<64x16xf32>
    %49 = arith.maximumf %47, %48 : vector<64x16xf32>
    %50 = arith.maximumf %37, %49 : vector<64x16xf32>
    %c3 = arith.constant 3 : index
    %c0_28 = arith.constant 0 : index
    %c0_29 = arith.constant 0 : index
    %51 = vector.load %arg2[%c3, %c0_28, %c0_29] : memref<8x64x16xf32, #tpu.memory_space<vmem>>, vector<1x64x16xf32>
    %52 = vector.shape_cast %51 : vector<1x64x16xf32> to vector<64x16xf32>
    %53 = arith.truncf %52 : vector<64x16xf32> to vector<64x16xbf16>
    %cst_30 = arith.constant dense<0.000000e+00> : vector<64x16xf32>
    %54 = tpu.matmul %3, %53, %cst_30 {dimension_numbers = #tpu.dot_dimension_numbers<[1], [0], [0], [1], [0, 0, 1, 1], [], []>} : vector<64x64xbf16>, vector<64x16xbf16>, vector<64x16xf32> -> vector<64x16xf32>
    %55 = arith.addf %54, %7 : vector<64x16xf32>
    %cst_31 = arith.constant 0.000000e+00 : f32
    %56 = vector.broadcast %cst_31 : f32 to vector<64x16xf32>
    %57 = arith.maximumf %55, %56 : vector<64x16xf32>
    %58 = arith.truncf %57 : vector<64x16xf32> to vector<64x16xbf16>
    %cst_32 = arith.constant dense<0.000000e+00> : vector<64x16xf32>
    %59 = tpu.matmul %4, %58, %cst_32 {dimension_numbers = #tpu.dot_dimension_numbers<[1], [0], [0], [1], [0, 0, 1, 1], [], []>} : vector<64x64xbf16>, vector<64x16xbf16>, vector<64x16xf32> -> vector<64x16xf32>
    %60 = arith.addf %59, %10 : vector<64x16xf32>
    %cst_33 = arith.constant 0.000000e+00 : f32
    %61 = vector.broadcast %cst_33 : f32 to vector<64x16xf32>
    %62 = arith.maximumf %60, %61 : vector<64x16xf32>
    %63 = arith.maximumf %50, %62 : vector<64x16xf32>
    %c4 = arith.constant 4 : index
    %c0_34 = arith.constant 0 : index
    %c0_35 = arith.constant 0 : index
    %64 = vector.load %arg2[%c4, %c0_34, %c0_35] : memref<8x64x16xf32, #tpu.memory_space<vmem>>, vector<1x64x16xf32>
    %65 = vector.shape_cast %64 : vector<1x64x16xf32> to vector<64x16xf32>
    %66 = arith.truncf %65 : vector<64x16xf32> to vector<64x16xbf16>
    %cst_36 = arith.constant dense<0.000000e+00> : vector<64x16xf32>
    %67 = tpu.matmul %3, %66, %cst_36 {dimension_numbers = #tpu.dot_dimension_numbers<[1], [0], [0], [1], [0, 0, 1, 1], [], []>} : vector<64x64xbf16>, vector<64x16xbf16>, vector<64x16xf32> -> vector<64x16xf32>
    %68 = arith.addf %67, %7 : vector<64x16xf32>
    %cst_37 = arith.constant 0.000000e+00 : f32
    %69 = vector.broadcast %cst_37 : f32 to vector<64x16xf32>
    %70 = arith.maximumf %68, %69 : vector<64x16xf32>
    %71 = arith.truncf %70 : vector<64x16xf32> to vector<64x16xbf16>
    %cst_38 = arith.constant dense<0.000000e+00> : vector<64x16xf32>
    %72 = tpu.matmul %4, %71, %cst_38 {dimension_numbers = #tpu.dot_dimension_numbers<[1], [0], [0], [1], [0, 0, 1, 1], [], []>} : vector<64x64xbf16>, vector<64x16xbf16>, vector<64x16xf32> -> vector<64x16xf32>
    %73 = arith.addf %72, %10 : vector<64x16xf32>
    %cst_39 = arith.constant 0.000000e+00 : f32
    %74 = vector.broadcast %cst_39 : f32 to vector<64x16xf32>
    %75 = arith.maximumf %73, %74 : vector<64x16xf32>
    %76 = arith.maximumf %63, %75 : vector<64x16xf32>
    %c5 = arith.constant 5 : index
    %c0_40 = arith.constant 0 : index
    %c0_41 = arith.constant 0 : index
    %77 = vector.load %arg2[%c5, %c0_40, %c0_41] : memref<8x64x16xf32, #tpu.memory_space<vmem>>, vector<1x64x16xf32>
    %78 = vector.shape_cast %77 : vector<1x64x16xf32> to vector<64x16xf32>
    %79 = arith.truncf %78 : vector<64x16xf32> to vector<64x16xbf16>
    %cst_42 = arith.constant dense<0.000000e+00> : vector<64x16xf32>
    %80 = tpu.matmul %3, %79, %cst_42 {dimension_numbers = #tpu.dot_dimension_numbers<[1], [0], [0], [1], [0, 0, 1, 1], [], []>} : vector<64x64xbf16>, vector<64x16xbf16>, vector<64x16xf32> -> vector<64x16xf32>
    %81 = arith.addf %80, %7 : vector<64x16xf32>
    %cst_43 = arith.constant 0.000000e+00 : f32
    %82 = vector.broadcast %cst_43 : f32 to vector<64x16xf32>
    %83 = arith.maximumf %81, %82 : vector<64x16xf32>
    %84 = arith.truncf %83 : vector<64x16xf32> to vector<64x16xbf16>
    %cst_44 = arith.constant dense<0.000000e+00> : vector<64x16xf32>
    %85 = tpu.matmul %4, %84, %cst_44 {dimension_numbers = #tpu.dot_dimension_numbers<[1], [0], [0], [1], [0, 0, 1, 1], [], []>} : vector<64x64xbf16>, vector<64x16xbf16>, vector<64x16xf32> -> vector<64x16xf32>
    %86 = arith.addf %85, %10 : vector<64x16xf32>
    %cst_45 = arith.constant 0.000000e+00 : f32
    %87 = vector.broadcast %cst_45 : f32 to vector<64x16xf32>
    %88 = arith.maximumf %86, %87 : vector<64x16xf32>
    %89 = arith.maximumf %76, %88 : vector<64x16xf32>
    %c6 = arith.constant 6 : index
    %c0_46 = arith.constant 0 : index
    %c0_47 = arith.constant 0 : index
    %90 = vector.load %arg2[%c6, %c0_46, %c0_47] : memref<8x64x16xf32, #tpu.memory_space<vmem>>, vector<1x64x16xf32>
    %91 = vector.shape_cast %90 : vector<1x64x16xf32> to vector<64x16xf32>
    %92 = arith.truncf %91 : vector<64x16xf32> to vector<64x16xbf16>
    %cst_48 = arith.constant dense<0.000000e+00> : vector<64x16xf32>
    %93 = tpu.matmul %3, %92, %cst_48 {dimension_numbers = #tpu.dot_dimension_numbers<[1], [0], [0], [1], [0, 0, 1, 1], [], []>} : vector<64x64xbf16>, vector<64x16xbf16>, vector<64x16xf32> -> vector<64x16xf32>
    %94 = arith.addf %93, %7 : vector<64x16xf32>
    %cst_49 = arith.constant 0.000000e+00 : f32
    %95 = vector.broadcast %cst_49 : f32 to vector<64x16xf32>
    %96 = arith.maximumf %94, %95 : vector<64x16xf32>
    %97 = arith.truncf %96 : vector<64x16xf32> to vector<64x16xbf16>
    %cst_50 = arith.constant dense<0.000000e+00> : vector<64x16xf32>
    %98 = tpu.matmul %4, %97, %cst_50 {dimension_numbers = #tpu.dot_dimension_numbers<[1], [0], [0], [1], [0, 0, 1, 1], [], []>} : vector<64x64xbf16>, vector<64x16xbf16>, vector<64x16xf32> -> vector<64x16xf32>
    %99 = arith.addf %98, %10 : vector<64x16xf32>
    %cst_51 = arith.constant 0.000000e+00 : f32
    %100 = vector.broadcast %cst_51 : f32 to vector<64x16xf32>
    %101 = arith.maximumf %99, %100 : vector<64x16xf32>
    %102 = arith.maximumf %89, %101 : vector<64x16xf32>
    %c7 = arith.constant 7 : index
    %c0_52 = arith.constant 0 : index
    %c0_53 = arith.constant 0 : index
    %103 = vector.load %arg2[%c7, %c0_52, %c0_53] : memref<8x64x16xf32, #tpu.memory_space<vmem>>, vector<1x64x16xf32>
    %104 = vector.shape_cast %103 : vector<1x64x16xf32> to vector<64x16xf32>
    %105 = arith.truncf %104 : vector<64x16xf32> to vector<64x16xbf16>
    %cst_54 = arith.constant dense<0.000000e+00> : vector<64x16xf32>
    %106 = tpu.matmul %3, %105, %cst_54 {dimension_numbers = #tpu.dot_dimension_numbers<[1], [0], [0], [1], [0, 0, 1, 1], [], []>} : vector<64x64xbf16>, vector<64x16xbf16>, vector<64x16xf32> -> vector<64x16xf32>
    %107 = arith.addf %106, %7 : vector<64x16xf32>
    %cst_55 = arith.constant 0.000000e+00 : f32
    %108 = vector.broadcast %cst_55 : f32 to vector<64x16xf32>
    %109 = arith.maximumf %107, %108 : vector<64x16xf32>
    %110 = arith.truncf %109 : vector<64x16xf32> to vector<64x16xbf16>
    %cst_56 = arith.constant dense<0.000000e+00> : vector<64x16xf32>
    %111 = tpu.matmul %4, %110, %cst_56 {dimension_numbers = #tpu.dot_dimension_numbers<[1], [0], [0], [1], [0, 0, 1, 1], [], []>} : vector<64x64xbf16>, vector<64x16xbf16>, vector<64x16xf32> -> vector<64x16xf32>
    %112 = arith.addf %111, %10 : vector<64x16xf32>
    %cst_57 = arith.constant 0.000000e+00 : f32
    %113 = vector.broadcast %cst_57 : f32 to vector<64x16xf32>
    %114 = arith.maximumf %112, %113 : vector<64x16xf32>
    %115 = arith.maximumf %102, %114 : vector<64x16xf32>
    %c0_58 = arith.constant 0 : index
    %c0_59 = arith.constant 0 : index
    %116 = vector.load %arg7[%c0_58, %c0_59] : memref<64x16xf32, #tpu.memory_space<vmem>>, vector<64x16xf32>
    tpu.vector_store %arg7[%c0_58, %c0_59], %115 {strides = array<i32>} : memref<64x16xf32, #tpu.memory_space<vmem>>, vector<64x16xf32>,
    return
  }
  func.func @transform_0(%arg0: i32, %arg1: i32) -> (i32, i32, i32) {
    %c0_i32 = arith.constant 0 : i32
    %c0_i32_0 = arith.constant 0 : i32
    return %arg1, %c0_i32, %arg0 : i32, i32, i32
  }
  func.func @transform_1(%arg0: i32, %arg1: i32) -> (i32, i32) {
    %c0_i32 = arith.constant 0 : i32
    %c0_i32_0 = arith.constant 0 : i32
    %c0_i32_1 = arith.constant 0 : i32
    return %c0_i32, %c0_i32_0 : i32, i32
  }
  func.func @transform_2(%arg0: i32, %arg1: i32) -> (i32, i32) {
    %c0_i32 = arith.constant 0 : i32
    %c0_i32_0 = arith.constant 0 : i32
    %c0_i32_1 = arith.constant 0 : i32
    return %c0_i32, %c0_i32_0 : i32, i32
  }
  func.func @transform_3(%arg0: i32, %arg1: i32) -> (i32, i32) {
    %c0_i32 = arith.constant 0 : i32
    %c0_i32_0 = arith.constant 0 : i32
    %c0_i32_1 = arith.constant 0 : i32
    return %c0_i32, %c0_i32_0 : i32, i32
  }
  func.func @transform_4(%arg0: i32, %arg1: i32) -> (i32, i32) {
    %c0_i32 = arith.constant 0 : i32
    %c0_i32_0 = arith.constant 0 : i32
    %c0_i32_1 = arith.constant 0 : i32
    return %c0_i32, %c0_i32_0 : i32, i32
  }
  func.func @transform_5(%arg0: i32, %arg1: i32) -> (i32, i32) {
    %c0_i32 = arith.constant 0 : i32
    %c0_i32_0 = arith.constant 0 : i32
    return %c0_i32, %arg0 : i32, i32
  }
}

module attributes {stable_mosaic.version = 11 : i64} {
  func.func @_conv_kernel(%arg0: i32, %arg1: memref<64x16xf32, #tpu.memory_space<vmem>>, %arg2: memref<64x64xbf16, #tpu.memory_space<vmem>>, %arg3: memref<64x1xf32, #tpu.memory_space<vmem>>, %arg4: memref<64x16xf32, #tpu.memory_space<vmem>>) attributes {dimension_semantics = [#tpu.dimension_semantics<parallel>], iteration_bounds = array<i64: 1>, scalar_prefetch = 0 : i64, scratch_operands = 0 : i64, tpu.core_type = #tpu.core_type<tc>, window_params = [{transform_indices = @transform_0, window_bounds = array<i64: 64, 16>}, {pipeline_mode = #tpu.pipeline_mode<synchronous>, transform_indices = @transform_1, window_bounds = array<i64: 64, 64>}, {pipeline_mode = #tpu.pipeline_mode<synchronous>, transform_indices = @transform_2, window_bounds = array<i64: 64, 1>}, {transform_indices = @transform_3, window_bounds = array<i64: 64, 16>}]} {
    %c0 = arith.constant 0 : index
    %c0_0 = arith.constant 0 : index
    %0 = vector.load %arg1[%c0, %c0_0] : memref<64x16xf32, #tpu.memory_space<vmem>>, vector<64x16xf32>
    %1 = arith.truncf %0 : vector<64x16xf32> to vector<64x16xbf16>
    %c0_1 = arith.constant 0 : index
    %c0_2 = arith.constant 0 : index
    %2 = vector.load %arg2[%c0_1, %c0_2] : memref<64x64xbf16, #tpu.memory_space<vmem>>, vector<64x64xbf16>
    %cst = arith.constant dense<0.000000e+00> : vector<64x16xf32>
    %3 = tpu.matmul %2, %1, %cst {dimension_numbers = #tpu.dot_dimension_numbers<[1], [0], [0], [1], [0, 0, 1, 1], [], []>} : vector<64x64xbf16>, vector<64x16xbf16>, vector<64x16xf32> -> vector<64x16xf32>
    %c0_3 = arith.constant 0 : index
    %c0_4 = arith.constant 0 : index
    %4 = vector.load %arg3[%c0_3, %c0_4] : memref<64x1xf32, #tpu.memory_space<vmem>>, vector<64x1xf32>
    %5 = vector.broadcast %4 : vector<64x1xf32> to vector<64x16xf32>
    %6 = arith.addf %3, %5 : vector<64x16xf32>
    %cst_5 = arith.constant 0.000000e+00 : f32
    %7 = vector.broadcast %cst_5 : f32 to vector<64x16xf32>
    %8 = arith.maximumf %6, %7 : vector<64x16xf32>
    %c0_6 = arith.constant 0 : index
    %c0_7 = arith.constant 0 : index
    %9 = vector.load %arg4[%c0_6, %c0_7] : memref<64x16xf32, #tpu.memory_space<vmem>>, vector<64x16xf32>
    tpu.vector_store %arg4[%c0_6, %c0_7], %8 {strides = array<i32>} : memref<64x16xf32, #tpu.memory_space<vmem>>, vector<64x16xf32>,
    return
  }
  func.func @transform_0(%arg0: i32) -> (i32, i32) {
    %c0_i32 = arith.constant 0 : i32
    %c0_i32_0 = arith.constant 0 : i32
    return %c0_i32, %arg0 : i32, i32
  }
  func.func @transform_1(%arg0: i32) -> (i32, i32) {
    %c0_i32 = arith.constant 0 : i32
    %c0_i32_0 = arith.constant 0 : i32
    %c0_i32_1 = arith.constant 0 : i32
    return %c0_i32, %c0_i32_0 : i32, i32
  }
  func.func @transform_2(%arg0: i32) -> (i32, i32) {
    %c0_i32 = arith.constant 0 : i32
    %c0_i32_0 = arith.constant 0 : i32
    %c0_i32_1 = arith.constant 0 : i32
    return %c0_i32, %c0_i32_0 : i32, i32
  }
  func.func @transform_3(%arg0: i32) -> (i32, i32) {
    %c0_i32 = arith.constant 0 : i32
    %c0_i32_0 = arith.constant 0 : i32
    return %c0_i32, %arg0 : i32, i32
  }
}

module attributes {stable_mosaic.version = 11 : i64} {
  func.func @_sa_layer_kernel(%arg0: i32, %arg1: memref<1x64x8xf32, #tpu.memory_space<vmem>>, %arg2: memref<16x64xbf16, #tpu.memory_space<vmem>>, %arg3: memref<64x64xbf16, #tpu.memory_space<vmem>>, %arg4: memref<64x1xf32, #tpu.memory_space<vmem>>, %arg5: memref<64x64xbf16, #tpu.memory_space<vmem>>, %arg6: memref<64x1xf32, #tpu.memory_space<vmem>>, %arg7: memref<1x64x8xf32, #tpu.memory_space<vmem>>) attributes {dimension_semantics = [#tpu.dimension_semantics<parallel>], iteration_bounds = array<i64: 2>, scalar_prefetch = 0 : i64, scratch_operands = 0 : i64, tpu.core_type = #tpu.core_type<tc>, window_params = [{transform_indices = @transform_0, window_bounds = array<i64: 1, 64, 8>}, {pipeline_mode = #tpu.pipeline_mode<synchronous>, transform_indices = @transform_1, window_bounds = array<i64: 16, 64>}, {pipeline_mode = #tpu.pipeline_mode<synchronous>, transform_indices = @transform_2, window_bounds = array<i64: 64, 64>}, {pipeline_mode = #tpu.pipeline_mode<synchronous>, transform_indices = @transform_3, window_bounds = array<i64: 64, 1>}, {pipeline_mode = #tpu.pipeline_mode<synchronous>, transform_indices = @transform_4, window_bounds = array<i64: 64, 64>}, {pipeline_mode = #tpu.pipeline_mode<synchronous>, transform_indices = @transform_5, window_bounds = array<i64: 64, 1>}, {transform_indices = @transform_6, window_bounds = array<i64: 1, 64, 8>}]} {
    %c0 = arith.constant 0 : index
    %c0_0 = arith.constant 0 : index
    %c0_1 = arith.constant 0 : index
    %0 = vector.load %arg1[%c0, %c0_0, %c0_1] : memref<1x64x8xf32, #tpu.memory_space<vmem>>, vector<1x64x8xf32>
    %1 = vector.shape_cast %0 : vector<1x64x8xf32> to vector<64x8xf32>
    %2 = arith.truncf %1 : vector<64x8xf32> to vector<64x8xbf16>
    %c0_2 = arith.constant 0 : index
    %c0_3 = arith.constant 0 : index
    %3 = vector.load %arg2[%c0_2, %c0_3] : memref<16x64xbf16, #tpu.memory_space<vmem>>, vector<16x64xbf16>
    %cst = arith.constant dense<0.000000e+00> : vector<16x8xf32>
    %4 = tpu.matmul %3, %2, %cst {dimension_numbers = #tpu.dot_dimension_numbers<[1], [0], [0], [1], [0, 0, 1, 1], [], []>} : vector<16x64xbf16>, vector<64x8xbf16>, vector<16x8xf32> -> vector<16x8xf32>
    %c0_4 = arith.constant 0 : index
    %c0_5 = arith.constant 0 : index
    %5 = vector.load %arg3[%c0_4, %c0_5] : memref<64x64xbf16, #tpu.memory_space<vmem>>, vector<64x64xbf16>
    %cst_6 = arith.constant dense<0.000000e+00> : vector<64x8xf32>
    %6 = tpu.matmul %5, %2, %cst_6 {dimension_numbers = #tpu.dot_dimension_numbers<[1], [0], [0], [1], [0, 0, 1, 1], [], []>} : vector<64x64xbf16>, vector<64x8xbf16>, vector<64x8xf32> -> vector<64x8xf32>
    %c0_7 = arith.constant 0 : index
    %c0_8 = arith.constant 0 : index
    %7 = vector.load %arg4[%c0_7, %c0_8] : memref<64x1xf32, #tpu.memory_space<vmem>>, vector<64x1xf32>
    %8 = vector.broadcast %7 : vector<64x1xf32> to vector<64x8xf32>
    %9 = arith.addf %6, %8 : vector<64x8xf32>
    %10 = arith.truncf %4 : vector<16x8xf32> to vector<16x8xbf16>
    %cst_9 = arith.constant dense<0.000000e+00> : vector<8x8xf32>
    %11 = tpu.matmul %10, %10, %cst_9 {dimension_numbers = #tpu.dot_dimension_numbers<[0], [0], [1], [1], [0, 1, 1, 1], [], []>} : vector<16x8xbf16>, vector<16x8xbf16>, vector<8x8xf32> -> vector<8x8xf32>
    %cst_10 = arith.constant dense<0xFF800000> : vector<8xf32>
    %12 = vector.multi_reduction <maximumf>, %11, %cst_10 [1] : vector<8x8xf32> to vector<8xf32>
    %13 = vector.shape_cast %12 : vector<8xf32> to vector<8x1xf32>
    %14 = vector.broadcast %13 : vector<8x1xf32> to vector<8x8xf32>
    %15 = arith.subf %11, %14 : vector<8x8xf32>
    %16 = math.exp %15 : vector<8x8xf32>
    %cst_11 = arith.constant dense<0.000000e+00> : vector<8xf32>
    %17 = vector.multi_reduction <add>, %16, %cst_11 [1] : vector<8x8xf32> to vector<8xf32>
    %18 = vector.shape_cast %17 : vector<8xf32> to vector<8x1xf32>
    %19 = tpu.reciprocal %18 {approx = true} : vector<8x1xf32> -> vector<8x1xf32>
    %20 = vector.broadcast %19 : vector<8x1xf32> to vector<8x8xf32>
    %21 = arith.mulf %16, %20 : vector<8x8xf32>
    %cst_12 = arith.constant dense<0.000000e+00> : vector<8xf32>
    %22 = vector.multi_reduction <add>, %21, %cst_12 [0] : vector<8x8xf32> to vector<8xf32>
    %23 = vector.shape_cast %22 : vector<8xf32> to vector<1x8xf32>
    %cst_13 = arith.constant 9.99999971E-10 : f32
    %24 = vector.broadcast %cst_13 : f32 to vector<1x8xf32>
    %25 = arith.addf %24, %23 : vector<1x8xf32>
    %26 = tpu.reciprocal %25 {approx = true} : vector<1x8xf32> -> vector<1x8xf32>
    %27 = vector.broadcast %26 : vector<1x8xf32> to vector<8x8xf32>
    %28 = arith.mulf %21, %27 : vector<8x8xf32>
    %29 = arith.truncf %9 : vector<64x8xf32> to vector<64x8xbf16>
    %30 = arith.truncf %28 : vector<8x8xf32> to vector<8x8xbf16>
    %cst_14 = arith.constant dense<0.000000e+00> : vector<64x8xf32>
    %31 = tpu.matmul %29, %30, %cst_14 {dimension_numbers = #tpu.dot_dimension_numbers<[1], [0], [0], [1], [0, 0, 1, 1], [], []>} : vector<64x8xbf16>, vector<8x8xbf16>, vector<64x8xf32> -> vector<64x8xf32>
    %32 = arith.subf %1, %31 : vector<64x8xf32>
    %33 = arith.truncf %32 : vector<64x8xf32> to vector<64x8xbf16>
    %c0_15 = arith.constant 0 : index
    %c0_16 = arith.constant 0 : index
    %34 = vector.load %arg5[%c0_15, %c0_16] : memref<64x64xbf16, #tpu.memory_space<vmem>>, vector<64x64xbf16>
    %cst_17 = arith.constant dense<0.000000e+00> : vector<64x8xf32>
    %35 = tpu.matmul %34, %33, %cst_17 {dimension_numbers = #tpu.dot_dimension_numbers<[1], [0], [0], [1], [0, 0, 1, 1], [], []>} : vector<64x64xbf16>, vector<64x8xbf16>, vector<64x8xf32> -> vector<64x8xf32>
    %c0_18 = arith.constant 0 : index
    %c0_19 = arith.constant 0 : index
    %36 = vector.load %arg6[%c0_18, %c0_19] : memref<64x1xf32, #tpu.memory_space<vmem>>, vector<64x1xf32>
    %37 = vector.broadcast %36 : vector<64x1xf32> to vector<64x8xf32>
    %38 = arith.addf %35, %37 : vector<64x8xf32>
    %cst_20 = arith.constant 0.000000e+00 : f32
    %39 = vector.broadcast %cst_20 : f32 to vector<64x8xf32>
    %40 = arith.maximumf %38, %39 : vector<64x8xf32>
    %41 = arith.addf %1, %40 : vector<64x8xf32>
    %c0_21 = arith.constant 0 : index
    %c0_22 = arith.constant 0 : index
    %c0_23 = arith.constant 0 : index
    %42 = vector.load %arg7[%c0_21, %c0_22, %c0_23] : memref<1x64x8xf32, #tpu.memory_space<vmem>>, vector<1x64x8xf32>
    %43 = vector.shape_cast %42 : vector<1x64x8xf32> to vector<64x8xf32>
    %44 = vector.shape_cast %41 : vector<64x8xf32> to vector<1x64x8xf32>
    tpu.vector_store %arg7[%c0_21, %c0_22, %c0_23], %44 {strides = array<i32>} : memref<1x64x8xf32, #tpu.memory_space<vmem>>, vector<1x64x8xf32>,
    return
  }
  func.func @transform_0(%arg0: i32) -> (i32, i32, i32) {
    %c0_i32 = arith.constant 0 : i32
    %c0_i32_0 = arith.constant 0 : i32
    %c0_i32_1 = arith.constant 0 : i32
    return %arg0, %c0_i32, %c0_i32_0 : i32, i32, i32
  }
  func.func @transform_1(%arg0: i32) -> (i32, i32) {
    %c0_i32 = arith.constant 0 : i32
    %c0_i32_0 = arith.constant 0 : i32
    %c0_i32_1 = arith.constant 0 : i32
    return %c0_i32, %c0_i32_0 : i32, i32
  }
  func.func @transform_2(%arg0: i32) -> (i32, i32) {
    %c0_i32 = arith.constant 0 : i32
    %c0_i32_0 = arith.constant 0 : i32
    %c0_i32_1 = arith.constant 0 : i32
    return %c0_i32, %c0_i32_0 : i32, i32
  }
  func.func @transform_3(%arg0: i32) -> (i32, i32) {
    %c0_i32 = arith.constant 0 : i32
    %c0_i32_0 = arith.constant 0 : i32
    %c0_i32_1 = arith.constant 0 : i32
    return %c0_i32, %c0_i32_0 : i32, i32
  }
  func.func @transform_4(%arg0: i32) -> (i32, i32) {
    %c0_i32 = arith.constant 0 : i32
    %c0_i32_0 = arith.constant 0 : i32
    %c0_i32_1 = arith.constant 0 : i32
    return %c0_i32, %c0_i32_0 : i32, i32
  }
  func.func @transform_5(%arg0: i32) -> (i32, i32) {
    %c0_i32 = arith.constant 0 : i32
    %c0_i32_0 = arith.constant 0 : i32
    %c0_i32_1 = arith.constant 0 : i32
    return %c0_i32, %c0_i32_0 : i32, i32
  }
  func.func @transform_6(%arg0: i32) -> (i32, i32, i32) {
    %c0_i32 = arith.constant 0 : i32
    %c0_i32_0 = arith.constant 0 : i32
    %c0_i32_1 = arith.constant 0 : i32
    return %arg0, %c0_i32, %c0_i32_0 : i32, i32, i32
  }
}

module attributes {stable_mosaic.version = 11 : i64} {
  func.func @_conv_kernel(%arg0: i32, %arg1: memref<512x16xf32, #tpu.memory_space<vmem>>, %arg2: memref<128x512xbf16, #tpu.memory_space<vmem>>, %arg3: memref<128x1xf32, #tpu.memory_space<vmem>>, %arg4: memref<128x16xf32, #tpu.memory_space<vmem>>) attributes {dimension_semantics = [#tpu.dimension_semantics<parallel>], iteration_bounds = array<i64: 1>, scalar_prefetch = 0 : i64, scratch_operands = 0 : i64, tpu.core_type = #tpu.core_type<tc>, window_params = [{transform_indices = @transform_0, window_bounds = array<i64: 512, 16>}, {pipeline_mode = #tpu.pipeline_mode<synchronous>, transform_indices = @transform_1, window_bounds = array<i64: 128, 512>}, {pipeline_mode = #tpu.pipeline_mode<synchronous>, transform_indices = @transform_2, window_bounds = array<i64: 128, 1>}, {transform_indices = @transform_3, window_bounds = array<i64: 128, 16>}]} {
    %c0 = arith.constant 0 : index
    %c0_0 = arith.constant 0 : index
    %0 = vector.load %arg1[%c0, %c0_0] : memref<512x16xf32, #tpu.memory_space<vmem>>, vector<512x16xf32>
    %1 = arith.truncf %0 : vector<512x16xf32> to vector<512x16xbf16>
    %c0_1 = arith.constant 0 : index
    %c0_2 = arith.constant 0 : index
    %2 = vector.load %arg2[%c0_1, %c0_2] : memref<128x512xbf16, #tpu.memory_space<vmem>>, vector<128x512xbf16>
    %cst = arith.constant dense<0.000000e+00> : vector<128x16xf32>
    %3 = tpu.matmul %2, %1, %cst {dimension_numbers = #tpu.dot_dimension_numbers<[1], [0], [0], [1], [0, 0, 1, 1], [], []>} : vector<128x512xbf16>, vector<512x16xbf16>, vector<128x16xf32> -> vector<128x16xf32>
    %c0_3 = arith.constant 0 : index
    %c0_4 = arith.constant 0 : index
    %4 = vector.load %arg3[%c0_3, %c0_4] : memref<128x1xf32, #tpu.memory_space<vmem>>, vector<128x1xf32>
    %5 = vector.broadcast %4 : vector<128x1xf32> to vector<128x16xf32>
    %6 = arith.addf %3, %5 : vector<128x16xf32>
    %cst_5 = arith.constant 0.000000e+00 : f32
    %7 = vector.broadcast %cst_5 : f32 to vector<128x16xf32>
    %8 = arith.maximumf %6, %7 : vector<128x16xf32>
    %c0_6 = arith.constant 0 : index
    %c0_7 = arith.constant 0 : index
    %9 = vector.load %arg4[%c0_6, %c0_7] : memref<128x16xf32, #tpu.memory_space<vmem>>, vector<128x16xf32>
    tpu.vector_store %arg4[%c0_6, %c0_7], %8 {strides = array<i32>} : memref<128x16xf32, #tpu.memory_space<vmem>>, vector<128x16xf32>,
    return
  }
  func.func @transform_0(%arg0: i32) -> (i32, i32) {
    %c0_i32 = arith.constant 0 : i32
    %c0_i32_0 = arith.constant 0 : i32
    return %c0_i32, %arg0 : i32, i32
  }
  func.func @transform_1(%arg0: i32) -> (i32, i32) {
    %c0_i32 = arith.constant 0 : i32
    %c0_i32_0 = arith.constant 0 : i32
    %c0_i32_1 = arith.constant 0 : i32
    return %c0_i32, %c0_i32_0 : i32, i32
  }
  func.func @transform_2(%arg0: i32) -> (i32, i32) {
    %c0_i32 = arith.constant 0 : i32
    %c0_i32_0 = arith.constant 0 : i32
    %c0_i32_1 = arith.constant 0 : i32
    return %c0_i32, %c0_i32_0 : i32, i32
  }
  func.func @transform_3(%arg0: i32) -> (i32, i32) {
    %c0_i32 = arith.constant 0 : i32
    %c0_i32_0 = arith.constant 0 : i32
    return %c0_i32, %arg0 : i32, i32
  }
}

module attributes {stable_mosaic.version = 11 : i64} {
  func.func @_sqdist_kernel(%arg0: i32, %arg1: memref<1x5x64xf32, #tpu.memory_space<vmem>>, %arg2: memref<1x5x8xf32, #tpu.memory_space<vmem>>, %arg3: memref<1x64x8xf32, #tpu.memory_space<vmem>>) attributes {dimension_semantics = [#tpu.dimension_semantics<parallel>], iteration_bounds = array<i64: 2>, scalar_prefetch = 0 : i64, scratch_operands = 0 : i64, tpu.core_type = #tpu.core_type<tc>, window_params = [{transform_indices = @transform_0, window_bounds = array<i64: 1, 5, 64>}, {transform_indices = @transform_1, window_bounds = array<i64: 1, 5, 8>}, {transform_indices = @transform_2, window_bounds = array<i64: 1, 64, 8>}]} {
    %c0 = arith.constant 0 : index
    %c0_0 = arith.constant 0 : index
    %c0_1 = arith.constant 0 : index
    %0 = vector.load %arg1[%c0, %c0_0, %c0_1] : memref<1x5x64xf32, #tpu.memory_space<vmem>>, vector<1x5x64xf32>
    %1 = vector.shape_cast %0 : vector<1x5x64xf32> to vector<5x64xf32>
    %c0_2 = arith.constant 0 : index
    %c0_3 = arith.constant 0 : index
    %c0_4 = arith.constant 0 : index
    %2 = vector.load %arg2[%c0_2, %c0_3, %c0_4] : memref<1x5x8xf32, #tpu.memory_space<vmem>>, vector<1x5x8xf32>
    %3 = vector.shape_cast %2 : vector<1x5x8xf32> to vector<5x8xf32>
    %cst = arith.constant dense<0.000000e+00> : vector<64x8xf32>
    %4 = tpu.matmul %1, %3, %cst {dimension_numbers = #tpu.dot_dimension_numbers<[0], [0], [1], [1], [0, 1, 1, 1], [], []>} : vector<5x64xf32>, vector<5x8xf32>, vector<64x8xf32> -> vector<64x8xf32>
    %c0_5 = arith.constant 0 : index
    %c0_6 = arith.constant 0 : index
    %c0_7 = arith.constant 0 : index
    %5 = vector.load %arg3[%c0_5, %c0_6, %c0_7] : memref<1x64x8xf32, #tpu.memory_space<vmem>>, vector<1x64x8xf32>
    %6 = vector.shape_cast %5 : vector<1x64x8xf32> to vector<64x8xf32>
    %7 = vector.shape_cast %4 : vector<64x8xf32> to vector<1x64x8xf32>
    tpu.vector_store %arg3[%c0_5, %c0_6, %c0_7], %7 {strides = array<i32>} : memref<1x64x8xf32, #tpu.memory_space<vmem>>, vector<1x64x8xf32>,
    return
  }
  func.func @transform_0(%arg0: i32) -> (i32, i32, i32) {
    %c0_i32 = arith.constant 0 : i32
    %c0_i32_0 = arith.constant 0 : i32
    %c0_i32_1 = arith.constant 0 : i32
    return %arg0, %c0_i32, %c0_i32_0 : i32, i32, i32
  }
  func.func @transform_1(%arg0: i32) -> (i32, i32, i32) {
    %c0_i32 = arith.constant 0 : i32
    %c0_i32_0 = arith.constant 0 : i32
    %c0_i32_1 = arith.constant 0 : i32
    return %arg0, %c0_i32, %c0_i32_0 : i32, i32, i32
  }
  func.func @transform_2(%arg0: i32) -> (i32, i32, i32) {
    %c0_i32 = arith.constant 0 : i32
    %c0_i32_0 = arith.constant 0 : i32
    %c0_i32_1 = arith.constant 0 : i32
    return %arg0, %c0_i32, %c0_i32_0 : i32, i32, i32
  }
}

module attributes {stable_mosaic.version = 11 : i64} {
  func.func @_conv_kernel(%arg0: i32, %arg1: memref<160x128xf32, #tpu.memory_space<vmem>>, %arg2: memref<64x160xbf16, #tpu.memory_space<vmem>>, %arg3: memref<64x1xf32, #tpu.memory_space<vmem>>, %arg4: memref<64x128xf32, #tpu.memory_space<vmem>>) attributes {dimension_semantics = [#tpu.dimension_semantics<parallel>], iteration_bounds = array<i64: 1>, scalar_prefetch = 0 : i64, scratch_operands = 0 : i64, tpu.core_type = #tpu.core_type<tc>, window_params = [{transform_indices = @transform_0, window_bounds = array<i64: 160, 128>}, {pipeline_mode = #tpu.pipeline_mode<synchronous>, transform_indices = @transform_1, window_bounds = array<i64: 64, 160>}, {pipeline_mode = #tpu.pipeline_mode<synchronous>, transform_indices = @transform_2, window_bounds = array<i64: 64, 1>}, {transform_indices = @transform_3, window_bounds = array<i64: 64, 128>}]} {
    %c0 = arith.constant 0 : index
    %c0_0 = arith.constant 0 : index
    %0 = vector.load %arg1[%c0, %c0_0] : memref<160x128xf32, #tpu.memory_space<vmem>>, vector<160x128xf32>
    %1 = arith.truncf %0 : vector<160x128xf32> to vector<160x128xbf16>
    %c0_1 = arith.constant 0 : index
    %c0_2 = arith.constant 0 : index
    %2 = vector.load %arg2[%c0_1, %c0_2] : memref<64x160xbf16, #tpu.memory_space<vmem>>, vector<64x160xbf16>
    %cst = arith.constant dense<0.000000e+00> : vector<64x128xf32>
    %3 = tpu.matmul %2, %1, %cst {dimension_numbers = #tpu.dot_dimension_numbers<[1], [0], [0], [1], [0, 0, 1, 1], [], []>} : vector<64x160xbf16>, vector<160x128xbf16>, vector<64x128xf32> -> vector<64x128xf32>
    %c0_3 = arith.constant 0 : index
    %c0_4 = arith.constant 0 : index
    %4 = vector.load %arg3[%c0_3, %c0_4] : memref<64x1xf32, #tpu.memory_space<vmem>>, vector<64x1xf32>
    %5 = vector.broadcast %4 : vector<64x1xf32> to vector<64x128xf32>
    %6 = arith.addf %3, %5 : vector<64x128xf32>
    %cst_5 = arith.constant 0.000000e+00 : f32
    %7 = vector.broadcast %cst_5 : f32 to vector<64x128xf32>
    %8 = arith.maximumf %6, %7 : vector<64x128xf32>
    %c0_6 = arith.constant 0 : index
    %c0_7 = arith.constant 0 : index
    %9 = vector.load %arg4[%c0_6, %c0_7] : memref<64x128xf32, #tpu.memory_space<vmem>>, vector<64x128xf32>
    tpu.vector_store %arg4[%c0_6, %c0_7], %8 {strides = array<i32>} : memref<64x128xf32, #tpu.memory_space<vmem>>, vector<64x128xf32>,
    return
  }
  func.func @transform_0(%arg0: i32) -> (i32, i32) {
    %c0_i32 = arith.constant 0 : i32
    %c0_i32_0 = arith.constant 0 : i32
    return %c0_i32, %arg0 : i32, i32
  }
  func.func @transform_1(%arg0: i32) -> (i32, i32) {
    %c0_i32 = arith.constant 0 : i32
    %c0_i32_0 = arith.constant 0 : i32
    %c0_i32_1 = arith.constant 0 : i32
    return %c0_i32, %c0_i32_0 : i32, i32
  }
  func.func @transform_2(%arg0: i32) -> (i32, i32) {
    %c0_i32 = arith.constant 0 : i32
    %c0_i32_0 = arith.constant 0 : i32
    %c0_i32_1 = arith.constant 0 : i32
    return %c0_i32, %c0_i32_0 : i32, i32
  }
  func.func @transform_3(%arg0: i32) -> (i32, i32) {
    %c0_i32 = arith.constant 0 : i32
    %c0_i32_0 = arith.constant 0 : i32
    return %c0_i32, %arg0 : i32, i32
  }
}

module attributes {stable_mosaic.version = 11 : i64} {
  func.func @_sqdist_kernel(%arg0: i32, %arg1: memref<1x5x512xf32, #tpu.memory_space<vmem>>, %arg2: memref<1x5x64xf32, #tpu.memory_space<vmem>>, %arg3: memref<1x512x64xf32, #tpu.memory_space<vmem>>) attributes {dimension_semantics = [#tpu.dimension_semantics<parallel>], iteration_bounds = array<i64: 2>, scalar_prefetch = 0 : i64, scratch_operands = 0 : i64, tpu.core_type = #tpu.core_type<tc>, window_params = [{transform_indices = @transform_0, window_bounds = array<i64: 1, 5, 512>}, {transform_indices = @transform_1, window_bounds = array<i64: 1, 5, 64>}, {transform_indices = @transform_2, window_bounds = array<i64: 1, 512, 64>}]} {
    %c0 = arith.constant 0 : index
    %c0_0 = arith.constant 0 : index
    %c0_1 = arith.constant 0 : index
    %0 = vector.load %arg1[%c0, %c0_0, %c0_1] : memref<1x5x512xf32, #tpu.memory_space<vmem>>, vector<1x5x512xf32>
    %1 = vector.shape_cast %0 : vector<1x5x512xf32> to vector<5x512xf32>
    %c0_2 = arith.constant 0 : index
    %c0_3 = arith.constant 0 : index
    %c0_4 = arith.constant 0 : index
    %2 = vector.load %arg2[%c0_2, %c0_3, %c0_4] : memref<1x5x64xf32, #tpu.memory_space<vmem>>, vector<1x5x64xf32>
    %3 = vector.shape_cast %2 : vector<1x5x64xf32> to vector<5x64xf32>
    %cst = arith.constant dense<0.000000e+00> : vector<512x64xf32>
    %4 = tpu.matmul %1, %3, %cst {dimension_numbers = #tpu.dot_dimension_numbers<[0], [0], [1], [1], [0, 1, 1, 1], [], []>} : vector<5x512xf32>, vector<5x64xf32>, vector<512x64xf32> -> vector<512x64xf32>
    %c0_5 = arith.constant 0 : index
    %c0_6 = arith.constant 0 : index
    %c0_7 = arith.constant 0 : index
    %5 = vector.load %arg3[%c0_5, %c0_6, %c0_7] : memref<1x512x64xf32, #tpu.memory_space<vmem>>, vector<1x512x64xf32>
    %6 = vector.shape_cast %5 : vector<1x512x64xf32> to vector<512x64xf32>
    %7 = vector.shape_cast %4 : vector<512x64xf32> to vector<1x512x64xf32>
    tpu.vector_store %arg3[%c0_5, %c0_6, %c0_7], %7 {strides = array<i32>} : memref<1x512x64xf32, #tpu.memory_space<vmem>>, vector<1x512x64xf32>,
    return
  }
  func.func @transform_0(%arg0: i32) -> (i32, i32, i32) {
    %c0_i32 = arith.constant 0 : i32
    %c0_i32_0 = arith.constant 0 : i32
    %c0_i32_1 = arith.constant 0 : i32
    return %arg0, %c0_i32, %c0_i32_0 : i32, i32, i32
  }
  func.func @transform_1(%arg0: i32) -> (i32, i32, i32) {
    %c0_i32 = arith.constant 0 : i32
    %c0_i32_0 = arith.constant 0 : i32
    %c0_i32_1 = arith.constant 0 : i32
    return %arg0, %c0_i32, %c0_i32_0 : i32, i32, i32
  }
  func.func @transform_2(%arg0: i32) -> (i32, i32, i32) {
    %c0_i32 = arith.constant 0 : i32
    %c0_i32_0 = arith.constant 0 : i32
    %c0_i32_1 = arith.constant 0 : i32
    return %arg0, %c0_i32, %c0_i32_0 : i32, i32, i32
  }
}

module attributes {stable_mosaic.version = 11 : i64} {
  func.func @_conv_kernel(%arg0: i32, %arg1: memref<80x512xf32, #tpu.memory_space<vmem>>, %arg2: memref<32x80xbf16, #tpu.memory_space<vmem>>, %arg3: memref<32x1xf32, #tpu.memory_space<vmem>>, %arg4: memref<32x512xf32, #tpu.memory_space<vmem>>) attributes {dimension_semantics = [#tpu.dimension_semantics<parallel>], iteration_bounds = array<i64: 2>, scalar_prefetch = 0 : i64, scratch_operands = 0 : i64, tpu.core_type = #tpu.core_type<tc>, window_params = [{transform_indices = @transform_0, window_bounds = array<i64: 80, 512>}, {pipeline_mode = #tpu.pipeline_mode<synchronous>, transform_indices = @transform_1, window_bounds = array<i64: 32, 80>}, {pipeline_mode = #tpu.pipeline_mode<synchronous>, transform_indices = @transform_2, window_bounds = array<i64: 32, 1>}, {transform_indices = @transform_3, window_bounds = array<i64: 32, 512>}]} {
    %c0 = arith.constant 0 : index
    %c0_0 = arith.constant 0 : index
    %0 = vector.load %arg1[%c0, %c0_0] : memref<80x512xf32, #tpu.memory_space<vmem>>, vector<80x512xf32>
    %1 = arith.truncf %0 : vector<80x512xf32> to vector<80x512xbf16>
    %c0_1 = arith.constant 0 : index
    %c0_2 = arith.constant 0 : index
    %2 = vector.load %arg2[%c0_1, %c0_2] : memref<32x80xbf16, #tpu.memory_space<vmem>>, vector<32x80xbf16>
    %cst = arith.constant dense<0.000000e+00> : vector<32x512xf32>
    %3 = tpu.matmul %2, %1, %cst {dimension_numbers = #tpu.dot_dimension_numbers<[1], [0], [0], [1], [0, 0, 1, 1], [], []>} : vector<32x80xbf16>, vector<80x512xbf16>, vector<32x512xf32> -> vector<32x512xf32>
    %c0_3 = arith.constant 0 : index
    %c0_4 = arith.constant 0 : index
    %4 = vector.load %arg3[%c0_3, %c0_4] : memref<32x1xf32, #tpu.memory_space<vmem>>, vector<32x1xf32>
    %5 = vector.broadcast %4 : vector<32x1xf32> to vector<32x512xf32>
    %6 = arith.addf %3, %5 : vector<32x512xf32>
    %cst_5 = arith.constant 0.000000e+00 : f32
    %7 = vector.broadcast %cst_5 : f32 to vector<32x512xf32>
    %8 = arith.maximumf %6, %7 : vector<32x512xf32>
    %c0_6 = arith.constant 0 : index
    %c0_7 = arith.constant 0 : index
    %9 = vector.load %arg4[%c0_6, %c0_7] : memref<32x512xf32, #tpu.memory_space<vmem>>, vector<32x512xf32>
    tpu.vector_store %arg4[%c0_6, %c0_7], %8 {strides = array<i32>} : memref<32x512xf32, #tpu.memory_space<vmem>>, vector<32x512xf32>,
    return
  }
  func.func @transform_0(%arg0: i32) -> (i32, i32) {
    %c0_i32 = arith.constant 0 : i32
    %c0_i32_0 = arith.constant 0 : i32
    return %c0_i32, %arg0 : i32, i32
  }
  func.func @transform_1(%arg0: i32) -> (i32, i32) {
    %c0_i32 = arith.constant 0 : i32
    %c0_i32_0 = arith.constant 0 : i32
    %c0_i32_1 = arith.constant 0 : i32
    return %c0_i32, %c0_i32_0 : i32, i32
  }
  func.func @transform_2(%arg0: i32) -> (i32, i32) {
    %c0_i32 = arith.constant 0 : i32
    %c0_i32_0 = arith.constant 0 : i32
    %c0_i32_1 = arith.constant 0 : i32
    return %c0_i32, %c0_i32_0 : i32, i32
  }
  func.func @transform_3(%arg0: i32) -> (i32, i32) {
    %c0_i32 = arith.constant 0 : i32
    %c0_i32_0 = arith.constant 0 : i32
    return %c0_i32, %arg0 : i32, i32
  }
}

module attributes {stable_mosaic.version = 11 : i64} {
  func.func @_conv_kernel(%arg0: i32, %arg1: memref<32x512xf32, #tpu.memory_space<vmem>>, %arg2: memref<8x32xbf16, #tpu.memory_space<vmem>>, %arg3: memref<8x1xf32, #tpu.memory_space<vmem>>, %arg4: memref<8x512xf32, #tpu.memory_space<vmem>>) attributes {dimension_semantics = [#tpu.dimension_semantics<parallel>], iteration_bounds = array<i64: 2>, scalar_prefetch = 0 : i64, scratch_operands = 0 : i64, tpu.core_type = #tpu.core_type<tc>, window_params = [{transform_indices = @transform_0, window_bounds = array<i64: 32, 512>}, {pipeline_mode = #tpu.pipeline_mode<synchronous>, transform_indices = @transform_1, window_bounds = array<i64: 8, 32>}, {pipeline_mode = #tpu.pipeline_mode<synchronous>, transform_indices = @transform_2, window_bounds = array<i64: 8, 1>}, {transform_indices = @transform_3, window_bounds = array<i64: 8, 512>}]} {
    %c0 = arith.constant 0 : index
    %c0_0 = arith.constant 0 : index
    %0 = vector.load %arg1[%c0, %c0_0] : memref<32x512xf32, #tpu.memory_space<vmem>>, vector<32x512xf32>
    %1 = arith.truncf %0 : vector<32x512xf32> to vector<32x512xbf16>
    %c0_1 = arith.constant 0 : index
    %c0_2 = arith.constant 0 : index
    %2 = vector.load %arg2[%c0_1, %c0_2] : memref<8x32xbf16, #tpu.memory_space<vmem>>, vector<8x32xbf16>
    %cst = arith.constant dense<0.000000e+00> : vector<8x512xf32>
    %3 = tpu.matmul %2, %1, %cst {dimension_numbers = #tpu.dot_dimension_numbers<[1], [0], [0], [1], [0, 0, 1, 1], [], []>} : vector<8x32xbf16>, vector<32x512xbf16>, vector<8x512xf32> -> vector<8x512xf32>
    %c0_3 = arith.constant 0 : index
    %c0_4 = arith.constant 0 : index
    %4 = vector.load %arg3[%c0_3, %c0_4] : memref<8x1xf32, #tpu.memory_space<vmem>>, vector<8x1xf32>
    %5 = vector.broadcast %4 : vector<8x1xf32> to vector<8x512xf32>
    %6 = arith.addf %3, %5 : vector<8x512xf32>
    %c0_5 = arith.constant 0 : index
    %c0_6 = arith.constant 0 : index
    %7 = vector.load %arg4[%c0_5, %c0_6] : memref<8x512xf32, #tpu.memory_space<vmem>>, vector<8x512xf32>
    tpu.vector_store %arg4[%c0_5, %c0_6], %6 {strides = array<i32>} : memref<8x512xf32, #tpu.memory_space<vmem>>, vector<8x512xf32>,
    return
  }
  func.func @transform_0(%arg0: i32) -> (i32, i32) {
    %c0_i32 = arith.constant 0 : i32
    %c0_i32_0 = arith.constant 0 : i32
    return %c0_i32, %arg0 : i32, i32
  }
  func.func @transform_1(%arg0: i32) -> (i32, i32) {
    %c0_i32 = arith.constant 0 : i32
    %c0_i32_0 = arith.constant 0 : i32
    %c0_i32_1 = arith.constant 0 : i32
    return %c0_i32, %c0_i32_0 : i32, i32
  }
  func.func @transform_2(%arg0: i32) -> (i32, i32) {
    %c0_i32 = arith.constant 0 : i32
    %c0_i32_0 = arith.constant 0 : i32
    %c0_i32_1 = arith.constant 0 : i32
    return %c0_i32, %c0_i32_0 : i32, i32
  }
  func.func @transform_3(%arg0: i32) -> (i32, i32) {
    %c0_i32 = arith.constant 0 : i32
    %c0_i32_0 = arith.constant 0 : i32
    return %c0_i32, %arg0 : i32, i32
  }
}

</mosaic_0001>

<bundles_post_ra>
// kernel: custom-call.20
= control target key start
LH: loop header
LB: loop body
LE: loop exit
PB: predicated region body
PF: predicated region fallthrough
CT: control target
= control target key end

     0   :  { %s6_s0 = inlined_call_operand.vmem [shape: f32[2,512], index: 0, kind: output, shape index: {}]  }

// kernel: custom-call.21
= control target key start
LH: loop header
LB: loop body
LE: loop exit
PB: predicated region body
PF: predicated region fallthrough
CT: control target
= control target key end

     0   :  { %s6_s0 = inlined_call_operand.vmem [shape: f32[2,64], index: 0, kind: output, shape index: {}]  }

// kernel: neg.7
= control target key start
LH: loop header
LB: loop body
LE: loop exit
PB: predicated region body
PF: predicated region fallthrough
CT: control target
= control target key end

     0   :  { %s40_s0 = inlined_call_operand.vmem [shape: f32[2,8,64], index: 0, kind: input, shape index: {}]   ;;  %s41_s1 = inlined_call_operand.vmem [shape: f32[2,8,64], index: 1, kind: output, shape index: {}]  }
   0x1   :  { %v2_v0 = vld [vmem:[%s40_s0] sm:$0xff]  ;;  %v16_v1 = vld [vmem:[%s40_s0 + $0x8] sm:$0xff] }
   0x2   :  { %v5_v2 = vxor.u32 2147483648, %v2_v0  ;;  %v12_v3 = vxor.u32 2147483648, %v16_v1 }
   0x4   :  { %7 = vst [vmem:[%s41_s1] sm:$0xff] %v5_v2  ;;  %17 = vst [vmem:[%s41_s1 + $0x8] sm:$0xff] %v12_v3 }

// kernel: neg.6
= control target key start
LH: loop header
LB: loop body
LE: loop exit
PB: predicated region body
PF: predicated region fallthrough
CT: control target
= control target key end

     0   :  { %s1032_s0 = inlined_call_operand.vmem [shape: f32[2,64,512], index: 0, kind: input, shape index: {}]   ;;  %s1033_s1 = inlined_call_operand.vmem [shape: f32[2,64,512], index: 1, kind: output, shape index: {}]  }
   0x1   :  { %v2_v0 = vld [vmem:[%s1032_s0] sm:$0xff]  ;;  %v542_v31 = vld [vmem:[%s1032_s0 + $0x8] sm:$0xff]  ;;  %v574_v62 = vld [vmem:[%s1032_s0 + $0x10] sm:$0xff] }
   0x2   :  { %v512_v1 = vld [vmem:[%s1032_s0 + $0x100] sm:$0xff]  ;;  %v5_v3 = vxor.u32 2147483648, %v2_v0  ;;  %v544_v32 = vld [vmem:[%s1032_s0 + $0x108] sm:$0xff]  ;;  %v132_v34 = vxor.u32 2147483648, %v542_v31 }
   0x3   :  { %v514_v2 = vld [vmem:[%s1032_s0 + $0x20] sm:$0xff]  ;;  %v12_v4 = vxor.u32 2147483648, %v512_v1  ;;  %v140_v35 = vxor.u32 2147483648, %v544_v32  ;;  %v546_v36 = vld [vmem:[%s1032_s0 + $0x28] sm:$0xff]  ;;  %v260_v1 = vxor.u32 2147483648, %v574_v62  ;;  %v606_v32 = vld [vmem:[%s1032_s0 + $0x18] sm:$0xff] }
   0x4   :  { %v20_v5 = vxor.u32 2147483648, %v514_v2  ;;  %v516_v6 = vld [vmem:[%s1032_s0 + $0x120] sm:$0xff]  ;;  %7 = vst [vmem:[%s1033_s1] sm:$0xff] %v5_v3  ;;  %v548_v37 = vld [vmem:[%s1032_s0 + $0x128] sm:$0xff]  ;;  %v148_v39 = vxor.u32 2147483648, %v546_v36  ;;  %543 = vst [vmem:[%s1033_s1 + $0x8] sm:$0xff] %v132_v34 }
   0x5   :  { %v518_v7 = vld [vmem:[%s1032_s0 + $0x40] sm:$0xff]  ;;  %v28_v9 = vxor.u32 2147483648, %v516_v6  ;;  %513 = vst [vmem:[%s1033_s1 + $0x100] sm:$0xff] %v12_v4  ;;  %v550_v38 = vld [vmem:[%s1032_s0 + $0x48] sm:$0xff]  ;;  %v156_v40 = vxor.u32 2147483648, %v548_v37  ;;  %545 = vst [vmem:[%s1033_s1 + $0x108] sm:$0xff] %v140_v35 }
   0x6   :  { %v520_v8 = vld [vmem:[%s1032_s0 + $0x140] sm:$0xff]  ;;  %v36_v10 = vxor.u32 2147483648, %v518_v7  ;;  %515 = vst [vmem:[%s1033_s1 + $0x20] sm:$0xff] %v20_v5  ;;  %v164_v41 = vxor.u32 2147483648, %v550_v38  ;;  %v552_v42 = vld [vmem:[%s1032_s0 + $0x148] sm:$0xff]  ;;  %547 = vst [vmem:[%s1033_s1 + $0x28] sm:$0xff] %v148_v39 }
   0x7   :  { %v44_v11 = vxor.u32 2147483648, %v520_v8  ;;  %v522_v12 = vld [vmem:[%s1032_s0 + $0x60] sm:$0xff]  ;;  %517 = vst [vmem:[%s1033_s1 + $0x120] sm:$0xff] %v28_v9  ;;  %v554_v43 = vld [vmem:[%s1032_s0 + $0x68] sm:$0xff]  ;;  %v172_v45 = vxor.u32 2147483648, %v552_v42  ;;  %549 = vst [vmem:[%s1033_s1 + $0x128] sm:$0xff] %v156_v40 }
   0x8   :  { %v524_v13 = vld [vmem:[%s1032_s0 + $0x160] sm:$0xff]  ;;  %v52_v15 = vxor.u32 2147483648, %v522_v12  ;;  %519 = vst [vmem:[%s1033_s1 + $0x40] sm:$0xff] %v36_v10  ;;  %v556_v44 = vld [vmem:[%s1032_s0 + $0x168] sm:$0xff]  ;;  %v180_v46 = vxor.u32 2147483648, %v554_v43  ;;  %551 = vst [vmem:[%s1033_s1 + $0x48] sm:$0xff] %v164_v41 }
   0x9   :  { %v526_v14 = vld [vmem:[%s1032_s0 + $0x80] sm:$0xff]  ;;  %v60_v16 = vxor.u32 2147483648, %v524_v13  ;;  %521 = vst [vmem:[%s1033_s1 + $0x140] sm:$0xff] %v44_v11  ;;  %v188_v47 = vxor.u32 2147483648, %v556_v44  ;;  %v558_v48 = vld [vmem:[%s1032_s0 + $0x88] sm:$0xff]  ;;  %553 = vst [vmem:[%s1033_s1 + $0x148] sm:$0xff] %v172_v45 }
   0xa   :  { %v68_v17 = vxor.u32 2147483648, %v526_v14  ;;  %v528_v18 = vld [vmem:[%s1032_s0 + $0x180] sm:$0xff]  ;;  %523 = vst [vmem:[%s1033_s1 + $0x60] sm:$0xff] %v52_v15  ;;  %v560_v49 = vld [vmem:[%s1032_s0 + $0x188] sm:$0xff]  ;;  %v196_v51 = vxor.u32 2147483648, %v558_v48  ;;  %555 = vst [vmem:[%s1033_s1 + $0x68] sm:$0xff] %v180_v46 }
   0xb   :  { %v530_v19 = vld [vmem:[%s1032_s0 + $0xa0] sm:$0xff]  ;;  %v76_v21 = vxor.u32 2147483648, %v528_v18  ;;  %525 = vst [vmem:[%s1033_s1 + $0x160] sm:$0xff] %v60_v16  ;;  %v562_v50 = vld [vmem:[%s1032_s0 + $0xa8] sm:$0xff]  ;;  %v204_v52 = vxor.u32 2147483648, %v560_v49  ;;  %557 = vst [vmem:[%s1033_s1 + $0x168] sm:$0xff] %v188_v47 }
   0xc   :  { %v532_v20 = vld [vmem:[%s1032_s0 + $0x1a0] sm:$0xff]  ;;  %v84_v22 = vxor.u32 2147483648, %v530_v19  ;;  %527 = vst [vmem:[%s1033_s1 + $0x80] sm:$0xff] %v68_v17  ;;  %v212_v53 = vxor.u32 2147483648, %v562_v50  ;;  %v564_v54 = vld [vmem:[%s1032_s0 + $0x1a8] sm:$0xff]  ;;  %559 = vst [vmem:[%s1033_s1 + $0x88] sm:$0xff] %v196_v51 }
   0xd   :  { %v92_v23 = vxor.u32 2147483648, %v532_v20  ;;  %v534_v24 = vld [vmem:[%s1032_s0 + $0xc0] sm:$0xff]  ;;  %529 = vst [vmem:[%s1033_s1 + $0x180] sm:$0xff] %v76_v21  ;;  %v566_v55 = vld [vmem:[%s1032_s0 + $0xc8] sm:$0xff]  ;;  %v220_v57 = vxor.u32 2147483648, %v564_v54  ;;  %561 = vst [vmem:[%s1033_s1 + $0x188] sm:$0xff] %v204_v52 }
   0xe   :  { %v536_v25 = vld [vmem:[%s1032_s0 + $0x1c0] sm:$0xff]  ;;  %v100_v27 = vxor.u32 2147483648, %v534_v24  ;;  %531 = vst [vmem:[%s1033_s1 + $0xa0] sm:$0xff] %v84_v22  ;;  %v568_v56 = vld [vmem:[%s1032_s0 + $0x1c8] sm:$0xff]  ;;  %v228_v58 = vxor.u32 2147483648, %v566_v55  ;;  %563 = vst [vmem:[%s1033_s1 + $0xa8] sm:$0xff] %v212_v53 }
   0xf   :  { %v538_v26 = vld [vmem:[%s1032_s0 + $0xe0] sm:$0xff]  ;;  %v108_v28 = vxor.u32 2147483648, %v536_v25  ;;  %533 = vst [vmem:[%s1033_s1 + $0x1a0] sm:$0xff] %v92_v23  ;;  %v236_v59 = vxor.u32 2147483648, %v568_v56  ;;  %v570_v60 = vld [vmem:[%s1032_s0 + $0xe8] sm:$0xff]  ;;  %v576_v2 = vld [vmem:[%s1032_s0 + $0x110] sm:$0xff] }
  0x10   :  { %v116_v29 = vxor.u32 2147483648, %v538_v26  ;;  %v540_v30 = vld [vmem:[%s1032_s0 + $0x1e0] sm:$0xff]  ;;  %535 = vst [vmem:[%s1033_s1 + $0xc0] sm:$0xff] %v100_v27  ;;  %v572_v61 = vld [vmem:[%s1032_s0 + $0x1e8] sm:$0xff]  ;;  %v244_v63 = vxor.u32 2147483648, %v570_v60  ;;  %v578_v3 = vld [vmem:[%s1032_s0 + $0x30] sm:$0xff] }
  0x11   :  { %v124_v33 = vxor.u32 2147483648, %v540_v30  ;;  %537 = vst [vmem:[%s1033_s1 + $0x1c0] sm:$0xff] %v108_v28  ;;  %v252_v0 = vxor.u32 2147483648, %v572_v61  ;;  %v580_v4 = vld [vmem:[%s1032_s0 + $0x130] sm:$0xff]  ;;  %565 = vst [vmem:[%s1033_s1 + $0x1a8] sm:$0xff] %v220_v57  ;;  %v268_v5 = vxor.u32 2147483648, %v576_v2 }
  0x12   :  { %539 = vst [vmem:[%s1033_s1 + $0xe0] sm:$0xff] %v116_v29  ;;  %567 = vst [vmem:[%s1033_s1 + $0xc8] sm:$0xff] %v228_v58  ;;  %v276_v6 = vxor.u32 2147483648, %v578_v3  ;;  %v284_v7 = vxor.u32 2147483648, %v580_v4  ;;  %v582_v8 = vld [vmem:[%s1032_s0 + $0x50] sm:$0xff]  ;;  %v610_v34 = vld [vmem:[%s1032_s0 + $0x38] sm:$0xff] }
  0x13   :  { %541 = vst [vmem:[%s1033_s1 + $0x1e0] sm:$0xff] %v124_v33  ;;  %569 = vst [vmem:[%s1033_s1 + $0x1c8] sm:$0xff] %v236_v59  ;;  %v584_v9 = vld [vmem:[%s1032_s0 + $0x150] sm:$0xff]  ;;  %v292_v11 = vxor.u32 2147483648, %v582_v8  ;;  %v608_v33 = vld [vmem:[%s1032_s0 + $0x118] sm:$0xff]  ;;  %v388_v35 = vxor.u32 2147483648, %v606_v32 }
  0x14   :  { %v586_v10 = vld [vmem:[%s1032_s0 + $0x70] sm:$0xff]  ;;  %571 = vst [vmem:[%s1033_s1 + $0xe8] sm:$0xff] %v244_v63  ;;  %573 = vst [vmem:[%s1033_s1 + $0x1e8] sm:$0xff] %v252_v0  ;;  %v300_v12 = vxor.u32 2147483648, %v584_v9  ;;  %v396_v36 = vxor.u32 2147483648, %v608_v33  ;;  %v404_v37 = vxor.u32 2147483648, %v610_v34 }
  0x15   :  { %575 = vst [vmem:[%s1033_s1 + $0x10] sm:$0xff] %v260_v1  ;;  %v308_v13 = vxor.u32 2147483648, %v586_v10  ;;  %v588_v14 = vld [vmem:[%s1032_s0 + $0x170] sm:$0xff]  ;;  %577 = vst [vmem:[%s1033_s1 + $0x110] sm:$0xff] %v268_v5  ;;  %v612_v38 = vld [vmem:[%s1032_s0 + $0x138] sm:$0xff] }
  0x16   :  { %v590_v15 = vld [vmem:[%s1032_s0 + $0x90] sm:$0xff]  ;;  %579 = vst [vmem:[%s1033_s1 + $0x30] sm:$0xff] %v276_v6  ;;  %581 = vst [vmem:[%s1033_s1 + $0x130] sm:$0xff] %v284_v7  ;;  %v316_v17 = vxor.u32 2147483648, %v588_v14  ;;  %v614_v39 = vld [vmem:[%s1032_s0 + $0x58] sm:$0xff]  ;;  %v412_v41 = vxor.u32 2147483648, %v612_v38 }
  0x17   :  { %v592_v16 = vld [vmem:[%s1032_s0 + $0x190] sm:$0xff]  ;;  %v324_v18 = vxor.u32 2147483648, %v590_v15  ;;  %583 = vst [vmem:[%s1033_s1 + $0x50] sm:$0xff] %v292_v11  ;;  %585 = vst [vmem:[%s1033_s1 + $0x150] sm:$0xff] %v300_v12  ;;  %v616_v40 = vld [vmem:[%s1032_s0 + $0x158] sm:$0xff]  ;;  %v420_v42 = vxor.u32 2147483648, %v614_v39 }
  0x18   :  { %v332_v19 = vxor.u32 2147483648, %v592_v16  ;;  %v594_v20 = vld [vmem:[%s1032_s0 + $0xb0] sm:$0xff]  ;;  %587 = vst [vmem:[%s1033_s1 + $0x70] sm:$0xff] %v308_v13  ;;  %589 = vst [vmem:[%s1033_s1 + $0x170] sm:$0xff] %v316_v17  ;;  %v428_v43 = vxor.u32 2147483648, %v616_v40  ;;  %v618_v44 = vld [vmem:[%s1032_s0 + $0x78] sm:$0xff] }
  0x19   :  { %v596_v21 = vld [vmem:[%s1032_s0 + $0x1b0] sm:$0xff]  ;;  %v340_v23 = vxor.u32 2147483648, %v594_v20  ;;  %591 = vst [vmem:[%s1033_s1 + $0x90] sm:$0xff] %v324_v18  ;;  %v620_v45 = vld [vmem:[%s1032_s0 + $0x178] sm:$0xff]  ;;  %607 = vst [vmem:[%s1033_s1 + $0x18] sm:$0xff] %v388_v35  ;;  %v436_v47 = vxor.u32 2147483648, %v618_v44 }
  0x1a   :  { %v598_v22 = vld [vmem:[%s1032_s0 + $0xd0] sm:$0xff]  ;;  %v348_v24 = vxor.u32 2147483648, %v596_v21  ;;  %593 = vst [vmem:[%s1033_s1 + $0x190] sm:$0xff] %v332_v19  ;;  %v622_v46 = vld [vmem:[%s1032_s0 + $0x98] sm:$0xff]  ;;  %609 = vst [vmem:[%s1033_s1 + $0x118] sm:$0xff] %v396_v36  ;;  %v444_v48 = vxor.u32 2147483648, %v620_v45 }
  0x1b   :  { %v356_v25 = vxor.u32 2147483648, %v598_v22  ;;  %v600_v26 = vld [vmem:[%s1032_s0 + $0x1d0] sm:$0xff]  ;;  %595 = vst [vmem:[%s1033_s1 + $0xb0] sm:$0xff] %v340_v23  ;;  %611 = vst [vmem:[%s1033_s1 + $0x38] sm:$0xff] %v404_v37  ;;  %v452_v49 = vxor.u32 2147483648, %v622_v46  ;;  %v624_v50 = vld [vmem:[%s1032_s0 + $0x198] sm:$0xff] }
  0x1c   :  { %v602_v27 = vld [vmem:[%s1032_s0 + $0xf0] sm:$0xff]  ;;  %v364_v29 = vxor.u32 2147483648, %v600_v26  ;;  %597 = vst [vmem:[%s1033_s1 + $0x1b0] sm:$0xff] %v348_v24  ;;  %v626_v51 = vld [vmem:[%s1032_s0 + $0xb8] sm:$0xff]  ;;  %613 = vst [vmem:[%s1033_s1 + $0x138] sm:$0xff] %v412_v41  ;;  %v460_v53 = vxor.u32 2147483648, %v624_v50 }
  0x1d   :  { %v604_v28 = vld [vmem:[%s1032_s0 + $0x1f0] sm:$0xff]  ;;  %v372_v30 = vxor.u32 2147483648, %v602_v27  ;;  %599 = vst [vmem:[%s1033_s1 + $0xd0] sm:$0xff] %v356_v25  ;;  %v628_v52 = vld [vmem:[%s1032_s0 + $0x1b8] sm:$0xff]  ;;  %615 = vst [vmem:[%s1033_s1 + $0x58] sm:$0xff] %v420_v42  ;;  %v468_v54 = vxor.u32 2147483648, %v626_v51 }
  0x1e   :  { %v380_v31 = vxor.u32 2147483648, %v604_v28  ;;  %601 = vst [vmem:[%s1033_s1 + $0x1d0] sm:$0xff] %v364_v29  ;;  %617 = vst [vmem:[%s1033_s1 + $0x158] sm:$0xff] %v428_v43  ;;  %v476_v55 = vxor.u32 2147483648, %v628_v52  ;;  %v630_v56 = vld [vmem:[%s1032_s0 + $0xd8] sm:$0xff] }
  0x1f   :  { %603 = vst [vmem:[%s1033_s1 + $0xf0] sm:$0xff] %v372_v30  ;;  %v632_v57 = vld [vmem:[%s1032_s0 + $0x1d8] sm:$0xff]  ;;  %619 = vst [vmem:[%s1033_s1 + $0x78] sm:$0xff] %v436_v47  ;;  %v484_v59 = vxor.u32 2147483648, %v630_v56 }
  0x20   :  { %605 = vst [vmem:[%s1033_s1 + $0x1f0] sm:$0xff] %v380_v31  ;;  %v634_v58 = vld [vmem:[%s1032_s0 + $0xf8] sm:$0xff]  ;;  %621 = vst [vmem:[%s1033_s1 + $0x178] sm:$0xff] %v444_v48  ;;  %v492_v60 = vxor.u32 2147483648, %v632_v57 }
  0x21   :  { %623 = vst [vmem:[%s1033_s1 + $0x98] sm:$0xff] %v452_v49  ;;  %v500_v61 = vxor.u32 2147483648, %v634_v58  ;;  %v636_v62 = vld [vmem:[%s1032_s0 + $0x1f8] sm:$0xff]  ;;  %625 = vst [vmem:[%s1033_s1 + $0x198] sm:$0xff] %v460_v53 }
  0x22   :  { %627 = vst [vmem:[%s1033_s1 + $0xb8] sm:$0xff] %v468_v54  ;;  %629 = vst [vmem:[%s1033_s1 + $0x1b8] sm:$0xff] %v476_v55  ;;  %v508_v63 = vxor.u32 2147483648, %v636_v62 }
  0x23   :  { %631 = vst [vmem:[%s1033_s1 + $0xd8] sm:$0xff] %v484_v59  ;;  %633 = vst [vmem:[%s1033_s1 + $0x1d8] sm:$0xff] %v492_v60 }
  0x24   :  { %635 = vst [vmem:[%s1033_s1 + $0xf8] sm:$0xff] %v500_v61  ;;  %637 = vst [vmem:[%s1033_s1 + $0x1f8] sm:$0xff] %v508_v63 }

// kernel: _lambda_.20
= control target key start
LH: loop header
LB: loop body
LE: loop exit
PB: predicated region body
PF: predicated region fallthrough
CT: control target
= control target key end

     0   :  { %s389_s9 = smov 0   ;;  %s409_s0 = inlined_call_operand.vmem [shape: f32[2,5,8], index: 0, kind: input, shape index: {}]   ;;  %s410_s1 = inlined_call_operand.vmem [shape: f32[2,5,64], index: 1, kind: input, shape index: {}]   ;;  %s411_s2 = inlined_call_operand.vmem [shape: f32[2,8,64], index: 2, kind: output, shape index: {}]  }
   0x1 LB: > { %s335_s10 = sadd.s32 4294967295, %s370_s9   ;;  %p339_p0 = scmp.ge.s32.totalorder %s370_s9, 1  ;;  %s370_s9 = sphi %s389_s9, %s12_s9  }
   0x2   : > { %p120_p1 = scmp.lt.s32.totalorder %s370_s9, 3 }
   0x4   : > { %p121_p2 = pnand %p339_p0, %p120_p1 }
   0x5   : > { %p144_p3 = scmp.lt.s32.totalorder (!%p121_p2), %s335_s10, 1 }
   0x6   : > { %124 = sbr.rel (%p121_p2) target bundleno = 335 (0x14f), region = 28 }
   0xb   : > { %v372_v0 = vmov 0.0   ;;  %vm373_vm0 = vmmov 0   ;;  %s413_s10 = smov (!%p144_p3, %s335_s10), 1  ;;  %vm194_vm1 = vcmask 1044480   ;;  %vm190_vm2 = vcmask 39936  }
   0xc   : > { %349 = vmatprep.subr.mxu0 %v372_v0  ;;  %351 = vmatprep.mubr.msk.f32.mxu0 %vm373_vm0, %v372_v0  ;;  %s340_s11 = sshll.u32 %s413_s10, 3  ;;  %vm268_vm3 = vcmask 523264  }
   0xd   : > { %s147_s14 = scalar_lea.vmem %s409_s0, %s340_s11  ;;  %s151_s17 = scalar_lea.vmem %s410_s1, %s340_s11 }
   0xe   : > { %v156_v1 = vld [vmem:[%s147_s14] sm:$0x1f]  ;;  %s155_s20 = scalar_lea.vmem %s411_s2, %s340_s11 }
   0xf   : > { %v157_v2 = vld [vmem:[%s151_s17] sm:$0x1f]  ;;  %158 = vxpose.xlu0.b32.start.end [1/1] (short) (narrow) %v156_v1, 8 }
  0x10   : > { %350 = vmatpush3.msk.msra.mxu0 %vm194_vm1, %v157_v2 }
  0x8b   : > { %v174_v3 = vpop.trf.xlu0 }
  0x8c   : > { %352 = vmatmul.mubr.msk.f32.vlgmr.msra.gmra.mxu0 %vm190_vm2, %v174_v3 }
 0x14c   : > { %v264_v4 = vpop.f32.mrf.mxu0 }
 0x14d   : > { %269 = vst.msk [vmem:[%s155_s20] sm:$0xff] %vm268_vm3, %v264_v4 }
 0x14e   : > { %v353_v5 = vpop.f32.mrf.mxu0 }
 0x14f PF: > { %s12_s9 = sadd.s32 1, %s370_s9  }
 0x150   : > { %p9_p4 = scmp.ge.s32.totalorder %s12_s9, 4  }
 0x152   :  { %11 = sbr.rel (!%p9_p4) target bundleno = 1 (0x1), region = 61 }

// kernel: _lambda_.18
= control target key start
LH: loop header
LB: loop body
LE: loop exit
PB: predicated region body
PF: predicated region fallthrough
CT: control target
= control target key end

     0   :  { %s628_s9 = smov 0   ;;  %s703_s0 = inlined_call_operand.vmem [shape: f32[2,5,64], index: 0, kind: input, shape index: {}]   ;;  %s704_s1 = inlined_call_operand.vmem [shape: f32[2,5,512], index: 1, kind: input, shape index: {}]   ;;  %s705_s2 = inlined_call_operand.vmem [shape: f32[2,64,512], index: 2, kind: output, shape index: {}]  }
   0x1 LB: > { %s561_s10 = sadd.s32 4294967295, %s610_s9   ;;  %p565_p0 = scmp.ge.s32.totalorder %s610_s9, 1  ;;  %s610_s9 = sphi %s628_s9, %s12_s9  }
   0x2   : > { %p121_p1 = scmp.lt.s32.totalorder %s610_s9, 3 }
   0x4   : > { %p122_p2 = pnand %p565_p0, %p121_p1 }
   0x5   : > { %p147_p3 = scmp.lt.s32.totalorder (!%p122_p2), %s561_s10, 1 }
   0x6   : > { %125 = sbr.rel (%p122_p2) target bundleno = 364 (0x16c), region = 28 }
   0xb   : > { %v612_v0 = vmov 0.0   ;;  %s707_s10 = smov (!%p147_p3, %s561_s10), 1  ;;  %vm223_vm0 = vcmask 1044480   ;;  %vm198_vm1 = vcmask 39936  }
   0xc   : > { %300 = vmatprep.mubr.f32.mxu0 %v612_v0  ;;  %413 = vmatprep.mubr.f32.mxu1 %v612_v0  ;;  %s566_s11 = sshll.u32 %s707_s10, 3  ;;  %s593_s15 = sshll.u32 %s707_s10, 5 }
   0xd   : > { %s150_s14 = scalar_lea.vmem %s703_s0, %s566_s11  ;;  %s155_s18 = scalar_lea.vmem %s704_s1, %s593_s15 }
   0xe   : > { %v161_v1 = vld [vmem:[%s150_s14] sm:$0x1f]  ;;  %v163_v2 = vld [vmem:[%s155_s18 + $0x8] sm:$0x1f]  ;;  %v165_v3 = vld [vmem:[%s155_s18 + $0x18] sm:$0x1f] }
   0xf   : > { %166 = vxpose.xlu0.b32.start.end [1/1] (short) (narrow) %v161_v1, 64  ;;  %v162_v4 = vld [vmem:[%s155_s18] sm:$0x1f]  ;;  %571 = vmatprep.subr.msk.mxu0 %vm223_vm0, %v163_v2  ;;  %v164_v5 = vld [vmem:[%s155_s18 + $0x10] sm:$0x1f]  ;;  %s594_s19 = sshll.u32 %s707_s10, 8 }
  0x10   : > { %581 = vmatprep.subr.msk.mxu1 %vm223_vm0, %v165_v3  ;;  %572 = vmatpush1.msk.msra.mxu0 %vm223_vm0, %v162_v4  ;;  %s666_s22 = scalar_lea.vmem %s705_s2, %s594_s19 }
  0x11   : > { %582 = vmatpush1.msk.msra.mxu1 %vm223_vm0, %v164_v5 }
  0x8b   : > { %v182_v6 = vpop.trf.xlu0 }
  0x8c   : > { %573 = vmatmul.mubr.msk.f32.vlgmr.msra.gmra.mxu0 %vm198_vm1, %v182_v6  ;;  %583 = vmatmul.mubr.msk.f32.vlgmr.msra.gmra.mxu1 %vm198_vm1, %v182_v6 }
  0x8d   : > { %306 = vmatprep.mubr.f32.mxu0 %v612_v0  ;;  %419 = vmatprep.mubr.f32.mxu1 %v612_v0 }
  0x8f   : > { %v183_v7 = vpop.trf.xlu0 }
  0x90   : > { %574 = vmatmul.mubr.msk.f32.gmra.mxu0 %vm198_vm1, %v183_v7  ;;  %584 = vmatmul.mubr.msk.f32.gmra.mxu1 %vm198_vm1, %v183_v7 }
  0x91   : > { %312 = vmatprep.mubr.f32.mxu0 %v612_v0  ;;  %425 = vmatprep.mubr.f32.mxu1 %v612_v0 }
  0x93   : > { %v184_v8 = vpop.trf.xlu0 }
  0x94   : > { %575 = vmatmul.mubr.msk.f32.gmra.mxu0 %vm198_vm1, %v184_v8  ;;  %585 = vmatmul.mubr.msk.f32.gmra.mxu1 %vm198_vm1, %v184_v8 }
  0x95   : > { %318 = vmatprep.mubr.f32.mxu0 %v612_v0  ;;  %431 = vmatprep.mubr.f32.mxu1 %v612_v0 }
  0x97   : > { %v185_v9 = vpop.trf.xlu0 }
  0x98   : > { %576 = vmatmul.mubr.msk.f32.gmra.mxu0 %vm198_vm1, %v185_v9  ;;  %586 = vmatmul.mubr.msk.f32.gmra.mxu1 %vm198_vm1, %v185_v9 }
  0x99   : > { %324 = vmatprep.mubr.f32.mxu0 %v612_v0  ;;  %437 = vmatprep.mubr.f32.mxu1 %v612_v0 }
  0x9b   : > { %v186_v10 = vpop.trf.xlu0 }
  0x9c   : > { %577 = vmatmul.mubr.msk.f32.gmra.mxu0 %vm198_vm1, %v186_v10  ;;  %587 = vmatmul.mubr.msk.f32.gmra.mxu1 %vm198_vm1, %v186_v10 }
  0x9d   : > { %330 = vmatprep.mubr.f32.mxu0 %v612_v0  ;;  %443 = vmatprep.mubr.f32.mxu1 %v612_v0 }
  0x9f   : > { %v187_v11 = vpop.trf.xlu0 }
  0xa0   : > { %578 = vmatmul.mubr.msk.f32.gmra.mxu0 %vm198_vm1, %v187_v11  ;;  %588 = vmatmul.mubr.msk.f32.gmra.mxu1 %vm198_vm1, %v187_v11 }
  0xa1   : > { %336 = vmatprep.mubr.f32.mxu0 %v612_v0  ;;  %449 = vmatprep.mubr.f32.mxu1 %v612_v0 }
  0xa3   : > { %v188_v12 = vpop.trf.xlu0 }
  0xa4   : > { %579 = vmatmul.mubr.msk.f32.gmra.mxu0 %vm198_vm1, %v188_v12  ;;  %589 = vmatmul.mubr.msk.f32.gmra.mxu1 %vm198_vm1, %v188_v12 }
  0xa5   : > { %342 = vmatprep.mubr.f32.mxu0 %v612_v0  ;;  %455 = vmatprep.mubr.f32.mxu1 %v612_v0 }
  0xa7   : > { %v189_v13 = vpop.trf.xlu0 }
  0xa8   : > { %580 = vmatmul.mubr.msk.f32.gmra.mxu0 %vm198_vm1, %v189_v13  ;;  %590 = vmatmul.mubr.msk.f32.gmra.mxu1 %vm198_vm1, %v189_v13 }
 0x14c   : > { %v302_v14 = vpop.f32.mrf.mxu0  ;;  %v415_v15 = vpop.f32.mrf.mxu1 }
 0x14d   : > { %462 = vst [vmem:[%s666_s22] sm:$0xff] %v302_v14  ;;  %464 = vst [vmem:[%s666_s22 + $0x10] sm:$0xff] %v415_v15 }
 0x14e   : > { %v304_v16 = vpop.f32.mrf.mxu0  ;;  %v417_v17 = vpop.f32.mrf.mxu1 }
 0x14f   : > { %463 = vst [vmem:[%s666_s22 + $0x8] sm:$0xff] %v304_v16  ;;  %465 = vst [vmem:[%s666_s22 + $0x18] sm:$0xff] %v417_v17 }
 0x150   : > { %v308_v18 = vpop.f32.mrf.mxu0  ;;  %v421_v19 = vpop.f32.mrf.mxu1 }
 0x151   : > { %466 = vst [vmem:[%s666_s22 + $0x20] sm:$0xff] %v308_v18  ;;  %468 = vst [vmem:[%s666_s22 + $0x30] sm:$0xff] %v421_v19 }
 0x152   : > { %v310_v20 = vpop.f32.mrf.mxu0  ;;  %v423_v21 = vpop.f32.mrf.mxu1 }
 0x153   : > { %467 = vst [vmem:[%s666_s22 + $0x28] sm:$0xff] %v310_v20  ;;  %469 = vst [vmem:[%s666_s22 + $0x38] sm:$0xff] %v423_v21 }
 0x154   : > { %v314_v22 = vpop.f32.mrf.mxu0  ;;  %v427_v23 = vpop.f32.mrf.mxu1 }
 0x155   : > { %470 = vst [vmem:[%s666_s22 + $0x40] sm:$0xff] %v314_v22  ;;  %472 = vst [vmem:[%s666_s22 + $0x50] sm:$0xff] %v427_v23 }
 0x156   : > { %v316_v24 = vpop.f32.mrf.mxu0  ;;  %v429_v25 = vpop.f32.mrf.mxu1 }
 0x157   : > { %471 = vst [vmem:[%s666_s22 + $0x48] sm:$0xff] %v316_v24  ;;  %473 = vst [vmem:[%s666_s22 + $0x58] sm:$0xff] %v429_v25 }
 0x158   : > { %v320_v26 = vpop.f32.mrf.mxu0  ;;  %v433_v27 = vpop.f32.mrf.mxu1 }
 0x159   : > { %474 = vst [vmem:[%s666_s22 + $0x60] sm:$0xff] %v320_v26  ;;  %476 = vst [vmem:[%s666_s22 + $0x70] sm:$0xff] %v433_v27 }
 0x15a   : > { %v322_v28 = vpop.f32.mrf.mxu0  ;;  %v435_v29 = vpop.f32.mrf.mxu1 }
 0x15b   : > { %475 = vst [vmem:[%s666_s22 + $0x68] sm:$0xff] %v322_v28  ;;  %477 = vst [vmem:[%s666_s22 + $0x78] sm:$0xff] %v435_v29 }
 0x15c   : > { %v326_v30 = vpop.f32.mrf.mxu0  ;;  %v439_v31 = vpop.f32.mrf.mxu1 }
 0x15d   : > { %478 = vst [vmem:[%s666_s22 + $0x80] sm:$0xff] %v326_v30  ;;  %480 = vst [vmem:[%s666_s22 + $0x90] sm:$0xff] %v439_v31 }
 0x15e   : > { %v328_v32 = vpop.f32.mrf.mxu0  ;;  %v441_v33 = vpop.f32.mrf.mxu1 }
 0x15f   : > { %479 = vst [vmem:[%s666_s22 + $0x88] sm:$0xff] %v328_v32  ;;  %481 = vst [vmem:[%s666_s22 + $0x98] sm:$0xff] %v441_v33 }
 0x160   : > { %v332_v34 = vpop.f32.mrf.mxu0  ;;  %v445_v35 = vpop.f32.mrf.mxu1 }
 0x161   : > { %482 = vst [vmem:[%s666_s22 + $0xa0] sm:$0xff] %v332_v34  ;;  %484 = vst [vmem:[%s666_s22 + $0xb0] sm:$0xff] %v445_v35 }
 0x162   : > { %v334_v36 = vpop.f32.mrf.mxu0  ;;  %v447_v37 = vpop.f32.mrf.mxu1 }
 0x163   : > { %483 = vst [vmem:[%s666_s22 + $0xa8] sm:$0xff] %v334_v36  ;;  %485 = vst [vmem:[%s666_s22 + $0xb8] sm:$0xff] %v447_v37 }
 0x164   : > { %v338_v38 = vpop.f32.mrf.mxu0  ;;  %v451_v39 = vpop.f32.mrf.mxu1 }
 0x165   : > { %486 = vst [vmem:[%s666_s22 + $0xc0] sm:$0xff] %v338_v38  ;;  %488 = vst [vmem:[%s666_s22 + $0xd0] sm:$0xff] %v451_v39 }
 0x166   : > { %v340_v40 = vpop.f32.mrf.mxu0  ;;  %v453_v41 = vpop.f32.mrf.mxu1 }
 0x167   : > { %487 = vst [vmem:[%s666_s22 + $0xc8] sm:$0xff] %v340_v40  ;;  %489 = vst [vmem:[%s666_s22 + $0xd8] sm:$0xff] %v453_v41 }
 0x168   : > { %v344_v42 = vpop.f32.mrf.mxu0  ;;  %v457_v43 = vpop.f32.mrf.mxu1 }
 0x169   : > { %490 = vst [vmem:[%s666_s22 + $0xe0] sm:$0xff] %v344_v42  ;;  %492 = vst [vmem:[%s666_s22 + $0xf0] sm:$0xff] %v457_v43 }
 0x16a   : > { %v346_v44 = vpop.f32.mrf.mxu0  ;;  %v459_v45 = vpop.f32.mrf.mxu1 }
 0x16b   : > { %491 = vst [vmem:[%s666_s22 + $0xe8] sm:$0xff] %v346_v44  ;;  %493 = vst [vmem:[%s666_s22 + $0xf8] sm:$0xff] %v459_v45 }
 0x16c PF: > { %s12_s9 = sadd.s32 1, %s610_s9  }
 0x16d   : > { %p9_p4 = scmp.ge.s32.totalorder %s12_s9, 4  }
 0x16f   :  { %11 = sbr.rel (!%p9_p4) target bundleno = 1 (0x1), region = 61 }

// kernel: _lambda_.17
= control target key start
LH: loop header
LB: loop body
LE: loop exit
PB: predicated region body
PF: predicated region fallthrough
CT: control target
= control target key end

     0   :  { %s562_s12 = smov 0   ;;  %s564_s13 = smov 0   ;;  %s642_s0 = inlined_call_operand.vmem [shape: f32[3,1024], index: 0, kind: input, shape index: {}]   ;;  %s643_s1 = inlined_call_operand.vmem [shape: f32[16,3], index: 1, kind: input, shape index: {}]   ;;  %s644_s2 = inlined_call_operand.vmem [shape: f32[16,1], index: 2, kind: input, shape index: {}]   ;;  %s645_s3 = inlined_call_operand.vmem [shape: f32[16,1024], index: 3, kind: output, shape index: {}]  }
   0x1   :  { %s566_s14 = smov 0  }
   0x2 LB: > { %s575_s15 = sadd.s32 4294967295, %s538_s14   ;;  %s577_s16 = sadd.s32 1, %s538_s14   ;;  %s538_s14 = sphi %s566_s14, %s649_s14   ;;  %s534_s13 = sphi %s564_s13, %s648_s13   ;;  %s530_s12 = sphi %s562_s12, %s647_s12  }
   0x3   : > { %s85_s17 = ssub.s32 %s538_s14, %s577_s16  ;;  %s88_s18 = sadd.s32 1, %s534_s13 }
   0x4   : > { %p86_p0 = scmp.eq.s32.totalorder %s85_s17, 0  ;;  %p98_p1 = scmp.ne.s32.totalorder %s534_s13, %s530_s12 }
   0x5   : > { %p99_p2 = scmp.eq.s32.totalorder %s575_s15, 1  ;;  %p469_p3 = scmp.ge.s32.totalorder %s538_s14, 1 }
   0x6   : > { %s585_s19 = scalar_select %p86_p0, %s534_s13, %s88_s18  }
   0x7   : > { %p587_p4 = por %p99_p2, %p98_p1  ;;  %p138_p5 = scmp.lt.s32.totalorder %s538_s14, 3 }
   0x9   : > { %p139_p6 = pnand %p469_p3, %p138_p5 }
   0xa   : > { %s471_s21 = sshll.u32 (!%p139_p6), %s575_s15, 2  ;;  %s158_s7 = sand.u32 (!%p139_p6), 1, %s530_s12  }
   0xb   : > { %142 = sbr.rel (%p139_p6) target bundleno = 237 (0xed), region = 32  ;;  %p162_p7 = scmp.lt.s32.totalorder (!%p139_p6), %s471_s21, 7 }
   0xc   : > { %s470_s8 = sshll.u32 (!%p139_p6), %s158_s7, 6 }
   0xd   : > { %s608_s9 = scalar_lea.vmem (!%p139_p6), [#allocation2], %s470_s8 }
  0x10   : > { %v540_v0 = vmov 0.0   ;;  %v172_v1 = vld [vmem:[%s644_s2] sm:$0xff]  ;;  %v541_v2 = vmov 0   ;;  %s651_s21 = smov (!%p162_p7, %s471_s21), 7  ;;  %v173_v3 = vld [vmem:[%s644_s2 + $0x8] sm:$0xff]  ;;  %vm195_vm0 = vcmask 1042432  }
  0x11   : > { %268 = vmatprep.mubr.f32.mxu0 %v540_v0  ;;  %345 = vmatprep.mubr.f32.mxu1 %v540_v0  ;;  %s472_s26 = sshll.u32 %s651_s21, 2  ;;  %v170_v8 = vld [vmem:[%s643_s1] sm:$0xff]  ;;  %vm188_vm1 = vcmask 23552   ;;  %v171_v9 = vld [vmem:[%s643_s1 + $0x8] sm:$0xff]  ;;  %s486_s10 = sshll.u32 (%p587_p4), %s575_s15, 5 }
  0x12   : > { %513 = vset.pattern.permute.xlu0 %v541_v2  ;;  %s165_s29 = scalar_lea.vmem %s642_s0, %s472_s26  ;;  %s383_s14 = scalar_lea.vmem (%p587_p4), %s645_s3, %s486_s10 }
  0x13   : > { %176 = vperm.xlu0 %513, %v172_v1   ;;  %v168_v4 = vld [vmem:[%s165_s29] sm:$0x77]  ;;  %v169_v5 = vld [vmem:[%s165_s29 + $0x8] sm:$0x77] }
  0x14   : > { %v186_v6 = vcombine.high %v168_v4, %v168_v4  ;;  %v187_v7 = vcombine.high %v169_v5, %v169_v5 }
  0x16   : > { %473 = vmatprep.subr.msk.mxu0 %vm195_vm0, %v186_v6  ;;  %477 = vmatprep.subr.msk.mxu1 %vm195_vm0, %v187_v7 }
  0x17   : > { %181 = vperm.xlu0 %513, %v173_v3   ;;  %474 = vmatpush1.msk.msra.mxu0 %vm195_vm0, %v168_v4 }
  0x18   : > { %478 = vmatpush1.msk.msra.mxu1 %vm195_vm0, %v169_v5  ;;  %475 = vmatmul.mubr.msk.f32.vlgmr.msra.gmra.mxu0 %vm188_vm1, %v170_v8 }
  0x19   : > { %479 = vmatmul.mubr.msk.f32.vlgmr.msra.gmra.mxu1 %vm188_vm1, %v170_v8  ;;  %274 = vmatprep.mubr.f32.mxu0 %v540_v0 }
  0x1a   : > { %351 = vmatprep.mubr.f32.mxu1 %v540_v0 }
  0x1c   : > { %476 = vmatmul.mubr.msk.f32.gmra.mxu0 %vm188_vm1, %v171_v9 }
  0x1d   : > { %480 = vmatmul.mubr.msk.f32.gmra.mxu1 %vm188_vm1, %v171_v9 }
  0x8e   : > { %v177_v10 = vpop.permute.xlu0 %176 }
  0x92   : > { %v182_v19 = vpop.permute.xlu0 %181 }
  0xd8   : > { %v270_v11 = vpop.f32.mrf.mxu0 }
  0xd9   : > { %v347_v12 = vpop.f32.mrf.mxu1  ;;  %v271_v13 = vadd.f32 %v270_v11, %v177_v10 }
  0xda   : > { %v348_v14 = vadd.f32 %v347_v12, %v177_v10  ;;  %v272_v15 = vpop.f32.mrf.mxu0 }
  0xdb   : > { %v349_v16 = vpop.f32.mrf.mxu1  ;;  %v358_v17 = vmax.f32 %v271_v13, 0.0  ;;  %v273_v20 = vadd.f32 %v272_v15, %v177_v10 }
  0xdc   : > { %v360_v18 = vmax.f32 %v348_v14, 0.0  ;;  %v350_v21 = vadd.f32 %v349_v16, %v177_v10  ;;  %v276_v22 = vpop.f32.mrf.mxu0 }
  0xdd   : > { %v353_v23 = vpop.f32.mrf.mxu1  ;;  %366 = vst [vmem:[%s608_s9] sm:$0xff] %v358_v17  ;;  %v359_v24 = vmax.f32 %v273_v20, 0.0  ;;  %v277_v26 = vadd.f32 %v276_v22, %v182_v19 }
  0xde   : > { %368 = vst [vmem:[%s608_s9 + $0x10] sm:$0xff] %v360_v18  ;;  %v361_v25 = vmax.f32 %v350_v21, 0.0  ;;  %v354_v27 = vadd.f32 %v353_v23, %v182_v19  ;;  %v278_v28 = vpop.f32.mrf.mxu0 }
  0xdf   : > { %v355_v29 = vpop.f32.mrf.mxu1  ;;  %367 = vst [vmem:[%s608_s9 + $0x8] sm:$0xff] %v359_v24  ;;  %v362_v30 = vmax.f32 %v277_v26, 0.0  ;;  %v279_v32 = vadd.f32 %v278_v28, %v182_v19 }
  0xe0   : > { %369 = vst [vmem:[%s608_s9 + $0x18] sm:$0xff] %v361_v25  ;;  %v364_v31 = vmax.f32 %v354_v27, 0.0  ;;  %v356_v33 = vadd.f32 %v355_v29, %v182_v19  ;;  %380 = sbr.rel (!%p587_p4) target bundleno = 237 (0xed), region = 36 }
  0xe1   : > { %370 = vst [vmem:[%s608_s9 + $0x20] sm:$0xff] %v362_v30  ;;  %v363_v34 = vmax.f32 %v279_v32, 0.0 }
  0xe2   : > { %372 = vst [vmem:[%s608_s9 + $0x30] sm:$0xff] %v364_v31  ;;  %v365_v35 = vmax.f32 %v356_v33, 0.0 }
  0xe3   : > { %371 = vst [vmem:[%s608_s9 + $0x28] sm:$0xff] %v363_v34 }
  0xe4   : > { %373 = vst [vmem:[%s608_s9 + $0x38] sm:$0xff] %v365_v35  ;;  %v396_v36 = vld [vmem:[%s608_s9] sm:$0xff] (%p587_p4) }
  0xe5   : > { %v400_v38 = vld [vmem:[%s608_s9 + $0x10] sm:$0xff]  ;;  %397 = vst [vmem:[%s383_s14] sm:$0xff] %v396_v36 }
  0xe6   : > { %v398_v37 = vld [vmem:[%s608_s9 + $0x8] sm:$0xff]  ;;  %401 = vst [vmem:[%s383_s14 + $0x10] sm:$0xff] %v400_v38 }
  0xe7   : > { %v402_v39 = vld [vmem:[%s608_s9 + $0x18] sm:$0xff]  ;;  %399 = vst [vmem:[%s383_s14 + $0x8] sm:$0xff] %v398_v37 }
  0xe8   : > { %v404_v40 = vld [vmem:[%s608_s9 + $0x20] sm:$0xff]  ;;  %403 = vst [vmem:[%s383_s14 + $0x18] sm:$0xff] %v402_v39 }
  0xe9   : > { %405 = vst [vmem:[%s383_s14 + $0x40] sm:$0xff] %v404_v40  ;;  %v408_v42 = vld [vmem:[%s608_s9 + $0x30] sm:$0xff] }
  0xea   : > { %v406_v41 = vld [vmem:[%s608_s9 + $0x28] sm:$0xff]  ;;  %409 = vst [vmem:[%s383_s14 + $0x50] sm:$0xff] %v408_v42 }
  0xeb   : > { %407 = vst [vmem:[%s383_s14 + $0x48] sm:$0xff] %v406_v41  ;;  %v410_v43 = vld [vmem:[%s608_s9 + $0x38] sm:$0xff] }
  0xec   : > { %411 = vst [vmem:[%s383_s14 + $0x58] sm:$0xff] %v410_v43 }
  0xed PF: > { %p10_p8 = scmp.ge.s32.totalorder %s577_s16, 4   ;;  %s647_s12 = smov %s534_s13 }
  0xee   : > { %s648_s13 = smov %s585_s19  ;;  %s649_s14 = smov %s577_s16 }
  0xef   :  { %12 = sbr.rel (!%p10_p8) target bundleno = 2 (0x2), region = 85 }

// kernel: sub.26
= control target key start
LH: loop header
LB: loop body
LE: loop exit
PB: predicated region body
PF: predicated region fallthrough
CT: control target
= control target key end

     0   :  { %s3518_s0 = inlined_call_operand.vmem [shape: f32[2,64,16], index: 0, kind: input, shape index: {}]   ;;  %s3519_s1 = inlined_call_operand.vmem [shape: f32[2,64,32,16], index: 1, kind: output, shape index: {}]  }
   0x1   :  { %v4_v0 = vld [vmem:[%s3518_s0] sm:$0x3]  ;;  %v1600_v1 = vld [vmem:[%s3518_s0 + $0x2] sm:$0x3]  ;;  %v1605_v2 = vld [vmem:[%s3518_s0 + $0x4] sm:$0x3] }
   0x2   :  { %5 = vst [vmem:[%s3519_s1] sm:$0x3] %v4_v0  ;;  %1058 = vst [vmem:[%s3519_s1 + $0x20] sm:$0x3] %v4_v0  ;;  %v1155_v3 = vld [vmem:[%s3518_s0 + $0x6] sm:$0x3] }
   0x3   :  { %1059 = vst [vmem:[%s3519_s1 + $0x40] sm:$0x3] %v4_v0  ;;  %1060 = vst [vmem:[%s3519_s1 + $0x60] sm:$0x3] %v4_v0  ;;  %v1965_v4 = vld [vmem:[%s3518_s0 + $0x8] sm:$0x3] }
   0x4   :  { %1061 = vst [vmem:[%s3519_s1 + $0x80] sm:$0x3] %v4_v0  ;;  %1062 = vst [vmem:[%s3519_s1 + $0xa0] sm:$0x3] %v4_v0  ;;  %v1970_v5 = vld [vmem:[%s3518_s0 + $0xa] sm:$0x3] }
   0x5   :  { %1063 = vst [vmem:[%s3519_s1 + $0xc0] sm:$0x3] %v4_v0  ;;  %1064 = vst [vmem:[%s3519_s1 + $0xe0] sm:$0x3] %v4_v0  ;;  %v1254_v6 = vld [vmem:[%s3518_s0 + $0xc] sm:$0x3] }
   0x6   :  { %1065 = vst [vmem:[%s3519_s1 + $0x100] sm:$0x3] %v4_v0  ;;  %1066 = vst [vmem:[%s3519_s1 + $0x120] sm:$0x3] %v4_v0  ;;  %v2330_v7 = vld [vmem:[%s3518_s0 + $0xe] sm:$0x3] }
   0x7   :  { %1067 = vst [vmem:[%s3519_s1 + $0x140] sm:$0x3] %v4_v0  ;;  %1068 = vst [vmem:[%s3519_s1 + $0x160] sm:$0x3] %v4_v0  ;;  %v2335_v8 = vld [vmem:[%s3518_s0 + $0x10] sm:$0x3] }
   0x8   :  { %1069 = vst [vmem:[%s3519_s1 + $0x180] sm:$0x3] %v4_v0  ;;  %1070 = vst [vmem:[%s3519_s1 + $0x1a0] sm:$0x3] %v4_v0  ;;  %v1353_v9 = vld [vmem:[%s3518_s0 + $0x12] sm:$0x3] }
   0x9   :  { %1071 = vst [vmem:[%s3519_s1 + $0x1c0] sm:$0x3] %v4_v0  ;;  %1072 = vst [vmem:[%s3519_s1 + $0x1e0] sm:$0x3] %v4_v0  ;;  %v2695_v10 = vld [vmem:[%s3518_s0 + $0x14] sm:$0x3] }
   0xa   :  { %1073 = vst [vmem:[%s3519_s1 + $0x200] sm:$0x3] %v4_v0  ;;  %1074 = vst [vmem:[%s3519_s1 + $0x220] sm:$0x3] %v4_v0  ;;  %v2700_v11 = vld [vmem:[%s3518_s0 + $0x16] sm:$0x3] }
   0xb   :  { %1075 = vst [vmem:[%s3519_s1 + $0x240] sm:$0x3] %v4_v0  ;;  %1076 = vst [vmem:[%s3519_s1 + $0x260] sm:$0x3] %v4_v0  ;;  %v1452_v12 = vld [vmem:[%s3518_s0 + $0x18] sm:$0x3] }
   0xc   :  { %1077 = vst [vmem:[%s3519_s1 + $0x280] sm:$0x3] %v4_v0  ;;  %1078 = vst [vmem:[%s3519_s1 + $0x2a0] sm:$0x3] %v4_v0  ;;  %v3060_v13 = vld [vmem:[%s3518_s0 + $0x1a] sm:$0x3] }
   0xd   :  { %1079 = vst [vmem:[%s3519_s1 + $0x2c0] sm:$0x3] %v4_v0  ;;  %1080 = vst [vmem:[%s3519_s1 + $0x2e0] sm:$0x3] %v4_v0  ;;  %v3065_v14 = vld [vmem:[%s3518_s0 + $0x1c] sm:$0x3] }
   0xe   :  { %1081 = vst [vmem:[%s3519_s1 + $0x300] sm:$0x3] %v4_v0  ;;  %1082 = vst [vmem:[%s3519_s1 + $0x320] sm:$0x3] %v4_v0  ;;  %v1551_v15 = vld [vmem:[%s3518_s0 + $0x1e] sm:$0x3] }
   0xf   :  { %1083 = vst [vmem:[%s3519_s1 + $0x340] sm:$0x3] %v4_v0  ;;  %1084 = vst [vmem:[%s3519_s1 + $0x360] sm:$0x3] %v4_v0 }
  0x10   :  { %1085 = vst [vmem:[%s3519_s1 + $0x380] sm:$0x3] %v4_v0  ;;  %1086 = vst [vmem:[%s3519_s1 + $0x3a0] sm:$0x3] %v4_v0 }
  0x11   :  { %1087 = vst [vmem:[%s3519_s1 + $0x3c0] sm:$0x3] %v4_v0  ;;  %1088 = vst [vmem:[%s3519_s1 + $0x3e0] sm:$0x3] %v4_v0 }
  0x12   :  { %1090 = vst [vmem:[%s3519_s1 + $0x2] sm:$0x3] %v1600_v1  ;;  %1091 = vst [vmem:[%s3519_s1 + $0x22] sm:$0x3] %v1600_v1 }
  0x13   :  { %1092 = vst [vmem:[%s3519_s1 + $0x42] sm:$0x3] %v1600_v1  ;;  %1093 = vst [vmem:[%s3519_s1 + $0x62] sm:$0x3] %v1600_v1 }
  0x14   :  { %1094 = vst [vmem:[%s3519_s1 + $0x82] sm:$0x3] %v1600_v1  ;;  %1095 = vst [vmem:[%s3519_s1 + $0xa2] sm:$0x3] %v1600_v1 }
  0x15   :  { %1096 = vst [vmem:[%s3519_s1 + $0xc2] sm:$0x3] %v1600_v1  ;;  %1097 = vst [vmem:[%s3519_s1 + $0xe2] sm:$0x3] %v1600_v1 }
  0x16   :  { %1098 = vst [vmem:[%s3519_s1 + $0x102] sm:$0x3] %v1600_v1  ;;  %1099 = vst [vmem:[%s3519_s1 + $0x122] sm:$0x3] %v1600_v1 }
  0x17   :  { %1100 = vst [vmem:[%s3519_s1 + $0x142] sm:$0x3] %v1600_v1  ;;  %1101 = vst [vmem:[%s3519_s1 + $0x162] sm:$0x3] %v1600_v1 }
  0x18   :  { %1102 = vst [vmem:[%s3519_s1 + $0x182] sm:$0x3] %v1600_v1  ;;  %1103 = vst [vmem:[%s3519_s1 + $0x1a2] sm:$0x3] %v1600_v1 }
  0x19   :  { %1104 = vst [vmem:[%s3519_s1 + $0x1c2] sm:$0x3] %v1600_v1  ;;  %1105 = vst [vmem:[%s3519_s1 + $0x1e2] sm:$0x3] %v1600_v1 }
  0x1a   :  { %1106 = vst [vmem:[%s3519_s1 + $0x202] sm:$0x3] %v1600_v1  ;;  %1107 = vst [vmem:[%s3519_s1 + $0x222] sm:$0x3] %v1600_v1 }
  0x1b   :  { %1108 = vst [vmem:[%s3519_s1 + $0x242] sm:$0x3] %v1600_v1  ;;  %1109 = vst [vmem:[%s3519_s1 + $0x262] sm:$0x3] %v1600_v1 }
  0x1c   :  { %1110 = vst [vmem:[%s3519_s1 + $0x282] sm:$0x3] %v1600_v1  ;;  %1111 = vst [vmem:[%s3519_s1 + $0x2a2] sm:$0x3] %v1600_v1 }
  0x1d   :  { %1112 = vst [vmem:[%s3519_s1 + $0x2c2] sm:$0x3] %v1600_v1  ;;  %1113 = vst [vmem:[%s3519_s1 + $0x2e2] sm:$0x3] %v1600_v1 }
  0x1e   :  { %1114 = vst [vmem:[%s3519_s1 + $0x302] sm:$0x3] %v1600_v1  ;;  %1115 = vst [vmem:[%s3519_s1 + $0x322] sm:$0x3] %v1600_v1 }
  0x1f   :  { %1116 = vst [vmem:[%s3519_s1 + $0x342] sm:$0x3] %v1600_v1  ;;  %1117 = vst [vmem:[%s3519_s1 + $0x362] sm:$0x3] %v1600_v1 }
  0x20   :  { %1118 = vst [vmem:[%s3519_s1 + $0x382] sm:$0x3] %v1600_v1  ;;  %1119 = vst [vmem:[%s3519_s1 + $0x3a2] sm:$0x3] %v1600_v1 }
  0x21   :  { %1120 = vst [vmem:[%s3519_s1 + $0x3c2] sm:$0x3] %v1600_v1  ;;  %1121 = vst [vmem:[%s3519_s1 + $0x3e2] sm:$0x3] %v1600_v1 }
  0x22   :  { %1123 = vst [vmem:[%s3519_s1 + $0x4] sm:$0x3] %v1605_v2  ;;  %1124 = vst [vmem:[%s3519_s1 + $0x24] sm:$0x3] %v1605_v2 }
  0x23   :  { %1125 = vst [vmem:[%s3519_s1 + $0x44] sm:$0x3] %v1605_v2  ;;  %1126 = vst [vmem:[%s3519_s1 + $0x64] sm:$0x3] %v1605_v2 }
  0x24   :  { %1127 = vst [vmem:[%s3519_s1 + $0x84] sm:$0x3] %v1605_v2  ;;  %1128 = vst [vmem:[%s3519_s1 + $0xa4] sm:$0x3] %v1605_v2 }
  0x25   :  { %1129 = vst [vmem:[%s3519_s1 + $0xc4] sm:$0x3] %v1605_v2  ;;  %1130 = vst [vmem:[%s3519_s1 + $0xe4] sm:$0x3] %v1605_v2 }
  0x26   :  { %1131 = vst [vmem:[%s3519_s1 + $0x104] sm:$0x3] %v1605_v2  ;;  %1132 = vst [vmem:[%s3519_s1 + $0x124] sm:$0x3] %v1605_v2 }
  0x27   :  { %1133 = vst [vmem:[%s3519_s1 + $0x144] sm:$0x3] %v1605_v2  ;;  %1134 = vst [vmem:[%s3519_s1 + $0x164] sm:$0x3] %v1605_v2 }
  0x28   :  { %1135 = vst [vmem:[%s3519_s1 + $0x184] sm:$0x3] %v1605_v2  ;;  %1136 = vst [vmem:[%s3519_s1 + $0x1a4] sm:$0x3] %v1605_v2 }
  0x29   :  { %1137 = vst [vmem:[%s3519_s1 + $0x1c4] sm:$0x3] %v1605_v2  ;;  %1138 = vst [vmem:[%s3519_s1 + $0x1e4] sm:$0x3] %v1605_v2 }
  0x2a   :  { %1139 = vst [vmem:[%s3519_s1 + $0x204] sm:$0x3] %v1605_v2  ;;  %1140 = vst [vmem:[%s3519_s1 + $0x224] sm:$0x3] %v1605_v2 }
  0x2b   :  { %1141 = vst [vmem:[%s3519_s1 + $0x244] sm:$0x3] %v1605_v2  ;;  %1142 = vst [vmem:[%s3519_s1 + $0x264] sm:$0x3] %v1605_v2 }
  0x2c   :  { %1143 = vst [vmem:[%s3519_s1 + $0x284] sm:$0x3] %v1605_v2  ;;  %1144 = vst [vmem:[%s3519_s1 + $0x2a4] sm:$0x3] %v1605_v2 }
  0x2d   :  { %1145 = vst [vmem:[%s3519_s1 + $0x2c4] sm:$0x3] %v1605_v2  ;;  %1146 = vst [vmem:[%s3519_s1 + $0x2e4] sm:$0x3] %v1605_v2 }
  0x2e   :  { %1147 = vst [vmem:[%s3519_s1 + $0x304] sm:$0x3] %v1605_v2  ;;  %1148 = vst [vmem:[%s3519_s1 + $0x324] sm:$0x3] %v1605_v2 }
  0x2f   :  { %1149 = vst [vmem:[%s3519_s1 + $0x344] sm:$0x3] %v1605_v2  ;;  %1150 = vst [vmem:[%s3519_s1 + $0x364] sm:$0x3] %v1605_v2 }
  0x30   :  { %1151 = vst [vmem:[%s3519_s1 + $0x384] sm:$0x3] %v1605_v2  ;;  %1152 = vst [vmem:[%s3519_s1 + $0x3a4] sm:$0x3] %v1605_v2 }
  0x31   :  { %1153 = vst [vmem:[%s3519_s1 + $0x3c4] sm:$0x3] %v1605_v2  ;;  %1154 = vst [vmem:[%s3519_s1 + $0x3e4] sm:$0x3] %v1605_v2 }
  0x32   :  { %1156 = vst [vmem:[%s3519_s1 + $0x6] sm:$0x3] %v1155_v3  ;;  %1157 = vst [vmem:[%s3519_s1 + $0x26] sm:$0x3] %v1155_v3 }
  0x33   :  { %1158 = vst [vmem:[%s3519_s1 + $0x46] sm:$0x3] %v1155_v3  ;;  %1159 = vst [vmem:[%s3519_s1 + $0x66] sm:$0x3] %v1155_v3 }
  0x34   :  { %1160 = vst [vmem:[%s3519_s1 + $0x86] sm:$0x3] %v1155_v3  ;;  %1161 = vst [vmem:[%s3519_s1 + $0xa6] sm:$0x3] %v1155_v3 }
  0x35   :  { %1162 = vst [vmem:[%s3519_s1 + $0xc6] sm:$0x3] %v1155_v3  ;;  %1163 = vst [vmem:[%s3519_s1 + $0xe6] sm:$0x3] %v1155_v3 }
  0x36   :  { %1164 = vst [vmem:[%s3519_s1 + $0x106] sm:$0x3] %v1155_v3  ;;  %1165 = vst [vmem:[%s3519_s1 + $0x126] sm:$0x3] %v1155_v3 }
  0x37   :  { %1166 = vst [vmem:[%s3519_s1 + $0x146] sm:$0x3] %v1155_v3  ;;  %1167 = vst [vmem:[%s3519_s1 + $0x166] sm:$0x3] %v1155_v3 }
  0x38   :  { %1168 = vst [vmem:[%s3519_s1 + $0x186] sm:$0x3] %v1155_v3  ;;  %1169 = vst [vmem:[%s3519_s1 + $0x1a6] sm:$0x3] %v1155_v3 }
  0x39   :  { %1170 = vst [vmem:[%s3519_s1 + $0x1c6] sm:$0x3] %v1155_v3  ;;  %1171 = vst [vmem:[%s3519_s1 + $0x1e6] sm:$0x3] %v1155_v3 }
  0x3a   :  { %1172 = vst [vmem:[%s3519_s1 + $0x206] sm:$0x3] %v1155_v3  ;;  %1173 = vst [vmem:[%s3519_s1 + $0x226] sm:$0x3] %v1155_v3 }
  0x3b   :  { %1174 = vst [vmem:[%s3519_s1 + $0x246] sm:$0x3] %v1155_v3  ;;  %1175 = vst [vmem:[%s3519_s1 + $0x266] sm:$0x3] %v1155_v3 }
  0x3c   :  { %1176 = vst [vmem:[%s3519_s1 + $0x286] sm:$0x3] %v1155_v3  ;;  %1177 = vst [vmem:[%s3519_s1 + $0x2a6] sm:$0x3] %v1155_v3 }
  0x3d   :  { %1178 = vst [vmem:[%s3519_s1 + $0x2c6] sm:$0x3] %v1155_v3  ;;  %1179 = vst [vmem:[%s3519_s1 + $0x2e6] sm:$0x3] %v1155_v3 }
  0x3e   :  { %1180 = vst [vmem:[%s3519_s1 + $0x306] sm:$0x3] %v1155_v3  ;;  %1181 = vst [vmem:[%s3519_s1 + $0x326] sm:$0x3] %v1155_v3 }
  0x3f   :  { %1182 = vst [vmem:[%s3519_s1 + $0x346] sm:$0x3] %v1155_v3  ;;  %1183 = vst [vmem:[%s3519_s1 + $0x366] sm:$0x3] %v1155_v3 }
  0x40   :  { %1184 = vst [vmem:[%s3519_s1 + $0x386] sm:$0x3] %v1155_v3  ;;  %1185 = vst [vmem:[%s3519_s1 + $0x3a6] sm:$0x3] %v1155_v3 }
  0x41   :  { %1186 = vst [vmem:[%s3519_s1 + $0x3c6] sm:$0x3] %v1155_v3  ;;  %1187 = vst [vmem:[%s3519_s1 + $0x3e6] sm:$0x3] %v1155_v3 }
  0x42   :  { %1189 = vst [vmem:[%s3519_s1 + $0x8] sm:$0x3] %v1965_v4  ;;  %1190 = vst [vmem:[%s3519_s1 + $0x28] sm:$0x3] %v1965_v4 }
  0x43   :  { %1191 = vst [vmem:[%s3519_s1 + $0x48] sm:$0x3] %v1965_v4  ;;  %1192 = vst [vmem:[%s3519_s1 + $0x68] sm:$0x3] %v1965_v4 }
  0x44   :  { %1193 = vst [vmem:[%s3519_s1 + $0x88] sm:$0x3] %v1965_v4  ;;  %1194 = vst [vmem:[%s3519_s1 + $0xa8] sm:$0x3] %v1965_v4 }
  0x45   :  { %1195 = vst [vmem:[%s3519_s1 + $0xc8] sm:$0x3] %v1965_v4  ;;  %1196 = vst [vmem:[%s3519_s1 + $0xe8] sm:$0x3] %v1965_v4 }
  0x46   :  { %1197 = vst [vmem:[%s3519_s1 + $0x108] sm:$0x3] %v1965_v4  ;;  %1198 = vst [vmem:[%s3519_s1 + $0x128] sm:$0x3] %v1965_v4 }
  0x47   :  { %1199 = vst [vmem:[%s3519_s1 + $0x148] sm:$0x3] %v1965_v4  ;;  %1200 = vst [vmem:[%s3519_s1 + $0x168] sm:$0x3] %v1965_v4 }
  0x48   :  { %1201 = vst [vmem:[%s3519_s1 + $0x188] sm:$0x3] %v1965_v4  ;;  %1202 = vst [vmem:[%s3519_s1 + $0x1a8] sm:$0x3] %v1965_v4 }
  0x49   :  { %1203 = vst [vmem:[%s3519_s1 + $0x1c8] sm:$0x3] %v1965_v4  ;;  %1204 = vst [vmem:[%s3519_s1 + $0x1e8] sm:$0x3] %v1965_v4 }
  0x4a   :  { %1205 = vst [vmem:[%s3519_s1 + $0x208] sm:$0x3] %v1965_v4  ;;  %1206 = vst [vmem:[%s3519_s1 + $0x228] sm:$0x3] %v1965_v4 }
  0x4b   :  { %1207 = vst [vmem:[%s3519_s1 + $0x248] sm:$0x3] %v1965_v4  ;;  %1208 = vst [vmem:[%s3519_s1 + $0x268] sm:$0x3] %v1965_v4 }
  0x4c   :  { %1209 = vst [vmem:[%s3519_s1 + $0x288] sm:$0x3] %v1965_v4  ;;  %1210 = vst [vmem:[%s3519_s1 + $0x2a8] sm:$0x3] %v1965_v4 }
  0x4d   :  { %1211 = vst [vmem:[%s3519_s1 + $0x2c8] sm:$0x3] %v1965_v4  ;;  %1212 = vst [vmem:[%s3519_s1 + $0x2e8] sm:$0x3] %v1965_v4 }
  0x4e   :  { %1213 = vst [vmem:[%s3519_s1 + $0x308] sm:$0x3] %v1965_v4  ;;  %1214 = vst [vmem:[%s3519_s1 + $0x328] sm:$0x3] %v1965_v4 }
  0x4f   :  { %1215 = vst [vmem:[%s3519_s1 + $0x348] sm:$0x3] %v1965_v4  ;;  %1216 = vst [vmem:[%s3519_s1 + $0x368] sm:$0x3] %v1965_v4 }
  0x50   :  { %1217 = vst [vmem:[%s3519_s1 + $0x388] sm:$0x3] %v1965_v4  ;;  %1218 = vst [vmem:[%s3519_s1 + $0x3a8] sm:$0x3] %v1965_v4 }
  0x51   :  { %1219 = vst [vmem:[%s3519_s1 + $0x3c8] sm:$0x3] %v1965_v4  ;;  %1220 = vst [vmem:[%s3519_s1 + $0x3e8] sm:$0x3] %v1965_v4 }
  0x52   :  { %1222 = vst [vmem:[%s3519_s1 + $0xa] sm:$0x3] %v1970_v5  ;;  %1223 = vst [vmem:[%s3519_s1 + $0x2a] sm:$0x3] %v1970_v5 }
  0x53   :  { %1224 = vst [vmem:[%s3519_s1 + $0x4a] sm:$0x3] %v1970_v5  ;;  %1225 = vst [vmem:[%s3519_s1 + $0x6a] sm:$0x3] %v1970_v5 }
  0x54   :  { %1226 = vst [vmem:[%s3519_s1 + $0x8a] sm:$0x3] %v1970_v5  ;;  %1227 = vst [vmem:[%s3519_s1 + $0xaa] sm:$0x3] %v1970_v5 }
  0x55   :  { %1228 = vst [vmem:[%s3519_s1 + $0xca] sm:$0x3] %v1970_v5  ;;  %1229 = vst [vmem:[%s3519_s1 + $0xea] sm:$0x3] %v1970_v5 }
  0x56   :  { %1230 = vst [vmem:[%s3519_s1 + $0x10a] sm:$0x3] %v1970_v5  ;;  %1231 = vst [vmem:[%s3519_s1 + $0x12a] sm:$0x3] %v1970_v5 }
  0x57   :  { %1232 = vst [vmem:[%s3519_s1 + $0x14a] sm:$0x3] %v1970_v5  ;;  %1233 = vst [vmem:[%s3519_s1 + $0x16a] sm:$0x3] %v1970_v5 }
  0x58   :  { %1234 = vst [vmem:[%s3519_s1 + $0x18a] sm:$0x3] %v1970_v5  ;;  %1235 = vst [vmem:[%s3519_s1 + $0x1aa] sm:$0x3] %v1970_v5 }
  0x59   :  { %1236 = vst [vmem:[%s3519_s1 + $0x1ca] sm:$0x3] %v1970_v5  ;;  %1237 = vst [vmem:[%s3519_s1 + $0x1ea] sm:$0x3] %v1970_v5 }
  0x5a   :  { %1238 = vst [vmem:[%s3519_s1 + $0x20a] sm:$0x3] %v1970_v5  ;;  %1239 = vst [vmem:[%s3519_s1 + $0x22a] sm:$0x3] %v1970_v5 }
  0x5b   :  { %1240 = vst [vmem:[%s3519_s1 + $0x24a] sm:$0x3] %v1970_v5  ;;  %1241 = vst [vmem:[%s3519_s1 + $0x26a] sm:$0x3] %v1970_v5 }
  0x5c   :  { %1242 = vst [vmem:[%s3519_s1 + $0x28a] sm:$0x3] %v1970_v5  ;;  %1243 = vst [vmem:[%s3519_s1 + $0x2aa] sm:$0x3] %v1970_v5 }
  0x5d   :  { %1244 = vst [vmem:[%s3519_s1 + $0x2ca] sm:$0x3] %v1970_v5  ;;  %1245 = vst [vmem:[%s3519_s1 + $0x2ea] sm:$0x3] %v1970_v5 }
  0x5e   :  { %1246 = vst [vmem:[%s3519_s1 + $0x30a] sm:$0x3] %v1970_v5  ;;  %1247 = vst [vmem:[%s3519_s1 + $0x32a] sm:$0x3] %v1970_v5 }
  0x5f   :  { %1248 = vst [vmem:[%s3519_s1 + $0x34a] sm:$0x3] %v1970_v5  ;;  %1249 = vst [vmem:[%s3519_s1 + $0x36a] sm:$0x3] %v1970_v5 }
  0x60   :  { %1250 = vst [vmem:[%s3519_s1 + $0x38a] sm:$0x3] %v1970_v5  ;;  %1251 = vst [vmem:[%s3519_s1 + $0x3aa] sm:$0x3] %v1970_v5 }
  0x61   :  { %1252 = vst [vmem:[%s3519_s1 + $0x3ca] sm:$0x3] %v1970_v5  ;;  %1253 = vst [vmem:[%s3519_s1 + $0x3ea] sm:$0x3] %v1970_v5 }
  0x62   :  { %1255 = vst [vmem:[%s3519_s1 + $0xc] sm:$0x3] %v1254_v6  ;;  %1256 = vst [vmem:[%s3519_s1 + $0x2c] sm:$0x3] %v1254_v6 }
  0x63   :  { %1257 = vst [vmem:[%s3519_s1 + $0x4c] sm:$0x3] %v1254_v6  ;;  %1258 = vst [vmem:[%s3519_s1 + $0x6c] sm:$0x3] %v1254_v6 }
  0x64   :  { %1259 = vst [vmem:[%s3519_s1 + $0x8c] sm:$0x3] %v1254_v6  ;;  %1260 = vst [vmem:[%s3519_s1 + $0xac] sm:$0x3] %v1254_v6 }
  0x65   :  { %1261 = vst [vmem:[%s3519_s1 + $0xcc] sm:$0x3] %v1254_v6  ;;  %1262 = vst [vmem:[%s3519_s1 + $0xec] sm:$0x3] %v1254_v6 }
  0x66   :  { %1263 = vst [vmem:[%s3519_s1 + $0x10c] sm:$0x3] %v1254_v6  ;;  %1264 = vst [vmem:[%s3519_s1 + $0x12c] sm:$0x3] %v1254_v6 }
  0x67   :  { %1265 = vst [vmem:[%s3519_s1 + $0x14c] sm:$0x3] %v1254_v6  ;;  %1266 = vst [vmem:[%s3519_s1 + $0x16c] sm:$0x3] %v1254_v6 }
  0x68   :  { %1267 = vst [vmem:[%s3519_s1 + $0x18c] sm:$0x3] %v1254_v6  ;;  %1268 = vst [vmem:[%s3519_s1 + $0x1ac] sm:$0x3] %v1254_v6 }
  0x69   :  { %1269 = vst [vmem:[%s3519_s1 + $0x1cc] sm:$0x3] %v1254_v6  ;;  %1270 = vst [vmem:[%s3519_s1 + $0x1ec] sm:$0x3] %v1254_v6 }
  0x6a   :  { %1271 = vst [vmem:[%s3519_s1 + $0x20c] sm:$0x3] %v1254_v6  ;;  %1272 = vst [vmem:[%s3519_s1 + $0x22c] sm:$0x3] %v1254_v6 }
  0x6b   :  { %1273 = vst [vmem:[%s3519_s1 + $0x24c] sm:$0x3] %v1254_v6  ;;  %1274 = vst [vmem:[%s3519_s1 + $0x26c] sm:$0x3] %v1254_v6 }
  0x6c   :  { %1275 = vst [vmem:[%s3519_s1 + $0x28c] sm:$0x3] %v1254_v6  ;;  %1276 = vst [vmem:[%s3519_s1 + $0x2ac] sm:$0x3] %v1254_v6 }
  0x6d   :  { %1277 = vst [vmem:[%s3519_s1 + $0x2cc] sm:$0x3] %v1254_v6  ;;  %1278 = vst [vmem:[%s3519_s1 + $0x2ec] sm:$0x3] %v1254_v6 }
  0x6e   :  { %1279 = vst [vmem:[%s3519_s1 + $0x30c] sm:$0x3] %v1254_v6  ;;  %1280 = vst [vmem:[%s3519_s1 + $0x32c] sm:$0x3] %v1254_v6 }
  0x6f   :  { %1281 = vst [vmem:[%s3519_s1 + $0x34c] sm:$0x3] %v1254_v6  ;;  %1282 = vst [vmem:[%s3519_s1 + $0x36c] sm:$0x3] %v1254_v6 }
  0x70   :  { %1283 = vst [vmem:[%s3519_s1 + $0x38c] sm:$0x3] %v1254_v6  ;;  %1284 = vst [vmem:[%s3519_s1 + $0x3ac] sm:$0x3] %v1254_v6 }
  0x71   :  { %1285 = vst [vmem:[%s3519_s1 + $0x3cc] sm:$0x3] %v1254_v6  ;;  %1286 = vst [vmem:[%s3519_s1 + $0x3ec] sm:$0x3] %v1254_v6 }
  0x72   :  { %1288 = vst [vmem:[%s3519_s1 + $0xe] sm:$0x3] %v2330_v7  ;;  %1289 = vst [vmem:[%s3519_s1 + $0x2e] sm:$0x3] %v2330_v7 }
  0x73   :  { %1290 = vst [vmem:[%s3519_s1 + $0x4e] sm:$0x3] %v2330_v7  ;;  %1291 = vst [vmem:[%s3519_s1 + $0x6e] sm:$0x3] %v2330_v7 }
  0x74   :  { %1292 = vst [vmem:[%s3519_s1 + $0x8e] sm:$0x3] %v2330_v7  ;;  %1293 = vst [vmem:[%s3519_s1 + $0xae] sm:$0x3] %v2330_v7 }
  0x75   :  { %1294 = vst [vmem:[%s3519_s1 + $0xce] sm:$0x3] %v2330_v7  ;;  %1295 = vst [vmem:[%s3519_s1 + $0xee] sm:$0x3] %v2330_v7 }
  0x76   :  { %1296 = vst [vmem:[%s3519_s1 + $0x10e] sm:$0x3] %v2330_v7  ;;  %1297 = vst [vmem:[%s3519_s1 + $0x12e] sm:$0x3] %v2330_v7 }
  0x77   :  { %1298 = vst [vmem:[%s3519_s1 + $0x14e] sm:$0x3] %v2330_v7  ;;  %1299 = vst [vmem:[%s3519_s1 + $0x16e] sm:$0x3] %v2330_v7 }
  0x78   :  { %1300 = vst [vmem:[%s3519_s1 + $0x18e] sm:$0x3] %v2330_v7  ;;  %1301 = vst [vmem:[%s3519_s1 + $0x1ae] sm:$0x3] %v2330_v7 }
  0x79   :  { %1302 = vst [vmem:[%s3519_s1 + $0x1ce] sm:$0x3] %v2330_v7  ;;  %1303 = vst [vmem:[%s3519_s1 + $0x1ee] sm:$0x3] %v2330_v7 }
  0x7a   :  { %1304 = vst [vmem:[%s3519_s1 + $0x20e] sm:$0x3] %v2330_v7  ;;  %1305 = vst [vmem:[%s3519_s1 + $0x22e] sm:$0x3] %v2330_v7 }
  0x7b   :  { %1306 = vst [vmem:[%s3519_s1 + $0x24e] sm:$0x3] %v2330_v7  ;;  %1307 = vst [vmem:[%s3519_s1 + $0x26e] sm:$0x3] %v2330_v7 }
  0x7c   :  { %1308 = vst [vmem:[%s3519_s1 + $0x28e] sm:$0x3] %v2330_v7  ;;  %1309 = vst [vmem:[%s3519_s1 + $0x2ae] sm:$0x3] %v2330_v7 }
  0x7d   :  { %1310 = vst [vmem:[%s3519_s1 + $0x2ce] sm:$0x3] %v2330_v7  ;;  %1311 = vst [vmem:[%s3519_s1 + $0x2ee] sm:$0x3] %v2330_v7 }
  0x7e   :  { %1312 = vst [vmem:[%s3519_s1 + $0x30e] sm:$0x3] %v2330_v7  ;;  %1313 = vst [vmem:[%s3519_s1 + $0x32e] sm:$0x3] %v2330_v7 }
  0x7f   :  { %1314 = vst [vmem:[%s3519_s1 + $0x34e] sm:$0x3] %v2330_v7  ;;  %1315 = vst [vmem:[%s3519_s1 + $0x36e] sm:$0x3] %v2330_v7 }
  0x80   :  { %1316 = vst [vmem:[%s3519_s1 + $0x38e] sm:$0x3] %v2330_v7  ;;  %1317 = vst [vmem:[%s3519_s1 + $0x3ae] sm:$0x3] %v2330_v7 }
  0x81   :  { %1318 = vst [vmem:[%s3519_s1 + $0x3ce] sm:$0x3] %v2330_v7  ;;  %1319 = vst [vmem:[%s3519_s1 + $0x3ee] sm:$0x3] %v2330_v7 }
  0x82   :  { %1321 = vst [vmem:[%s3519_s1 + $0x10] sm:$0x3] %v2335_v8  ;;  %1322 = vst [vmem:[%s3519_s1 + $0x30] sm:$0x3] %v2335_v8 }
  0x83   :  { %1323 = vst [vmem:[%s3519_s1 + $0x50] sm:$0x3] %v2335_v8  ;;  %1324 = vst [vmem:[%s3519_s1 + $0x70] sm:$0x3] %v2335_v8 }
  0x84   :  { %1325 = vst [vmem:[%s3519_s1 + $0x90] sm:$0x3] %v2335_v8  ;;  %1326 = vst [vmem:[%s3519_s1 + $0xb0] sm:$0x3] %v2335_v8 }
  0x85   :  { %1327 = vst [vmem:[%s3519_s1 + $0xd0] sm:$0x3] %v2335_v8  ;;  %1328 = vst [vmem:[%s3519_s1 + $0xf0] sm:$0x3] %v2335_v8 }
  0x86   :  { %1329 = vst [vmem:[%s3519_s1 + $0x110] sm:$0x3] %v2335_v8  ;;  %1330 = vst [vmem:[%s3519_s1 + $0x130] sm:$0x3] %v2335_v8 }
  0x87   :  { %1331 = vst [vmem:[%s3519_s1 + $0x150] sm:$0x3] %v2335_v8  ;;  %1332 = vst [vmem:[%s3519_s1 + $0x170] sm:$0x3] %v2335_v8 }
  0x88   :  { %1333 = vst [vmem:[%s3519_s1 + $0x190] sm:$0x3] %v2335_v8  ;;  %1334 = vst [vmem:[%s3519_s1 + $0x1b0] sm:$0x3] %v2335_v8 }
  0x89   :  { %1335 = vst [vmem:[%s3519_s1 + $0x1d0] sm:$0x3] %v2335_v8  ;;  %1336 = vst [vmem:[%s3519_s1 + $0x1f0] sm:$0x3] %v2335_v8 }
  0x8a   :  { %1337 = vst [vmem:[%s3519_s1 + $0x210] sm:$0x3] %v2335_v8  ;;  %1338 = vst [vmem:[%s3519_s1 + $0x230] sm:$0x3] %v2335_v8 }
  0x8b   :  { %1339 = vst [vmem:[%s3519_s1 + $0x250] sm:$0x3] %v2335_v8  ;;  %1340 = vst [vmem:[%s3519_s1 + $0x270] sm:$0x3] %v2335_v8 }
  0x8c   :  { %1341 = vst [vmem:[%s3519_s1 + $0x290] sm:$0x3] %v2335_v8  ;;  %1342 = vst [vmem:[%s3519_s1 + $0x2b0] sm:$0x3] %v2335_v8 }
  0x8d   :  { %1343 = vst [vmem:[%s3519_s1 + $0x2d0] sm:$0x3] %v2335_v8  ;;  %1344 = vst [vmem:[%s3519_s1 + $0x2f0] sm:$0x3] %v2335_v8 }
  0x8e   :  { %1345 = vst [vmem:[%s3519_s1 + $0x310] sm:$0x3] %v2335_v8  ;;  %1346 = vst [vmem:[%s3519_s1 + $0x330] sm:$0x3] %v2335_v8 }
  0x8f   :  { %1347 = vst [vmem:[%s3519_s1 + $0x350] sm:$0x3] %v2335_v8  ;;  %1348 = vst [vmem:[%s3519_s1 + $0x370] sm:$0x3] %v2335_v8 }
  0x90   :  { %1349 = vst [vmem:[%s3519_s1 + $0x390] sm:$0x3] %v2335_v8  ;;  %1350 = vst [vmem:[%s3519_s1 + $0x3b0] sm:$0x3] %v2335_v8 }
  0x91   :  { %1351 = vst [vmem:[%s3519_s1 + $0x3d0] sm:$0x3] %v2335_v8  ;;  %1352 = vst [vmem:[%s3519_s1 + $0x3f0] sm:$0x3] %v2335_v8 }
  0x92   :  { %1354 = vst [vmem:[%s3519_s1 + $0x12] sm:$0x3] %v1353_v9  ;;  %1355 = vst [vmem:[%s3519_s1 + $0x32] sm:$0x3] %v1353_v9 }
  0x93   :  { %1356 = vst [vmem:[%s3519_s1 + $0x52] sm:$0x3] %v1353_v9  ;;  %1357 = vst [vmem:[%s3519_s1 + $0x72] sm:$0x3] %v1353_v9 }
  0x94   :  { %1358 = vst [vmem:[%s3519_s1 + $0x92] sm:$0x3] %v1353_v9  ;;  %1359 = vst [vmem:[%s3519_s1 + $0xb2] sm:$0x3] %v1353_v9 }
  0x95   :  { %1360 = vst [vmem:[%s3519_s1 + $0xd2] sm:$0x3] %v1353_v9  ;;  %1361 = vst [vmem:[%s3519_s1 + $0xf2] sm:$0x3] %v1353_v9 }
  0x96   :  { %1362 = vst [vmem:[%s3519_s1 + $0x112] sm:$0x3] %v1353_v9  ;;  %1363 = vst [vmem:[%s3519_s1 + $0x132] sm:$0x3] %v1353_v9 }
  0x97   :  { %1364 = vst [vmem:[%s3519_s1 + $0x152] sm:$0x3] %v1353_v9  ;;  %1365 = vst [vmem:[%s3519_s1 + $0x172] sm:$0x3] %v1353_v9 }
  0x98   :  { %1366 = vst [vmem:[%s3519_s1 + $0x192] sm:$0x3] %v1353_v9  ;;  %1367 = vst [vmem:[%s3519_s1 + $0x1b2] sm:$0x3] %v1353_v9 }
  0x99   :  { %1368 = vst [vmem:[%s3519_s1 + $0x1d2] sm:$0x3] %v1353_v9  ;;  %1369 = vst [vmem:[%s3519_s1 + $0x1f2] sm:$0x3] %v1353_v9 }
  0x9a   :  { %1370 = vst [vmem:[%s3519_s1 + $0x212] sm:$0x3] %v1353_v9  ;;  %1371 = vst [vmem:[%s3519_s1 + $0x232] sm:$0x3] %v1353_v9 }
  0x9b   :  { %1372 = vst [vmem:[%s3519_s1 + $0x252] sm:$0x3] %v1353_v9  ;;  %1373 = vst [vmem:[%s3519_s1 + $0x272] sm:$0x3] %v1353_v9 }
  0x9c   :  { %1374 = vst [vmem:[%s3519_s1 + $0x292] sm:$0x3] %v1353_v9  ;;  %1375 = vst [vmem:[%s3519_s1 + $0x2b2] sm:$0x3] %v1353_v9 }
  0x9d   :  { %1376 = vst [vmem:[%s3519_s1 + $0x2d2] sm:$0x3] %v1353_v9  ;;  %1377 = vst [vmem:[%s3519_s1 + $0x2f2] sm:$0x3] %v1353_v9 }
  0x9e   :  { %1378 = vst [vmem:[%s3519_s1 + $0x312] sm:$0x3] %v1353_v9  ;;  %1379 = vst [vmem:[%s3519_s1 + $0x332] sm:$0x3] %v1353_v9 }
  0x9f   :  { %1380 = vst [vmem:[%s3519_s1 + $0x352] sm:$0x3] %v1353_v9  ;;  %1381 = vst [vmem:[%s3519_s1 + $0x372] sm:$0x3] %v1353_v9 }
  0xa0   :  { %1382 = vst [vmem:[%s3519_s1 + $0x392] sm:$0x3] %v1353_v9  ;;  %1383 = vst [vmem:[%s3519_s1 + $0x3b2] sm:$0x3] %v1353_v9 }
  0xa1   :  { %1384 = vst [vmem:[%s3519_s1 + $0x3d2] sm:$0x3] %v1353_v9  ;;  %1385 = vst [vmem:[%s3519_s1 + $0x3f2] sm:$0x3] %v1353_v9 }
  0xa2   :  { %1387 = vst [vmem:[%s3519_s1 + $0x14] sm:$0x3] %v2695_v10  ;;  %1388 = vst [vmem:[%s3519_s1 + $0x34] sm:$0x3] %v2695_v10 }
  0xa3   :  { %1389 = vst [vmem:[%s3519_s1 + $0x54] sm:$0x3] %v2695_v10  ;;  %1390 = vst [vmem:[%s3519_s1 + $0x74] sm:$0x3] %v2695_v10 }
  0xa4   :  { %1391 = vst [vmem:[%s3519_s1 + $0x94] sm:$0x3] %v2695_v10  ;;  %1392 = vst [vmem:[%s3519_s1 + $0xb4] sm:$0x3] %v2695_v10 }
  0xa5   :  { %1393 = vst [vmem:[%s3519_s1 + $0xd4] sm:$0x3] %v2695_v10  ;;  %1394 = vst [vmem:[%s3519_s1 + $0xf4] sm:$0x3] %v2695_v10 }
  0xa6   :  { %1395 = vst [vmem:[%s3519_s1 + $0x114] sm:$0x3] %v2695_v10  ;;  %1396 = vst [vmem:[%s3519_s1 + $0x134] sm:$0x3] %v2695_v10 }
  0xa7   :  { %1397 = vst [vmem:[%s3519_s1 + $0x154] sm:$0x3] %v2695_v10  ;;  %1398 = vst [vmem:[%s3519_s1 + $0x174] sm:$0x3] %v2695_v10 }
  0xa8   :  { %1399 = vst [vmem:[%s3519_s1 + $0x194] sm:$0x3] %v2695_v10  ;;  %1400 = vst [vmem:[%s3519_s1 + $0x1b4] sm:$0x3] %v2695_v10 }
  0xa9   :  { %1401 = vst [vmem:[%s3519_s1 + $0x1d4] sm:$0x3] %v2695_v10  ;;  %1402 = vst [vmem:[%s3519_s1 + $0x1f4] sm:$0x3] %v2695_v10 }
  0xaa   :  { %1403 = vst [vmem:[%s3519_s1 + $0x214] sm:$0x3] %v2695_v10  ;;  %1404 = vst [vmem:[%s3519_s1 + $0x234] sm:$0x3] %v2695_v10 }
  0xab   :  { %1405 = vst [vmem:[%s3519_s1 + $0x254] sm:$0x3] %v2695_v10  ;;  %1406 = vst [vmem:[%s3519_s1 + $0x274] sm:$0x3] %v2695_v10 }
  0xac   :  { %1407 = vst [vmem:[%s3519_s1 + $0x294] sm:$0x3] %v2695_v10  ;;  %1408 = vst [vmem:[%s3519_s1 + $0x2b4] sm:$0x3] %v2695_v10 }
  0xad   :  { %1409 = vst [vmem:[%s3519_s1 + $0x2d4] sm:$0x3] %v2695_v10  ;;  %1410 = vst [vmem:[%s3519_s1 + $0x2f4] sm:$0x3] %v2695_v10 }
  0xae   :  { %1411 = vst [vmem:[%s3519_s1 + $0x314] sm:$0x3] %v2695_v10  ;;  %1412 = vst [vmem:[%s3519_s1 + $0x334] sm:$0x3] %v2695_v10 }
  0xaf   :  { %1413 = vst [vmem:[%s3519_s1 + $0x354] sm:$0x3] %v2695_v10  ;;  %1414 = vst [vmem:[%s3519_s1 + $0x374] sm:$0x3] %v2695_v10 }
  0xb0   :  { %1415 = vst [vmem:[%s3519_s1 + $0x394] sm:$0x3] %v2695_v10  ;;  %1416 = vst [vmem:[%s3519_s1 + $0x3b4] sm:$0x3] %v2695_v10 }
  0xb1   :  { %1417 = vst [vmem:[%s3519_s1 + $0x3d4] sm:$0x3] %v2695_v10  ;;  %1418 = vst [vmem:[%s3519_s1 + $0x3f4] sm:$0x3] %v2695_v10 }
  0xb2   :  { %1420 = vst [vmem:[%s3519_s1 + $0x16] sm:$0x3] %v2700_v11  ;;  %1421 = vst [vmem:[%s3519_s1 + $0x36] sm:$0x3] %v2700_v11 }
  0xb3   :  { %1422 = vst [vmem:[%s3519_s1 + $0x56] sm:$0x3] %v2700_v11  ;;  %1423 = vst [vmem:[%s3519_s1 + $0x76] sm:$0x3] %v2700_v11 }
  0xb4   :  { %1424 = vst [vmem:[%s3519_s1 + $0x96] sm:$0x3] %v2700_v11  ;;  %1425 = vst [vmem:[%s3519_s1 + $0xb6] sm:$0x3] %v2700_v11 }
  0xb5   :  { %1426 = vst [vmem:[%s3519_s1 + $0xd6] sm:$0x3] %v2700_v11  ;;  %1427 = vst [vmem:[%s3519_s1 + $0xf6] sm:$0x3] %v2700_v11 }
  0xb6   :  { %1428 = vst [vmem:[%s3519_s1 + $0x116] sm:$0x3] %v2700_v11  ;;  %1429 = vst [vmem:[%s3519_s1 + $0x136] sm:$0x3] %v2700_v11 }
  0xb7   :  { %1430 = vst [vmem:[%s3519_s1 + $0x156] sm:$0x3] %v2700_v11  ;;  %1431 = vst [vmem:[%s3519_s1 + $0x176] sm:$0x3] %v2700_v11 }
  0xb8   :  { %1432 = vst [vmem:[%s3519_s1 + $0x196] sm:$0x3] %v2700_v11  ;;  %1433 = vst [vmem:[%s3519_s1 + $0x1b6] sm:$0x3] %v2700_v11 }
  0xb9   :  { %1434 = vst [vmem:[%s3519_s1 + $0x1d6] sm:$0x3] %v2700_v11  ;;  %1435 = vst [vmem:[%s3519_s1 + $0x1f6] sm:$0x3] %v2700_v11 }
  0xba   :  { %1436 = vst [vmem:[%s3519_s1 + $0x216] sm:$0x3] %v2700_v11  ;;  %1437 = vst [vmem:[%s3519_s1 + $0x236] sm:$0x3] %v2700_v11 }
  0xbb   :  { %1438 = vst [vmem:[%s3519_s1 + $0x256] sm:$0x3] %v2700_v11  ;;  %1439 = vst [vmem:[%s3519_s1 + $0x276] sm:$0x3] %v2700_v11 }
  0xbc   :  { %1440 = vst [vmem:[%s3519_s1 + $0x296] sm:$0x3] %v2700_v11  ;;  %1441 = vst [vmem:[%s3519_s1 + $0x2b6] sm:$0x3] %v2700_v11 }
  0xbd   :  { %1442 = vst [vmem:[%s3519_s1 + $0x2d6] sm:$0x3] %v2700_v11  ;;  %1443 = vst [vmem:[%s3519_s1 + $0x2f6] sm:$0x3] %v2700_v11 }
  0xbe   :  { %1444 = vst [vmem:[%s3519_s1 + $0x316] sm:$0x3] %v2700_v11  ;;  %1445 = vst [vmem:[%s3519_s1 + $0x336] sm:$0x3] %v2700_v11 }
  0xbf   :  { %1446 = vst [vmem:[%s3519_s1 + $0x356] sm:$0x3] %v2700_v11  ;;  %1447 = vst [vmem:[%s3519_s1 + $0x376] sm:$0x3] %v2700_v11 }
  0xc0   :  { %1448 = vst [vmem:[%s3519_s1 + $0x396] sm:$0x3] %v2700_v11  ;;  %1449 = vst [vmem:[%s3519_s1 + $0x3b6] sm:$0x3] %v2700_v11 }
  0xc1   :  { %1450 = vst [vmem:[%s3519_s1 + $0x3d6] sm:$0x3] %v2700_v11  ;;  %1451 = vst [vmem:[%s3519_s1 + $0x3f6] sm:$0x3] %v2700_v11 }
  0xc2   :  { %1453 = vst [vmem:[%s3519_s1 + $0x18] sm:$0x3] %v1452_v12  ;;  %1454 = vst [vmem:[%s3519_s1 + $0x38] sm:$0x3] %v1452_v12 }
  0xc3   :  { %1455 = vst [vmem:[%s3519_s1 + $0x58] sm:$0x3] %v1452_v12  ;;  %1456 = vst [vmem:[%s3519_s1 + $0x78] sm:$0x3] %v1452_v12 }
  0xc4   :  { %1457 = vst [vmem:[%s3519_s1 + $0x98] sm:$0x3] %v1452_v12  ;;  %1458 = vst [vmem:[%s3519_s1 + $0xb8] sm:$0x3] %v1452_v12 }
  0xc5   :  { %1459 = vst [vmem:[%s3519_s1 + $0xd8] sm:$0x3] %v1452_v12  ;;  %1460 = vst [vmem:[%s3519_s1 + $0xf8] sm:$0x3] %v1452_v12 }
  0xc6   :  { %1461 = vst [vmem:[%s3519_s1 + $0x118] sm:$0x3] %v1452_v12  ;;  %1462 = vst [vmem:[%s3519_s1 + $0x138] sm:$0x3] %v1452_v12 }
  0xc7   :  { %1463 = vst [vmem:[%s3519_s1 + $0x158] sm:$0x3] %v1452_v12  ;;  %1464 = vst [vmem:[%s3519_s1 + $0x178] sm:$0x3] %v1452_v12 }
  0xc8   :  { %1465 = vst [vmem:[%s3519_s1 + $0x198] sm:$0x3] %v1452_v12  ;;  %1466 = vst [vmem:[%s3519_s1 + $0x1b8] sm:$0x3] %v1452_v12 }
  0xc9   :  { %1467 = vst [vmem:[%s3519_s1 + $0x1d8] sm:$0x3] %v1452_v12  ;;  %1468 = vst [vmem:[%s3519_s1 + $0x1f8] sm:$0x3] %v1452_v12 }
  0xca   :  { %1469 = vst [vmem:[%s3519_s1 + $0x218] sm:$0x3] %v1452_v12  ;;  %1470 = vst [vmem:[%s3519_s1 + $0x238] sm:$0x3] %v1452_v12 }
  0xcb   :  { %1471 = vst [vmem:[%s3519_s1 + $0x258] sm:$0x3] %v1452_v12  ;;  %1472 = vst [vmem:[%s3519_s1 + $0x278] sm:$0x3] %v1452_v12 }
  0xcc   :  { %1473 = vst [vmem:[%s3519_s1 + $0x298] sm:$0x3] %v1452_v12  ;;  %1474 = vst [vmem:[%s3519_s1 + $0x2b8] sm:$0x3] %v1452_v12 }
  0xcd   :  { %1475 = vst [vmem:[%s3519_s1 + $0x2d8] sm:$0x3] %v1452_v12  ;;  %1476 = vst [vmem:[%s3519_s1 + $0x2f8] sm:$0x3] %v1452_v12 }
  0xce   :  { %1477 = vst [vmem:[%s3519_s1 + $0x318] sm:$0x3] %v1452_v12  ;;  %1478 = vst [vmem:[%s3519_s1 + $0x338] sm:$0x3] %v1452_v12 }
  0xcf   :  { %1479 = vst [vmem:[%s3519_s1 + $0x358] sm:$0x3] %v1452_v12  ;;  %1480 = vst [vmem:[%s3519_s1 + $0x378] sm:$0x3] %v1452_v12 }
  0xd0   :  { %1481 = vst [vmem:[%s3519_s1 + $0x398] sm:$0x3] %v1452_v12  ;;  %1482 = vst [vmem:[%s3519_s1 + $0x3b8] sm:$0x3] %v1452_v12 }
  0xd1   :  { %1483 = vst [vmem:[%s3519_s1 + $0x3d8] sm:$0x3] %v1452_v12  ;;  %1484 = vst [vmem:[%s3519_s1 + $0x3f8] sm:$0x3] %v1452_v12 }
  0xd2   :  { %1486 = vst [vmem:[%s3519_s1 + $0x1a] sm:$0x3] %v3060_v13  ;;  %1487 = vst [vmem:[%s3519_s1 + $0x3a] sm:$0x3] %v3060_v13 }
  0xd3   :  { %1488 = vst [vmem:[%s3519_s1 + $0x5a] sm:$0x3] %v3060_v13  ;;  %1489 = vst [vmem:[%s3519_s1 + $0x7a] sm:$0x3] %v3060_v13 }
  0xd4   :  { %1490 = vst [vmem:[%s3519_s1 + $0x9a] sm:$0x3] %v3060_v13  ;;  %1491 = vst [vmem:[%s3519_s1 + $0xba] sm:$0x3] %v3060_v13 }
  0xd5   :  { %1492 = vst [vmem:[%s3519_s1 + $0xda] sm:$0x3] %v3060_v13  ;;  %1493 = vst [vmem:[%s3519_s1 + $0xfa] sm:$0x3] %v3060_v13 }
  0xd6   :  { %1494 = vst [vmem:[%s3519_s1 + $0x11a] sm:$0x3] %v3060_v13  ;;  %1495 = vst [vmem:[%s3519_s1 + $0x13a] sm:$0x3] %v3060_v13 }
  0xd7   :  { %1496 = vst [vmem:[%s3519_s1 + $0x15a] sm:$0x3] %v3060_v13  ;;  %1497 = vst [vmem:[%s3519_s1 + $0x17a] sm:$0x3] %v3060_v13 }
  0xd8   :  { %1498 = vst [vmem:[%s3519_s1 + $0x19a] sm:$0x3] %v3060_v13  ;;  %1499 = vst [vmem:[%s3519_s1 + $0x1ba] sm:$0x3] %v3060_v13 }
  0xd9   :  { %1500 = vst [vmem:[%s3519_s1 + $0x1da] sm:$0x3] %v3060_v13  ;;  %1501 = vst [vmem:[%s3519_s1 + $0x1fa] sm:$0x3] %v3060_v13 }
  0xda   :  { %1502 = vst [vmem:[%s3519_s1 + $0x21a] sm:$0x3] %v3060_v13  ;;  %1503 = vst [vmem:[%s3519_s1 + $0x23a] sm:$0x3] %v3060_v13 }
  0xdb   :  { %1504 = vst [vmem:[%s3519_s1 + $0x25a] sm:$0x3] %v3060_v13  ;;  %1505 = vst [vmem:[%s3519_s1 + $0x27a] sm:$0x3] %v3060_v13 }
  0xdc   :  { %1506 = vst [vmem:[%s3519_s1 + $0x29a] sm:$0x3] %v3060_v13  ;;  %1507 = vst [vmem:[%s3519_s1 + $0x2ba] sm:$0x3] %v3060_v13 }
  0xdd   :  { %1508 = vst [vmem:[%s3519_s1 + $0x2da] sm:$0x3] %v3060_v13  ;;  %1509 = vst [vmem:[%s3519_s1 + $0x2fa] sm:$0x3] %v3060_v13 }
  0xde   :  { %1510 = vst [vmem:[%s3519_s1 + $0x31a] sm:$0x3] %v3060_v13  ;;  %1511 = vst [vmem:[%s3519_s1 + $0x33a] sm:$0x3] %v3060_v13 }
  0xdf   :  { %1512 = vst [vmem:[%s3519_s1 + $0x35a] sm:$0x3] %v3060_v13  ;;  %1513 = vst [vmem:[%s3519_s1 + $0x37a] sm:$0x3] %v3060_v13 }
  0xe0   :  { %1514 = vst [vmem:[%s3519_s1 + $0x39a] sm:$0x3] %v3060_v13  ;;  %1515 = vst [vmem:[%s3519_s1 + $0x3ba] sm:$0x3] %v3060_v13 }
  0xe1   :  { %1516 = vst [vmem:[%s3519_s1 + $0x3da] sm:$0x3] %v3060_v13  ;;  %1517 = vst [vmem:[%s3519_s1 + $0x3fa] sm:$0x3] %v3060_v13 }
  0xe2   :  { %1519 = vst [vmem:[%s3519_s1 + $0x1c] sm:$0x3] %v3065_v14  ;;  %1520 = vst [vmem:[%s3519_s1 + $0x3c] sm:$0x3] %v3065_v14 }
  0xe3   :  { %1521 = vst [vmem:[%s3519_s1 + $0x5c] sm:$0x3] %v3065_v14  ;;  %1522 = vst [vmem:[%s3519_s1 + $0x7c] sm:$0x3] %v3065_v14 }
  0xe4   :  { %1523 = vst [vmem:[%s3519_s1 + $0x9c] sm:$0x3] %v3065_v14  ;;  %1524 = vst [vmem:[%s3519_s1 + $0xbc] sm:$0x3] %v3065_v14 }
  0xe5   :  { %1525 = vst [vmem:[%s3519_s1 + $0xdc] sm:$0x3] %v3065_v14  ;;  %1526 = vst [vmem:[%s3519_s1 + $0xfc] sm:$0x3] %v3065_v14 }
  0xe6   :  { %1527 = vst [vmem:[%s3519_s1 + $0x11c] sm:$0x3] %v3065_v14  ;;  %1528 = vst [vmem:[%s3519_s1 + $0x13c] sm:$0x3] %v3065_v14 }
  0xe7   :  { %1529 = vst [vmem:[%s3519_s1 + $0x15c] sm:$0x3] %v3065_v14  ;;  %1530 = vst [vmem:[%s3519_s1 + $0x17c] sm:$0x3] %v3065_v14 }
  0xe8   :  { %1531 = vst [vmem:[%s3519_s1 + $0x19c] sm:$0x3] %v3065_v14  ;;  %1532 = vst [vmem:[%s3519_s1 + $0x1bc] sm:$0x3] %v3065_v14 }
  0xe9   :  { %1533 = vst [vmem:[%s3519_s1 + $0x1dc] sm:$0x3] %v3065_v14  ;;  %1534 = vst [vmem:[%s3519_s1 + $0x1fc] sm:$0x3] %v3065_v14 }
  0xea   :  { %1535 = vst [vmem:[%s3519_s1 + $0x21c] sm:$0x3] %v3065_v14  ;;  %1536 = vst [vmem:[%s3519_s1 + $0x23c] sm:$0x3] %v3065_v14 }
  0xeb   :  { %1537 = vst [vmem:[%s3519_s1 + $0x25c] sm:$0x3] %v3065_v14  ;;  %1538 = vst [vmem:[%s3519_s1 + $0x27c] sm:$0x3] %v3065_v14 }
  0xec   :  { %1539 = vst [vmem:[%s3519_s1 + $0x29c] sm:$0x3] %v3065_v14  ;;  %1540 = vst [vmem:[%s3519_s1 + $0x2bc] sm:$0x3] %v3065_v14 }
  0xed   :  { %1541 = vst [vmem:[%s3519_s1 + $0x2dc] sm:$0x3] %v3065_v14  ;;  %1542 = vst [vmem:[%s3519_s1 + $0x2fc] sm:$0x3] %v3065_v14 }
  0xee   :  { %1543 = vst [vmem:[%s3519_s1 + $0x31c] sm:$0x3] %v3065_v14  ;;  %1544 = vst [vmem:[%s3519_s1 + $0x33c] sm:$0x3] %v3065_v14 }
  0xef   :  { %1545 = vst [vmem:[%s3519_s1 + $0x35c] sm:$0x3] %v3065_v14  ;;  %1546 = vst [vmem:[%s3519_s1 + $0x37c] sm:$0x3] %v3065_v14 }
  0xf0   :  { %1547 = vst [vmem:[%s3519_s1 + $0x39c] sm:$0x3] %v3065_v14  ;;  %1548 = vst [vmem:[%s3519_s1 + $0x3bc] sm:$0x3] %v3065_v14 }
  0xf1   :  { %1549 = vst [vmem:[%s3519_s1 + $0x3dc] sm:$0x3] %v3065_v14  ;;  %1550 = vst [vmem:[%s3519_s1 + $0x3fc] sm:$0x3] %v3065_v14 }
  0xf2   :  { %1552 = vst [vmem:[%s3519_s1 + $0x1e] sm:$0x3] %v1551_v15  ;;  %1553 = vst [vmem:[%s3519_s1 + $0x3e] sm:$0x3] %v1551_v15 }
  0xf3   :  { %1554 = vst [vmem:[%s3519_s1 + $0x5e] sm:$0x3] %v1551_v15  ;;  %1555 = vst [vmem:[%s3519_s1 + $0x7e] sm:$0x3] %v1551_v15 }
  0xf4   :  { %1556 = vst [vmem:[%s3519_s1 + $0x9e] sm:$0x3] %v1551_v15  ;;  %1557 = vst [vmem:[%s3519_s1 + $0xbe] sm:$0x3] %v1551_v15 }
  0xf5   :  { %1558 = vst [vmem:[%s3519_s1 + $0xde] sm:$0x3] %v1551_v15  ;;  %1559 = vst [vmem:[%s3519_s1 + $0xfe] sm:$0x3] %v1551_v15 }
  0xf6   :  { %1560 = vst [vmem:[%s3519_s1 + $0x11e] sm:$0x3] %v1551_v15  ;;  %1561 = vst [vmem:[%s3519_s1 + $0x13e] sm:$0x3] %v1551_v15 }
  0xf7   :  { %1562 = vst [vmem:[%s3519_s1 + $0x15e] sm:$0x3] %v1551_v15  ;;  %1563 = vst [vmem:[%s3519_s1 + $0x17e] sm:$0x3] %v1551_v15 }
  0xf8   :  { %1564 = vst [vmem:[%s3519_s1 + $0x19e] sm:$0x3] %v1551_v15  ;;  %1565 = vst [vmem:[%s3519_s1 + $0x1be] sm:$0x3] %v1551_v15 }
  0xf9   :  { %1566 = vst [vmem:[%s3519_s1 + $0x1de] sm:$0x3] %v1551_v15  ;;  %1567 = vst [vmem:[%s3519_s1 + $0x1fe] sm:$0x3] %v1551_v15 }
  0xfa   :  { %1568 = vst [vmem:[%s3519_s1 + $0x21e] sm:$0x3] %v1551_v15  ;;  %1569 = vst [vmem:[%s3519_s1 + $0x23e] sm:$0x3] %v1551_v15 }
  0xfb   :  { %1570 = vst [vmem:[%s3519_s1 + $0x25e] sm:$0x3] %v1551_v15  ;;  %1571 = vst [vmem:[%s3519_s1 + $0x27e] sm:$0x3] %v1551_v15 }
  0xfc   :  { %1572 = vst [vmem:[%s3519_s1 + $0x29e] sm:$0x3] %v1551_v15  ;;  %1573 = vst [vmem:[%s3519_s1 + $0x2be] sm:$0x3] %v1551_v15 }
  0xfd   :  { %1574 = vst [vmem:[%s3519_s1 + $0x2de] sm:$0x3] %v1551_v15  ;;  %1575 = vst [vmem:[%s3519_s1 + $0x2fe] sm:$0x3] %v1551_v15 }
  0xfe   :  { %1576 = vst [vmem:[%s3519_s1 + $0x31e] sm:$0x3] %v1551_v15  ;;  %1577 = vst [vmem:[%s3519_s1 + $0x33e] sm:$0x3] %v1551_v15 }
  0xff   :  { %1578 = vst [vmem:[%s3519_s1 + $0x35e] sm:$0x3] %v1551_v15  ;;  %1579 = vst [vmem:[%s3519_s1 + $0x37e] sm:$0x3] %v1551_v15 }
 0x100   :  { %1580 = vst [vmem:[%s3519_s1 + $0x39e] sm:$0x3] %v1551_v15  ;;  %1581 = vst [vmem:[%s3519_s1 + $0x3be] sm:$0x3] %v1551_v15 }
 0x101   :  { %1582 = vst [vmem:[%s3519_s1 + $0x3de] sm:$0x3] %v1551_v15  ;;  %1583 = vst [vmem:[%s3519_s1 + $0x3fe] sm:$0x3] %v1551_v15 }

// kernel: _lambda_.19
= control target key start
LH: loop header
LB: loop body
LE: loop exit
PB: predicated region body
PF: predicated region fallthrough
CT: control target
= control target key end

     0   :  { %s1729_s18 = smov 0   ;;  %s1731_s19 = smov 0   ;;  %s2017_s0 = inlined_call_operand.vmem [shape: f32[32,32,128], index: 0, kind: input, shape index: {}]   ;;  %s2018_s1 = inlined_call_operand.vmem [shape: bf16[32,32], index: 1, kind: input, shape index: {}]   ;;  %s2019_s2 = inlined_call_operand.vmem [shape: f32[32,1], index: 2, kind: input, shape index: {}, may-alias: {2,4}]   ;;  %s2020_s3 = inlined_call_operand.vmem [shape: bf16[32,32], index: 3, kind: input, shape index: {}]   ;;  %s2021_s4 = inlined_call_operand.vmem [shape: f32[32,1], index: 4, kind: input, shape index: {}, may-alias: {2,4}]   ;;  %s2022_s5 = inlined_call_operand.vmem [shape: f32[32,128], index: 5, kind: output, shape index: {}]  }
   0x1   :  { %s1733_s20 = smov 0  }
   0x2 LB: > { %s24_s21 = sadd.s32 1, %s1691_s19  ;;  %p1376_p0 = scmp.ge.s32.totalorder %s1695_s20, 1  ;;  %s1695_s20 = sphi %s1733_s20, %s15_s20   ;;  %s1691_s19 = sphi %s1731_s19, %s2024_s19   ;;  %s1687_s18 = sphi %s1729_s18, %s2023_s18  }
   0x3   : > { %p25_p1 = scmp.ge.s32.totalorder %s24_s21, 4  ;;  %p206_p2 = scmp.lt.s32.totalorder %s1695_s20, 5 }
   0x5   : > { %s2026_s21 = smov (%p25_p1, %s24_s21), 0  ;;  %p207_p3 = pnand %p1376_p0, %p206_p2 }
   0x6   : > { %s1377_s22 = sshll.u32 (!%p207_p3), %s1687_s18, 3  ;;  %p1380_p5 = scmp.ne.s32.totalorder (!%p207_p3), %s1687_s18, 0 }
   0x7   : > { %210 = sbr.rel (%p207_p3) target bundleno = 504 (0x1f8), region = 40  ;;  %p238_p4 = scmp.lt.s32.totalorder (!%p207_p3), %s1377_s22, 31 }
   0xc   : > { %s2028_s22 = smov (!%p238_p4, %s1377_s22), 31  ;;  %255 = sbr.rel (%p1380_p5) target bundleno = 20 (0x14), region = 44 }
   0xd   : > { %s1448_s23 = sshll.u32 %s2028_s22, 5 }
   0xe   : > { %s1750_s26 = scalar_lea.vmem %s2017_s0, %s1448_s23 }
  0x11   : > { %v1697_v0 = vmov 0.0  }
  0x12   : > { %256 = vst [vmem:[%s2022_s5] sm:$0xff] %v1697_v0  ;;  %257 = vst [vmem:[%s2022_s5 + $0x8] sm:$0xff] %v1697_v0 }
  0x13   : > { %258 = vst [vmem:[%s2022_s5 + $0x10] sm:$0xff] %v1697_v0  ;;  %259 = vst [vmem:[%s2022_s5 + $0x18] sm:$0xff] %v1697_v0 }
  0x14 PF: > { %v322_v1 = vld [vmem:[%s1750_s26 + $0x10] sm:$0xff]  ;;  %v323_v2 = vld [vmem:[%s1750_s26 + $0x18] sm:$0xff]  ;;  %v320_v3 = vld [vmem:[%s1750_s26] sm:$0xff]  ;;  %vm336_vm0 = vcmask 261120   ;;  %v1698_v6 = vmov 0  }
  0x15   : > { %v325_v4 = vpack.c.bf16 %v323_v2, %v322_v1  ;;  %v321_v5 = vld [vmem:[%s1750_s26 + $0x8] sm:$0xff]  ;;  %1667 = vset.pattern.permute.xlu0 %v1698_v6  ;;  %1668 = vset.pattern.permute.xlu1 %v1698_v6  ;;  %v1771_v8 = vld [vmem:[%s2018_s1] sm:$0xff]   ;;  %v1391_v9 = vld [vmem:[%s1750_s26 + $0x30] sm:$0xff] }
  0x16   : > { %v324_v7 = vpack.c.bf16 %v321_v5, %v320_v3  ;;  %v1392_v10 = vld [vmem:[%s1750_s26 + $0x38] sm:$0xff]  ;;  %1517 = vmatprep.mubr.msk.bf16.mxu0 %vm336_vm0, %v1771_v8  ;;  %v1389_v12 = vld [vmem:[%s1750_s26 + $0x20] sm:$0xff]  ;;  %v1390_v13 = vld [vmem:[%s1750_s26 + $0x28] sm:$0xff] }
  0x17   : > { %1513 = vmatprep.subr.bf16.mxu0 %v325_v4  ;;  %v477_v11 = vpack.c.bf16 %v1392_v10, %v1391_v9  ;;  %v1782_v14 = vld [vmem:[%s2018_s1 + $0x8] sm:$0xff]   ;;  %v476_v15 = vpack.c.bf16 %v1390_v13, %v1389_v12  ;;  %v1399_v16 = vld [vmem:[%s1750_s26 + $0x50] sm:$0xff]  ;;  %v1400_v17 = vld [vmem:[%s1750_s26 + $0x58] sm:$0xff] }
  0x18   : > { %1514 = vmatpush3.bf16.msra.mxu0 %v325_v4  ;;  %v270_v18 = vld [vmem:[%s2019_s2 + $0x10] sm:$0xff]  ;;  %v596_v19 = vpack.c.bf16 %v1400_v17, %v1399_v16  ;;  %v268_v20 = vld [vmem:[%s2019_s2] sm:$0xff]  ;;  %v1398_v22 = vld [vmem:[%s1750_s26 + $0x48] sm:$0xff] }
  0x19   : > { %1515 = vmatprep.subr.bf16.mxu0 %v324_v7  ;;  %284 = vperm.xlu0 %1667, %v270_v18   ;;  %v1397_v21 = vld [vmem:[%s1750_s26 + $0x40] sm:$0xff]  ;;  %v271_v23 = vld [vmem:[%s2019_s2 + $0x18] sm:$0xff]  ;;  %v269_v24 = vld [vmem:[%s2019_s2 + $0x8] sm:$0xff] }
  0x1a   : > { %274 = vperm.xlu1 %1668, %v268_v20   ;;  %v595_v25 = vpack.c.bf16 %v1398_v22, %v1397_v21  ;;  %v1407_v26 = vld [vmem:[%s1750_s26 + $0x70] sm:$0xff]  ;;  %v1408_v27 = vld [vmem:[%s1750_s26 + $0x78] sm:$0xff]  ;;  %v292_v28 = vld [vmem:[%s2021_s4] sm:$0xff] }
  0x1b   : > { %v293_v29 = vld [vmem:[%s2021_s4 + $0x8] sm:$0xff]  ;;  %v715_v30 = vpack.c.bf16 %v1408_v27, %v1407_v26  ;;  %v1405_v31 = vld [vmem:[%s1750_s26 + $0x60] sm:$0xff]  ;;  %v294_v33 = vld [vmem:[%s2021_s4 + $0x10] sm:$0xff] }
  0x1c   : > { %1516 = vmatpush3.bf16.msra.mxu0 %v324_v7  ;;  %v1406_v32 = vld [vmem:[%s1750_s26 + $0x68] sm:$0xff]  ;;  %v295_v34 = vld [vmem:[%s2021_s4 + $0x18] sm:$0xff]  ;;  %v1415_v36 = vld [vmem:[%s1750_s26 + $0x90] sm:$0xff] }
  0x1d   : > { %1529 = vmatprep.subr.bf16.mxu0 %v477_v11  ;;  %289 = vperm.xlu0 %1667, %v271_v23   ;;  %v714_v35 = vpack.c.bf16 %v1406_v32, %v1405_v31  ;;  %v1416_v37 = vld [vmem:[%s1750_s26 + $0x98] sm:$0xff]  ;;  %v1413_v39 = vld [vmem:[%s1750_s26 + $0x80] sm:$0xff]  ;;  %v1414_v40 = vld [vmem:[%s1750_s26 + $0x88] sm:$0xff] }
  0x1e   : > { %279 = vperm.xlu1 %1668, %v269_v24   ;;  %v834_v38 = vpack.c.bf16 %v1416_v37, %v1415_v36  ;;  %v833_v41 = vpack.c.bf16 %v1414_v40, %v1413_v39  ;;  %v1423_v42 = vld [vmem:[%s1750_s26 + $0xb0] sm:$0xff]  ;;  %v1424_v43 = vld [vmem:[%s1750_s26 + $0xb8] sm:$0xff]  ;;  %v1421_v45 = vld [vmem:[%s1750_s26 + $0xa0] sm:$0xff] }
  0x1f   : > { %1518 = vmatmul.mubr.msk.bf16.vlgmr.msra.gmra.mxu0 %vm336_vm0, %v1782_v14  ;;  %v953_v44 = vpack.c.bf16 %v1424_v43, %v1423_v42  ;;  %v1422_v46 = vld [vmem:[%s1750_s26 + $0xa8] sm:$0xff]  ;;  %v1431_v48 = vld [vmem:[%s1750_s26 + $0xd0] sm:$0xff]  ;;  %v1432_v49 = vld [vmem:[%s1750_s26 + $0xd8] sm:$0xff] }
  0x20   : > { %1530 = vmatpush3.bf16.msra.mxu0 %v477_v11  ;;  %1533 = vmatprep.mubr.msk.bf16.mxu0 %vm336_vm0, %v1771_v8  ;;  %v952_v47 = vpack.c.bf16 %v1422_v46, %v1421_v45  ;;  %v1072_v50 = vpack.c.bf16 %v1432_v49, %v1431_v48  ;;  %v1429_v51 = vld [vmem:[%s1750_s26 + $0xc0] sm:$0xff]  ;;  %v1430_v52 = vld [vmem:[%s1750_s26 + $0xc8] sm:$0xff]  ;;  %v1439_v54 = vld [vmem:[%s1750_s26 + $0xf0] sm:$0xff] }
  0x21   : > { %1531 = vmatprep.subr.bf16.mxu0 %v476_v15  ;;  %298 = vperm.xlu0 %1667, %v292_v28   ;;  %v1071_v53 = vpack.c.bf16 %v1430_v52, %v1429_v51  ;;  %v1440_v55 = vld [vmem:[%s1750_s26 + $0xf8] sm:$0xff]  ;;  %v1437_v57 = vld [vmem:[%s1750_s26 + $0xe0] sm:$0xff]  ;;  %v1438_v58 = vld [vmem:[%s1750_s26 + $0xe8] sm:$0xff] }
  0x22   : > { %303 = vperm.xlu1 %1668, %v293_v29   ;;  %v1191_v56 = vpack.c.bf16 %v1440_v55, %v1439_v54  ;;  %v1190_v59 = vpack.c.bf16 %v1438_v58, %v1437_v57  ;;  %v1865_v60 = vld [vmem:[%s2020_s3] sm:$0xff]  }
  0x23   : > { %1525 = vmatprep.mubr.msk.bf16.mxu1 %vm336_vm0, %v1865_v60 }
  0x24   : > { %1532 = vmatpush3.bf16.msra.mxu0 %v476_v15 }
  0x25   : > { %1545 = vmatprep.subr.bf16.mxu0 %v596_v19  ;;  %308 = vperm.xlu0 %1667, %v294_v33  }
  0x26   : > { %313 = vperm.xlu1 %1668, %v295_v34  }
  0x27   : > { %1534 = vmatmul.mubr.msk.bf16.vlgmr.msra.gmra.mxu0 %vm336_vm0, %v1782_v14 }
  0x28   : > { %1546 = vmatpush3.bf16.msra.mxu0 %v596_v19  ;;  %1549 = vmatprep.mubr.msk.bf16.mxu0 %vm336_vm0, %v1771_v8 }
  0x29   : > { %1547 = vmatprep.subr.bf16.mxu0 %v595_v25 }
  0x2c   : > { %1548 = vmatpush3.bf16.msra.mxu0 %v595_v25  ;;  %v1888_v25 = vld [vmem:[%s2020_s3 + $0x8] sm:$0xff]  }
  0x2d   : > { %1561 = vmatprep.subr.bf16.mxu0 %v715_v30 }
  0x2f   : > { %1550 = vmatmul.mubr.msk.bf16.vlgmr.msra.gmra.mxu0 %vm336_vm0, %v1782_v14 }
  0x30   : > { %1562 = vmatpush3.bf16.msra.mxu0 %v715_v30  ;;  %1565 = vmatprep.mubr.msk.bf16.mxu0 %vm336_vm0, %v1771_v8 }
  0x31   : > { %1563 = vmatprep.subr.bf16.mxu0 %v714_v35 }
  0x34   : > { %1564 = vmatpush3.bf16.msra.mxu0 %v714_v35 }
  0x35   : > { %1577 = vmatprep.subr.bf16.mxu0 %v834_v38 }
  0x37   : > { %1566 = vmatmul.mubr.msk.bf16.vlgmr.msra.gmra.mxu0 %vm336_vm0, %v1782_v14 }
  0x38   : > { %1578 = vmatpush3.bf16.msra.mxu0 %v834_v38  ;;  %1581 = vmatprep.mubr.msk.bf16.mxu0 %vm336_vm0, %v1771_v8 }
  0x39   : > { %1579 = vmatprep.subr.bf16.mxu0 %v833_v41 }
  0x3c   : > { %1580 = vmatpush3.bf16.msra.mxu0 %v833_v41 }
  0x3d   : > { %1593 = vmatprep.subr.bf16.mxu0 %v953_v44 }
  0x3f   : > { %1582 = vmatmul.mubr.msk.bf16.vlgmr.msra.gmra.mxu0 %vm336_vm0, %v1782_v14 }
  0x40   : > { %1594 = vmatpush3.bf16.msra.mxu0 %v953_v44  ;;  %1597 = vmatprep.mubr.msk.bf16.mxu0 %vm336_vm0, %v1771_v8 }
  0x41   : > { %1595 = vmatprep.subr.bf16.mxu0 %v952_v47 }
  0x44   : > { %1596 = vmatpush3.bf16.msra.mxu0 %v952_v47 }
  0x45   : > { %1609 = vmatprep.subr.bf16.mxu0 %v1072_v50 }
  0x47   : > { %1598 = vmatmul.mubr.msk.bf16.vlgmr.msra.gmra.mxu0 %vm336_vm0, %v1782_v14 }
  0x48   : > { %1610 = vmatpush3.bf16.msra.mxu0 %v1072_v50  ;;  %1613 = vmatprep.mubr.msk.bf16.mxu0 %vm336_vm0, %v1771_v8 }
  0x49   : > { %1611 = vmatprep.subr.bf16.mxu0 %v1071_v53 }
  0x4c   : > { %1612 = vmatpush3.bf16.msra.mxu0 %v1071_v53 }
  0x4d   : > { %1625 = vmatprep.subr.bf16.mxu0 %v1191_v56 }
  0x4f   : > { %1614 = vmatmul.mubr.msk.bf16.vlgmr.msra.gmra.mxu0 %vm336_vm0, %v1782_v14 }
  0x50   : > { %1626 = vmatpush3.bf16.msra.mxu0 %v1191_v56  ;;  %1629 = vmatprep.mubr.msk.bf16.mxu0 %vm336_vm0, %v1771_v8 }
  0x51   : > { %1627 = vmatprep.subr.bf16.mxu0 %v1190_v59 }
  0x54   : > { %1628 = vmatpush3.bf16.msra.mxu0 %v1190_v59 }
  0x57   : > { %1630 = vmatmul.mubr.msk.bf16.vlgmr.msra.gmra.mxu0 %vm336_vm0, %v1782_v14 }
  0x94   : > { %v1869_v61 = vpop.permute.xlu0 %284 }
  0x95   : > { %v1871_v62 = vpop.permute.xlu1 %274 }
  0x98   : > { %v1874_v2 = vpop.permute.xlu0 %289 }
  0x99   : > { %v1878_v6 = vpop.permute.xlu1 %279 }
  0xdf   : > { %v1519_v63 = vpop.f32.mrf.mxu0 }
  0xe0   : > { %v386_v1 = vadd.f32 %v1519_v63, %v1869_v61 }
  0xe1   : > { %v377_v0 = vpop.f32.mrf.mxu0 }
  0xe2   : > { %v378_v4 = vadd.f32 %v377_v0, %v1871_v62  ;;  %v394_v8 = vmax.f32 %v386_v1, 0.0 }
  0xe3   : > { %v1520_v3 = vpop.f32.mrf.mxu0 }
  0xe4   : > { %v389_v5 = vadd.f32 %v1520_v3, %v1874_v2  ;;  %v392_v12 = vmax.f32 %v378_v4, 0.0 }
  0xe5   : > { %v380_v7 = vpop.f32.mrf.mxu0 }
  0xe6   : > { %v395_v9 = vmax.f32 %v389_v5, 0.0  ;;  %v381_v10 = vadd.f32 %v380_v7, %v1878_v6 }
  0xe7   : > { %v1535_v11 = vpop.f32.mrf.mxu0 }
  0xe8   : > { %v393_v13 = vmax.f32 %v381_v10, 0.0  ;;  %v397_v14 = vpack.c.bf16 %v395_v9, %v394_v8  ;;  %v521_v17 = vadd.f32 %v1535_v11, %v1869_v61 }
  0xe9   : > { %v512_v15 = vpop.f32.mrf.mxu0 }
  0xea   : > { %v396_v16 = vpack.c.bf16 %v393_v13, %v392_v12  ;;  %1521 = vmatprep.subr.bf16.mxu1 %v397_v14  ;;  %v513_v19 = vadd.f32 %v512_v15, %v1871_v62  ;;  %v529_v22 = vmax.f32 %v521_v17, 0.0 }
  0xeb   : > { %1522 = vmatpush3.bf16.msra.mxu1 %v397_v14  ;;  %v1536_v18 = vpop.f32.mrf.mxu0 }
  0xec   : > { %v524_v20 = vadd.f32 %v1536_v18, %v1874_v2  ;;  %1523 = vmatprep.subr.bf16.mxu1 %v396_v16  ;;  %v527_v27 = vmax.f32 %v513_v19, 0.0 }
  0xed   : > { %v515_v21 = vpop.f32.mrf.mxu0 }
  0xee   : > { %v530_v23 = vmax.f32 %v524_v20, 0.0  ;;  %v516_v24 = vadd.f32 %v515_v21, %v1878_v6 }
  0xef   : > { %1524 = vmatpush3.bf16.msra.mxu1 %v396_v16  ;;  %v1551_v26 = vpop.f32.mrf.mxu0 }
  0xf0   : > { %v532_v28 = vpack.c.bf16 %v530_v23, %v529_v22  ;;  %v528_v29 = vmax.f32 %v516_v24, 0.0  ;;  %v640_v32 = vadd.f32 %v1551_v26, %v1869_v61 }
  0xf1   : > { %v631_v30 = vpop.f32.mrf.mxu0 }
  0xf2   : > { %v531_v31 = vpack.c.bf16 %v528_v29, %v527_v27  ;;  %1526 = vmatmul.mubr.msk.bf16.vlgmr.msra.gmra.mxu1 %vm336_vm0, %v1888_v25  ;;  %1537 = vmatprep.subr.bf16.mxu1 %v532_v28  ;;  %v632_v34 = vadd.f32 %v631_v30, %v1871_v62  ;;  %v648_v37 = vmax.f32 %v640_v32, 0.0 }
  0xf3   : > { %1538 = vmatpush3.bf16.msra.mxu1 %v532_v28  ;;  %v1552_v33 = vpop.f32.mrf.mxu0  ;;  %1541 = vmatprep.mubr.msk.bf16.mxu1 %vm336_vm0, %v1865_v60 }
  0xf4   : > { %v643_v35 = vadd.f32 %v1552_v33, %v1874_v2  ;;  %1539 = vmatprep.subr.bf16.mxu1 %v531_v31  ;;  %v646_v41 = vmax.f32 %v632_v34, 0.0 }
  0xf5   : > { %v634_v36 = vpop.f32.mrf.mxu0 }
  0xf6   : > { %v649_v38 = vmax.f32 %v643_v35, 0.0  ;;  %v635_v39 = vadd.f32 %v634_v36, %v1878_v6 }
  0xf7   : > { %1540 = vmatpush3.bf16.msra.mxu1 %v531_v31  ;;  %v1567_v40 = vpop.f32.mrf.mxu0 }
  0xf8   : > { %v651_v42 = vpack.c.bf16 %v649_v38, %v648_v37  ;;  %v647_v43 = vmax.f32 %v635_v39, 0.0  ;;  %v759_v46 = vadd.f32 %v1567_v40, %v1869_v61 }
  0xf9   : > { %v750_v44 = vpop.f32.mrf.mxu0 }
  0xfa   : > { %v650_v45 = vpack.c.bf16 %v647_v43, %v646_v41  ;;  %1542 = vmatmul.mubr.msk.bf16.vlgmr.msra.gmra.mxu1 %vm336_vm0, %v1888_v25  ;;  %1553 = vmatprep.subr.bf16.mxu1 %v651_v42  ;;  %v751_v48 = vadd.f32 %v750_v44, %v1871_v62  ;;  %v767_v51 = vmax.f32 %v759_v46, 0.0 }
  0xfb   : > { %1554 = vmatpush3.bf16.msra.mxu1 %v651_v42  ;;  %v1568_v47 = vpop.f32.mrf.mxu0  ;;  %1557 = vmatprep.mubr.msk.bf16.mxu1 %vm336_vm0, %v1865_v60 }
  0xfc   : > { %v762_v49 = vadd.f32 %v1568_v47, %v1874_v2  ;;  %1555 = vmatprep.subr.bf16.mxu1 %v650_v45  ;;  %v765_v55 = vmax.f32 %v751_v48, 0.0 }
  0xfd   : > { %v753_v50 = vpop.f32.mrf.mxu0 }
  0xfe   : > { %v768_v52 = vmax.f32 %v762_v49, 0.0  ;;  %v754_v53 = vadd.f32 %v753_v50, %v1878_v6 }
  0xff   : > { %1556 = vmatpush3.bf16.msra.mxu1 %v650_v45  ;;  %v1583_v54 = vpop.f32.mrf.mxu0 }
 0x100   : > { %v770_v56 = vpack.c.bf16 %v768_v52, %v767_v51  ;;  %v766_v57 = vmax.f32 %v754_v53, 0.0  ;;  %v878_v63 = vadd.f32 %v1583_v54, %v1869_v61 }
 0x101   : > { %v869_v58 = vpop.f32.mrf.mxu0 }
 0x102   : > { %v769_v59 = vpack.c.bf16 %v766_v57, %v765_v55  ;;  %1558 = vmatmul.mubr.msk.bf16.vlgmr.msra.gmra.mxu1 %vm336_vm0, %v1888_v25  ;;  %1569 = vmatprep.subr.bf16.mxu1 %v770_v56  ;;  %v870_v1 = vadd.f32 %v869_v58, %v1871_v62  ;;  %v886_v5 = vmax.f32 %v878_v63, 0.0 }
 0x103   : > { %1570 = vmatpush3.bf16.msra.mxu1 %v770_v56  ;;  %v1584_v0 = vpop.f32.mrf.mxu0  ;;  %1573 = vmatprep.mubr.msk.bf16.mxu1 %vm336_vm0, %v1865_v60 }
 0x104   : > { %v881_v3 = vadd.f32 %v1584_v0, %v1874_v2  ;;  %1571 = vmatprep.subr.bf16.mxu1 %v769_v59  ;;  %v884_v10 = vmax.f32 %v870_v1, 0.0 }
 0x105   : > { %v872_v4 = vpop.f32.mrf.mxu0 }
 0x106   : > { %v887_v7 = vmax.f32 %v881_v3, 0.0  ;;  %v873_v8 = vadd.f32 %v872_v4, %v1878_v6 }
 0x107   : > { %1572 = vmatpush3.bf16.msra.mxu1 %v769_v59  ;;  %v1599_v9 = vpop.f32.mrf.mxu0 }
 0x108   : > { %v889_v11 = vpack.c.bf16 %v887_v7, %v886_v5  ;;  %v885_v12 = vmax.f32 %v873_v8, 0.0  ;;  %v997_v15 = vadd.f32 %v1599_v9, %v1869_v61  ;;  %v1944_v7 = vpop.permute.xlu0 %298  ;;  %v1946_v9 = vpop.permute.xlu1 %303 }
 0x109   : > { %v988_v13 = vpop.f32.mrf.mxu0 }
 0x10a   : > { %v888_v14 = vpack.c.bf16 %v885_v12, %v884_v10  ;;  %1574 = vmatmul.mubr.msk.bf16.vlgmr.msra.gmra.mxu1 %vm336_vm0, %v1888_v25  ;;  %1585 = vmatprep.subr.bf16.mxu1 %v889_v11  ;;  %v989_v17 = vadd.f32 %v988_v13, %v1871_v62  ;;  %v1005_v20 = vmax.f32 %v997_v15, 0.0 }
 0x10b   : > { %1586 = vmatpush3.bf16.msra.mxu1 %v889_v11  ;;  %v1600_v16 = vpop.f32.mrf.mxu0  ;;  %1589 = vmatprep.mubr.msk.bf16.mxu1 %vm336_vm0, %v1865_v60 }
 0x10c   : > { %v1000_v18 = vadd.f32 %v1600_v16, %v1874_v2  ;;  %1587 = vmatprep.subr.bf16.mxu1 %v888_v14  ;;  %v1003_v24 = vmax.f32 %v989_v17, 0.0  ;;  %v1948_v11 = vpop.permute.xlu0 %308 }
 0x10d   : > { %v991_v19 = vpop.f32.mrf.mxu0 }
 0x10e   : > { %v1006_v21 = vmax.f32 %v1000_v18, 0.0  ;;  %v992_v22 = vadd.f32 %v991_v19, %v1878_v6 }
 0x10f   : > { %1588 = vmatpush3.bf16.msra.mxu1 %v888_v14  ;;  %v1615_v23 = vpop.f32.mrf.mxu0  ;;  %v1951_v14 = vpop.permute.xlu1 %313 }
 0x110   : > { %v1008_v26 = vpack.c.bf16 %v1006_v21, %v1005_v20  ;;  %v1004_v27 = vmax.f32 %v992_v22, 0.0  ;;  %v1116_v30 = vadd.f32 %v1615_v23, %v1869_v61 }
 0x111   : > { %v1107_v28 = vpop.f32.mrf.mxu0 }
 0x112   : > { %v1007_v29 = vpack.c.bf16 %v1004_v27, %v1003_v24  ;;  %1590 = vmatmul.mubr.msk.bf16.vlgmr.msra.gmra.mxu1 %vm336_vm0, %v1888_v25  ;;  %1601 = vmatprep.subr.bf16.mxu1 %v1008_v26  ;;  %v1108_v32 = vadd.f32 %v1107_v28, %v1871_v62  ;;  %v1124_v35 = vmax.f32 %v1116_v30, 0.0  ;;  %v318_v27 = vld [vmem:[%s2022_s5 + $0x10] sm:$0xff] }
 0x113   : > { %1602 = vmatpush3.bf16.msra.mxu1 %v1008_v26  ;;  %v1616_v31 = vpop.f32.mrf.mxu0  ;;  %1605 = vmatprep.mubr.msk.bf16.mxu1 %vm336_vm0, %v1865_v60 }
 0x114   : > { %v1119_v33 = vadd.f32 %v1616_v31, %v1874_v2  ;;  %1603 = vmatprep.subr.bf16.mxu1 %v1007_v29  ;;  %v1122_v39 = vmax.f32 %v1108_v32, 0.0 }
 0x115   : > { %v1110_v34 = vpop.f32.mrf.mxu0 }
 0x116   : > { %v1125_v36 = vmax.f32 %v1119_v33, 0.0  ;;  %v1111_v37 = vadd.f32 %v1110_v34, %v1878_v6 }
 0x117   : > { %1604 = vmatpush3.bf16.msra.mxu1 %v1007_v29  ;;  %v1631_v38 = vpop.f32.mrf.mxu0  ;;  %v316_v29 = vld [vmem:[%s2022_s5] sm:$0xff] }
 0x118   : > { %v1127_v40 = vpack.c.bf16 %v1125_v36, %v1124_v35  ;;  %v1123_v41 = vmax.f32 %v1111_v37, 0.0  ;;  %v1235_v44 = vadd.f32 %v1631_v38, %v1869_v61  ;;  %v319_v35 = vld [vmem:[%s2022_s5 + $0x18] sm:$0xff]  ;;  %v317_v36 = vld [vmem:[%s2022_s5 + $0x8] sm:$0xff] }
 0x119   : > { %v1226_v42 = vpop.f32.mrf.mxu0 }
 0x11a   : > { %v1126_v43 = vpack.c.bf16 %v1123_v41, %v1122_v39  ;;  %1606 = vmatmul.mubr.msk.bf16.vlgmr.msra.gmra.mxu1 %vm336_vm0, %v1888_v25  ;;  %1617 = vmatprep.subr.bf16.mxu1 %v1127_v40  ;;  %v1227_v46 = vadd.f32 %v1226_v42, %v1871_v62  ;;  %v1243_v49 = vmax.f32 %v1235_v44, 0.0 }
 0x11b   : > { %1618 = vmatpush3.bf16.msra.mxu1 %v1127_v40  ;;  %v1632_v45 = vpop.f32.mrf.mxu0  ;;  %1621 = vmatprep.mubr.msk.bf16.mxu1 %vm336_vm0, %v1865_v60 }
 0x11c   : > { %v1238_v47 = vadd.f32 %v1632_v45, %v1874_v2  ;;  %1619 = vmatprep.subr.bf16.mxu1 %v1126_v43  ;;  %v1241_v61 = vmax.f32 %v1227_v46, 0.0 }
 0x11d   : > { %v1229_v48 = vpop.f32.mrf.mxu0 }
 0x11e   : > { %v1244_v50 = vmax.f32 %v1238_v47, 0.0  ;;  %v1230_v51 = vadd.f32 %v1229_v48, %v1878_v6 }
 0x11f   : > { %1620 = vmatpush3.bf16.msra.mxu1 %v1126_v43 }
 0x120   : > { %v1246_v52 = vpack.c.bf16 %v1244_v50, %v1243_v49  ;;  %v1242_v53 = vmax.f32 %v1230_v51, 0.0 }
 0x122   : > { %v1245_v54 = vpack.c.bf16 %v1242_v53, %v1241_v61  ;;  %1622 = vmatmul.mubr.msk.bf16.vlgmr.msra.gmra.mxu1 %vm336_vm0, %v1888_v25  ;;  %1633 = vmatprep.subr.bf16.mxu1 %v1246_v52 }
 0x123   : > { %1634 = vmatpush3.bf16.msra.mxu1 %v1246_v52  ;;  %1637 = vmatprep.mubr.msk.bf16.mxu1 %vm336_vm0, %v1865_v60 }
 0x124   : > { %1635 = vmatprep.subr.bf16.mxu1 %v1245_v54 }
 0x127   : > { %1636 = vmatpush3.bf16.msra.mxu1 %v1245_v54 }
 0x12a   : > { %1638 = vmatmul.mubr.msk.bf16.vlgmr.msra.gmra.mxu1 %vm336_vm0, %v1888_v25 }
 0x1b2   : > { %v1527_v62 = vpop.f32.mrf.mxu1 }
 0x1b3   : > { %v457_v12 = vadd.f32 %v1527_v62, %v1948_v11 }
 0x1b4   : > { %v448_v2 = vpop.f32.mrf.mxu1 }
 0x1b5   : > { %v449_v15 = vadd.f32 %v448_v2, %v1944_v7  ;;  %v465_v21 = vmax.f32 %v457_v12, 0.0 }
 0x1b6   : > { %v1528_v6 = vpop.f32.mrf.mxu1 }
 0x1b7   : > { %v460_v16 = vadd.f32 %v1528_v6, %v1951_v14  ;;  %v463_v28 = vmax.f32 %v449_v15, 0.0  ;;  %v469_v39 = vmax.f32 %v318_v27, %v465_v21 }
 0x1b8   : > { %v451_v55 = vpop.f32.mrf.mxu1 }
 0x1b9   : > { %v452_v17 = vadd.f32 %v451_v55, %v1946_v9  ;;  %v466_v30 = vmax.f32 %v460_v16, 0.0  ;;  %v467_v44 = vmax.f32 %v316_v29, %v463_v28 }
 0x1ba   : > { %v1543_v56 = vpop.f32.mrf.mxu1 }
 0x1bb   : > { %v576_v18 = vadd.f32 %v1543_v56, %v1948_v11  ;;  %v464_v31 = vmax.f32 %v452_v17, 0.0  ;;  %v470_v48 = vmax.f32 %v319_v35, %v466_v30 }
 0x1bc   : > { %v567_v57 = vpop.f32.mrf.mxu1 }
 0x1bd   : > { %v568_v20 = vadd.f32 %v567_v57, %v1944_v7  ;;  %v584_v32 = vmax.f32 %v576_v18, 0.0  ;;  %v468_v49 = vmax.f32 %v317_v36, %v464_v31 }
 0x1be   : > { %v1544_v58 = vpop.f32.mrf.mxu1 }
 0x1bf   : > { %v579_v22 = vadd.f32 %v1544_v58, %v1951_v14  ;;  %v582_v37 = vmax.f32 %v568_v20, 0.0  ;;  %v588_v50 = vmax.f32 %v469_v39, %v584_v32 }
 0x1c0   : > { %v570_v59 = vpop.f32.mrf.mxu1 }
 0x1c1   : > { %v571_v23 = vadd.f32 %v570_v59, %v1946_v9  ;;  %v585_v40 = vmax.f32 %v579_v22, 0.0  ;;  %v586_v52 = vmax.f32 %v467_v44, %v582_v37 }
 0x1c2   : > { %v1559_v63 = vpop.f32.mrf.mxu1 }
 0x1c3   : > { %v695_v24 = vadd.f32 %v1559_v63, %v1948_v11  ;;  %v583_v41 = vmax.f32 %v571_v23, 0.0  ;;  %v589_v2 = vmax.f32 %v470_v48, %v585_v40 }
 0x1c4   : > { %v686_v0 = vpop.f32.mrf.mxu1 }
 0x1c5   : > { %v687_v33 = vadd.f32 %v686_v0, %v1944_v7  ;;  %v703_v42 = vmax.f32 %v695_v24, 0.0  ;;  %v587_v6 = vmax.f32 %v468_v49, %v583_v41 }
 0x1c6   : > { %v1560_v1 = vpop.f32.mrf.mxu1 }
 0x1c7   : > { %v698_v38 = vadd.f32 %v1560_v1, %v1951_v14  ;;  %v701_v51 = vmax.f32 %v687_v33, 0.0  ;;  %v707_v55 = vmax.f32 %v588_v50, %v703_v42 }
 0x1c8   : > { %v689_v3 = vpop.f32.mrf.mxu1 }
 0x1c9   : > { %v690_v45 = vadd.f32 %v689_v3, %v1946_v9  ;;  %v704_v53 = vmax.f32 %v698_v38, 0.0  ;;  %v705_v1 = vmax.f32 %v586_v52, %v701_v51 }
 0x1ca   : > { %v1575_v4 = vpop.f32.mrf.mxu1 }
 0x1cb   : > { %v814_v46 = vadd.f32 %v1575_v4, %v1948_v11  ;;  %v702_v58 = vmax.f32 %v690_v45, 0.0 }
 0x1cc   : > { %v805_v5 = vpop.f32.mrf.mxu1 }
 0x1cd   : > { %v806_v47 = vadd.f32 %v805_v5, %v1944_v7  ;;  %v822_v59 = vmax.f32 %v814_v46, 0.0  ;;  %v706_v22 = vmax.f32 %v587_v6, %v702_v58 }
 0x1ce   : > { %v1576_v60 = vpop.f32.mrf.mxu1 }
 0x1cf   : > { %v817_v54 = vadd.f32 %v1576_v60, %v1951_v14  ;;  %v820_v63 = vmax.f32 %v806_v47, 0.0 }
 0x1d0   : > { %v808_v8 = vpop.f32.mrf.mxu1 }
 0x1d1   : > { %v809_v3 = vadd.f32 %v808_v8, %v1946_v9  ;;  %v823_v12 = vmax.f32 %v817_v54, 0.0  ;;  %v826_v8 = vmax.f32 %v707_v55, %v822_v59  ;;  %v824_v23 = vmax.f32 %v705_v1, %v820_v63 }
 0x1d2   : > { %v1591_v25 = vpop.f32.mrf.mxu1 }
 0x1d3   : > { %v933_v62 = vadd.f32 %v1591_v25, %v1948_v11  ;;  %v708_v25 = vmax.f32 %v589_v2, %v704_v53  ;;  %v821_v24 = vmax.f32 %v809_v3, 0.0 }
 0x1d4   : > { %v924_v10 = vpop.f32.mrf.mxu1 }
 0x1d5   : > { %v925_v56 = vadd.f32 %v924_v10, %v1944_v7  ;;  %v941_v15 = vmax.f32 %v933_v62, 0.0  ;;  %v827_v30 = vmax.f32 %v708_v25, %v823_v12  ;;  %v825_v41 = vmax.f32 %v706_v22, %v821_v24 }
 0x1d6   : > { %v1592_v13 = vpop.f32.mrf.mxu1 }
 0x1d7   : > { %v936_v4 = vadd.f32 %v1592_v13, %v1951_v14  ;;  %v939_v10 = vmax.f32 %v925_v56, 0.0  ;;  %v945_v31 = vmax.f32 %v826_v8, %v941_v15 }
 0x1d8   : > { %v927_v19 = vpop.f32.mrf.mxu1 }
 0x1d9   : > { %v928_v17 = vadd.f32 %v927_v19, %v1946_v9  ;;  %v943_v33 = vmax.f32 %v824_v23, %v939_v10 }
 0x1da   : > { %v1607_v26 = vpop.f32.mrf.mxu1 }
 0x1db   : > { %v1052_v0 = vadd.f32 %v1607_v26, %v1948_v11  ;;  %v942_v26 = vmax.f32 %v936_v4, 0.0 }
 0x1dc   : > { %v1043_v34 = vpop.f32.mrf.mxu1 }
 0x1dd   : > { %v1044_v5 = vadd.f32 %v1043_v34, %v1944_v7  ;;  %v1060_v13 = vmax.f32 %v1052_v0, 0.0  ;;  %v940_v34 = vmax.f32 %v928_v17, 0.0  ;;  %v946_v42 = vmax.f32 %v827_v30, %v942_v26 }
 0x1de   : > { %v1608_v43 = vpop.f32.mrf.mxu1 }
 0x1df   : > { %v1055_v18 = vadd.f32 %v1608_v43, %v1951_v14  ;;  %v1058_v27 = vmax.f32 %v1044_v5, 0.0  ;;  %v1064_v38 = vmax.f32 %v945_v31, %v1060_v13  ;;  %v944_v50 = vmax.f32 %v825_v41, %v940_v34 }
 0x1e0   : > { %v1046_v61 = vpop.f32.mrf.mxu1 }
 0x1e1   : > { %v1047_v28 = vadd.f32 %v1046_v61, %v1946_v9  ;;  %v1061_v35 = vmax.f32 %v1055_v18, 0.0  ;;  %v1062_v43 = vmax.f32 %v943_v33, %v1058_v27 }
 0x1e2   : > { %v1623_v57 = vpop.f32.mrf.mxu1 }
 0x1e3   : > { %v1171_v16 = vadd.f32 %v1623_v57, %v1948_v11  ;;  %v1059_v44 = vmax.f32 %v1047_v28, 0.0  ;;  %v1065_v51 = vmax.f32 %v946_v42, %v1061_v35 }
 0x1e4   : > { %v1162_v60 = vpop.f32.mrf.mxu1 }
 0x1e5   : > { %v1163_v20 = vadd.f32 %v1162_v60, %v1944_v7  ;;  %v1179_v32 = vmax.f32 %v1171_v16, 0.0 }
 0x1e6   : > { %v1624_v21 = vpop.f32.mrf.mxu1 }
 0x1e7   : > { %v1174_v19 = vadd.f32 %v1624_v21, %v1951_v14  ;;  %v1177_v36 = vmax.f32 %v1163_v20, 0.0  ;;  %v1183_v46 = vmax.f32 %v1064_v38, %v1179_v32 }
 0x1e8   : > { %v1165_v29 = vpop.f32.mrf.mxu1 }
 0x1e9   : > { %v1166_v39 = vadd.f32 %v1165_v29, %v1946_v9  ;;  %v1180_v47 = vmax.f32 %v1174_v19, 0.0  ;;  %v1181_v61 = vmax.f32 %v1062_v43, %v1177_v36 }
 0x1ea   : > { %v1639_v37 = vpop.f32.mrf.mxu1 }
 0x1eb   : > { %v1290_v40 = vadd.f32 %v1639_v37, %v1948_v11  ;;  %v1178_v53 = vmax.f32 %v1166_v39, 0.0  ;;  %v1063_v11 = vmax.f32 %v944_v50, %v1059_v44  ;;  %v1184_v55 = vmax.f32 %v1065_v51, %v1180_v47 }
 0x1ec   : > { %v1281_v45 = vpop.f32.mrf.mxu1 }
 0x1ed   : > { %v1298_v48 = vmax.f32 %v1290_v40, 0.0  ;;  %v1282_v49 = vadd.f32 %v1281_v45, %v1944_v7  ;;  %v1182_v58 = vmax.f32 %v1063_v11, %v1178_v53 }
 0x1ee   : > { %v1640_v52 = vpop.f32.mrf.mxu1 }
 0x1ef   : > { %v1302_v54 = vmax.f32 %v1183_v46, %v1298_v48  ;;  %v1296_v62 = vmax.f32 %v1282_v49, 0.0  ;;  %v1293_v2 = vadd.f32 %v1640_v52, %v1951_v14 }
 0x1f0   : > { %v1284_v6 = vpop.f32.mrf.mxu1 }
 0x1f1   : > { %1306 = vst [vmem:[%s2022_s5 + $0x10] sm:$0xff] %v1302_v54  ;;  %v1300_v56 = vmax.f32 %v1181_v61, %v1296_v62  ;;  %v1299_v57 = vmax.f32 %v1293_v2, 0.0  ;;  %v1285_v7 = vadd.f32 %v1284_v6, %v1946_v9 }
 0x1f3   : > { %1304 = vst [vmem:[%s2022_s5] sm:$0xff] %v1300_v56  ;;  %v1303_v59 = vmax.f32 %v1184_v55, %v1299_v57  ;;  %v1297_v63 = vmax.f32 %v1285_v7, 0.0 }
 0x1f5   : > { %1307 = vst [vmem:[%s2022_s5 + $0x18] sm:$0xff] %v1303_v59  ;;  %v1301_v14 = vmax.f32 %v1182_v58, %v1297_v63 }
 0x1f7   : > { %1305 = vst [vmem:[%s2022_s5 + $0x8] sm:$0xff] %v1301_v14 }
 0x1f8 PF: > { %s15_s20 = sadd.s32 1, %s1695_s20   ;;  %s2023_s18 = smov %s1691_s19 }
 0x1f9   : > { %p12_p6 = scmp.ge.s32.totalorder %s15_s20, 6   ;;  %s2024_s19 = smov %s2026_s21 }
 0x1fb   :  { %14 = sbr.rel (!%p12_p6) target bundleno = 2 (0x2), region = 81 }

// kernel: sub.30
= control target key start
LH: loop header
LB: loop body
LE: loop exit
PB: predicated region body
PF: predicated region fallthrough
CT: control target
= control target key end

     0   :  { %s440_s0 = inlined_call_operand.vmem [shape: f32[2,8,32], index: 0, kind: input, shape index: {}]   ;;  %s441_s1 = inlined_call_operand.vmem [shape: f32[2,8,32,32], index: 1, kind: output, shape index: {}]  }
   0x1   :  { %v4_v0 = vld [vmem:[%s440_s0] sm:$0xff]  ;;  %v214_v1 = vld [vmem:[%s440_s0 + $0x8] sm:$0xff] }
   0x2   :  { %5 = vst [vmem:[%s441_s1] sm:$0xff] %v4_v0  ;;  %134 = vst [vmem:[%s441_s1 + $0x10] sm:$0xff] %v4_v0 }
   0x3   :  { %135 = vst [vmem:[%s441_s1 + $0x20] sm:$0xff] %v4_v0  ;;  %136 = vst [vmem:[%s441_s1 + $0x30] sm:$0xff] %v4_v0 }
   0x4   :  { %137 = vst [vmem:[%s441_s1 + $0x40] sm:$0xff] %v4_v0  ;;  %138 = vst [vmem:[%s441_s1 + $0x50] sm:$0xff] %v4_v0 }
   0x5   :  { %139 = vst [vmem:[%s441_s1 + $0x60] sm:$0xff] %v4_v0  ;;  %140 = vst [vmem:[%s441_s1 + $0x70] sm:$0xff] %v4_v0 }
   0x6   :  { %141 = vst [vmem:[%s441_s1 + $0x80] sm:$0xff] %v4_v0  ;;  %142 = vst [vmem:[%s441_s1 + $0x90] sm:$0xff] %v4_v0 }
   0x7   :  { %143 = vst [vmem:[%s441_s1 + $0xa0] sm:$0xff] %v4_v0  ;;  %144 = vst [vmem:[%s441_s1 + $0xb0] sm:$0xff] %v4_v0 }
   0x8   :  { %145 = vst [vmem:[%s441_s1 + $0xc0] sm:$0xff] %v4_v0  ;;  %146 = vst [vmem:[%s441_s1 + $0xd0] sm:$0xff] %v4_v0 }
   0x9   :  { %147 = vst [vmem:[%s441_s1 + $0xe0] sm:$0xff] %v4_v0  ;;  %148 = vst [vmem:[%s441_s1 + $0xf0] sm:$0xff] %v4_v0 }
   0xa   :  { %149 = vst [vmem:[%s441_s1 + $0x100] sm:$0xff] %v4_v0  ;;  %150 = vst [vmem:[%s441_s1 + $0x110] sm:$0xff] %v4_v0 }
   0xb   :  { %151 = vst [vmem:[%s441_s1 + $0x120] sm:$0xff] %v4_v0  ;;  %152 = vst [vmem:[%s441_s1 + $0x130] sm:$0xff] %v4_v0 }
   0xc   :  { %153 = vst [vmem:[%s441_s1 + $0x140] sm:$0xff] %v4_v0  ;;  %154 = vst [vmem:[%s441_s1 + $0x150] sm:$0xff] %v4_v0 }
   0xd   :  { %155 = vst [vmem:[%s441_s1 + $0x160] sm:$0xff] %v4_v0  ;;  %156 = vst [vmem:[%s441_s1 + $0x170] sm:$0xff] %v4_v0 }
   0xe   :  { %157 = vst [vmem:[%s441_s1 + $0x180] sm:$0xff] %v4_v0  ;;  %158 = vst [vmem:[%s441_s1 + $0x190] sm:$0xff] %v4_v0 }
   0xf   :  { %159 = vst [vmem:[%s441_s1 + $0x1a0] sm:$0xff] %v4_v0  ;;  %160 = vst [vmem:[%s441_s1 + $0x1b0] sm:$0xff] %v4_v0 }
  0x10   :  { %161 = vst [vmem:[%s441_s1 + $0x1c0] sm:$0xff] %v4_v0  ;;  %162 = vst [vmem:[%s441_s1 + $0x1d0] sm:$0xff] %v4_v0 }
  0x11   :  { %163 = vst [vmem:[%s441_s1 + $0x1e0] sm:$0xff] %v4_v0  ;;  %164 = vst [vmem:[%s441_s1 + $0x1f0] sm:$0xff] %v4_v0 }
  0x12   :  { %166 = vst [vmem:[%s441_s1 + $0x8] sm:$0xff] %v214_v1  ;;  %167 = vst [vmem:[%s441_s1 + $0x18] sm:$0xff] %v214_v1 }
  0x13   :  { %168 = vst [vmem:[%s441_s1 + $0x28] sm:$0xff] %v214_v1  ;;  %169 = vst [vmem:[%s441_s1 + $0x38] sm:$0xff] %v214_v1 }
  0x14   :  { %170 = vst [vmem:[%s441_s1 + $0x48] sm:$0xff] %v214_v1  ;;  %171 = vst [vmem:[%s441_s1 + $0x58] sm:$0xff] %v214_v1 }
  0x15   :  { %172 = vst [vmem:[%s441_s1 + $0x68] sm:$0xff] %v214_v1  ;;  %173 = vst [vmem:[%s441_s1 + $0x78] sm:$0xff] %v214_v1 }
  0x16   :  { %174 = vst [vmem:[%s441_s1 + $0x88] sm:$0xff] %v214_v1  ;;  %175 = vst [vmem:[%s441_s1 + $0x98] sm:$0xff] %v214_v1 }
  0x17   :  { %176 = vst [vmem:[%s441_s1 + $0xa8] sm:$0xff] %v214_v1  ;;  %177 = vst [vmem:[%s441_s1 + $0xb8] sm:$0xff] %v214_v1 }
  0x18   :  { %178 = vst [vmem:[%s441_s1 + $0xc8] sm:$0xff] %v214_v1  ;;  %179 = vst [vmem:[%s441_s1 + $0xd8] sm:$0xff] %v214_v1 }
  0x19   :  { %180 = vst [vmem:[%s441_s1 + $0xe8] sm:$0xff] %v214_v1  ;;  %181 = vst [vmem:[%s441_s1 + $0xf8] sm:$0xff] %v214_v1 }
  0x1a   :  { %182 = vst [vmem:[%s441_s1 + $0x108] sm:$0xff] %v214_v1  ;;  %183 = vst [vmem:[%s441_s1 + $0x118] sm:$0xff] %v214_v1 }
  0x1b   :  { %184 = vst [vmem:[%s441_s1 + $0x128] sm:$0xff] %v214_v1  ;;  %185 = vst [vmem:[%s441_s1 + $0x138] sm:$0xff] %v214_v1 }
  0x1c   :  { %186 = vst [vmem:[%s441_s1 + $0x148] sm:$0xff] %v214_v1  ;;  %187 = vst [vmem:[%s441_s1 + $0x158] sm:$0xff] %v214_v1 }
  0x1d   :  { %188 = vst [vmem:[%s441_s1 + $0x168] sm:$0xff] %v214_v1  ;;  %189 = vst [vmem:[%s441_s1 + $0x178] sm:$0xff] %v214_v1 }
  0x1e   :  { %190 = vst [vmem:[%s441_s1 + $0x188] sm:$0xff] %v214_v1  ;;  %191 = vst [vmem:[%s441_s1 + $0x198] sm:$0xff] %v214_v1 }
  0x1f   :  { %192 = vst [vmem:[%s441_s1 + $0x1a8] sm:$0xff] %v214_v1  ;;  %193 = vst [vmem:[%s441_s1 + $0x1b8] sm:$0xff] %v214_v1 }
  0x20   :  { %194 = vst [vmem:[%s441_s1 + $0x1c8] sm:$0xff] %v214_v1  ;;  %195 = vst [vmem:[%s441_s1 + $0x1d8] sm:$0xff] %v214_v1 }
  0x21   :  { %196 = vst [vmem:[%s441_s1 + $0x1e8] sm:$0xff] %v214_v1  ;;  %197 = vst [vmem:[%s441_s1 + $0x1f8] sm:$0xff] %v214_v1 }

// kernel: _lambda_.22
= control target key start
LH: loop header
LB: loop body
LE: loop exit
PB: predicated region body
PF: predicated region fallthrough
CT: control target
= control target key end

     0   :  { %v249_v3 = vmov 0   ;;  %vm103_vm0 = vcmask 523264   ;;  %vm189_vm1 = vcmask 130048   ;;  %s366_s0 = inlined_call_operand.vmem [shape: f32[64,16], index: 0, kind: input, shape index: {}]   ;;  %s367_s1 = inlined_call_operand.vmem [shape: bf16[64,64], index: 1, kind: input, shape index: {}]   ;;  %s368_s2 = inlined_call_operand.vmem [shape: f32[64,1], index: 2, kind: input, shape index: {}]   ;;  %s369_s3 = inlined_call_operand.vmem [shape: f32[64,16], index: 3, kind: output, shape index: {}]  }
   0x1   :  { %v21_v0 = vld [vmem:[%s366_s0 + $0x30] sm:$0xff]  ;;  %v22_v1 = vld [vmem:[%s366_s0 + $0x38] sm:$0xff]  ;;  %v19_v2 = vld [vmem:[%s366_s0 + $0x20] sm:$0xff]  ;;  %244 = vset.pattern.permute.xlu1 %v249_v3  ;;  %243 = vset.pattern.permute.xlu0 %v249_v3 }
   0x2   :  { %v26_v4 = vpack.c.bf16 %v22_v1, %v21_v0  ;;  %v20_v5 = vld [vmem:[%s366_s0 + $0x28] sm:$0xff]  ;;  %v17_v7 = vld [vmem:[%s366_s0 + $0x10] sm:$0xff]  ;;  %v18_v8 = vld [vmem:[%s366_s0 + $0x18] sm:$0xff] }
   0x3   :  { %v25_v6 = vpack.c.bf16 %v20_v5, %v19_v2  ;;  %v245_v9 = vld [vmem:[%s367_s1] sm:$0xff]   ;;  %v246_v10 = vld [vmem:[%s367_s1 + $0x10] sm:$0xff]   ;;  %v24_v11 = vpack.c.bf16 %v18_v8, %v17_v7  ;;  %v16_v13 = vld [vmem:[%s366_s0 + $0x8] sm:$0xff] }
   0x4   :  { %218 = vmatprep.subr.bf16.mxu0 %v26_v4  ;;  %234 = vmatprep.subr.bf16.mxu1 %v26_v4  ;;  %v15_v12 = vld [vmem:[%s366_s0] sm:$0xff]  ;;  %v37_v14 = vld [vmem:[%s368_s2 + $0x10] sm:$0xff]  ;;  %v38_v16 = vld [vmem:[%s368_s2 + $0x18] sm:$0xff] }
   0x5   :  { %219 = vmatpush3.bf16.msra.mxu0 %v26_v4  ;;  %238 = vmatpush3.bf16.msra.mxu1 %v26_v4  ;;  %v35_v15 = vld [vmem:[%s368_s2] sm:$0xff]  ;;  %v23_v17 = vpack.c.bf16 %v16_v13, %v15_v12  ;;  %v36_v18 = vld [vmem:[%s368_s2 + $0x8] sm:$0xff]  ;;  %v248_v21 = vld [vmem:[%s367_s1 + $0x18] sm:$0xff]  }
   0x6   :  { %220 = vmatprep.subr.bf16.mxu0 %v25_v6  ;;  %235 = vmatprep.subr.bf16.mxu1 %v25_v6  ;;  %v40_v19 = vld [vmem:[%s368_s2 + $0x28] sm:$0xff]  ;;  %v39_v22 = vld [vmem:[%s368_s2 + $0x20] sm:$0xff]  ;;  %v42_v23 = vld [vmem:[%s368_s2 + $0x38] sm:$0xff] }
   0x7   :  { %226 = vmatprep.mubr.msk.bf16.mxu0 %vm103_vm0, %v245_v9  ;;  %230 = vmatprep.mubr.msk.bf16.mxu1 %vm103_vm0, %v246_v10  ;;  %v247_v20 = vld [vmem:[%s367_s1 + $0x8] sm:$0xff]   ;;  %v41_v24 = vld [vmem:[%s368_s2 + $0x30] sm:$0xff] }
   0x8   :  { %55 = vperm.xlu1 %244, %v37_v14   ;;  %45 = vperm.xlu0 %243, %v35_v15  }
   0x9   :  { %221 = vmatpush3.bf16.msra.mxu0 %v25_v6  ;;  %239 = vmatpush3.bf16.msra.mxu1 %v25_v6 }
   0xa   :  { %222 = vmatprep.subr.bf16.mxu0 %v24_v11  ;;  %236 = vmatprep.subr.bf16.mxu1 %v24_v11 }
   0xc   :  { %60 = vperm.xlu1 %244, %v38_v16   ;;  %50 = vperm.xlu0 %243, %v36_v18  }
   0xd   :  { %223 = vmatpush3.bf16.msra.mxu0 %v24_v11  ;;  %240 = vmatpush3.bf16.msra.mxu1 %v24_v11 }
   0xe   :  { %224 = vmatprep.subr.bf16.mxu0 %v23_v17  ;;  %237 = vmatprep.subr.bf16.mxu1 %v23_v17 }
  0x10   :  { %70 = vperm.xlu1 %244, %v40_v19   ;;  %65 = vperm.xlu0 %243, %v39_v22  }
  0x11   :  { %225 = vmatpush3.bf16.msra.mxu0 %v23_v17  ;;  %241 = vmatpush3.bf16.msra.mxu1 %v23_v17 }
  0x14   :  { %227 = vmatmul.mubr.msk.bf16.vlgmr.msra.gmra.mxu0 %vm103_vm0, %v247_v20  ;;  %231 = vmatmul.mubr.msk.bf16.vlgmr.msra.gmra.mxu1 %vm103_vm0, %v248_v21 }
  0x15   :  { %80 = vperm.xlu1 %244, %v42_v23   ;;  %75 = vperm.xlu0 %243, %v41_v24  }
  0x83   :  { %v46_v25 = vpop.permute.xlu0 %45  ;;  %v56_v26 = vpop.permute.xlu1 %55 }
  0x87   :  { %v51_v27 = vpop.permute.xlu0 %50  ;;  %v61_v28 = vpop.permute.xlu1 %60 }
  0x8b   :  { %v66_v29 = vpop.permute.xlu0 %65  ;;  %v71_v30 = vpop.permute.xlu1 %70 }
  0x90   :  { %v76_v31 = vpop.permute.xlu0 %75  ;;  %v81_v38 = vpop.permute.xlu1 %80 }
  0xd4   :  { %v228_v32 = vpop.f32.mrf.mxu0  ;;  %v232_v33 = vpop.f32.mrf.mxu1 }
  0xd5   :  { %v159_v34 = vadd.f32 %v228_v32, %v56_v26  ;;  %v175_v35 = vadd.f32 %v232_v33, %v76_v31 }
  0xd6   :  { %v150_v36 = vpop.f32.mrf.mxu0  ;;  %v166_v37 = vpop.f32.mrf.mxu1 }
  0xd7   :  { %v183_v39 = vmax.f32 %v159_v34, 0.0  ;;  %v187_v40 = vmax.f32 %v175_v35, 0.0  ;;  %v151_v41 = vadd.f32 %v150_v36, %v46_v25  ;;  %v167_v42 = vadd.f32 %v166_v37, %v66_v29 }
  0xd8   :  { %v229_v43 = vpop.f32.mrf.mxu0  ;;  %v233_v44 = vpop.f32.mrf.mxu1 }
  0xd9   :  { %192 = vst.msk [vmem:[%s369_s3 + $0x10] sm:$0xff] %vm189_vm1, %v183_v39  ;;  %196 = vst.msk [vmem:[%s369_s3 + $0x30] sm:$0xff] %vm189_vm1, %v187_v40  ;;  %v181_v45 = vmax.f32 %v151_v41, 0.0  ;;  %v185_v46 = vmax.f32 %v167_v42, 0.0  ;;  %v162_v47 = vadd.f32 %v229_v43, %v61_v28  ;;  %v178_v48 = vadd.f32 %v233_v44, %v81_v38 }
  0xda   :  { %v153_v49 = vpop.f32.mrf.mxu0  ;;  %v169_v50 = vpop.f32.mrf.mxu1 }
  0xdb   :  { %190 = vst.msk [vmem:[%s369_s3] sm:$0xff] %vm189_vm1, %v181_v45  ;;  %194 = vst.msk [vmem:[%s369_s3 + $0x20] sm:$0xff] %vm189_vm1, %v185_v46  ;;  %v184_v51 = vmax.f32 %v162_v47, 0.0  ;;  %v188_v52 = vmax.f32 %v178_v48, 0.0  ;;  %v154_v53 = vadd.f32 %v153_v49, %v51_v27  ;;  %v170_v54 = vadd.f32 %v169_v50, %v71_v30 }
  0xdd   :  { %193 = vst.msk [vmem:[%s369_s3 + $0x18] sm:$0xff] %vm189_vm1, %v184_v51  ;;  %197 = vst.msk [vmem:[%s369_s3 + $0x38] sm:$0xff] %vm189_vm1, %v188_v52  ;;  %v182_v55 = vmax.f32 %v154_v53, 0.0  ;;  %v186_v56 = vmax.f32 %v170_v54, 0.0 }
  0xdf   :  { %191 = vst.msk [vmem:[%s369_s3 + $0x8] sm:$0xff] %vm189_vm1, %v182_v55  ;;  %195 = vst.msk [vmem:[%s369_s3 + $0x28] sm:$0xff] %vm189_vm1, %v186_v56 }

// kernel: _lambda_.21
= control target key start
LH: loop header
LB: loop body
LE: loop exit
PB: predicated region body
PF: predicated region fallthrough
CT: control target
= control target key end

     0   :  { %s2507_s18 = smov 0   ;;  %s2509_s19 = smov 0   ;;  %s3107_s0 = inlined_call_operand.vmem [shape: f32[32,64,16], index: 0, kind: input, shape index: {}]   ;;  %s3108_s1 = inlined_call_operand.vmem [shape: bf16[64,64], index: 1, kind: input, shape index: {}]   ;;  %s3109_s2 = inlined_call_operand.vmem [shape: f32[64,1], index: 2, kind: input, shape index: {}, may-alias: {2,4}]   ;;  %s3110_s3 = inlined_call_operand.vmem [shape: bf16[64,64], index: 3, kind: input, shape index: {}]   ;;  %s3111_s4 = inlined_call_operand.vmem [shape: f32[64,1], index: 4, kind: input, shape index: {}, may-alias: {2,4}]   ;;  %s3112_s5 = inlined_call_operand.vmem [shape: f32[64,16], index: 5, kind: output, shape index: {}]  }
   0x1   :  { %s2511_s20 = smov 0  }
   0x2 LB: > { %s24_s21 = sadd.s32 1, %s2469_s19  ;;  %p1894_p0 = scmp.ge.s32.totalorder %s2473_s20, 1  ;;  %s2473_s20 = sphi %s2511_s20, %s15_s20   ;;  %s2469_s19 = sphi %s2509_s19, %s3114_s19   ;;  %s2465_s18 = sphi %s2507_s18, %s3113_s18  }
   0x3   : > { %p25_p1 = scmp.ge.s32.totalorder %s24_s21, 4  ;;  %p206_p2 = scmp.lt.s32.totalorder %s2473_s20, 5 }
   0x5   : > { %s3116_s21 = smov (%p25_p1, %s24_s21), 0  ;;  %p207_p3 = pnand %p1894_p0, %p206_p2 }
   0x6   : > { %s1895_s22 = sshll.u32 (!%p207_p3), %s2465_s18, 3  ;;  %p1898_p5 = scmp.ne.s32.totalorder (!%p207_p3), %s2465_s18, 0 }
   0x7   : > { %210 = sbr.rel (%p207_p3) target bundleno = 594 (0x252), region = 40  ;;  %p238_p4 = scmp.lt.s32.totalorder (!%p207_p3), %s1895_s22, 31 }
   0xc   : > { %s3118_s22 = smov (!%p238_p4, %s1895_s22), 31  ;;  %255 = sbr.rel (%p1898_p5) target bundleno = 22 (0x16), region = 44 }
   0xd   : > { %s2030_s23 = sshll.u32 %s3118_s22, 6 }
   0xe   : > { %s2528_s26 = scalar_lea.vmem %s3107_s0, %s2030_s23 }
  0x11   : > { %vm256_vm0 = vcmask 130048   ;;  %v2475_v0 = vmov 0.0  }
  0x12   : > { %257 = vst.msk [vmem:[%s3112_s5] sm:$0xff] %vm256_vm0, %v2475_v0  ;;  %258 = vst.msk [vmem:[%s3112_s5 + $0x8] sm:$0xff] %vm256_vm0, %v2475_v0 }
  0x13   : > { %259 = vst.msk [vmem:[%s3112_s5 + $0x10] sm:$0xff] %vm256_vm0, %v2475_v0  ;;  %260 = vst.msk [vmem:[%s3112_s5 + $0x18] sm:$0xff] %vm256_vm0, %v2475_v0 }
  0x14   : > { %261 = vst.msk [vmem:[%s3112_s5 + $0x20] sm:$0xff] %vm256_vm0, %v2475_v0  ;;  %262 = vst.msk [vmem:[%s3112_s5 + $0x28] sm:$0xff] %vm256_vm0, %v2475_v0 }
  0x15   : > { %263 = vst.msk [vmem:[%s3112_s5 + $0x30] sm:$0xff] %vm256_vm0, %v2475_v0  ;;  %264 = vst.msk [vmem:[%s3112_s5 + $0x38] sm:$0xff] %vm256_vm0, %v2475_v0 }
  0x16 PF: > { %v391_v1 = vld [vmem:[%s2528_s26 + $0x30] sm:$0xff]  ;;  %v392_v2 = vld [vmem:[%s2528_s26 + $0x38] sm:$0xff]  ;;  %v389_v3 = vld [vmem:[%s2528_s26 + $0x20] sm:$0xff]  ;;  %v2476_v6 = vmov 0   ;;  %vm417_vm1 = vcmask 523264   ;;  %vm1817_vm2 = vcmask 130048  }
  0x17   : > { %v396_v4 = vpack.c.bf16 %v392_v2, %v391_v1  ;;  %v390_v5 = vld [vmem:[%s2528_s26 + $0x28] sm:$0xff]  ;;  %2441 = vset.pattern.permute.xlu0 %v2476_v6  ;;  %2442 = vset.pattern.permute.xlu1 %v2476_v6  ;;  %v387_v8 = vld [vmem:[%s2528_s26 + $0x10] sm:$0xff]  ;;  %v388_v9 = vld [vmem:[%s2528_s26 + $0x18] sm:$0xff] }
  0x18   : > { %v395_v7 = vpack.c.bf16 %v390_v5, %v389_v3  ;;  %v2563_v10 = vld [vmem:[%s3108_s1] sm:$0xff]   ;;  %v394_v11 = vpack.c.bf16 %v388_v9, %v387_v8  ;;  %v386_v13 = vld [vmem:[%s2528_s26 + $0x8] sm:$0xff]  ;;  %v1921_v15 = vld [vmem:[%s2528_s26 + $0x70] sm:$0xff] }
  0x19   : > { %2159 = vmatprep.subr.bf16.mxu0 %v396_v4  ;;  %v385_v12 = vld [vmem:[%s2528_s26] sm:$0xff]  ;;  %2167 = vmatprep.mubr.msk.bf16.mxu0 %vm417_vm1, %v2563_v10  ;;  %v1922_v16 = vld [vmem:[%s2528_s26 + $0x78] sm:$0xff]  ;;  %v1920_v19 = vld [vmem:[%s2528_s26 + $0x68] sm:$0xff] }
  0x1a   : > { %2160 = vmatpush3.bf16.msra.mxu0 %v396_v4  ;;  %v393_v14 = vpack.c.bf16 %v386_v13, %v385_v12  ;;  %v632_v17 = vpack.c.bf16 %v1922_v16, %v1921_v15  ;;  %v1919_v18 = vld [vmem:[%s2528_s26 + $0x60] sm:$0xff]  ;;  %v2576_v20 = vld [vmem:[%s3108_s1 + $0x8] sm:$0xff]   ;;  %v287_v21 = vld [vmem:[%s3109_s2 + $0x30] sm:$0xff] }
  0x1b   : > { %2161 = vmatprep.subr.bf16.mxu0 %v395_v7  ;;  %v2584_v22 = vld [vmem:[%s3108_s1 + $0x10] sm:$0xff]   ;;  %321 = vperm.xlu0 %2441, %v287_v21   ;;  %v285_v23 = vld [vmem:[%s3109_s2 + $0x20] sm:$0xff]  ;;  %v631_v24 = vpack.c.bf16 %v1920_v19, %v1919_v18  ;;  %v1918_v26 = vld [vmem:[%s2528_s26 + $0x58] sm:$0xff] }
  0x1c   : > { %311 = vperm.xlu1 %2442, %v285_v23   ;;  %v1917_v25 = vld [vmem:[%s2528_s26 + $0x50] sm:$0xff]  ;;  %v288_v27 = vld [vmem:[%s3109_s2 + $0x38] sm:$0xff]  ;;  %v286_v28 = vld [vmem:[%s3109_s2 + $0x28] sm:$0xff] }
  0x1d   : > { %v630_v29 = vpack.c.bf16 %v1918_v26, %v1917_v25  ;;  %v1915_v30 = vld [vmem:[%s2528_s26 + $0x40] sm:$0xff]  ;;  %v1916_v31 = vld [vmem:[%s2528_s26 + $0x48] sm:$0xff]  ;;  %v283_v32 = vld [vmem:[%s3109_s2 + $0x10] sm:$0xff] }
  0x1e   : > { %2162 = vmatpush3.bf16.msra.mxu0 %v395_v7  ;;  %v2609_v33 = vld [vmem:[%s3108_s1 + $0x18] sm:$0xff]   ;;  %v629_v35 = vpack.c.bf16 %v1916_v31, %v1915_v30  ;;  %v1937_v36 = vld [vmem:[%s2528_s26 + $0xb0] sm:$0xff]  ;;  %v281_v38 = vld [vmem:[%s3109_s2] sm:$0xff] }
  0x1f   : > { %2163 = vmatprep.subr.bf16.mxu0 %v394_v11  ;;  %326 = vperm.xlu0 %2441, %v288_v27   ;;  %v284_v34 = vld [vmem:[%s3109_s2 + $0x18] sm:$0xff]  ;;  %v282_v39 = vld [vmem:[%s3109_s2 + $0x8] sm:$0xff]  ;;  %v1935_v41 = vld [vmem:[%s2528_s26 + $0xa0] sm:$0xff] }
  0x20   : > { %316 = vperm.xlu1 %2442, %v286_v28   ;;  %v1938_v37 = vld [vmem:[%s2528_s26 + $0xb8] sm:$0xff]  ;;  %v1936_v42 = vld [vmem:[%s2528_s26 + $0xa8] sm:$0xff]  ;;  %v329_v43 = vld [vmem:[%s3111_s4] sm:$0xff] }
  0x21   : > { %v803_v40 = vpack.c.bf16 %v1938_v37, %v1937_v36  ;;  %v330_v44 = vld [vmem:[%s3111_s4 + $0x8] sm:$0xff]  ;;  %v802_v45 = vpack.c.bf16 %v1936_v42, %v1935_v41  ;;  %v1933_v46 = vld [vmem:[%s2528_s26 + $0x90] sm:$0xff]  ;;  %v1934_v47 = vld [vmem:[%s2528_s26 + $0x98] sm:$0xff] }
  0x22   : > { %2164 = vmatpush3.bf16.msra.mxu0 %v394_v11  ;;  %v331_v48 = vld [vmem:[%s3111_s4 + $0x10] sm:$0xff]  ;;  %v332_v49 = vld [vmem:[%s3111_s4 + $0x18] sm:$0xff]  ;;  %v801_v50 = vpack.c.bf16 %v1934_v47, %v1933_v46  ;;  %v1931_v51 = vld [vmem:[%s2528_s26 + $0x80] sm:$0xff] }
  0x23   : > { %2165 = vmatprep.subr.bf16.mxu0 %v393_v14  ;;  %301 = vperm.xlu0 %2441, %v283_v32   ;;  %v1932_v52 = vld [vmem:[%s2528_s26 + $0x88] sm:$0xff]  ;;  %v333_v53 = vld [vmem:[%s3111_s4 + $0x20] sm:$0xff]  ;;  %v1953_v56 = vld [vmem:[%s2528_s26 + $0xf0] sm:$0xff] }
  0x24   : > { %306 = vperm.xlu1 %2442, %v284_v34   ;;  %v334_v54 = vld [vmem:[%s3111_s4 + $0x28] sm:$0xff]  ;;  %v800_v55 = vpack.c.bf16 %v1932_v52, %v1931_v51  ;;  %v1954_v57 = vld [vmem:[%s2528_s26 + $0xf8] sm:$0xff]  ;;  %v335_v58 = vld [vmem:[%s3111_s4 + $0x30] sm:$0xff] }
  0x25   : > { %v336_v59 = vld [vmem:[%s3111_s4 + $0x38] sm:$0xff]  ;;  %v974_v60 = vpack.c.bf16 %v1954_v57, %v1953_v56  ;;  %v1951_v61 = vld [vmem:[%s2528_s26 + $0xe0] sm:$0xff]  ;;  %v1952_v62 = vld [vmem:[%s2528_s26 + $0xe8] sm:$0xff] }
  0x26   : > { %2166 = vmatpush3.bf16.msra.mxu0 %v393_v14  ;;  %v973_v63 = vpack.c.bf16 %v1952_v62, %v1951_v61  ;;  %v1949_v0 = vld [vmem:[%s2528_s26 + $0xd0] sm:$0xff]  ;;  %v1950_v1 = vld [vmem:[%s2528_s26 + $0xd8] sm:$0xff]  ;;  %v1947_v3 = vld [vmem:[%s2528_s26 + $0xc0] sm:$0xff] }
  0x27   : > { %2191 = vmatprep.subr.bf16.mxu0 %v632_v17  ;;  %291 = vperm.xlu0 %2441, %v281_v38   ;;  %v972_v2 = vpack.c.bf16 %v1950_v1, %v1949_v0  ;;  %v1948_v4 = vld [vmem:[%s2528_s26 + $0xc8] sm:$0xff]  ;;  %v1969_v6 = vld [vmem:[%s2528_s26 + $0x130] sm:$0xff]  ;;  %v1970_v7 = vld [vmem:[%s2528_s26 + $0x138] sm:$0xff] }
  0x28   : > { %296 = vperm.xlu1 %2442, %v282_v39   ;;  %v971_v5 = vpack.c.bf16 %v1948_v4, %v1947_v3  ;;  %v1145_v8 = vpack.c.bf16 %v1970_v7, %v1969_v6  ;;  %v1967_v9 = vld [vmem:[%s2528_s26 + $0x120] sm:$0xff]  ;;  %v1968_v11 = vld [vmem:[%s2528_s26 + $0x128] sm:$0xff]  ;;  %v1965_v13 = vld [vmem:[%s2528_s26 + $0x110] sm:$0xff] }
  0x29   : > { %2168 = vmatmul.mubr.msk.bf16.vlgmr.msra.gmra.mxu0 %vm417_vm1, %v2576_v20  ;;  %v1144_v12 = vpack.c.bf16 %v1968_v11, %v1967_v9  ;;  %v1966_v14 = vld [vmem:[%s2528_s26 + $0x118] sm:$0xff]  ;;  %v1963_v16 = vld [vmem:[%s2528_s26 + $0x100] sm:$0xff]  ;;  %v1985_v19 = vld [vmem:[%s2528_s26 + $0x170] sm:$0xff] }
  0x2a   : > { %2192 = vmatpush3.bf16.msra.mxu0 %v632_v17  ;;  %2171 = vmatprep.mubr.msk.bf16.mxu0 %vm417_vm1, %v2584_v22  ;;  %v1143_v15 = vpack.c.bf16 %v1966_v14, %v1965_v13  ;;  %v1964_v17 = vld [vmem:[%s2528_s26 + $0x108] sm:$0xff]  ;;  %v1986_v21 = vld [vmem:[%s2528_s26 + $0x178] sm:$0xff]  ;;  %v1981_v27 = vld [vmem:[%s2528_s26 + $0x150] sm:$0xff] }
  0x2b   : > { %2193 = vmatprep.subr.bf16.mxu0 %v631_v24  ;;  %339 = vperm.xlu0 %2441, %v329_v43   ;;  %v1142_v18 = vpack.c.bf16 %v1964_v17, %v1963_v16  ;;  %v1316_v23 = vpack.c.bf16 %v1986_v21, %v1985_v19  ;;  %v1984_v25 = vld [vmem:[%s2528_s26 + $0x168] sm:$0xff]  ;;  %v1982_v28 = vld [vmem:[%s2528_s26 + $0x158] sm:$0xff]  ;;  %v1979_v30 = vld [vmem:[%s2528_s26 + $0x140] sm:$0xff] }
  0x2c   : > { %344 = vperm.xlu1 %2442, %v330_v44   ;;  %v1980_v31 = vld [vmem:[%s2528_s26 + $0x148] sm:$0xff]  ;;  %v2001_v34 = vld [vmem:[%s2528_s26 + $0x1b0] sm:$0xff]  ;;  %v1999_v37 = vld [vmem:[%s2528_s26 + $0x1a0] sm:$0xff] }
  0x2d   : > { %v1313_v32 = vpack.c.bf16 %v1980_v31, %v1979_v30  ;;  %v2000_v38 = vld [vmem:[%s2528_s26 + $0x1a8] sm:$0xff]  ;;  %v1998_v41 = vld [vmem:[%s2528_s26 + $0x198] sm:$0xff]  ;;  %v1995_v43 = vld [vmem:[%s2528_s26 + $0x180] sm:$0xff] }
  0x2e   : > { %2194 = vmatpush3.bf16.msra.mxu0 %v631_v24  ;;  %v1983_v24 = vld [vmem:[%s2528_s26 + $0x160] sm:$0xff]  ;;  %v1486_v39 = vpack.c.bf16 %v2000_v38, %v1999_v37  ;;  %v1996_v44 = vld [vmem:[%s2528_s26 + $0x188] sm:$0xff]  ;;  %v2017_v46 = vld [vmem:[%s2528_s26 + $0x1f0] sm:$0xff] }
  0x2f   : > { %2195 = vmatprep.subr.bf16.mxu0 %v630_v29  ;;  %349 = vperm.xlu0 %2441, %v331_v48   ;;  %v1315_v26 = vpack.c.bf16 %v1984_v25, %v1983_v24  ;;  %v2018_v47 = vld [vmem:[%s2528_s26 + $0x1f8] sm:$0xff]  ;;  %v2013_v52 = vld [vmem:[%s2528_s26 + $0x1d0] sm:$0xff]  ;;  %v2011_v56 = vld [vmem:[%s2528_s26 + $0x1c0] sm:$0xff] }
  0x30   : > { %354 = vperm.xlu1 %2442, %v332_v49   ;;  %v1658_v48 = vpack.c.bf16 %v2018_v47, %v2017_v46  ;;  %v2015_v49 = vld [vmem:[%s2528_s26 + $0x1e0] sm:$0xff]  ;;  %v2012_v57 = vld [vmem:[%s2528_s26 + $0x1c8] sm:$0xff] }
  0x31   : > { %2172 = vmatmul.mubr.msk.bf16.gmra.mxu0 %vm417_vm1, %v2609_v33  ;;  %v2789_v46 = vld [vmem:[%s3110_s3 + $0x8] sm:$0xff]  }
  0x32   : > { %2196 = vmatpush3.bf16.msra.mxu0 %v630_v29  ;;  %2199 = vmatprep.mubr.msk.bf16.mxu0 %vm417_vm1, %v2563_v10  ;;  %v1314_v29 = vpack.c.bf16 %v1982_v28, %v1981_v27 }
  0x33   : > { %2197 = vmatprep.subr.bf16.mxu0 %v629_v35  ;;  %359 = vperm.xlu0 %2441, %v333_v53   ;;  %v2014_v53 = vld [vmem:[%s2528_s26 + $0x1d8] sm:$0xff] }
  0x34   : > { %364 = vperm.xlu1 %2442, %v334_v54   ;;  %v2739_v54 = vld [vmem:[%s3110_s3] sm:$0xff]  }
  0x35   : > { %2183 = vmatprep.mubr.msk.bf16.mxu1 %vm417_vm1, %v2739_v54 }
  0x36   : > { %2198 = vmatpush3.bf16.msra.mxu0 %v629_v35  ;;  %v2002_v35 = vld [vmem:[%s2528_s26 + $0x1b8] sm:$0xff] }
  0x37   : > { %2223 = vmatprep.subr.bf16.mxu0 %v803_v40  ;;  %369 = vperm.xlu0 %2441, %v335_v58   ;;  %v1487_v36 = vpack.c.bf16 %v2002_v35, %v2001_v34  ;;  %v1655_v58 = vpack.c.bf16 %v2012_v57, %v2011_v56 }
  0x38   : > { %374 = vperm.xlu1 %2442, %v336_v59  }
  0x39   : > { %2200 = vmatmul.mubr.msk.bf16.vlgmr.msra.gmra.mxu0 %vm417_vm1, %v2576_v20 }
  0x3a   : > { %2224 = vmatpush3.bf16.msra.mxu0 %v803_v40  ;;  %2203 = vmatprep.mubr.msk.bf16.mxu0 %vm417_vm1, %v2584_v22  ;;  %v1997_v40 = vld [vmem:[%s2528_s26 + $0x190] sm:$0xff] }
  0x3b   : > { %2225 = vmatprep.subr.bf16.mxu0 %v802_v45  ;;  %v1485_v42 = vpack.c.bf16 %v1998_v41, %v1997_v40 }
  0x3e   : > { %2226 = vmatpush3.bf16.msra.mxu0 %v802_v45  ;;  %v1484_v45 = vpack.c.bf16 %v1996_v44, %v1995_v43 }
  0x3f   : > { %2227 = vmatprep.subr.bf16.mxu0 %v801_v50 }
  0x41   : > { %2204 = vmatmul.mubr.msk.bf16.gmra.mxu0 %vm417_vm1, %v2609_v33 }
  0x42   : > { %2228 = vmatpush3.bf16.msra.mxu0 %v801_v50  ;;  %2231 = vmatprep.mubr.msk.bf16.mxu0 %vm417_vm1, %v2563_v10  ;;  %v2016_v50 = vld [vmem:[%s2528_s26 + $0x1e8] sm:$0xff] }
  0x43   : > { %2229 = vmatprep.subr.bf16.mxu0 %v800_v55  ;;  %v1657_v51 = vpack.c.bf16 %v2016_v50, %v2015_v49 }
  0x46   : > { %2230 = vmatpush3.bf16.msra.mxu0 %v800_v55  ;;  %v1656_v55 = vpack.c.bf16 %v2014_v53, %v2013_v52 }
  0x47   : > { %2255 = vmatprep.subr.bf16.mxu0 %v974_v60 }
  0x49   : > { %2232 = vmatmul.mubr.msk.bf16.vlgmr.msra.gmra.mxu0 %vm417_vm1, %v2576_v20 }
  0x4a   : > { %2256 = vmatpush3.bf16.msra.mxu0 %v974_v60  ;;  %2235 = vmatprep.mubr.msk.bf16.mxu0 %vm417_vm1, %v2584_v22 }
  0x4b   : > { %2257 = vmatprep.subr.bf16.mxu0 %v973_v63 }
  0x4e   : > { %2258 = vmatpush3.bf16.msra.mxu0 %v973_v63 }
  0x4f   : > { %2259 = vmatprep.subr.bf16.mxu0 %v972_v2 }
  0x51   : > { %2236 = vmatmul.mubr.msk.bf16.gmra.mxu0 %vm417_vm1, %v2609_v33 }
  0x52   : > { %2260 = vmatpush3.bf16.msra.mxu0 %v972_v2  ;;  %2263 = vmatprep.mubr.msk.bf16.mxu0 %vm417_vm1, %v2563_v10 }
  0x53   : > { %2261 = vmatprep.subr.bf16.mxu0 %v971_v5 }
  0x56   : > { %2262 = vmatpush3.bf16.msra.mxu0 %v971_v5 }
  0x57   : > { %2287 = vmatprep.subr.bf16.mxu0 %v1145_v8 }
  0x59   : > { %2264 = vmatmul.mubr.msk.bf16.vlgmr.msra.gmra.mxu0 %vm417_vm1, %v2576_v20 }
  0x5a   : > { %2288 = vmatpush3.bf16.msra.mxu0 %v1145_v8  ;;  %2267 = vmatprep.mubr.msk.bf16.mxu0 %vm417_vm1, %v2584_v22 }
  0x5b   : > { %2289 = vmatprep.subr.bf16.mxu0 %v1144_v12 }
  0x5e   : > { %2290 = vmatpush3.bf16.msra.mxu0 %v1144_v12 }
  0x5f   : > { %2291 = vmatprep.subr.bf16.mxu0 %v1143_v15 }
  0x61   : > { %2268 = vmatmul.mubr.msk.bf16.gmra.mxu0 %vm417_vm1, %v2609_v33 }
  0x62   : > { %2292 = vmatpush3.bf16.msra.mxu0 %v1143_v15  ;;  %2295 = vmatprep.mubr.msk.bf16.mxu0 %vm417_vm1, %v2563_v10 }
  0x63   : > { %2293 = vmatprep.subr.bf16.mxu0 %v1142_v18 }
  0x66   : > { %2294 = vmatpush3.bf16.msra.mxu0 %v1142_v18 }
  0x67   : > { %2319 = vmatprep.subr.bf16.mxu0 %v1316_v23 }
  0x69   : > { %2296 = vmatmul.mubr.msk.bf16.vlgmr.msra.gmra.mxu0 %vm417_vm1, %v2576_v20 }
  0x6a   : > { %2320 = vmatpush3.bf16.msra.mxu0 %v1316_v23  ;;  %2299 = vmatprep.mubr.msk.bf16.mxu0 %vm417_vm1, %v2584_v22 }
  0x6b   : > { %2321 = vmatprep.subr.bf16.mxu0 %v1315_v26 }
  0x6e   : > { %2322 = vmatpush3.bf16.msra.mxu0 %v1315_v26 }
  0x6f   : > { %2323 = vmatprep.subr.bf16.mxu0 %v1314_v29 }
  0x71   : > { %2300 = vmatmul.mubr.msk.bf16.gmra.mxu0 %vm417_vm1, %v2609_v33 }
  0x72   : > { %2324 = vmatpush3.bf16.msra.mxu0 %v1314_v29  ;;  %2327 = vmatprep.mubr.msk.bf16.mxu0 %vm417_vm1, %v2563_v10 }
  0x73   : > { %2325 = vmatprep.subr.bf16.mxu0 %v1313_v32 }
  0x76   : > { %2326 = vmatpush3.bf16.msra.mxu0 %v1313_v32 }
  0x77   : > { %2351 = vmatprep.subr.bf16.mxu0 %v1487_v36 }
  0x79   : > { %2328 = vmatmul.mubr.msk.bf16.vlgmr.msra.gmra.mxu0 %vm417_vm1, %v2576_v20 }
  0x7a   : > { %2352 = vmatpush3.bf16.msra.mxu0 %v1487_v36  ;;  %2331 = vmatprep.mubr.msk.bf16.mxu0 %vm417_vm1, %v2584_v22 }
  0x7b   : > { %2353 = vmatprep.subr.bf16.mxu0 %v1486_v39 }
  0x7e   : > { %2354 = vmatpush3.bf16.msra.mxu0 %v1486_v39 }
  0x7f   : > { %2355 = vmatprep.subr.bf16.mxu0 %v1485_v42 }
  0x81   : > { %2332 = vmatmul.mubr.msk.bf16.gmra.mxu0 %vm417_vm1, %v2609_v33 }
  0x82   : > { %2356 = vmatpush3.bf16.msra.mxu0 %v1485_v42  ;;  %2359 = vmatprep.mubr.msk.bf16.mxu0 %vm417_vm1, %v2563_v10 }
  0x83   : > { %2357 = vmatprep.subr.bf16.mxu0 %v1484_v45 }
  0x86   : > { %2358 = vmatpush3.bf16.msra.mxu0 %v1484_v45 }
  0x87   : > { %2383 = vmatprep.subr.bf16.mxu0 %v1658_v48 }
  0x89   : > { %2360 = vmatmul.mubr.msk.bf16.vlgmr.msra.gmra.mxu0 %vm417_vm1, %v2576_v20 }
  0x8a   : > { %2384 = vmatpush3.bf16.msra.mxu0 %v1658_v48  ;;  %2363 = vmatprep.mubr.msk.bf16.mxu0 %vm417_vm1, %v2584_v22  ;;  %v2794_v48 = vld [vmem:[%s3110_s3 + $0x10] sm:$0xff]  }
  0x8b   : > { %2385 = vmatprep.subr.bf16.mxu0 %v1657_v51 }
  0x8e   : > { %2386 = vmatpush3.bf16.msra.mxu0 %v1657_v51 }
  0x8f   : > { %2387 = vmatprep.subr.bf16.mxu0 %v1656_v55 }
  0x91   : > { %2364 = vmatmul.mubr.msk.bf16.gmra.mxu0 %vm417_vm1, %v2609_v33 }
  0x92   : > { %2388 = vmatpush3.bf16.msra.mxu0 %v1656_v55  ;;  %2391 = vmatprep.mubr.msk.bf16.mxu0 %vm417_vm1, %v2563_v10 }
  0x93   : > { %2389 = vmatprep.subr.bf16.mxu0 %v1655_v58 }
  0x96   : > { %2390 = vmatpush3.bf16.msra.mxu0 %v1655_v58  ;;  %v2759_v61 = vpop.permute.xlu0 %321 }
  0x97   : > { %v2757_v59 = vpop.permute.xlu1 %311 }
  0x99   : > { %2392 = vmatmul.mubr.msk.bf16.vlgmr.msra.gmra.mxu0 %vm417_vm1, %v2576_v20 }
  0x9a   : > { %2395 = vmatprep.mubr.msk.bf16.mxu0 %vm417_vm1, %v2584_v22  ;;  %v2763_v1 = vpop.permute.xlu0 %326 }
  0x9b   : > { %v2761_v0 = vpop.permute.xlu1 %316 }
  0x9e   : > { %v2770_v6 = vpop.permute.xlu0 %301 }
  0x9f   : > { %v2766_v22 = vpop.permute.xlu1 %306 }
  0xa1   : > { %2396 = vmatmul.mubr.msk.bf16.gmra.mxu0 %vm417_vm1, %v2609_v33 }
  0xa2   : > { %v2778_v25 = vpop.permute.xlu0 %291 }
  0xa3   : > { %v2775_v18 = vpop.permute.xlu1 %296 }
  0xe9   : > { %v2169_v60 = vpop.f32.mrf.mxu0 }
  0xea   : > { %v473_v14 = vadd.f32 %v2169_v60, %v2770_v6 }
  0xeb   : > { %v464_v62 = vpop.f32.mrf.mxu0 }
  0xec   : > { %v497_v27 = vmax.f32 %v473_v14, 0.0  ;;  %v465_v28 = vadd.f32 %v464_v62, %v2778_v25 }
  0xed   : > { %v2170_v63 = vpop.f32.mrf.mxu0 }
  0xee   : > { %v476_v8 = vadd.f32 %v2170_v63, %v2766_v22  ;;  %v495_v34 = vmax.f32 %v465_v28, 0.0 }
  0xef   : > { %v467_v10 = vpop.f32.mrf.mxu0 }
  0xf0   : > { %v498_v21 = vmax.f32 %v476_v8, 0.0  ;;  %v468_v23 = vadd.f32 %v467_v10, %v2775_v18 }
  0xf1   : > { %v2173_v2 = vpop.f32.mrf.mxu0 }
  0xf2   : > { %v489_v3 = vadd.f32 %v2173_v2, %v2759_v61  ;;  %v504_v30 = vpack.c.bf16 %v498_v21, %v497_v27  ;;  %v496_v31 = vmax.f32 %v468_v23, 0.0 }
  0xf3   : > { %v480_v20 = vpop.f32.mrf.mxu0 }
  0xf4   : > { %v481_v33 = vadd.f32 %v480_v20, %v2757_v59  ;;  %v501_v9 = vmax.f32 %v489_v3, 0.0  ;;  %v503_v36 = vpack.c.bf16 %v496_v31, %v495_v34  ;;  %v2806_v20 = vld [vmem:[%s3110_s3 + $0x18] sm:$0xff]  }
  0xf5   : > { %v2174_v4 = vpop.f32.mrf.mxu0 }
  0xf6   : > { %v492_v5 = vadd.f32 %v2174_v4, %v2763_v1  ;;  %v499_v15 = vmax.f32 %v481_v33, 0.0 }
  0xf7   : > { %v483_v7 = vpop.f32.mrf.mxu0 }
  0xf8   : > { %v502_v11 = vmax.f32 %v492_v5, 0.0  ;;  %v484_v12 = vadd.f32 %v483_v7, %v2761_v0 }
  0xf9   : > { %v2201_v13 = vpop.f32.mrf.mxu0 }
  0xfa   : > { %v500_v16 = vmax.f32 %v484_v12, 0.0  ;;  %v506_v17 = vpack.c.bf16 %v502_v11, %v501_v9  ;;  %v676_v49 = vadd.f32 %v2201_v13, %v2770_v6 }
  0xfb   : > { %v667_v19 = vpop.f32.mrf.mxu0 }
  0xfc   : > { %v505_v24 = vpack.c.bf16 %v500_v16, %v499_v15  ;;  %2175 = vmatprep.subr.bf16.mxu1 %v506_v17  ;;  %v700_v60 = vmax.f32 %v676_v49, 0.0  ;;  %v668_v62 = vadd.f32 %v667_v19, %v2778_v25 }
  0xfd   : > { %2176 = vmatpush3.bf16.msra.mxu1 %v506_v17  ;;  %v2202_v26 = vpop.f32.mrf.mxu0 }
  0xfe   : > { %2177 = vmatprep.subr.bf16.mxu1 %v505_v24  ;;  %v679_v42 = vadd.f32 %v2202_v26, %v2766_v22  ;;  %v698_v4 = vmax.f32 %v668_v62, 0.0 }
  0xff   : > { %v670_v29 = vpop.f32.mrf.mxu0 }
 0x100   : > { %v701_v55 = vmax.f32 %v679_v42, 0.0  ;;  %v671_v56 = vadd.f32 %v670_v29, %v2775_v18 }
 0x101   : > { %2178 = vmatpush3.bf16.msra.mxu1 %v505_v24  ;;  %v2205_v32 = vpop.f32.mrf.mxu0 }
 0x102   : > { %2179 = vmatprep.subr.bf16.mxu1 %v504_v30  ;;  %v692_v37 = vadd.f32 %v2205_v32, %v2759_v61  ;;  %v707_v10 = vpack.c.bf16 %v701_v55, %v700_v60  ;;  %v699_v2 = vmax.f32 %v671_v56, 0.0 }
 0x103   : > { %v683_v35 = vpop.f32.mrf.mxu0 }
 0x104   : > { %v684_v39 = vadd.f32 %v683_v35, %v2757_v59  ;;  %v704_v43 = vmax.f32 %v692_v37, 0.0  ;;  %v706_v5 = vpack.c.bf16 %v699_v2, %v698_v4 }
 0x105   : > { %2180 = vmatpush3.bf16.msra.mxu1 %v504_v30  ;;  %v2206_v38 = vpop.f32.mrf.mxu0 }
 0x106   : > { %v695_v40 = vadd.f32 %v2206_v38, %v2763_v1  ;;  %2181 = vmatprep.subr.bf16.mxu1 %v503_v36  ;;  %v702_v50 = vmax.f32 %v684_v39, 0.0 }
 0x107   : > { %v686_v41 = vpop.f32.mrf.mxu0 }
 0x108   : > { %v705_v44 = vmax.f32 %v695_v40, 0.0  ;;  %v687_v45 = vadd.f32 %v686_v41, %v2761_v0 }
 0x109   : > { %2182 = vmatpush3.bf16.msra.mxu1 %v503_v36  ;;  %v2233_v47 = vpop.f32.mrf.mxu0 }
 0x10a   : > { %v709_v51 = vpack.c.bf16 %v705_v44, %v704_v43  ;;  %v703_v52 = vmax.f32 %v687_v45, 0.0  ;;  %v847_v19 = vadd.f32 %v2233_v47, %v2770_v6 }
 0x10b   : > { %v838_v53 = vpop.f32.mrf.mxu0 }
 0x10c   : > { %v708_v57 = vpack.c.bf16 %v703_v52, %v702_v50  ;;  %2184 = vmatmul.mubr.msk.bf16.vlgmr.msra.gmra.mxu1 %vm417_vm1, %v2789_v46  ;;  %2207 = vmatprep.subr.bf16.mxu1 %v709_v51  ;;  %v871_v31 = vmax.f32 %v847_v19, 0.0  ;;  %v839_v32 = vadd.f32 %v838_v53, %v2778_v25 }
 0x10d   : > { %2208 = vmatpush3.bf16.msra.mxu1 %v709_v51  ;;  %v2234_v58 = vpop.f32.mrf.mxu0  ;;  %2187 = vmatprep.mubr.msk.bf16.mxu1 %vm417_vm1, %v2794_v48 }
 0x10e   : > { %2209 = vmatprep.subr.bf16.mxu1 %v708_v57  ;;  %v850_v13 = vadd.f32 %v2234_v58, %v2766_v22  ;;  %v869_v38 = vmax.f32 %v839_v32, 0.0 }
 0x10f   : > { %v841_v63 = vpop.f32.mrf.mxu0 }
 0x110   : > { %v872_v27 = vmax.f32 %v850_v13, 0.0  ;;  %v842_v28 = vadd.f32 %v841_v63, %v2775_v18 }
 0x111   : > { %2210 = vmatpush3.bf16.msra.mxu1 %v708_v57  ;;  %v2237_v3 = vpop.f32.mrf.mxu0 }
 0x112   : > { %2211 = vmatprep.subr.bf16.mxu1 %v707_v10  ;;  %v863_v7 = vadd.f32 %v2237_v3, %v2759_v61  ;;  %v878_v35 = vpack.c.bf16 %v872_v27, %v871_v31  ;;  %v870_v36 = vmax.f32 %v842_v28, 0.0 }
 0x113   : > { %v854_v33 = vpop.f32.mrf.mxu0 }
 0x114   : > { %2188 = vmatmul.mubr.msk.bf16.gmra.mxu1 %vm417_vm1, %v2806_v20  ;;  %v855_v9 = vadd.f32 %v854_v33, %v2757_v59  ;;  %v875_v14 = vmax.f32 %v863_v7, 0.0  ;;  %v877_v40 = vpack.c.bf16 %v870_v36, %v869_v38 }
 0x115   : > { %2212 = vmatpush3.bf16.msra.mxu1 %v707_v10  ;;  %v2238_v8 = vpop.f32.mrf.mxu0  ;;  %2215 = vmatprep.mubr.msk.bf16.mxu1 %vm417_vm1, %v2739_v54 }
 0x116   : > { %v866_v11 = vadd.f32 %v2238_v8, %v2763_v1  ;;  %2213 = vmatprep.subr.bf16.mxu1 %v706_v5  ;;  %v873_v21 = vmax.f32 %v855_v9, 0.0 }
 0x117   : > { %v857_v12 = vpop.f32.mrf.mxu0 }
 0x118   : > { %v876_v15 = vmax.f32 %v866_v11, 0.0  ;;  %v858_v16 = vadd.f32 %v857_v12, %v2761_v0 }
 0x119   : > { %2214 = vmatpush3.bf16.msra.mxu1 %v706_v5  ;;  %v2265_v17 = vpop.f32.mrf.mxu0 }
 0x11a   : > { %v880_v23 = vpack.c.bf16 %v876_v15, %v875_v14  ;;  %v874_v24 = vmax.f32 %v858_v16, 0.0  ;;  %v1018_v53 = vadd.f32 %v2265_v17, %v2770_v6 }
 0x11b   : > { %v1009_v26 = vpop.f32.mrf.mxu0 }
 0x11c   : > { %v879_v29 = vpack.c.bf16 %v874_v24, %v873_v21  ;;  %2216 = vmatmul.mubr.msk.bf16.vlgmr.msra.gmra.mxu1 %vm417_vm1, %v2789_v46  ;;  %2239 = vmatprep.subr.bf16.mxu1 %v880_v23  ;;  %v1042_v2 = vmax.f32 %v1018_v53, 0.0  ;;  %v1010_v3 = vadd.f32 %v1009_v26, %v2778_v25 }
 0x11d   : > { %2240 = vmatpush3.bf16.msra.mxu1 %v880_v23  ;;  %v2266_v30 = vpop.f32.mrf.mxu0  ;;  %2219 = vmatprep.mubr.msk.bf16.mxu1 %vm417_vm1, %v2794_v48 }
 0x11e   : > { %2241 = vmatprep.subr.bf16.mxu1 %v879_v29  ;;  %v1021_v47 = vadd.f32 %v2266_v30, %v2766_v22  ;;  %v1040_v8 = vmax.f32 %v1010_v3, 0.0 }
 0x11f   : > { %v1012_v34 = vpop.f32.mrf.mxu0 }
 0x120   : > { %v1043_v60 = vmax.f32 %v1021_v47, 0.0  ;;  %v1013_v62 = vadd.f32 %v1012_v34, %v2775_v18 }
 0x121   : > { %2242 = vmatpush3.bf16.msra.mxu1 %v879_v29  ;;  %v2269_v37 = vpop.f32.mrf.mxu0 }
 0x122   : > { %2243 = vmatprep.subr.bf16.mxu1 %v878_v35  ;;  %v1034_v41 = vadd.f32 %v2269_v37, %v2759_v61  ;;  %v1049_v33 = vpack.c.bf16 %v1043_v60, %v1042_v2  ;;  %v1041_v5 = vmax.f32 %v1013_v62, 0.0 }
 0x123   : > { %v1025_v39 = vpop.f32.mrf.mxu0 }
 0x124   : > { %2220 = vmatmul.mubr.msk.bf16.gmra.mxu1 %vm417_vm1, %v2806_v20  ;;  %v1026_v43 = vadd.f32 %v1025_v39, %v2757_v59  ;;  %v1046_v49 = vmax.f32 %v1034_v41, 0.0  ;;  %v1048_v11 = vpack.c.bf16 %v1041_v5, %v1040_v8 }
 0x125   : > { %2244 = vmatpush3.bf16.msra.mxu1 %v878_v35  ;;  %v2270_v42 = vpop.f32.mrf.mxu0  ;;  %2247 = vmatprep.mubr.msk.bf16.mxu1 %vm417_vm1, %v2739_v54 }
 0x126   : > { %v1037_v44 = vadd.f32 %v2270_v42, %v2763_v1  ;;  %2245 = vmatprep.subr.bf16.mxu1 %v877_v40  ;;  %v1044_v55 = vmax.f32 %v1026_v43, 0.0 }
 0x127   : > { %v1028_v45 = vpop.f32.mrf.mxu0 }
 0x128   : > { %v1047_v50 = vmax.f32 %v1037_v44, 0.0  ;;  %v1029_v51 = vadd.f32 %v1028_v45, %v2761_v0 }
 0x129   : > { %2246 = vmatpush3.bf16.msra.mxu1 %v877_v40  ;;  %v2297_v52 = vpop.f32.mrf.mxu0 }
 0x12a   : > { %v1051_v56 = vpack.c.bf16 %v1047_v50, %v1046_v49  ;;  %v1045_v57 = vmax.f32 %v1029_v51, 0.0  ;;  %v1189_v26 = vadd.f32 %v2297_v52, %v2770_v6 }
 0x12b   : > { %v1180_v58 = vpop.f32.mrf.mxu0 }
 0x12c   : > { %v1050_v63 = vpack.c.bf16 %v1045_v57, %v1044_v55  ;;  %2248 = vmatmul.mubr.msk.bf16.vlgmr.msra.gmra.mxu1 %vm417_vm1, %v2789_v46  ;;  %2271 = vmatprep.subr.bf16.mxu1 %v1051_v56  ;;  %v1213_v36 = vmax.f32 %v1189_v26, 0.0  ;;  %v1181_v37 = vadd.f32 %v1180_v58, %v2778_v25 }
 0x12d   : > { %2272 = vmatpush3.bf16.msra.mxu1 %v1051_v56  ;;  %v2298_v10 = vpop.f32.mrf.mxu0  ;;  %2251 = vmatprep.mubr.msk.bf16.mxu1 %vm417_vm1, %v2794_v48 }
 0x12e   : > { %2273 = vmatprep.subr.bf16.mxu1 %v1050_v63  ;;  %v1192_v17 = vadd.f32 %v2298_v10, %v2766_v22  ;;  %v1211_v42 = vmax.f32 %v1181_v37, 0.0 }
 0x12f   : > { %v1183_v4 = vpop.f32.mrf.mxu0 }
 0x130   : > { %v1214_v31 = vmax.f32 %v1192_v17, 0.0  ;;  %v1184_v32 = vadd.f32 %v1183_v4, %v2775_v18 }
 0x131   : > { %2274 = vmatpush3.bf16.msra.mxu1 %v1050_v63  ;;  %v2301_v7 = vpop.f32.mrf.mxu0 }
 0x132   : > { %2275 = vmatprep.subr.bf16.mxu1 %v1049_v33  ;;  %v1205_v12 = vadd.f32 %v2301_v7, %v2759_v61  ;;  %v1220_v39 = vpack.c.bf16 %v1214_v31, %v1213_v36  ;;  %v1212_v40 = vmax.f32 %v1184_v32, 0.0 }
 0x133   : > { %v1196_v9 = vpop.f32.mrf.mxu0 }
 0x134   : > { %2252 = vmatmul.mubr.msk.bf16.gmra.mxu1 %vm417_vm1, %v2806_v20  ;;  %v1197_v14 = vadd.f32 %v1196_v9, %v2757_v59  ;;  %v1217_v19 = vmax.f32 %v1205_v12, 0.0  ;;  %v1219_v44 = vpack.c.bf16 %v1212_v40, %v1211_v42 }
 0x135   : > { %2276 = vmatpush3.bf16.msra.mxu1 %v1049_v33  ;;  %v2302_v13 = vpop.f32.mrf.mxu0  ;;  %2279 = vmatprep.mubr.msk.bf16.mxu1 %vm417_vm1, %v2739_v54 }
 0x136   : > { %v1208_v15 = vadd.f32 %v2302_v13, %v2763_v1  ;;  %2277 = vmatprep.subr.bf16.mxu1 %v1048_v11  ;;  %v1215_v27 = vmax.f32 %v1197_v14, 0.0 }
 0x137   : > { %v1199_v16 = vpop.f32.mrf.mxu0 }
 0x138   : > { %v1218_v21 = vmax.f32 %v1208_v15, 0.0  ;;  %v1200_v23 = vadd.f32 %v1199_v16, %v2761_v0 }
 0x139   : > { %2278 = vmatpush3.bf16.msra.mxu1 %v1048_v11  ;;  %v2329_v24 = vpop.f32.mrf.mxu0 }
 0x13a   : > { %v1222_v28 = vpack.c.bf16 %v1218_v21, %v1217_v19  ;;  %v1216_v29 = vmax.f32 %v1200_v23, 0.0  ;;  %v1360_v58 = vadd.f32 %v2329_v24, %v2770_v6 }
 0x13b   : > { %v1351_v30 = vpop.f32.mrf.mxu0 }
 0x13c   : > { %v1221_v34 = vpack.c.bf16 %v1216_v29, %v1215_v27  ;;  %2280 = vmatmul.mubr.msk.bf16.vlgmr.msra.gmra.mxu1 %vm417_vm1, %v2789_v46  ;;  %2303 = vmatprep.subr.bf16.mxu1 %v1222_v28  ;;  %v1384_v5 = vmax.f32 %v1360_v58, 0.0  ;;  %v1352_v7 = vadd.f32 %v1351_v30, %v2778_v25 }
 0x13d   : > { %2304 = vmatpush3.bf16.msra.mxu1 %v1222_v28  ;;  %v2330_v35 = vpop.f32.mrf.mxu0  ;;  %2283 = vmatprep.mubr.msk.bf16.mxu1 %vm417_vm1, %v2794_v48 }
 0x13e   : > { %2305 = vmatprep.subr.bf16.mxu1 %v1221_v34  ;;  %v1363_v52 = vadd.f32 %v2330_v35, %v2766_v22  ;;  %v1382_v13 = vmax.f32 %v1352_v7, 0.0 }
 0x13f   : > { %v1354_v38 = vpop.f32.mrf.mxu0 }
 0x140   : > { %v1385_v2 = vmax.f32 %v1363_v52, 0.0  ;;  %v1355_v3 = vadd.f32 %v1354_v38, %v2775_v18 }
 0x141   : > { %2306 = vmatpush3.bf16.msra.mxu1 %v1221_v34  ;;  %v2333_v41 = vpop.f32.mrf.mxu0 }
 0x142   : > { %2307 = vmatprep.subr.bf16.mxu1 %v1220_v39  ;;  %v1376_v45 = vadd.f32 %v2333_v41, %v2759_v61  ;;  %v1391_v9 = vpack.c.bf16 %v1385_v2, %v1384_v5  ;;  %v1383_v11 = vmax.f32 %v1355_v3, 0.0 }
 0x143   : > { %v1367_v43 = vpop.f32.mrf.mxu0 }
 0x144   : > { %2284 = vmatmul.mubr.msk.bf16.gmra.mxu1 %vm417_vm1, %v2806_v20  ;;  %v1368_v49 = vadd.f32 %v1367_v43, %v2757_v59  ;;  %v1388_v53 = vmax.f32 %v1376_v45, 0.0  ;;  %v1390_v15 = vpack.c.bf16 %v1383_v11, %v1382_v13 }
 0x145   : > { %2308 = vmatpush3.bf16.msra.mxu1 %v1220_v39  ;;  %v2334_v47 = vpop.f32.mrf.mxu0  ;;  %2311 = vmatprep.mubr.msk.bf16.mxu1 %vm417_vm1, %v2739_v54 }
 0x146   : > { %v1379_v50 = vadd.f32 %v2334_v47, %v2763_v1  ;;  %2309 = vmatprep.subr.bf16.mxu1 %v1219_v44  ;;  %v1386_v60 = vmax.f32 %v1368_v49, 0.0 }
 0x147   : > { %v1370_v51 = vpop.f32.mrf.mxu0 }
 0x148   : > { %v1389_v55 = vmax.f32 %v1379_v50, 0.0  ;;  %v1371_v56 = vadd.f32 %v1370_v51, %v2761_v0 }
 0x149   : > { %2310 = vmatpush3.bf16.msra.mxu1 %v1219_v44  ;;  %v2361_v57 = vpop.f32.mrf.mxu0 }
 0x14a   : > { %v1393_v62 = vpack.c.bf16 %v1389_v55, %v1388_v53  ;;  %v1387_v63 = vmax.f32 %v1371_v56, 0.0  ;;  %v1531_v30 = vadd.f32 %v2361_v57, %v2770_v6 }
 0x14b   : > { %v1522_v10 = vpop.f32.mrf.mxu0 }
 0x14c   : > { %v1392_v4 = vpack.c.bf16 %v1387_v63, %v1386_v60  ;;  %2312 = vmatmul.mubr.msk.bf16.vlgmr.msra.gmra.mxu1 %vm417_vm1, %v2789_v46  ;;  %2335 = vmatprep.subr.bf16.mxu1 %v1393_v62  ;;  %v1555_v40 = vmax.f32 %v1531_v30, 0.0  ;;  %v1523_v41 = vadd.f32 %v1522_v10, %v2778_v25  ;;  %v377_v30 = vld [vmem:[%s3112_s5] sm:$0xff] }
 0x14d   : > { %2336 = vmatpush3.bf16.msra.mxu1 %v1393_v62  ;;  %v2362_v33 = vpop.f32.mrf.mxu0  ;;  %2315 = vmatprep.mubr.msk.bf16.mxu1 %vm417_vm1, %v2794_v48 }
 0x14e   : > { %2337 = vmatprep.subr.bf16.mxu1 %v1392_v4  ;;  %v1534_v24 = vadd.f32 %v2362_v33, %v2766_v22  ;;  %v1553_v47 = vmax.f32 %v1523_v41, 0.0 }
 0x14f   : > { %v1525_v8 = vpop.f32.mrf.mxu0 }
 0x150   : > { %v1556_v36 = vmax.f32 %v1534_v24, 0.0  ;;  %v1526_v37 = vadd.f32 %v1525_v8, %v2775_v18  ;;  %v2916_v8 = vpop.permute.xlu1 %344 }
 0x151   : > { %2338 = vmatpush3.bf16.msra.mxu1 %v1392_v4  ;;  %v2365_v12 = vpop.f32.mrf.mxu0 }
 0x152   : > { %2339 = vmatprep.subr.bf16.mxu1 %v1391_v9  ;;  %v1547_v16 = vadd.f32 %v2365_v12, %v2759_v61  ;;  %v1562_v43 = vpack.c.bf16 %v1556_v36, %v1555_v40  ;;  %v1554_v44 = vmax.f32 %v1526_v37, 0.0  ;;  %v380_v36 = vld [vmem:[%s3112_s5 + $0x18] sm:$0xff] }
 0x153   : > { %v1538_v14 = vpop.f32.mrf.mxu0 }
 0x154   : > { %2316 = vmatmul.mubr.msk.bf16.gmra.mxu1 %vm417_vm1, %v2806_v20  ;;  %v1539_v19 = vadd.f32 %v1538_v14, %v2757_v59  ;;  %v1559_v26 = vmax.f32 %v1547_v16, 0.0  ;;  %v1561_v50 = vpack.c.bf16 %v1554_v44, %v1553_v47  ;;  %v2920_v13 = vpop.permute.xlu1 %354 }
 0x155   : > { %2340 = vmatpush3.bf16.msra.mxu1 %v1391_v9  ;;  %v2366_v17 = vpop.f32.mrf.mxu0  ;;  %2343 = vmatprep.mubr.msk.bf16.mxu1 %vm417_vm1, %v2739_v54 }
 0x156   : > { %v1550_v21 = vadd.f32 %v2366_v17, %v2763_v1  ;;  %2341 = vmatprep.subr.bf16.mxu1 %v1390_v15  ;;  %v1557_v31 = vmax.f32 %v1539_v19, 0.0 }
 0x157   : > { %v1541_v23 = vpop.f32.mrf.mxu0 }
 0x158   : > { %v1560_v27 = vmax.f32 %v1550_v21, 0.0  ;;  %v1542_v28 = vadd.f32 %v1541_v23, %v2761_v0  ;;  %v2927_v21 = vpop.permute.xlu1 %364  ;;  %v379_v23 = vld [vmem:[%s3112_s5 + $0x10] sm:$0xff] }
 0x159   : > { %2342 = vmatpush3.bf16.msra.mxu1 %v1390_v15  ;;  %v2393_v29 = vpop.f32.mrf.mxu0 }
 0x15a   : > { %v1564_v32 = vpack.c.bf16 %v1560_v27, %v1559_v26  ;;  %v1558_v34 = vmax.f32 %v1542_v28, 0.0  ;;  %v1702_v62 = vadd.f32 %v2393_v29, %v2770_v6 }
 0x15b   : > { %v1693_v35 = vpop.f32.mrf.mxu0 }
 0x15c   : > { %v1563_v38 = vpack.c.bf16 %v1558_v34, %v1557_v31  ;;  %2344 = vmatmul.mubr.msk.bf16.vlgmr.msra.gmra.mxu1 %vm417_vm1, %v2789_v46  ;;  %2367 = vmatprep.subr.bf16.mxu1 %v1564_v32 }
 0x15d   : > { %2368 = vmatpush3.bf16.msra.mxu1 %v1564_v32  ;;  %v2394_v39 = vpop.f32.mrf.mxu0  ;;  %2347 = vmatprep.mubr.msk.bf16.mxu1 %vm417_vm1, %v2794_v48 }
 0x15e   : > { %2369 = vmatprep.subr.bf16.mxu1 %v1563_v38  ;;  %v1705_v57 = vadd.f32 %v2394_v39, %v2766_v22 }
 0x15f   : > { %v1696_v42 = vpop.f32.mrf.mxu0 }
 0x160   : > { %v1727_v3 = vmax.f32 %v1705_v57, 0.0  ;;  %v1697_v4 = vadd.f32 %v1696_v42, %v2775_v18  ;;  %v2914_v18 = vpop.permute.xlu0 %339 }
 0x161   : > { %2370 = vmatpush3.bf16.msra.mxu1 %v1563_v38  ;;  %v2397_v45 = vpop.f32.mrf.mxu0 }
 0x162   : > { %2371 = vmatprep.subr.bf16.mxu1 %v1562_v43  ;;  %v1718_v51 = vadd.f32 %v2397_v45, %v2759_v61  ;;  %v1725_v6 = vmax.f32 %v1697_v4, 0.0 }
 0x163   : > { %v1709_v49 = vpop.f32.mrf.mxu0 }
 0x164   : > { %2348 = vmatmul.mubr.msk.bf16.gmra.mxu1 %vm417_vm1, %v2806_v20  ;;  %v1710_v53 = vadd.f32 %v1709_v49, %v2757_v59  ;;  %v1730_v58 = vmax.f32 %v1718_v51, 0.0  ;;  %v2918_v11 = vpop.permute.xlu0 %349  ;;  %v2949_v49 = vpop.permute.xlu1 %374 }
 0x165   : > { %2372 = vmatpush3.bf16.msra.mxu1 %v1562_v43  ;;  %v2398_v52 = vpop.f32.mrf.mxu0  ;;  %2375 = vmatprep.mubr.msk.bf16.mxu1 %vm417_vm1, %v2739_v54  ;;  %v378_v43 = vld [vmem:[%s3112_s5 + $0x8] sm:$0xff] }
 0x166   : > { %v1721_v55 = vadd.f32 %v2398_v52, %v2763_v1  ;;  %2373 = vmatprep.subr.bf16.mxu1 %v1561_v50  ;;  %v1728_v63 = vmax.f32 %v1710_v53, 0.0  ;;  %v1726_v1 = vmax.f32 %v1702_v62, 0.0  ;;  %v383_v53 = vld [vmem:[%s3112_s5 + $0x30] sm:$0xff] }
 0x167   : > { %v1712_v56 = vpop.f32.mrf.mxu0 }
 0x168   : > { %v1731_v60 = vmax.f32 %v1721_v55, 0.0  ;;  %v1713_v61 = vadd.f32 %v1712_v56, %v2761_v0  ;;  %v1694_v0 = vadd.f32 %v1693_v35, %v2778_v25  ;;  %v1733_v22 = vpack.c.bf16 %v1727_v3, %v1726_v1  ;;  %v2922_v14 = vpop.permute.xlu0 %359 }
 0x169   : > { %2374 = vmatpush3.bf16.msra.mxu1 %v1561_v50 }
 0x16a   : > { %v1735_v10 = vpack.c.bf16 %v1731_v60, %v1730_v58  ;;  %v1729_v2 = vmax.f32 %v1713_v61, 0.0  ;;  %v1724_v33 = vmax.f32 %v1694_v0, 0.0 }
 0x16c   : > { %v1734_v59 = vpack.c.bf16 %v1729_v2, %v1728_v63  ;;  %2376 = vmatmul.mubr.msk.bf16.vlgmr.msra.gmra.mxu1 %vm417_vm1, %v2789_v46  ;;  %2399 = vmatprep.subr.bf16.mxu1 %v1735_v10  ;;  %v1732_v5 = vpack.c.bf16 %v1725_v6, %v1724_v33  ;;  %v2933_v27 = vpop.permute.xlu0 %369  ;;  %v381_v63 = vld [vmem:[%s3112_s5 + $0x20] sm:$0xff] }
 0x16d   : > { %2400 = vmatpush3.bf16.msra.mxu1 %v1735_v10  ;;  %2379 = vmatprep.mubr.msk.bf16.mxu1 %vm417_vm1, %v2794_v48 }
 0x16e   : > { %2401 = vmatprep.subr.bf16.mxu1 %v1734_v59 }
 0x171   : > { %2402 = vmatpush3.bf16.msra.mxu1 %v1734_v59 }
 0x172   : > { %2403 = vmatprep.subr.bf16.mxu1 %v1733_v22 }
 0x174   : > { %2380 = vmatmul.mubr.msk.bf16.gmra.mxu1 %vm417_vm1, %v2806_v20 }
 0x175   : > { %2404 = vmatpush3.bf16.msra.mxu1 %v1733_v22  ;;  %2407 = vmatprep.mubr.msk.bf16.mxu1 %vm417_vm1, %v2739_v54 }
 0x176   : > { %2405 = vmatprep.subr.bf16.mxu1 %v1732_v5 }
 0x179   : > { %2406 = vmatpush3.bf16.msra.mxu1 %v1732_v5 }
 0x17c   : > { %2408 = vmatmul.mubr.msk.bf16.vlgmr.msra.gmra.mxu1 %vm417_vm1, %v2789_v46 }
 0x17d   : > { %2411 = vmatprep.mubr.msk.bf16.mxu1 %vm417_vm1, %v2794_v48 }
 0x184   : > { %2412 = vmatmul.mubr.msk.bf16.gmra.mxu1 %vm417_vm1, %v2806_v20 }
 0x1cc   : > { %v2185_v25 = vpop.f32.mrf.mxu1 }
 0x1cd   : > { %v582_v48 = vadd.f32 %v2185_v25, %v2918_v11  ;;  %v384_v25 = vld [vmem:[%s3112_s5 + $0x38] sm:$0xff] }
 0x1ce   : > { %v573_v7 = vpop.f32.mrf.mxu1 }
 0x1cf   : > { %v574_v20 = vadd.f32 %v573_v7, %v2914_v18  ;;  %v606_v19 = vmax.f32 %v582_v48, 0.0  ;;  %v382_v48 = vld [vmem:[%s3112_s5 + $0x28] sm:$0xff] }
 0x1d0   : > { %v2186_v9 = vpop.f32.mrf.mxu1 }
 0x1d1   : > { %v585_v16 = vadd.f32 %v2186_v9, %v2920_v13  ;;  %v604_v28 = vmax.f32 %v574_v20, 0.0  ;;  %v614_v35 = vmax.f32 %v379_v23, %v606_v19 }
 0x1d2   : > { %v576_v54 = vpop.f32.mrf.mxu1 }
 0x1d3   : > { %v577_v24 = vadd.f32 %v576_v54, %v2916_v8  ;;  %v607_v31 = vmax.f32 %v585_v16, 0.0  ;;  %v612_v42 = vmax.f32 %v377_v30, %v604_v28 }
 0x1d4   : > { %v2189_v12 = vpop.f32.mrf.mxu1 }
 0x1d5   : > { %v598_v32 = vadd.f32 %v2189_v12, %v2933_v27  ;;  %v605_v39 = vmax.f32 %v577_v24, 0.0  ;;  %v615_v50 = vmax.f32 %v380_v36, %v607_v31 }
 0x1d6   : > { %v589_v46 = vpop.f32.mrf.mxu1 }
 0x1d7   : > { %v590_v40 = vadd.f32 %v589_v46, %v2922_v14  ;;  %v610_v51 = vmax.f32 %v598_v32, 0.0  ;;  %v613_v60 = vmax.f32 %v378_v43, %v605_v39 }
 0x1d8   : > { %v2190_v15 = vpop.f32.mrf.mxu1 }
 0x1d9   : > { %v601_v55 = vadd.f32 %v2190_v15, %v2949_v49  ;;  %v608_v61 = vmax.f32 %v590_v40, 0.0  ;;  %v618_v59 = vmax.f32 %v383_v53, %v610_v51 }
 0x1da   : > { %v592_v17 = vpop.f32.mrf.mxu1 }
 0x1db   : > { %v593_v10 = vadd.f32 %v592_v17, %v2927_v21  ;;  %v611_v0 = vmax.f32 %v601_v55, 0.0  ;;  %v616_v5 = vmax.f32 %v381_v63, %v608_v61 }
 0x1dc   : > { %v2217_v26 = vpop.f32.mrf.mxu1 }
 0x1dd   : > { %v753_v29 = vadd.f32 %v2217_v26, %v2918_v11  ;;  %v609_v9 = vmax.f32 %v593_v10, 0.0  ;;  %v619_v20 = vmax.f32 %v384_v25, %v611_v0 }
 0x1de   : > { %v744_v34 = vpop.f32.mrf.mxu1 }
 0x1df   : > { %v777_v37 = vmax.f32 %v753_v29, 0.0  ;;  %v745_v38 = vadd.f32 %v744_v34, %v2914_v18  ;;  %v617_v24 = vmax.f32 %v382_v48, %v609_v9 }
 0x1e0   : > { %v2218_v41 = vpop.f32.mrf.mxu1 }
 0x1e1   : > { %v785_v44 = vmax.f32 %v614_v35, %v777_v37  ;;  %v775_v45 = vmax.f32 %v745_v38, 0.0  ;;  %v756_v47 = vadd.f32 %v2218_v41, %v2920_v13 }
 0x1e2   : > { %v747_v52 = vpop.f32.mrf.mxu1 }
 0x1e3   : > { %v783_v56 = vmax.f32 %v612_v42, %v775_v45  ;;  %v778_v57 = vmax.f32 %v756_v47, 0.0  ;;  %v748_v58 = vadd.f32 %v747_v52, %v2916_v8 }
 0x1e4   : > { %v2221_v62 = vpop.f32.mrf.mxu1 }
 0x1e5   : > { %v786_v2 = vmax.f32 %v615_v50, %v778_v57  ;;  %v776_v3 = vmax.f32 %v748_v58, 0.0  ;;  %v769_v4 = vadd.f32 %v2221_v62, %v2933_v27 }
 0x1e6   : > { %v760_v1 = vpop.f32.mrf.mxu1 }
 0x1e7   : > { %v784_v22 = vmax.f32 %v613_v60, %v776_v3  ;;  %v781_v6 = vmax.f32 %v769_v4, 0.0  ;;  %v761_v33 = vadd.f32 %v760_v1, %v2922_v14 }
 0x1e8   : > { %v2222_v7 = vpop.f32.mrf.mxu1 }
 0x1e9   : > { %v789_v54 = vmax.f32 %v618_v59, %v781_v6  ;;  %v779_v12 = vmax.f32 %v761_v33, 0.0  ;;  %v772_v46 = vadd.f32 %v2222_v7, %v2949_v49 }
 0x1ea   : > { %v763_v15 = vpop.f32.mrf.mxu1 }
 0x1eb   : > { %v787_v16 = vmax.f32 %v616_v5, %v779_v12  ;;  %v782_v17 = vmax.f32 %v772_v46, 0.0  ;;  %v764_v19 = vadd.f32 %v763_v15, %v2927_v21 }
 0x1ec   : > { %v2249_v23 = vpop.f32.mrf.mxu1 }
 0x1ed   : > { %v790_v26 = vmax.f32 %v619_v20, %v782_v17  ;;  %v780_v28 = vmax.f32 %v764_v19, 0.0  ;;  %v924_v29 = vadd.f32 %v2249_v23, %v2918_v11 }
 0x1ee   : > { %v915_v30 = vpop.f32.mrf.mxu1 }
 0x1ef   : > { %v788_v31 = vmax.f32 %v617_v24, %v780_v28  ;;  %v948_v32 = vmax.f32 %v924_v29, 0.0  ;;  %v916_v34 = vadd.f32 %v915_v30, %v2914_v18 }
 0x1f0   : > { %v2250_v35 = vpop.f32.mrf.mxu1 }
 0x1f1   : > { %v2972_v36 = vmax.f32 %v785_v44, %v948_v32  ;;  %v946_v37 = vmax.f32 %v916_v34, 0.0  ;;  %v927_v38 = vadd.f32 %v2250_v35, %v2920_v13 }
 0x1f2   : > { %v918_v39 = vpop.f32.mrf.mxu1 }
 0x1f3   : > { %v2975_v40 = vmax.f32 %v783_v56, %v946_v37  ;;  %v949_v41 = vmax.f32 %v927_v38, 0.0  ;;  %v919_v42 = vadd.f32 %v918_v39, %v2916_v8 }
 0x1f4   : > { %v2253_v43 = vpop.f32.mrf.mxu1 }
 0x1f5   : > { %v2978_v45 = vmax.f32 %v786_v2, %v949_v41  ;;  %v947_v47 = vmax.f32 %v919_v42, 0.0  ;;  %v940_v50 = vadd.f32 %v2253_v43, %v2933_v27 }
 0x1f6   : > { %v931_v51 = vpop.f32.mrf.mxu1 }
 0x1f7   : > { %v2981_v52 = vmax.f32 %v784_v22, %v947_v47  ;;  %v952_v44 = vmax.f32 %v940_v50, 0.0  ;;  %v932_v53 = vadd.f32 %v931_v51, %v2922_v14 }
 0x1f8   : > { %v2254_v55 = vpop.f32.mrf.mxu1 }
 0x1f9   : > { %v2984_v57 = vmax.f32 %v789_v54, %v952_v44  ;;  %v950_v56 = vmax.f32 %v932_v53, 0.0  ;;  %v943_v58 = vadd.f32 %v2254_v55, %v2949_v49 }
 0x1fa   : > { %v934_v60 = vpop.f32.mrf.mxu1 }
 0x1fb   : > { %v2987_v61 = vmax.f32 %v787_v16, %v950_v56  ;;  %v953_v62 = vmax.f32 %v943_v58, 0.0  ;;  %v935_v63 = vadd.f32 %v934_v60, %v2927_v21 }
 0x1fc   : > { %v2281_v10 = vpop.f32.mrf.mxu1 }
 0x1fd   : > { %v2990_v2 = vmax.f32 %v790_v26, %v953_v62  ;;  %v951_v3 = vmax.f32 %v935_v63, 0.0  ;;  %v1095_v28 = vadd.f32 %v2281_v10, %v2918_v11 }
 0x1fe   : > { %v1086_v4 = vpop.f32.mrf.mxu1 }
 0x1ff   : > { %v2992_v59 = vmax.f32 %v788_v31, %v951_v3  ;;  %v1087_v30 = vadd.f32 %v1086_v4, %v2914_v18  ;;  %v1119_v38 = vmax.f32 %v1095_v28, 0.0 }
 0x200   : > { %v2282_v1 = vpop.f32.mrf.mxu1 }
 0x201   : > { %v1098_v31 = vadd.f32 %v2282_v1, %v2920_v13  ;;  %v1117_v42 = vmax.f32 %v1087_v30, 0.0  ;;  %v1127_v58 = vmax.f32 %v2972_v36, %v1119_v38 }
 0x202   : > { %v1089_v0 = vpop.f32.mrf.mxu1 }
 0x203   : > { %v1090_v32 = vadd.f32 %v1089_v0, %v2916_v8  ;;  %v1120_v43 = vmax.f32 %v1098_v31, 0.0  ;;  %v1125_v3 = vmax.f32 %v2975_v40, %v1117_v42 }
 0x204   : > { %v2285_v22 = vpop.f32.mrf.mxu1 }
 0x205   : > { %v1111_v34 = vadd.f32 %v2285_v22, %v2933_v27  ;;  %v1118_v47 = vmax.f32 %v1090_v32, 0.0  ;;  %v1128_v4 = vmax.f32 %v2978_v45, %v1120_v43 }
 0x206   : > { %v1102_v6 = vpop.f32.mrf.mxu1 }
 0x207   : > { %v1103_v37 = vadd.f32 %v1102_v6, %v2922_v14  ;;  %v1123_v50 = vmax.f32 %v1111_v34, 0.0  ;;  %v1126_v22 = vmax.f32 %v2981_v52, %v1118_v47 }
 0x208   : > { %v2286_v33 = vpop.f32.mrf.mxu1 }
 0x209   : > { %v1114_v39 = vadd.f32 %v2286_v33, %v2949_v49  ;;  %v1121_v55 = vmax.f32 %v1103_v37, 0.0  ;;  %v1131_v6 = vmax.f32 %v2984_v57, %v1123_v50 }
 0x20a   : > { %v1105_v5 = vpop.f32.mrf.mxu1 }
 0x20b   : > { %v1106_v51 = vadd.f32 %v1105_v5, %v2927_v21  ;;  %v1124_v60 = vmax.f32 %v1114_v39, 0.0 }
 0x20c   : > { %v2313_v25 = vpop.f32.mrf.mxu1 }
 0x20d   : > { %v1266_v44 = vadd.f32 %v2313_v25, %v2918_v11  ;;  %v1122_v33 = vmax.f32 %v1106_v51, 0.0  ;;  %v1129_v25 = vmax.f32 %v2987_v61, %v1121_v55  ;;  %v3025_v45 = vmax.f32 %v2990_v2, %v1124_v60 }
 0x20e   : > { %v1257_v7 = vpop.f32.mrf.mxu1 }
 0x20f   : > { %v1258_v56 = vadd.f32 %v1257_v7, %v2914_v18  ;;  %v1290_v36 = vmax.f32 %v1266_v44, 0.0  ;;  %v3031_v61 = vmax.f32 %v2992_v59, %v1122_v33 }
 0x210   : > { %v2314_v9 = vpop.f32.mrf.mxu1 }
 0x211   : > { %v1269_v62 = vadd.f32 %v2314_v9, %v2920_v13  ;;  %v1288_v7 = vmax.f32 %v1258_v56, 0.0 }
 0x212   : > { %v1260_v54 = vpop.f32.mrf.mxu1 }
 0x213   : > { %v1261_v63 = vadd.f32 %v1260_v54, %v2916_v8  ;;  %v1291_v54 = vmax.f32 %v1269_v62, 0.0 }
 0x214   : > { %v2317_v12 = vpop.f32.mrf.mxu1 }
 0x215   : > { %v1282_v1 = vadd.f32 %v2317_v12, %v2933_v27  ;;  %v1289_v12 = vmax.f32 %v1261_v63, 0.0 }
 0x216   : > { %v1273_v46 = vpop.f32.mrf.mxu1 }
 0x217   : > { %v1274_v0 = vadd.f32 %v1273_v46, %v2922_v14  ;;  %v1294_v28 = vmax.f32 %v1282_v1, 0.0  ;;  %v1297_v39 = vmax.f32 %v1126_v22, %v1289_v12 }
 0x218   : > { %v2318_v48 = vpop.f32.mrf.mxu1 }
 0x219   : > { %v1292_v57 = vmax.f32 %v1274_v0, 0.0  ;;  %v1302_v43 = vmax.f32 %v1131_v6, %v1294_v28 }
 0x21a   : > { %v1276_v15 = vpop.f32.mrf.mxu1 }
 0x21b   : > { %v3037_v2 = vadd.f32 %v1276_v15, %v2927_v21  ;;  %v1300_v47 = vmax.f32 %v1129_v25, %v1292_v57 }
 0x21c   : > { %v2345_v20 = vpop.f32.mrf.mxu1 }
 0x21d   : > { %v1437_v9 = vadd.f32 %v2345_v20, %v2918_v11  ;;  %v1298_v20 = vmax.f32 %v1127_v58, %v1290_v36  ;;  %v1293_v51 = vmax.f32 %v3037_v2, 0.0 }
 0x21e   : > { %v1428_v16 = vpop.f32.mrf.mxu1 }
 0x21f   : > { %v1429_v40 = vadd.f32 %v1428_v16, %v2914_v18  ;;  %v3034_v16 = vadd.f32 %v2318_v48, %v2949_v49  ;;  %v1461_v34 = vmax.f32 %v1437_v9, 0.0 }
 0x220   : > { %v2346_v17 = vpop.f32.mrf.mxu1 }
 0x221   : > { %v1440_v46 = vadd.f32 %v2346_v17, %v2920_v13  ;;  %v1296_v17 = vmax.f32 %v1125_v3, %v1288_v7  ;;  %v1459_v37 = vmax.f32 %v1429_v40, 0.0  ;;  %v1295_v15 = vmax.f32 %v3034_v16, 0.0 }
 0x222   : > { %v1431_v19 = vpop.f32.mrf.mxu1  ;;  %v1469_v56 = vmax.f32 %v1298_v20, %v1461_v34 }
 0x223   : > { %v1432_v30 = vadd.f32 %v1431_v19, %v2916_v8  ;;  %v1299_v19 = vmax.f32 %v1128_v4, %v1291_v54  ;;  %v1467_v58 = vmax.f32 %v1296_v17, %v1459_v37  ;;  %v1303_v34 = vmax.f32 %v3025_v45, %v1295_v15 }
 0x224   : > { %v2994_v23 = vpop.f32.mrf.mxu1 }
 0x225   : > { %v1460_v48 = vmax.f32 %v1432_v30, 0.0  ;;  %v1453_v44 = vadd.f32 %v2994_v23, %v2933_v27 }
 0x226   : > { %v2996_v24 = vpop.f32.mrf.mxu1 }
 0x227   : > { %v1445_v63 = vadd.f32 %v2996_v24, %v2922_v14  ;;  %v1468_v0 = vmax.f32 %v1297_v39, %v1460_v48 }
 0x228   : > { %v2998_v26 = vpop.f32.mrf.mxu1 }
 0x229   : > { %v1456_v33 = vadd.f32 %v2998_v26, %v2949_v49 }
 0x22a   : > { %v3001_v29 = vpop.f32.mrf.mxu1 }
 0x22b   : > { %v1448_v54 = vadd.f32 %v3001_v29, %v2927_v21 }
 0x22c   : > { %v2377_v35 = vpop.f32.mrf.mxu1 }
 0x22d   : > { %v1608_v31 = vadd.f32 %v2377_v35, %v2918_v11  ;;  %v1462_v35 = vmax.f32 %v1440_v46, 0.0 }
 0x22e   : > { %v1599_v41 = vpop.f32.mrf.mxu1 }
 0x22f   : > { %v1600_v38 = vadd.f32 %v1599_v41, %v2914_v18  ;;  %v1632_v50 = vmax.f32 %v1608_v31, 0.0  ;;  %v1470_v62 = vmax.f32 %v1299_v19, %v1462_v35 }
 0x230   : > { %v2378_v53 = vpop.f32.mrf.mxu1 }
 0x231   : > { %v1611_v59 = vadd.f32 %v2378_v53, %v2920_v13  ;;  %v1630_v60 = vmax.f32 %v1600_v38, 0.0  ;;  %v1640_v22 = vmax.f32 %v1469_v56, %v1632_v50 }
 0x232   : > { %v1602_v10 = vpop.f32.mrf.mxu1 }
 0x233   : > { %v1603_v55 = vadd.f32 %v1602_v10, %v2916_v8  ;;  %v1633_v3 = vmax.f32 %v1611_v59, 0.0  ;;  %v1465_v10 = vmax.f32 %v1453_v44, 0.0  ;;  %v1638_v7 = vmax.f32 %v1467_v58, %v1630_v60 }
 0x234   : > { %v2381_v5 = vpop.f32.mrf.mxu1 }
 0x235   : > { %v1624_v4 = vadd.f32 %v2381_v5, %v2933_v27  ;;  %v1631_v36 = vmax.f32 %v1603_v55, 0.0  ;;  %v1463_v5 = vmax.f32 %v1445_v63, 0.0  ;;  %v1641_v12 = vmax.f32 %v1470_v62, %v1633_v3 }
 0x236   : > { %v1615_v52 = vpop.f32.mrf.mxu1  ;;  %v1473_v30 = vmax.f32 %v1302_v43, %v1465_v10  ;;  %v1301_v43 = vmax.f32 %v3031_v61, %v1293_v51 }
 0x237   : > { %v1636_v46 = vmax.f32 %v1624_v4, 0.0  ;;  %v1639_v31 = vmax.f32 %v1468_v0, %v1631_v36  ;;  %v1471_v37 = vmax.f32 %v1300_v47, %v1463_v5 }
 0x238   : > { %v2382_v32 = vpop.f32.mrf.mxu1 }
 0x239   : > { %v1627_v28 = vadd.f32 %v2382_v32, %v2949_v49  ;;  %v1644_v38 = vmax.f32 %v1473_v30, %v1636_v46 }
 0x23a   : > { %v1618_v42 = vpop.f32.mrf.mxu1 }
 0x23b   : > { %v1619_v29 = vadd.f32 %v1618_v42, %v2927_v21  ;;  %v1637_v39 = vmax.f32 %v1627_v28, 0.0 }
 0x23c   : > { %v2409_v41 = vpop.f32.mrf.mxu1 }
 0x23d   : > { %v1779_v53 = vadd.f32 %v2409_v41, %v2918_v11  ;;  %v1616_v11 = vadd.f32 %v1615_v52, %v2922_v14  ;;  %v1635_v45 = vmax.f32 %v1619_v29, 0.0 }
 0x23e   : > { %v1770_v1 = vpop.f32.mrf.mxu1 }
 0x23f   : > { %v1803_v6 = vmax.f32 %v1779_v53, 0.0  ;;  %v1771_v23 = vadd.f32 %v1770_v1, %v2914_v18  ;;  %v1634_v20 = vmax.f32 %v1616_v11, 0.0 }
 0x240   : > { %v2410_v25 = vpop.f32.mrf.mxu1 }
 0x241   : > { %v1811_v9 = vmax.f32 %v1640_v22, %v1803_v6  ;;  %v1801_v24 = vmax.f32 %v1771_v23, 0.0  ;;  %v1782_v40 = vadd.f32 %v2410_v25, %v2920_v13  ;;  %v1466_v13 = vmax.f32 %v1456_v33, 0.0 }
 0x242   : > { %v1773_v18 = vpop.f32.mrf.mxu1 }
 0x243   : > { %1820 = vst.msk [vmem:[%s3112_s5 + $0x10] sm:$0xff] %vm1817_vm2, %v1811_v9  ;;  %v1809_v26 = vmax.f32 %v1638_v7, %v1801_v24  ;;  %v1804_v52 = vmax.f32 %v1782_v40, 0.0  ;;  %v1774_v57 = vadd.f32 %v1773_v18, %v2916_v8  ;;  %v1464_v8 = vmax.f32 %v1448_v54, 0.0 }
 0x244   : > { %v2413_v16 = vpop.f32.mrf.mxu1  ;;  %v1474_v48 = vmax.f32 %v1303_v34, %v1466_v13 }
 0x245   : > { %1818 = vst.msk [vmem:[%s3112_s5] sm:$0xff] %vm1817_vm2, %v1809_v26  ;;  %v1812_v2 = vmax.f32 %v1641_v12, %v1804_v52  ;;  %v1802_v32 = vmax.f32 %v1774_v57, 0.0  ;;  %v1795_v17 = vadd.f32 %v2413_v16, %v2933_v27  ;;  %v1642_v27 = vmax.f32 %v1471_v37, %v1634_v20 }
 0x246   : > { %v1786_v19 = vpop.f32.mrf.mxu1  ;;  %v1472_v55 = vmax.f32 %v1301_v43, %v1464_v8  ;;  %v1645_v56 = vmax.f32 %v1474_v48, %v1637_v39 }
 0x247   : > { %1821 = vst.msk [vmem:[%s3112_s5 + $0x18] sm:$0xff] %vm1817_vm2, %v1812_v2  ;;  %v1810_v35 = vmax.f32 %v1639_v31, %v1802_v32  ;;  %v1807_v59 = vmax.f32 %v1795_v17, 0.0  ;;  %v1787_v42 = vadd.f32 %v1786_v19, %v2922_v14 }
 0x248   : > { %v2414_v50 = vpop.f32.mrf.mxu1  ;;  %v1643_v58 = vmax.f32 %v1472_v55, %v1635_v45 }
 0x249   : > { %1819 = vst.msk [vmem:[%s3112_s5 + $0x8] sm:$0xff] %vm1817_vm2, %v1810_v35  ;;  %v1815_v47 = vmax.f32 %v1644_v38, %v1807_v59  ;;  %v1805_v15 = vmax.f32 %v1787_v42, 0.0  ;;  %v1798_v44 = vadd.f32 %v2414_v50, %v2949_v49 }
 0x24a   : > { %v1789_v41 = vpop.f32.mrf.mxu1 }
 0x24b   : > { %1824 = vst.msk [vmem:[%s3112_s5 + $0x30] sm:$0xff] %vm1817_vm2, %v1815_v47  ;;  %v1813_v14 = vmax.f32 %v1642_v27, %v1805_v15  ;;  %v1808_v61 = vmax.f32 %v1798_v44, 0.0  ;;  %v1790_v51 = vadd.f32 %v1789_v41, %v2927_v21 }
 0x24d   : > { %1822 = vst.msk [vmem:[%s3112_s5 + $0x20] sm:$0xff] %vm1817_vm2, %v1813_v14  ;;  %v1816_v60 = vmax.f32 %v1645_v56, %v1808_v61  ;;  %v1806_v49 = vmax.f32 %v1790_v51, 0.0 }
 0x24f   : > { %1825 = vst.msk [vmem:[%s3112_s5 + $0x38] sm:$0xff] %vm1817_vm2, %v1816_v60  ;;  %v1814_v53 = vmax.f32 %v1643_v58, %v1806_v49 }
 0x251   : > { %1823 = vst.msk [vmem:[%s3112_s5 + $0x28] sm:$0xff] %vm1817_vm2, %v1814_v53 }
 0x252 PF: > { %s15_s20 = sadd.s32 1, %s2473_s20   ;;  %s3113_s18 = smov %s2469_s19 }
 0x253   : > { %p12_p6 = scmp.ge.s32.totalorder %s15_s20, 6   ;;  %s3114_s19 = smov %s3116_s21 }
 0x255   :  { %14 = sbr.rel (!%p12_p6) target bundleno = 2 (0x2), region = 81 }

// kernel: _lambda_.24
= control target key start
LH: loop header
LB: loop body
LE: loop exit
PB: predicated region body
PF: predicated region fallthrough
CT: control target
= control target key end

     0   :  { %s1082_s21 = smov 0   ;;  %s1257_s0 = inlined_call_operand.vmem [shape: f32[2,64,8], index: 0, kind: input, shape index: {}]   ;;  %s1258_s1 = inlined_call_operand.vmem [shape: bf16[16,64], index: 1, kind: input, shape index: {}]   ;;  %s1259_s2 = inlined_call_operand.vmem [shape: bf16[64,64], index: 2, kind: input, shape index: {}]   ;;  %s1260_s3 = inlined_call_operand.vmem [shape: f32[64,1], index: 3, kind: input, shape index: {}]   ;;  %s1261_s4 = inlined_call_operand.vmem [shape: bf16[64,64], index: 4, kind: input, shape index: {}]   ;;  %s1262_s5 = inlined_call_operand.vmem [shape: f32[64,1], index: 5, kind: input, shape index: {}]   ;;  %s1263_s6 = inlined_call_operand.vmem [shape: f32[2,64,8], index: 6, kind: output, shape index: {}]  }
   0x1 LB: > { %s883_s22 = sadd.s32 4294967295, %s1042_s21   ;;  %p887_p0 = scmp.ge.s32.totalorder %s1042_s21, 1  ;;  %s1042_s21 = sphi %s1082_s21, %s16_s21  }
   0x2   : > { %p212_p1 = scmp.lt.s32.totalorder %s1042_s21, 3 }
   0x4   : > { %p213_p2 = pnand %p887_p0, %p212_p1 }
   0x5   : > { %p242_p3 = scmp.lt.s32.totalorder (!%p213_p2), %s883_s22, 1 }
   0x6   : > { %216 = sbr.rel (%p213_p2) target bundleno = 1311 (0x51f), region = 44 }
   0xb   : > { %v1044_v0 = vmov 0.0   ;;  %vm1045_vm0 = vmmov 0   ;;  %s1265_s22 = smov (!%p242_p3, %s883_s22), 1  ;;  %v1021_v13 = vld [vmem:[%s1258_s1] sm:$0xff]   ;;  %vm272_vm1 = vcmask 523264   ;;  %vm487_vm2 = vcmask 130048  }
   0xc   : > { %947 = vmatprep.subr.bf16.mxu0 %v1044_v0  ;;  %955 = vmatprep.mubr.msk.bf16.mxu0 %vm1045_vm0, %v1044_v0  ;;  %s917_s23 = sshll.u32 %s1265_s22, 6  ;;  %v1022_v20 = vld [vmem:[%s1259_s2] sm:$0xff]   ;;  %v1023_v21 = vld [vmem:[%s1259_s2 + $0x8] sm:$0xff]   ;;  %v1024_v22 = vld [vmem:[%s1259_s2 + $0x10] sm:$0xff]   ;;  %vm531_vm3 = vcmask 64512   ;;  %v1046_v29 = vmov 0  }
   0xd   : > { %s246_s26 = scalar_lea.vmem %s1257_s0, %s917_s23  ;;  %967 = vmatprep.mubr.msk.bf16.mxu1 %vm272_vm1, %v1022_v20  ;;  %v1025_v23 = vld [vmem:[%s1259_s2 + $0x18] sm:$0xff]   ;;  %1019 = vset.pattern.permute.xlu1 %v1046_v29  ;;  %v326_v30 = vld [vmem:[%s1260_s3 + $0x8] sm:$0xff]  ;;  %v663_v31 = vld [vmem:[%s1262_s5 + $0x20] sm:$0xff]  ;;  %vm570_vm4 = vcmask 1043456   ;;  %s1228_s13 = scalar_lea.vmem %s1263_s6, %s917_s23 }
   0xe   : > { %v1099_v1 = vld [vmem:[%s246_s26 + $0x30] sm:$0xff]  ;;  %v1101_v2 = vld [vmem:[%s246_s26 + $0x38] sm:$0xff]  ;;  %v1103_v3 = vld [vmem:[%s246_s26 + $0x20] sm:$0xff] }
   0xf   : > { %v264_v4 = vpack.c.bf16 %v1101_v2, %v1099_v1  ;;  %v1107_v5 = vld [vmem:[%s246_s26 + $0x28] sm:$0xff]  ;;  %v1111_v7 = vld [vmem:[%s246_s26 + $0x10] sm:$0xff]  ;;  %v1113_v8 = vld [vmem:[%s246_s26 + $0x18] sm:$0xff] }
  0x10   : > { %v263_v6 = vpack.c.bf16 %v1107_v5, %v1103_v3  ;;  %v262_v9 = vpack.c.bf16 %v1113_v8, %v1111_v7  ;;  %v1117_v10 = vld [vmem:[%s246_s26] sm:$0xff]  ;;  %v1119_v11 = vld [vmem:[%s246_s26 + $0x8] sm:$0xff]  ;;  %v665_v32 = vld [vmem:[%s1262_s5 + $0x30] sm:$0xff] }
  0x11   : > { %948 = vmatpush3.bf16.msra.mxu0 %v264_v4  ;;  %959 = vmatprep.subr.bf16.mxu1 %v264_v4  ;;  %v261_v12 = vpack.c.bf16 %v1119_v11, %v1117_v10  ;;  %v325_v38 = vld [vmem:[%s1260_s3] sm:$0xff]  ;;  %v327_v39 = vld [vmem:[%s1260_s3 + $0x10] sm:$0xff]  ;;  %v328_v40 = vld [vmem:[%s1260_s3 + $0x18] sm:$0xff] }
  0x12   : > { %949 = vmatprep.subr.bf16.mxu0 %v1044_v0  ;;  %960 = vmatpush3.bf16.msra.mxu1 %v264_v4  ;;  %v329_v41 = vld [vmem:[%s1260_s3 + $0x20] sm:$0xff]  ;;  %v330_v42 = vld [vmem:[%s1260_s3 + $0x28] sm:$0xff]  ;;  %v331_v43 = vld [vmem:[%s1260_s3 + $0x30] sm:$0xff] }
  0x13   : > { %961 = vmatprep.subr.bf16.mxu1 %v263_v6  ;;  %v332_v44 = vld [vmem:[%s1260_s3 + $0x38] sm:$0xff]  ;;  %v659_v45 = vld [vmem:[%s1262_s5] sm:$0xff]  ;;  %v660_v46 = vld [vmem:[%s1262_s5 + $0x8] sm:$0xff] }
  0x14   : > { %v661_v47 = vld [vmem:[%s1262_s5 + $0x10] sm:$0xff]  ;;  %v662_v48 = vld [vmem:[%s1262_s5 + $0x18] sm:$0xff]  ;;  %v664_v49 = vld [vmem:[%s1262_s5 + $0x28] sm:$0xff] }
  0x15   : > { %950 = vmatpush3.bf16.msra.mxu0 %v263_v6  ;;  %v666_v50 = vld [vmem:[%s1262_s5 + $0x38] sm:$0xff] }
  0x16   : > { %951 = vmatprep.subr.bf16.mxu0 %v1044_v0  ;;  %962 = vmatpush3.bf16.msra.mxu1 %v263_v6 }
  0x17   : > { %963 = vmatprep.subr.bf16.mxu1 %v262_v9 }
  0x19   : > { %952 = vmatpush3.bf16.msra.mxu0 %v262_v9 }
  0x1a   : > { %953 = vmatprep.subr.bf16.mxu0 %v1044_v0  ;;  %964 = vmatpush3.bf16.msra.mxu1 %v262_v9 }
  0x1b   : > { %965 = vmatprep.subr.bf16.mxu1 %v261_v12 }
  0x1d   : > { %954 = vmatpush3.bf16.msra.mxu0 %v261_v12 }
  0x1e   : > { %975 = vmatprep.subr.bf16.mxu0 %v1044_v0  ;;  %966 = vmatpush3.bf16.msra.mxu1 %v261_v12 }
  0x20   : > { %956 = vmatmul.mubr.msk.bf16.vlgmr.msra.gmra.mxu0 %vm272_vm1, %v1021_v13 }
  0x21   : > { %977 = vmatprep.mubr.msk.bf16.mxu0 %vm1045_vm0, %v1044_v0  ;;  %968 = vmatmul.mubr.msk.bf16.vlgmr.msra.gmra.mxu1 %vm272_vm1, %v1023_v21 }
  0x22   : > { %971 = vmatprep.mubr.msk.bf16.mxu1 %vm272_vm1, %v1024_v22 }
  0x29   : > { %972 = vmatmul.mubr.msk.bf16.gmra.mxu1 %vm272_vm1, %v1025_v23 }
  0xe0   : > { %v310_v14 = vpop.f32.mrf.mxu0 }
  0xe1   : > { %v969_v51 = vpop.f32.mrf.mxu1 }
  0xe2   : > { %v957_v15 = vpop.f32.mrf.mxu0 }
  0xe3   : > { %v439_v52 = vpop.f32.mrf.mxu1 }
  0xe4   : > { %v313_v16 = vpop.f32.mrf.mxu0 }
  0xe5   : > { %v470_v17 = vpack.c.bf16 %v313_v16, %v310_v14  ;;  %v970_v53 = vpop.f32.mrf.mxu1 }
  0xe6   : > { %v958_v18 = vpop.f32.mrf.mxu0 }
  0xe7   : > { %471 = vxpose.xlu0.c.b16.start.end [1/1] (short) (narrow) %v470_v17, 16  ;;  %976 = vmatpush3.bf16.msra.mxu0 %v470_v17  ;;  %v442_v56 = vpop.f32.mrf.mxu1 }
  0xe9   : > { %v973_v17 = vpop.f32.mrf.mxu1 }
  0xf0   : > { %1020 = vset.pattern.permute.xlu0 %v1046_v29 }
 0x149   : > { %v479_v19 = vpop.trf.xlu0 }
 0x14a   : > { %978 = vmatmul.mubr.msk.bf16.vlgmr.msra.gmra.mxu0 %vm487_vm2, %v479_v19  ;;  %v455_v19 = vpop.f32.mrf.mxu1 }
 0x14c   : > { %v974_v20 = vpop.f32.mrf.mxu1 }
 0x14e   : > { %v458_v23 = vpop.f32.mrf.mxu1 }
 0x20a   : > { %v525_v24 = vpop.f32.mrf.mxu0 }
 0x20b   : > { %v532_v25 = vsel %vm531_vm3, %v525_v24, -inf }
 0x20c   : > { %533 = vmax.xlane.f32.xlu0 %v532_v25  ;;  %v979_v26 = vpop.f32.mrf.mxu0 }
 0x20e   : > { %v528_v27 = vpop.f32.mrf.mxu0 }
 0x210   : > { %v980_v28 = vpop.f32.mrf.mxu0 }
 0x222   : > { %340 = vperm.xlu0 %1020, %v326_v30  }
 0x226   : > { %689 = vperm.xlu0 %1020, %v663_v31  }
 0x22a   : > { %699 = vperm.xlu0 %1020, %v665_v32  }
 0x295   : > { %v534_v33 = vpop.xlane.xlu0 %533 }
 0x296   : > { %v535_v34 = vsub.f32 %v525_v24, %v534_v33 }
 0x298   : > { %v536_v35 = vmul.f32 1.442695, %v535_v34 }
 0x29a   : > { %1030 = vpow2.f32 %v536_v35 }
 0x29d   : > { %v341_v55 = vpop.permute.xlu0 %340 }
 0x29e   : > { %v443_v57 = vadd.f32 %v442_v56, %v341_v55 }
 0x2a7   : > { %v1031_v36 = vpop.eup %1030 }
 0x2a8   : > { %v538_v37 = vsel %vm531_vm3, %v1031_v36, 0.0 }
 0x2a9   : > { %539 = vadd.xlane.f32.xlu1 %v538_v37 }
 0x2ba   : > { %335 = vperm.xlu1 %1019, %v325_v38   ;;  %v1026_v38 = vld [vmem:[%s1261_s4] sm:$0xff]  }
 0x2bb   : > { %999 = vmatprep.mubr.msk.bf16.mxu1 %vm272_vm1, %v1026_v38 }
 0x2be   : > { %345 = vperm.xlu1 %1019, %v327_v39  }
 0x2c2   : > { %350 = vperm.xlu1 %1019, %v328_v40  }
 0x2c6   : > { %355 = vperm.xlu1 %1019, %v329_v41  }
 0x2ca   : > { %360 = vperm.xlu1 %1019, %v330_v42  }
 0x2ce   : > { %365 = vperm.xlu1 %1019, %v331_v43  }
 0x2d2   : > { %370 = vperm.xlu1 %1019, %v332_v44  }
 0x2d6   : > { %669 = vperm.xlu1 %1019, %v659_v45  }
 0x2da   : > { %674 = vperm.xlu1 %1019, %v660_v46  }
 0x2de   : > { %679 = vperm.xlu1 %1019, %v661_v47  }
 0x2e2   : > { %684 = vperm.xlu1 %1019, %v662_v48  }
 0x2e6   : > { %694 = vperm.xlu1 %1019, %v664_v49  }
 0x2ea   : > { %704 = vperm.xlu1 %1019, %v666_v50  }
 0x332   : > { %v540_v54 = vpop.xlane.xlu1 %539 }
 0x333   : > { %1032 = vrcp.f32 %v540_v54 }
 0x336   : > { %v336_v58 = vpop.permute.xlu1 %335 }
 0x337   : > { %v440_v59 = vadd.f32 %v439_v52, %v336_v58 }
 0x339   : > { %v553_v60 = vpack.c.bf16 %v443_v57, %v440_v59  ;;  %v1027_v59 = vld [vmem:[%s1261_s4 + $0x8] sm:$0xff]  }
 0x33a   : > { %v346_v12 = vpop.permute.xlu1 %345 }
 0x33b   : > { %983 = vmatprep.mubr.msk.bf16.mxu0 %vm531_vm3, %v553_v60  ;;  %v448_v25 = vadd.f32 %v969_v51, %v346_v12  ;;  %v1028_v60 = vld [vmem:[%s1261_s4 + $0x10] sm:$0xff]   ;;  %v690_v12 = vpop.permute.xlu0 %689 }
 0x33e   : > { %v351_v16 = vpop.permute.xlu1 %350 }
 0x33f   : > { %v451_v26 = vadd.f32 %v970_v53, %v351_v16 }
 0x340   : > { %v1033_v61 = vpop.eup %1032 }
 0x341   : > { %v542_v62 = vmul.f32 %v1033_v61, %v1031_v36  ;;  %v554_v32 = vpack.c.bf16 %v451_v26, %v448_v25  ;;  %v1029_v61 = vld [vmem:[%s1261_s4 + $0x18] sm:$0xff]   ;;  %v700_v25 = vpop.permute.xlu0 %699 }
 0x342   : > { %v356_v18 = vpop.permute.xlu1 %355 }
 0x343   : > { %v543_v63 = vsel %vm531_vm3, %v542_v62, 0.0  ;;  %v456_v29 = vadd.f32 %v455_v19, %v356_v18 }
 0x344   : > { %v544_v0 = vrot.slane %v543_v63, 4 }
 0x346   : > { %v545_v4 = vadd.f32 %v544_v0, %v543_v63  ;;  %v361_v21 = vpop.permute.xlu1 %360 }
 0x347   : > { %v459_v30 = vadd.f32 %v458_v23, %v361_v21 }
 0x348   : > { %v546_v6 = vrot.slane %v545_v4, 2 }
 0x349   : > { %v555_v33 = vpack.c.bf16 %v459_v30, %v456_v29 }
 0x34a   : > { %v547_v9 = vadd.f32 %v546_v6, %v545_v4  ;;  %v366_v28 = vpop.permute.xlu1 %365 }
 0x34b   : > { %v464_v35 = vadd.f32 %v973_v17, %v366_v28 }
 0x34c   : > { %v548_v13 = vrot.slane %v547_v9, 1 }
 0x34e   : > { %v549_v14 = vadd.f32 %v548_v13, %v547_v9  ;;  %v371_v34 = vpop.permute.xlu1 %370 }
 0x34f   : > { %v467_v36 = vadd.f32 %v974_v20, %v371_v34 }
 0x350   : > { %v550_v15 = vadd.f32 1e-09, %v549_v14 }
 0x351   : > { %v556_v37 = vpack.c.bf16 %v467_v36, %v464_v35 }
 0x352   : > { %1034 = vrcp.f32 %v550_v15 }
 0x35f   : > { %v1035_v22 = vpop.eup %1034 }
 0x360   : > { %v552_v24 = vmul.f32 %v1035_v22, %v542_v62  ;;  %v670_v62 = vpop.permute.xlu1 %669 }
 0x362   : > { %v557_v27 = vpack.c.bf16 %v552_v24, %v552_v24 }
 0x364   : > { %1007 = vmatprep.subr.msk.bf16.mxu0 %vm570_vm4, %v557_v27  ;;  %v572_v31 = vsel %vm570_vm4, %v557_v27, 0  ;;  %v675_v63 = vpop.permute.xlu1 %674 }
 0x365   : > { %982 = vmatpush3.bf16.msra.mxu0 %v572_v31 }
 0x368   : > { %984 = vmatmul.mubr.msk.bf16.vlgmr.msra.gmra.mxu0 %vm531_vm3, %v554_v32  ;;  %v680_v0 = vpop.permute.xlu1 %679 }
 0x369   : > { %987 = vmatprep.mubr.msk.bf16.mxu0 %vm531_vm3, %v555_v33 }
 0x36c   : > { %v685_v4 = vpop.permute.xlu1 %684 }
 0x370   : > { %988 = vmatmul.mubr.msk.bf16.gmra.mxu0 %vm531_vm3, %v556_v37  ;;  %v695_v20 = vpop.permute.xlu1 %694 }
 0x374   : > { %v705_v32 = vpop.permute.xlu1 %704 }
 0x428   : > { %v985_v39 = vpop.f32.mrf.mxu0 }
 0x429   : > { %v641_v54 = vsub.f32 %v1111_v7, %v985_v39 }
 0x42a   : > { %v608_v40 = vpop.f32.mrf.mxu0 }
 0x42b   : > { %v639_v57 = vsub.f32 %v1117_v10, %v608_v40 }
 0x42c   : > { %v986_v41 = vpop.f32.mrf.mxu0 }
 0x42d   : > { %v642_v52 = vsub.f32 %v1113_v8, %v986_v41 }
 0x42e   : > { %v611_v42 = vpop.f32.mrf.mxu0 }
 0x42f   : > { %v648_v55 = vpack.c.bf16 %v642_v52, %v641_v54  ;;  %v640_v56 = vsub.f32 %v1119_v11, %v611_v42 }
 0x430   : > { %v989_v43 = vpop.f32.mrf.mxu0 }
 0x431   : > { %v645_v46 = vsub.f32 %v1099_v1, %v989_v43  ;;  %v647_v58 = vpack.c.bf16 %v640_v56, %v639_v57 }
 0x432   : > { %v624_v44 = vpop.f32.mrf.mxu0 }
 0x433   : > { %v643_v49 = vsub.f32 %v1103_v3, %v624_v44 }
 0x434   : > { %v990_v45 = vpop.f32.mrf.mxu0 }
 0x435   : > { %v646_v47 = vsub.f32 %v1101_v2, %v990_v45 }
 0x436   : > { %v627_v48 = vpop.f32.mrf.mxu0 }
 0x437   : > { %v650_v50 = vpack.c.bf16 %v646_v47, %v645_v46  ;;  %v644_v51 = vsub.f32 %v1107_v5, %v627_v48 }
 0x439   : > { %v649_v53 = vpack.c.bf16 %v644_v51, %v643_v49  ;;  %991 = vmatprep.subr.bf16.mxu1 %v650_v50 }
 0x43a   : > { %992 = vmatpush3.bf16.msra.mxu1 %v650_v50 }
 0x43b   : > { %993 = vmatprep.subr.bf16.mxu1 %v649_v53 }
 0x43e   : > { %994 = vmatpush3.bf16.msra.mxu1 %v649_v53 }
 0x43f   : > { %995 = vmatprep.subr.bf16.mxu1 %v648_v55 }
 0x442   : > { %996 = vmatpush3.bf16.msra.mxu1 %v648_v55 }
 0x443   : > { %997 = vmatprep.subr.bf16.mxu1 %v647_v58 }
 0x446   : > { %998 = vmatpush3.bf16.msra.mxu1 %v647_v58 }
 0x449   : > { %1000 = vmatmul.mubr.msk.bf16.vlgmr.msra.gmra.mxu1 %vm272_vm1, %v1027_v59 }
 0x44a   : > { %1003 = vmatprep.mubr.msk.bf16.mxu1 %vm272_vm1, %v1028_v60 }
 0x451   : > { %1004 = vmatmul.mubr.msk.bf16.gmra.mxu1 %vm272_vm1, %v1029_v61 }
 0x509   : > { %v1001_v6 = vpop.f32.mrf.mxu1 }
 0x50a   : > { %v782_v9 = vadd.f32 %v1001_v6, %v680_v0 }
 0x50b   : > { %v773_v13 = vpop.f32.mrf.mxu1 }
 0x50c   : > { %v806_v14 = vmax.f32 %v782_v9, 0.0  ;;  %v774_v15 = vadd.f32 %v773_v13, %v670_v62 }
 0x50d   : > { %v1002_v16 = vpop.f32.mrf.mxu1 }
 0x50e   : > { %v814_v17 = vadd.f32 %v806_v14, %v1111_v7  ;;  %v804_v18 = vmax.f32 %v774_v15, 0.0  ;;  %v785_v19 = vadd.f32 %v1002_v16, %v685_v4 }
 0x50f   : > { %v776_v21 = vpop.f32.mrf.mxu1 }
 0x510   : > { %822 = vst.msk [vmem:[%s1228_s13 + $0x10] sm:$0xff] %vm531_vm3, %v814_v17  ;;  %v812_v22 = vadd.f32 %v804_v18, %v1117_v10  ;;  %v807_v23 = vmax.f32 %v785_v19, 0.0  ;;  %v777_v24 = vadd.f32 %v776_v21, %v675_v63 }
 0x511   : > { %v1005_v26 = vpop.f32.mrf.mxu1 }
 0x512   : > { %820 = vst.msk [vmem:[%s1228_s13] sm:$0xff] %vm531_vm3, %v812_v22  ;;  %v815_v27 = vadd.f32 %v807_v23, %v1113_v8  ;;  %v805_v7 = vmax.f32 %v777_v24, 0.0  ;;  %v798_v28 = vadd.f32 %v1005_v26, %v700_v25 }
 0x513   : > { %v789_v29 = vpop.f32.mrf.mxu1 }
 0x514   : > { %823 = vst.msk [vmem:[%s1228_s13 + $0x18] sm:$0xff] %vm531_vm3, %v815_v27  ;;  %v813_v30 = vadd.f32 %v805_v7, %v1119_v11  ;;  %v810_v31 = vmax.f32 %v798_v28, 0.0  ;;  %v790_v10 = vadd.f32 %v789_v29, %v690_v12 }
 0x515   : > { %v1006_v33 = vpop.f32.mrf.mxu1 }
 0x516   : > { %821 = vst.msk [vmem:[%s1228_s13 + $0x8] sm:$0xff] %vm531_vm3, %v813_v30  ;;  %v818_v34 = vadd.f32 %v810_v31, %v1099_v1  ;;  %v808_v35 = vmax.f32 %v790_v10, 0.0  ;;  %v801_v8 = vadd.f32 %v1006_v33, %v705_v32 }
 0x517   : > { %v792_v36 = vpop.f32.mrf.mxu1 }
 0x518   : > { %826 = vst.msk [vmem:[%s1228_s13 + $0x30] sm:$0xff] %vm531_vm3, %v818_v34  ;;  %v816_v37 = vadd.f32 %v808_v35, %v1103_v3  ;;  %v811_v38 = vmax.f32 %v801_v8, 0.0  ;;  %v793_v39 = vadd.f32 %v792_v36, %v695_v20 }
 0x51a   : > { %824 = vst.msk [vmem:[%s1228_s13 + $0x20] sm:$0xff] %vm531_vm3, %v816_v37  ;;  %v819_v11 = vadd.f32 %v811_v38, %v1101_v2  ;;  %v809_v40 = vmax.f32 %v793_v39, 0.0 }
 0x51c   : > { %827 = vst.msk [vmem:[%s1228_s13 + $0x38] sm:$0xff] %vm531_vm3, %v819_v11  ;;  %v817_v41 = vadd.f32 %v809_v40, %v1107_v5 }
 0x51e   : > { %825 = vst.msk [vmem:[%s1228_s13 + $0x28] sm:$0xff] %vm531_vm3, %v817_v41 }
 0x51f PF: > { %s16_s21 = sadd.s32 1, %s1042_s21  }
 0x520   : > { %p13_p4 = scmp.ge.s32.totalorder %s16_s21, 4  }
 0x522   :  { %15 = sbr.rel (!%p13_p4) target bundleno = 1 (0x1), region = 74 }

// kernel: neg.8
= control target key start
LH: loop header
LB: loop body
LE: loop exit
PB: predicated region body
PF: predicated region fallthrough
CT: control target
= control target key end

     0   :  { %s264_s0 = inlined_call_operand.vmem [shape: f32[2,64,8], index: 0, kind: input, shape index: {}]   ;;  %s265_s1 = inlined_call_operand.vmem [shape: f32[2,64,8], index: 1, kind: output, shape index: {}]  }
   0x1   :  { %v2_v0 = vld [vmem:[%s264_s0] sm:$0xff]  ;;  %v130_v2 = vld [vmem:[%s264_s0 + $0x8] sm:$0xff]  ;;  %v134_v7 = vld [vmem:[%s264_s0 + $0x10] sm:$0xff] }
   0x2   :  { %v128_v1 = vld [vmem:[%s264_s0 + $0x40] sm:$0xff]  ;;  %v5_v3 = vxor.u32 2147483648, %v2_v0  ;;  %v20_v5 = vxor.u32 2147483648, %v130_v2  ;;  %v132_v6 = vld [vmem:[%s264_s0 + $0x48] sm:$0xff]  ;;  %v136_v8 = vld [vmem:[%s264_s0 + $0x50] sm:$0xff]  ;;  %v36_v10 = vxor.u32 2147483648, %v134_v7 }
   0x3   :  { %v12_v4 = vxor.u32 2147483648, %v128_v1  ;;  %v28_v9 = vxor.u32 2147483648, %v132_v6  ;;  %v44_v11 = vxor.u32 2147483648, %v136_v8  ;;  %v138_v12 = vld [vmem:[%s264_s0 + $0x18] sm:$0xff]  ;;  %v142_v14 = vld [vmem:[%s264_s0 + $0x20] sm:$0xff]  ;;  %v146_v19 = vld [vmem:[%s264_s0 + $0x28] sm:$0xff] }
   0x4   :  { %v140_v13 = vld [vmem:[%s264_s0 + $0x58] sm:$0xff]  ;;  %7 = vst [vmem:[%s265_s1] sm:$0xff] %v5_v3  ;;  %131 = vst [vmem:[%s265_s1 + $0x8] sm:$0xff] %v20_v5  ;;  %v52_v15 = vxor.u32 2147483648, %v138_v12  ;;  %v68_v17 = vxor.u32 2147483648, %v142_v14  ;;  %v144_v18 = vld [vmem:[%s264_s0 + $0x60] sm:$0xff]  ;;  %v84_v22 = vxor.u32 2147483648, %v146_v19 }
   0x5   :  { %129 = vst [vmem:[%s265_s1 + $0x40] sm:$0xff] %v12_v4  ;;  %v60_v16 = vxor.u32 2147483648, %v140_v13  ;;  %v148_v20 = vld [vmem:[%s264_s0 + $0x68] sm:$0xff]  ;;  %133 = vst [vmem:[%s265_s1 + $0x48] sm:$0xff] %v28_v9  ;;  %v76_v21 = vxor.u32 2147483648, %v144_v18  ;;  %v150_v24 = vld [vmem:[%s264_s0 + $0x30] sm:$0xff] }
   0x6   :  { %135 = vst [vmem:[%s265_s1 + $0x10] sm:$0xff] %v36_v10  ;;  %137 = vst [vmem:[%s265_s1 + $0x50] sm:$0xff] %v44_v11  ;;  %v92_v23 = vxor.u32 2147483648, %v148_v20  ;;  %v152_v25 = vld [vmem:[%s264_s0 + $0x70] sm:$0xff]  ;;  %v154_v26 = vld [vmem:[%s264_s0 + $0x38] sm:$0xff]  ;;  %v100_v27 = vxor.u32 2147483648, %v150_v24 }
   0x7   :  { %139 = vst [vmem:[%s265_s1 + $0x18] sm:$0xff] %v52_v15  ;;  %141 = vst [vmem:[%s265_s1 + $0x58] sm:$0xff] %v60_v16  ;;  %v108_v28 = vxor.u32 2147483648, %v152_v25  ;;  %v116_v29 = vxor.u32 2147483648, %v154_v26  ;;  %v156_v30 = vld [vmem:[%s264_s0 + $0x78] sm:$0xff] }
   0x8   :  { %143 = vst [vmem:[%s265_s1 + $0x20] sm:$0xff] %v68_v17  ;;  %145 = vst [vmem:[%s265_s1 + $0x60] sm:$0xff] %v76_v21  ;;  %v124_v31 = vxor.u32 2147483648, %v156_v30 }
   0x9   :  { %147 = vst [vmem:[%s265_s1 + $0x28] sm:$0xff] %v84_v22  ;;  %149 = vst [vmem:[%s265_s1 + $0x68] sm:$0xff] %v92_v23 }
   0xa   :  { %151 = vst [vmem:[%s265_s1 + $0x30] sm:$0xff] %v100_v27  ;;  %153 = vst [vmem:[%s265_s1 + $0x70] sm:$0xff] %v108_v28 }
   0xb   :  { %155 = vst [vmem:[%s265_s1 + $0x38] sm:$0xff] %v116_v29  ;;  %157 = vst [vmem:[%s265_s1 + $0x78] sm:$0xff] %v124_v31 }

// kernel: _lambda_.28
= control target key start
LH: loop header
LB: loop body
LE: loop exit
PB: predicated region body
PF: predicated region fallthrough
CT: control target
= control target key end

     0   :  { %v841_v3 = vmov 0   ;;  %vm609_vm0 = vcmask 130048   ;;  %s1262_s0 = inlined_call_operand.vmem [shape: f32[512,16], index: 0, kind: input, shape index: {}]   ;;  %s1263_s1 = inlined_call_operand.vmem [shape: bf16[128,512], index: 1, kind: input, shape index: {}]   ;;  %s1264_s2 = inlined_call_operand.vmem [shape: f32[128,1], index: 2, kind: input, shape index: {}]   ;;  %s1265_s3 = inlined_call_operand.vmem [shape: f32[128,16], index: 3, kind: output, shape index: {}]  }
   0x1   :  { %v45_v0 = vld [vmem:[%s1262_s0 + $0xf0] sm:$0xff]  ;;  %v46_v1 = vld [vmem:[%s1262_s0 + $0xf8] sm:$0xff]  ;;  %791 = vset.pattern.permute.xlu0 %v841_v3  ;;  %792 = vset.pattern.permute.xlu1 %v841_v3  ;;  %v43_v12 = vld [vmem:[%s1262_s0 + $0xe0] sm:$0xff] }
   0x2   :  { %v77_v2 = vld [vmem:[%s1262_s0 + $0x1f0] sm:$0xff]  ;;  %v94_v4 = vpack.c.bf16 %v46_v1, %v45_v0  ;;  %v78_v5 = vld [vmem:[%s1262_s0 + $0x1f8] sm:$0xff]  ;;  %v44_v14 = vld [vmem:[%s1262_s0 + $0xe8] sm:$0xff] }
   0x3   :  { %v29_v6 = vld [vmem:[%s1262_s0 + $0x70] sm:$0xff]  ;;  %v30_v7 = vld [vmem:[%s1262_s0 + $0x78] sm:$0xff]  ;;  %v110_v8 = vpack.c.bf16 %v78_v5, %v77_v2  ;;  %v75_v15 = vld [vmem:[%s1262_s0 + $0x1e0] sm:$0xff]  ;;  %v93_v17 = vpack.c.bf16 %v44_v14, %v43_v12 }
   0x4   :  { %v86_v9 = vpack.c.bf16 %v30_v7, %v29_v6  ;;  %v61_v10 = vld [vmem:[%s1262_s0 + $0x170] sm:$0xff]  ;;  %v62_v11 = vld [vmem:[%s1262_s0 + $0x178] sm:$0xff]  ;;  %662 = vmatprep.subr.bf16.mxu0 %v94_v4  ;;  %v76_v16 = vld [vmem:[%s1262_s0 + $0x1e8] sm:$0xff] }
   0x5   :  { %v102_v13 = vpack.c.bf16 %v62_v11, %v61_v10  ;;  %726 = vmatprep.subr.bf16.mxu1 %v110_v8  ;;  %v109_v18 = vpack.c.bf16 %v76_v16, %v75_v15  ;;  %v27_v19 = vld [vmem:[%s1262_s0 + $0x60] sm:$0xff]  ;;  %v28_v20 = vld [vmem:[%s1262_s0 + $0x68] sm:$0xff]  ;;  %v41_v24 = vld [vmem:[%s1262_s0 + $0xd0] sm:$0xff] }
   0x6   :  { %663 = vmatpush3.bf16.msra.mxu0 %v86_v9  ;;  %v59_v21 = vld [vmem:[%s1262_s0 + $0x160] sm:$0xff]  ;;  %v85_v22 = vpack.c.bf16 %v28_v20, %v27_v19  ;;  %v60_v23 = vld [vmem:[%s1262_s0 + $0x168] sm:$0xff]  ;;  %v42_v25 = vld [vmem:[%s1262_s0 + $0xd8] sm:$0xff] }
   0x7   :  { %727 = vmatpush3.bf16.msra.mxu1 %v102_v13  ;;  %664 = vmatprep.subr.bf16.mxu0 %v93_v17  ;;  %v101_v26 = vpack.c.bf16 %v60_v23, %v59_v21  ;;  %v92_v27 = vpack.c.bf16 %v42_v25, %v41_v24  ;;  %v73_v28 = vld [vmem:[%s1262_s0 + $0x1d0] sm:$0xff]  ;;  %v74_v29 = vld [vmem:[%s1262_s0 + $0x1d8] sm:$0xff]  ;;  %v39_v36 = vld [vmem:[%s1262_s0 + $0xc0] sm:$0xff] }
   0x8   :  { %728 = vmatprep.subr.bf16.mxu1 %v109_v18  ;;  %v25_v30 = vld [vmem:[%s1262_s0 + $0x50] sm:$0xff]  ;;  %v108_v31 = vpack.c.bf16 %v74_v29, %v73_v28  ;;  %v26_v32 = vld [vmem:[%s1262_s0 + $0x58] sm:$0xff]  ;;  %v40_v37 = vld [vmem:[%s1262_s0 + $0xc8] sm:$0xff] }
   0x9   :  { %v57_v33 = vld [vmem:[%s1262_s0 + $0x150] sm:$0xff]  ;;  %v58_v34 = vld [vmem:[%s1262_s0 + $0x158] sm:$0xff]  ;;  %v84_v35 = vpack.c.bf16 %v26_v32, %v25_v30  ;;  %v71_v38 = vld [vmem:[%s1262_s0 + $0x1c0] sm:$0xff]  ;;  %v91_v40 = vpack.c.bf16 %v40_v37, %v39_v36 }
   0xa   :  { %665 = vmatpush3.bf16.msra.mxu0 %v85_v22  ;;  %v100_v39 = vpack.c.bf16 %v58_v34, %v57_v33  ;;  %v72_v41 = vld [vmem:[%s1262_s0 + $0x1c8] sm:$0xff]  ;;  %v23_v42 = vld [vmem:[%s1262_s0 + $0x40] sm:$0xff]  ;;  %v37_v47 = vld [vmem:[%s1262_s0 + $0xb0] sm:$0xff] }
   0xb   :  { %729 = vmatpush3.bf16.msra.mxu1 %v101_v26  ;;  %666 = vmatprep.subr.bf16.mxu0 %v92_v27  ;;  %v24_v43 = vld [vmem:[%s1262_s0 + $0x48] sm:$0xff]  ;;  %v107_v44 = vpack.c.bf16 %v72_v41, %v71_v38  ;;  %v55_v45 = vld [vmem:[%s1262_s0 + $0x140] sm:$0xff]  ;;  %v38_v48 = vld [vmem:[%s1262_s0 + $0xb8] sm:$0xff] }
   0xc   :  { %730 = vmatprep.subr.bf16.mxu1 %v108_v31  ;;  %v56_v46 = vld [vmem:[%s1262_s0 + $0x148] sm:$0xff]  ;;  %v69_v49 = vld [vmem:[%s1262_s0 + $0x1b0] sm:$0xff]  ;;  %v70_v50 = vld [vmem:[%s1262_s0 + $0x1b8] sm:$0xff]  ;;  %v83_v51 = vpack.c.bf16 %v24_v43, %v23_v42  ;;  %v90_v53 = vpack.c.bf16 %v38_v48, %v37_v47 }
   0xd   :  { %v99_v52 = vpack.c.bf16 %v56_v46, %v55_v45  ;;  %v21_v54 = vld [vmem:[%s1262_s0 + $0x30] sm:$0xff]  ;;  %v22_v55 = vld [vmem:[%s1262_s0 + $0x38] sm:$0xff]  ;;  %v106_v57 = vpack.c.bf16 %v70_v50, %v69_v49  ;;  %v35_v59 = vld [vmem:[%s1262_s0 + $0xa0] sm:$0xff] }
   0xe   :  { %667 = vmatpush3.bf16.msra.mxu0 %v84_v35  ;;  %v53_v56 = vld [vmem:[%s1262_s0 + $0x130] sm:$0xff]  ;;  %v54_v58 = vld [vmem:[%s1262_s0 + $0x138] sm:$0xff]  ;;  %v36_v60 = vld [vmem:[%s1262_s0 + $0xa8] sm:$0xff]  ;;  %v82_v63 = vpack.c.bf16 %v22_v55, %v21_v54 }
   0xf   :  { %731 = vmatpush3.bf16.msra.mxu1 %v100_v39  ;;  %668 = vmatprep.subr.bf16.mxu0 %v91_v40  ;;  %v67_v61 = vld [vmem:[%s1262_s0 + $0x1a0] sm:$0xff]  ;;  %v68_v62 = vld [vmem:[%s1262_s0 + $0x1a8] sm:$0xff]  ;;  %v98_v1 = vpack.c.bf16 %v54_v58, %v53_v56  ;;  %v89_v2 = vpack.c.bf16 %v36_v60, %v35_v59  ;;  %v33_v7 = vld [vmem:[%s1262_s0 + $0x90] sm:$0xff] }
  0x10   :  { %732 = vmatprep.subr.bf16.mxu1 %v107_v44  ;;  %v19_v0 = vld [vmem:[%s1262_s0 + $0x20] sm:$0xff]  ;;  %v20_v3 = vld [vmem:[%s1262_s0 + $0x28] sm:$0xff]  ;;  %v105_v6 = vpack.c.bf16 %v68_v62, %v67_v61  ;;  %v34_v8 = vld [vmem:[%s1262_s0 + $0x98] sm:$0xff] }
  0x11   :  { %v51_v4 = vld [vmem:[%s1262_s0 + $0x120] sm:$0xff]  ;;  %v52_v5 = vld [vmem:[%s1262_s0 + $0x128] sm:$0xff]  ;;  %v65_v9 = vld [vmem:[%s1262_s0 + $0x190] sm:$0xff]  ;;  %v81_v13 = vpack.c.bf16 %v20_v3, %v19_v0  ;;  %v88_v18 = vpack.c.bf16 %v34_v8, %v33_v7 }
  0x12   :  { %669 = vmatpush3.bf16.msra.mxu0 %v83_v51  ;;  %v66_v10 = vld [vmem:[%s1262_s0 + $0x198] sm:$0xff]  ;;  %v17_v11 = vld [vmem:[%s1262_s0 + $0x10] sm:$0xff]  ;;  %v31_v16 = vld [vmem:[%s1262_s0 + $0x80] sm:$0xff]  ;;  %v97_v17 = vpack.c.bf16 %v52_v5, %v51_v4 }
  0x13   :  { %733 = vmatpush3.bf16.msra.mxu1 %v99_v52  ;;  %670 = vmatprep.subr.bf16.mxu0 %v90_v53  ;;  %v18_v12 = vld [vmem:[%s1262_s0 + $0x18] sm:$0xff]  ;;  %v49_v14 = vld [vmem:[%s1262_s0 + $0x110] sm:$0xff]  ;;  %v32_v19 = vld [vmem:[%s1262_s0 + $0x88] sm:$0xff]  ;;  %v104_v20 = vpack.c.bf16 %v66_v10, %v65_v9 }
  0x14   :  { %734 = vmatprep.subr.bf16.mxu1 %v106_v57  ;;  %v50_v15 = vld [vmem:[%s1262_s0 + $0x118] sm:$0xff]  ;;  %v63_v21 = vld [vmem:[%s1262_s0 + $0x180] sm:$0xff]  ;;  %v64_v23 = vld [vmem:[%s1262_s0 + $0x188] sm:$0xff]  ;;  %v80_v25 = vpack.c.bf16 %v18_v12, %v17_v11  ;;  %v87_v28 = vpack.c.bf16 %v32_v19, %v31_v16 }
  0x15   :  { %v795_v22 = vld [vmem:[%s1263_s1 + $0x4] ss:$16 sps:$4 sm:$0xff]   ;;  %v798_v24 = vld [vmem:[%s1263_s1 + $0xc] ss:$16 sps:$4 sm:$0xff]   ;;  %v96_v27 = vpack.c.bf16 %v50_v15, %v49_v14  ;;  %v103_v30 = vpack.c.bf16 %v64_v23, %v63_v21  ;;  %v793_v35 = vld [vmem:[%s1263_s1] ss:$16 sps:$4 sm:$0xff]  }
  0x16   :  { %671 = vmatpush3.bf16.msra.mxu0 %v82_v63  ;;  %v15_v26 = vld [vmem:[%s1262_s0] sm:$0xff]  ;;  %431 = vmatprep.mubr.bf16.mxu0 %v795_v22  ;;  %v16_v29 = vld [vmem:[%s1262_s0 + $0x8] sm:$0xff]  ;;  %v145_v44 = vld [vmem:[%s1264_s2 + $0x10] sm:$0xff] }
  0x17   :  { %735 = vmatpush3.bf16.msra.mxu1 %v98_v1  ;;  %672 = vmatprep.subr.bf16.mxu0 %v89_v2  ;;  %v47_v31 = vld [vmem:[%s1262_s0 + $0x100] sm:$0xff]  ;;  %v48_v32 = vld [vmem:[%s1262_s0 + $0x108] sm:$0xff]  ;;  %v79_v33 = vpack.c.bf16 %v16_v29, %v15_v26  ;;  %v146_v46 = vld [vmem:[%s1264_s2 + $0x18] sm:$0xff] }
  0x18   :  { %736 = vmatprep.subr.bf16.mxu1 %v105_v6  ;;  %528 = vmatprep.mubr.bf16.mxu1 %v798_v24  ;;  %v95_v34 = vpack.c.bf16 %v48_v32, %v47_v31  ;;  %v796_v36 = vld [vmem:[%s1263_s1 + $0x8] ss:$16 sps:$4 sm:$0xff]   ;;  %v799_v37 = vld [vmem:[%s1263_s1 + $0x24] ss:$16 sps:$4 sm:$0xff]   ;;  %v801_v38 = vld [vmem:[%s1263_s1 + $0x2c] ss:$16 sps:$4 sm:$0xff]  }
  0x19   :  { %v803_v39 = vld [vmem:[%s1263_s1 + $0x20] ss:$16 sps:$4 sm:$0xff]   ;;  %v804_v40 = vld [vmem:[%s1263_s1 + $0x28] ss:$16 sps:$4 sm:$0xff]   ;;  %v805_v41 = vld [vmem:[%s1263_s1 + $0x44] ss:$16 sps:$4 sm:$0xff]   ;;  %171 = vperm.xlu1 %792, %v145_v44  }
  0x1a   :  { %673 = vmatpush3.bf16.msra.mxu0 %v81_v13  ;;  %v807_v42 = vld [vmem:[%s1263_s1 + $0x4c] ss:$16 sps:$4 sm:$0xff]   ;;  %v143_v43 = vld [vmem:[%s1264_s2] sm:$0xff]  ;;  %v810_v48 = vld [vmem:[%s1263_s1 + $0x48] ss:$16 sps:$4 sm:$0xff]  }
  0x1b   :  { %737 = vmatpush3.bf16.msra.mxu1 %v97_v17  ;;  %674 = vmatprep.subr.bf16.mxu0 %v88_v18  ;;  %v144_v45 = vld [vmem:[%s1264_s2 + $0x8] sm:$0xff]  ;;  %v809_v47 = vld [vmem:[%s1263_s1 + $0x40] ss:$16 sps:$4 sm:$0xff]   ;;  %v811_v49 = vld [vmem:[%s1263_s1 + $0x64] ss:$16 sps:$4 sm:$0xff]  }
  0x1c   :  { %738 = vmatprep.subr.bf16.mxu1 %v104_v20  ;;  %161 = vperm.xlu0 %791, %v143_v43   ;;  %v147_v50 = vld [vmem:[%s1264_s2 + $0x20] sm:$0xff]  ;;  %v813_v51 = vld [vmem:[%s1263_s1 + $0x6c] ss:$16 sps:$4 sm:$0xff]   ;;  %v149_v53 = vld [vmem:[%s1264_s2 + $0x30] sm:$0xff] }
  0x1d   :  { %176 = vperm.xlu1 %792, %v146_v46   ;;  %v148_v52 = vld [vmem:[%s1264_s2 + $0x28] sm:$0xff]  ;;  %v150_v54 = vld [vmem:[%s1264_s2 + $0x38] sm:$0xff]  ;;  %v815_v55 = vld [vmem:[%s1263_s1 + $0x60] ss:$16 sps:$4 sm:$0xff]  }
  0x1e   :  { %675 = vmatpush3.bf16.msra.mxu0 %v80_v25  ;;  %v816_v56 = vld [vmem:[%s1263_s1 + $0x68] ss:$16 sps:$4 sm:$0xff]   ;;  %v817_v57 = vld [vmem:[%s1263_s1 + $0x84] ss:$16 sps:$4 sm:$0xff]   ;;  %v819_v59 = vld [vmem:[%s1263_s1 + $0x8c] ss:$16 sps:$4 sm:$0xff]  }
  0x1f   :  { %739 = vmatpush3.bf16.msra.mxu1 %v96_v27  ;;  %676 = vmatprep.subr.bf16.mxu0 %v87_v28  ;;  %v151_v58 = vld [vmem:[%s1264_s2 + $0x40] sm:$0xff]  ;;  %v152_v60 = vld [vmem:[%s1264_s2 + $0x48] sm:$0xff]  ;;  %v153_v61 = vld [vmem:[%s1264_s2 + $0x50] sm:$0xff] }
  0x20   :  { %740 = vmatprep.subr.bf16.mxu1 %v103_v30  ;;  %166 = vperm.xlu0 %791, %v144_v45   ;;  %v154_v62 = vld [vmem:[%s1264_s2 + $0x58] sm:$0xff]  ;;  %v821_v63 = vld [vmem:[%s1263_s1 + $0x80] ss:$16 sps:$4 sm:$0xff]   ;;  %v823_v1 = vld [vmem:[%s1263_s1 + $0xa4] ss:$16 sps:$4 sm:$0xff]  }
  0x21   :  { %186 = vperm.xlu1 %792, %v148_v52   ;;  %v822_v0 = vld [vmem:[%s1263_s1 + $0x88] ss:$16 sps:$4 sm:$0xff]   ;;  %v155_v2 = vld [vmem:[%s1264_s2 + $0x60] sm:$0xff]  ;;  %v825_v3 = vld [vmem:[%s1263_s1 + $0xac] ss:$16 sps:$4 sm:$0xff]  }
  0x22   :  { %677 = vmatpush3.bf16.msra.mxu0 %v79_v33  ;;  %v156_v4 = vld [vmem:[%s1264_s2 + $0x68] sm:$0xff]  ;;  %v157_v5 = vld [vmem:[%s1264_s2 + $0x70] sm:$0xff]  ;;  %v158_v6 = vld [vmem:[%s1264_s2 + $0x78] sm:$0xff] }
  0x23   :  { %741 = vmatpush3.bf16.msra.mxu1 %v95_v34  ;;  %v827_v7 = vld [vmem:[%s1263_s1 + $0xa0] ss:$16 sps:$4 sm:$0xff]   ;;  %v828_v8 = vld [vmem:[%s1263_s1 + $0xa8] ss:$16 sps:$4 sm:$0xff]   ;;  %v829_v9 = vld [vmem:[%s1263_s1 + $0xc4] ss:$16 sps:$4 sm:$0xff]  }
  0x24   :  { %181 = vperm.xlu0 %791, %v147_v50   ;;  %v831_v10 = vld [vmem:[%s1263_s1 + $0xcc] ss:$16 sps:$4 sm:$0xff]   ;;  %v833_v11 = vld [vmem:[%s1263_s1 + $0xc0] ss:$16 sps:$4 sm:$0xff]   ;;  %v834_v12 = vld [vmem:[%s1263_s1 + $0xc8] ss:$16 sps:$4 sm:$0xff]  }
  0x25   :  { %432 = vmatmul.mubr.bf16.vlgmr.msra.gmra.mxu0 %v793_v35  ;;  %196 = vperm.xlu1 %792, %v150_v54   ;;  %v835_v13 = vld [vmem:[%s1263_s1 + $0xe4] ss:$16 sps:$4 sm:$0xff]   ;;  %v837_v14 = vld [vmem:[%s1263_s1 + $0xec] ss:$16 sps:$4 sm:$0xff]   ;;  %v839_v15 = vld [vmem:[%s1263_s1 + $0xe0] ss:$16 sps:$4 sm:$0xff]  }
  0x26   :  { %529 = vmatmul.mubr.bf16.vlgmr.msra.gmra.mxu1 %v796_v36  ;;  %439 = vmatprep.mubr.bf16.mxu0 %v799_v37  ;;  %v840_v16 = vld [vmem:[%s1263_s1 + $0xe8] ss:$16 sps:$4 sm:$0xff]  }
  0x27   :  { %536 = vmatprep.mubr.bf16.mxu1 %v801_v38 }
  0x28   :  { %191 = vperm.xlu0 %791, %v149_v53  }
  0x29   :  { %206 = vperm.xlu1 %792, %v152_v60  }
  0x2c   :  { %201 = vperm.xlu0 %791, %v151_v58  }
  0x2d   :  { %440 = vmatmul.mubr.bf16.gmra.mxu0 %v803_v39  ;;  %216 = vperm.xlu1 %792, %v154_v62  }
  0x2e   :  { %537 = vmatmul.mubr.bf16.gmra.mxu1 %v804_v40  ;;  %447 = vmatprep.mubr.bf16.mxu0 %v805_v41 }
  0x2f   :  { %544 = vmatprep.mubr.bf16.mxu1 %v807_v42 }
  0x30   :  { %211 = vperm.xlu0 %791, %v153_v61  }
  0x31   :  { %226 = vperm.xlu1 %792, %v156_v4  }
  0x34   :  { %221 = vperm.xlu0 %791, %v155_v2  }
  0x35   :  { %448 = vmatmul.mubr.bf16.gmra.mxu0 %v809_v47  ;;  %236 = vperm.xlu1 %792, %v158_v6  }
  0x36   :  { %545 = vmatmul.mubr.bf16.gmra.mxu1 %v810_v48  ;;  %455 = vmatprep.mubr.bf16.mxu0 %v811_v49 }
  0x37   :  { %552 = vmatprep.mubr.bf16.mxu1 %v813_v51 }
  0x38   :  { %231 = vperm.xlu0 %791, %v157_v5  }
  0x3d   :  { %456 = vmatmul.mubr.bf16.gmra.mxu0 %v815_v55 }
  0x3e   :  { %553 = vmatmul.mubr.bf16.gmra.mxu1 %v816_v56  ;;  %463 = vmatprep.mubr.bf16.mxu0 %v817_v57 }
  0x3f   :  { %560 = vmatprep.mubr.bf16.mxu1 %v819_v59 }
  0x45   :  { %464 = vmatmul.mubr.bf16.gmra.mxu0 %v821_v63 }
  0x46   :  { %561 = vmatmul.mubr.bf16.gmra.mxu1 %v822_v0  ;;  %471 = vmatprep.mubr.bf16.mxu0 %v823_v1 }
  0x47   :  { %568 = vmatprep.mubr.bf16.mxu1 %v825_v3 }
  0x4d   :  { %472 = vmatmul.mubr.bf16.gmra.mxu0 %v827_v7 }
  0x4e   :  { %569 = vmatmul.mubr.bf16.gmra.mxu1 %v828_v8  ;;  %479 = vmatprep.mubr.bf16.mxu0 %v829_v9 }
  0x4f   :  { %576 = vmatprep.mubr.bf16.mxu1 %v831_v10 }
  0x55   :  { %480 = vmatmul.mubr.bf16.gmra.mxu0 %v833_v11 }
  0x56   :  { %577 = vmatmul.mubr.bf16.gmra.mxu1 %v834_v12  ;;  %487 = vmatprep.mubr.bf16.mxu0 %v835_v13 }
  0x57   :  { %584 = vmatprep.mubr.bf16.mxu1 %v837_v14 }
  0x5d   :  { %488 = vmatmul.mubr.bf16.gmra.mxu0 %v839_v15 }
  0x5e   :  { %585 = vmatmul.mubr.bf16.gmra.mxu1 %v840_v16 }
  0x94   :  { %v172_v37 = vpop.permute.xlu1 %171 }
  0x97   :  { %v162_v18 = vpop.permute.xlu0 %161 }
  0x98   :  { %v177_v51 = vpop.permute.xlu1 %176 }
  0x9b   :  { %v167_v28 = vpop.permute.xlu0 %166 }
  0x9c   :  { %v187_v7 = vpop.permute.xlu1 %186 }
  0x9f   :  { %v182_v61 = vpop.permute.xlu0 %181 }
  0xe5   :  { %v678_v17 = vpop.f32.mrf.mxu0 }
  0xe6   :  { %v742_v19 = vpop.f32.mrf.mxu1 }
  0xe7   :  { %v679_v20 = vpop.f32.mrf.mxu0 }
  0xe8   :  { %v680_v21 = vadd.f32 %v679_v20, %v678_v17  ;;  %v743_v22 = vpop.f32.mrf.mxu1  ;;  %v192_v17 = vpop.permute.xlu0 %191 }
  0xe9   :  { %v681_v23 = vpop.f32.mrf.mxu0  ;;  %v744_v24 = vadd.f32 %v743_v22, %v742_v19 }
  0xea   :  { %v434_v25 = vadd.f32 %v680_v21, %v162_v18  ;;  %v745_v26 = vpop.f32.mrf.mxu1 }
  0xeb   :  { %v682_v27 = vpop.f32.mrf.mxu0 }
  0xec   :  { %v531_v29 = vadd.f32 %v744_v24, %v434_v25  ;;  %v683_v30 = vadd.f32 %v682_v27, %v681_v23  ;;  %v746_v31 = vpop.f32.mrf.mxu1  ;;  %v197_v27 = vpop.permute.xlu1 %196 }
  0xed   :  { %v684_v32 = vpop.f32.mrf.mxu0  ;;  %v747_v34 = vadd.f32 %v746_v31, %v745_v26 }
  0xee   :  { %v593_v33 = vmax.f32 %v531_v29, 0.0  ;;  %v437_v35 = vadd.f32 %v683_v30, %v167_v28  ;;  %v748_v36 = vpop.f32.mrf.mxu1 }
  0xef   :  { %v685_v38 = vpop.f32.mrf.mxu0 }
  0xf0   :  { %610 = vst.msk [vmem:[%s1265_s3] sm:$0xff] %vm609_vm0, %v593_v33  ;;  %v534_v39 = vadd.f32 %v747_v34, %v437_v35  ;;  %v686_v40 = vadd.f32 %v685_v38, %v684_v32  ;;  %v749_v41 = vpop.f32.mrf.mxu1 }
  0xf1   :  { %v687_v42 = vpop.f32.mrf.mxu0  ;;  %v750_v45 = vadd.f32 %v749_v41, %v748_v36 }
  0xf2   :  { %v594_v43 = vmax.f32 %v534_v39, 0.0  ;;  %v442_v44 = vadd.f32 %v686_v40, %v172_v37  ;;  %v751_v46 = vpop.f32.mrf.mxu1  ;;  %v202_v37 = vpop.permute.xlu0 %201 }
  0xf3   :  { %v688_v47 = vpop.f32.mrf.mxu0 }
  0xf4   :  { %611 = vst.msk [vmem:[%s1265_s3 + $0x8] sm:$0xff] %vm609_vm0, %v594_v43  ;;  %v539_v48 = vadd.f32 %v750_v45, %v442_v44  ;;  %v689_v49 = vadd.f32 %v688_v47, %v687_v42  ;;  %v752_v50 = vpop.f32.mrf.mxu1  ;;  %v207_v47 = vpop.permute.xlu1 %206 }
  0xf5   :  { %v690_v52 = vpop.f32.mrf.mxu0  ;;  %v753_v55 = vadd.f32 %v752_v50, %v751_v46 }
  0xf6   :  { %v595_v53 = vmax.f32 %v539_v48, 0.0  ;;  %v445_v54 = vadd.f32 %v689_v49, %v177_v51  ;;  %v754_v56 = vpop.f32.mrf.mxu1 }
  0xf7   :  { %v691_v57 = vpop.f32.mrf.mxu0 }
  0xf8   :  { %612 = vst.msk [vmem:[%s1265_s3 + $0x10] sm:$0xff] %vm609_vm0, %v595_v53  ;;  %v542_v58 = vadd.f32 %v753_v55, %v445_v54  ;;  %v692_v59 = vadd.f32 %v691_v57, %v690_v52  ;;  %v755_v60 = vpop.f32.mrf.mxu1  ;;  %v212_v57 = vpop.permute.xlu0 %211 }
  0xf9   :  { %v693_v62 = vpop.f32.mrf.mxu0  ;;  %v756_v1 = vadd.f32 %v755_v60, %v754_v56 }
  0xfa   :  { %v596_v63 = vmax.f32 %v542_v58, 0.0  ;;  %v450_v0 = vadd.f32 %v692_v59, %v182_v61  ;;  %v757_v2 = vpop.f32.mrf.mxu1 }
  0xfb   :  { %v694_v3 = vpop.f32.mrf.mxu0 }
  0xfc   :  { %613 = vst.msk [vmem:[%s1265_s3 + $0x18] sm:$0xff] %vm609_vm0, %v596_v63  ;;  %v547_v4 = vadd.f32 %v756_v1, %v450_v0  ;;  %v695_v5 = vadd.f32 %v694_v3, %v693_v62  ;;  %v758_v6 = vpop.f32.mrf.mxu1  ;;  %v217_v3 = vpop.permute.xlu1 %216 }
  0xfd   :  { %v696_v8 = vpop.f32.mrf.mxu0  ;;  %v759_v11 = vadd.f32 %v758_v6, %v757_v2 }
  0xfe   :  { %v597_v9 = vmax.f32 %v547_v4, 0.0  ;;  %v453_v10 = vadd.f32 %v695_v5, %v187_v7  ;;  %v760_v12 = vpop.f32.mrf.mxu1 }
  0xff   :  { %v697_v13 = vpop.f32.mrf.mxu0 }
 0x100   :  { %614 = vst.msk [vmem:[%s1265_s3 + $0x20] sm:$0xff] %vm609_vm0, %v597_v9  ;;  %v550_v14 = vadd.f32 %v759_v11, %v453_v10  ;;  %v698_v15 = vadd.f32 %v697_v13, %v696_v8  ;;  %v761_v16 = vpop.f32.mrf.mxu1  ;;  %v222_v13 = vpop.permute.xlu0 %221 }
 0x101   :  { %v699_v18 = vpop.f32.mrf.mxu0  ;;  %v762_v21 = vadd.f32 %v761_v16, %v760_v12 }
 0x102   :  { %v598_v19 = vmax.f32 %v550_v14, 0.0  ;;  %v458_v20 = vadd.f32 %v698_v15, %v192_v17  ;;  %v763_v22 = vpop.f32.mrf.mxu1 }
 0x103   :  { %v700_v23 = vpop.f32.mrf.mxu0 }
 0x104   :  { %615 = vst.msk [vmem:[%s1265_s3 + $0x28] sm:$0xff] %vm609_vm0, %v598_v19  ;;  %v555_v24 = vadd.f32 %v762_v21, %v458_v20  ;;  %v701_v25 = vadd.f32 %v700_v23, %v699_v18  ;;  %v764_v26 = vpop.f32.mrf.mxu1  ;;  %v227_v23 = vpop.permute.xlu1 %226 }
 0x105   :  { %v702_v28 = vpop.f32.mrf.mxu0  ;;  %v765_v31 = vadd.f32 %v764_v26, %v763_v22 }
 0x106   :  { %v599_v29 = vmax.f32 %v555_v24, 0.0  ;;  %v461_v30 = vadd.f32 %v701_v25, %v197_v27  ;;  %v766_v32 = vpop.f32.mrf.mxu1 }
 0x107   :  { %v703_v33 = vpop.f32.mrf.mxu0 }
 0x108   :  { %616 = vst.msk [vmem:[%s1265_s3 + $0x30] sm:$0xff] %vm609_vm0, %v599_v29  ;;  %v558_v34 = vadd.f32 %v765_v31, %v461_v30  ;;  %v704_v35 = vadd.f32 %v703_v33, %v702_v28  ;;  %v767_v36 = vpop.f32.mrf.mxu1  ;;  %v232_v33 = vpop.permute.xlu0 %231 }
 0x109   :  { %v705_v38 = vpop.f32.mrf.mxu0  ;;  %v768_v41 = vadd.f32 %v767_v36, %v766_v32 }
 0x10a   :  { %v600_v39 = vmax.f32 %v558_v34, 0.0  ;;  %v466_v40 = vadd.f32 %v704_v35, %v202_v37  ;;  %v769_v42 = vpop.f32.mrf.mxu1 }
 0x10b   :  { %v706_v43 = vpop.f32.mrf.mxu0 }
 0x10c   :  { %617 = vst.msk [vmem:[%s1265_s3 + $0x38] sm:$0xff] %vm609_vm0, %v600_v39  ;;  %v563_v44 = vadd.f32 %v768_v41, %v466_v40  ;;  %v707_v45 = vadd.f32 %v706_v43, %v705_v38  ;;  %v770_v46 = vpop.f32.mrf.mxu1  ;;  %v237_v43 = vpop.permute.xlu1 %236 }
 0x10d   :  { %v708_v48 = vpop.f32.mrf.mxu0  ;;  %v771_v51 = vadd.f32 %v770_v46, %v769_v42 }
 0x10e   :  { %v601_v49 = vmax.f32 %v563_v44, 0.0  ;;  %v469_v50 = vadd.f32 %v707_v45, %v207_v47  ;;  %v772_v52 = vpop.f32.mrf.mxu1 }
 0x10f   :  { %v709_v53 = vpop.f32.mrf.mxu0 }
 0x110   :  { %618 = vst.msk [vmem:[%s1265_s3 + $0x40] sm:$0xff] %vm609_vm0, %v601_v49  ;;  %v566_v54 = vadd.f32 %v771_v51, %v469_v50  ;;  %v710_v55 = vadd.f32 %v709_v53, %v708_v48  ;;  %v773_v56 = vpop.f32.mrf.mxu1 }
 0x111   :  { %v711_v58 = vpop.f32.mrf.mxu0  ;;  %v774_v61 = vadd.f32 %v773_v56, %v772_v52 }
 0x112   :  { %v602_v59 = vmax.f32 %v566_v54, 0.0  ;;  %v474_v60 = vadd.f32 %v710_v55, %v212_v57  ;;  %v775_v62 = vpop.f32.mrf.mxu1 }
 0x113   :  { %v712_v63 = vpop.f32.mrf.mxu0 }
 0x114   :  { %619 = vst.msk [vmem:[%s1265_s3 + $0x48] sm:$0xff] %vm609_vm0, %v602_v59  ;;  %v571_v0 = vadd.f32 %v774_v61, %v474_v60  ;;  %v713_v1 = vadd.f32 %v712_v63, %v711_v58  ;;  %v776_v2 = vpop.f32.mrf.mxu1 }
 0x115   :  { %v714_v4 = vpop.f32.mrf.mxu0  ;;  %v777_v7 = vadd.f32 %v776_v2, %v775_v62 }
 0x116   :  { %v603_v5 = vmax.f32 %v571_v0, 0.0  ;;  %v477_v6 = vadd.f32 %v713_v1, %v217_v3  ;;  %v778_v8 = vpop.f32.mrf.mxu1 }
 0x117   :  { %v715_v9 = vpop.f32.mrf.mxu0 }
 0x118   :  { %620 = vst.msk [vmem:[%s1265_s3 + $0x50] sm:$0xff] %vm609_vm0, %v603_v5  ;;  %v574_v10 = vadd.f32 %v777_v7, %v477_v6  ;;  %v716_v11 = vadd.f32 %v715_v9, %v714_v4  ;;  %v779_v12 = vpop.f32.mrf.mxu1 }
 0x119   :  { %v717_v14 = vpop.f32.mrf.mxu0  ;;  %v780_v17 = vadd.f32 %v779_v12, %v778_v8 }
 0x11a   :  { %v604_v15 = vmax.f32 %v574_v10, 0.0  ;;  %v482_v16 = vadd.f32 %v716_v11, %v222_v13  ;;  %v781_v18 = vpop.f32.mrf.mxu1 }
 0x11b   :  { %v718_v19 = vpop.f32.mrf.mxu0 }
 0x11c   :  { %621 = vst.msk [vmem:[%s1265_s3 + $0x58] sm:$0xff] %vm609_vm0, %v604_v15  ;;  %v579_v20 = vadd.f32 %v780_v17, %v482_v16  ;;  %v719_v21 = vadd.f32 %v718_v19, %v717_v14  ;;  %v782_v22 = vpop.f32.mrf.mxu1 }
 0x11d   :  { %v720_v24 = vpop.f32.mrf.mxu0  ;;  %v783_v27 = vadd.f32 %v782_v22, %v781_v18 }
 0x11e   :  { %v605_v25 = vmax.f32 %v579_v20, 0.0  ;;  %v485_v26 = vadd.f32 %v719_v21, %v227_v23  ;;  %v784_v28 = vpop.f32.mrf.mxu1 }
 0x11f   :  { %v721_v29 = vpop.f32.mrf.mxu0 }
 0x120   :  { %622 = vst.msk [vmem:[%s1265_s3 + $0x60] sm:$0xff] %vm609_vm0, %v605_v25  ;;  %v582_v30 = vadd.f32 %v783_v27, %v485_v26  ;;  %v722_v31 = vadd.f32 %v721_v29, %v720_v24  ;;  %v785_v32 = vpop.f32.mrf.mxu1 }
 0x121   :  { %v723_v34 = vpop.f32.mrf.mxu0  ;;  %v786_v37 = vadd.f32 %v785_v32, %v784_v28 }
 0x122   :  { %v606_v35 = vmax.f32 %v582_v30, 0.0  ;;  %v490_v36 = vadd.f32 %v722_v31, %v232_v33  ;;  %v787_v38 = vpop.f32.mrf.mxu1 }
 0x123   :  { %v724_v39 = vpop.f32.mrf.mxu0 }
 0x124   :  { %623 = vst.msk [vmem:[%s1265_s3 + $0x68] sm:$0xff] %vm609_vm0, %v606_v35  ;;  %v587_v40 = vadd.f32 %v786_v37, %v490_v36  ;;  %v725_v41 = vadd.f32 %v724_v39, %v723_v34  ;;  %v788_v42 = vpop.f32.mrf.mxu1 }
 0x125   :  { %v789_v46 = vadd.f32 %v788_v42, %v787_v38 }
 0x126   :  { %v607_v44 = vmax.f32 %v587_v40, 0.0  ;;  %v493_v45 = vadd.f32 %v725_v41, %v237_v43 }
 0x128   :  { %624 = vst.msk [vmem:[%s1265_s3 + $0x70] sm:$0xff] %vm609_vm0, %v607_v44  ;;  %v590_v47 = vadd.f32 %v789_v46, %v493_v45 }
 0x12a   :  { %v608_v48 = vmax.f32 %v590_v47, 0.0 }
 0x12c   :  { %625 = vst.msk [vmem:[%s1265_s3 + $0x78] sm:$0xff] %vm609_vm0, %v608_v48 }

// kernel: _lambda_.29
= control target key start
LH: loop header
LB: loop body
LE: loop exit
PB: predicated region body
PF: predicated region fallthrough
CT: control target
= control target key end

     0   :  { %s480_s9 = smov 0   ;;  %s520_s0 = inlined_call_operand.vmem [shape: f32[2,5,64], index: 0, kind: input, shape index: {}]   ;;  %s521_s1 = inlined_call_operand.vmem [shape: f32[2,5,8], index: 1, kind: input, shape index: {}]   ;;  %s522_s2 = inlined_call_operand.vmem [shape: f32[2,64,8], index: 2, kind: output, shape index: {}]  }
   0x1 LB: > { %s402_s10 = sadd.s32 4294967295, %s463_s9   ;;  %p406_p0 = scmp.ge.s32.totalorder %s463_s9, 1  ;;  %s463_s9 = sphi %s480_s9, %s12_s9  }
   0x2   : > { %p120_p1 = scmp.lt.s32.totalorder %s463_s9, 3 }
   0x4   : > { %p121_p2 = pnand %p406_p0, %p120_p1 }
   0x5   : > { %p145_p3 = scmp.lt.s32.totalorder (!%p121_p2), %s402_s10, 1 }
   0x6   : > { %124 = sbr.rel (%p121_p2) target bundleno = 364 (0x16c), region = 28 }
   0xb   : > { %s524_s10 = smov (!%p145_p3, %s402_s10), 1  ;;  %vm217_vm0 = vcmask 1044480   ;;  %vm192_vm1 = vcmask 39936   ;;  %vm326_vm2 = vcmask 64512  }
   0xc   : > { %s407_s11 = sshll.u32 %s524_s10, 3  ;;  %s422_s18 = sshll.u32 %s524_s10, 6 }
   0xd   : > { %s148_s14 = scalar_lea.vmem %s520_s0, %s407_s11  ;;  %s152_s17 = scalar_lea.vmem %s521_s1, %s407_s11 }
   0xe   : > { %v158_v0 = vld [vmem:[%s148_s14] sm:$0x1f]  ;;  %s157_s21 = scalar_lea.vmem %s522_s2, %s422_s18 }
   0xf   : > { %v159_v1 = vld [vmem:[%s152_s17] sm:$0x1f]  ;;  %160 = vxpose.xlu0.b32.start.end [1/1] (short) (narrow) %v158_v0, 64 }
  0x10   : > { %432 = vmatprep.subr.msk.mxu0 %vm217_vm0, %v159_v1  ;;  %446 = vmatprep.subr.msk.mxu1 %vm217_vm0, %v159_v1 }
  0x11   : > { %433 = vmatpush3.msk.msra.mxu0 %vm217_vm0, %v159_v1  ;;  %447 = vmatpush3.msk.msra.mxu1 %vm217_vm0, %v159_v1 }
  0x8b   : > { %v176_v2 = vpop.trf.xlu0 }
  0x8c   : > { %434 = vmatprep.mubr.msk.f32.mxu0 %vm192_vm1, %v176_v2 }
  0x8f   : > { %v177_v3 = vpop.trf.xlu0 }
  0x90   : > { %435 = vmatmul.mubr.msk.f32.vlgmr.msra.gmra.mxu0 %vm192_vm1, %v177_v3 }
  0x93   : > { %v178_v4 = vpop.trf.xlu0 }
  0x94   : > { %437 = vmatprep.mubr.msk.f32.mxu0 %vm192_vm1, %v178_v4 }
  0x97   : > { %v179_v5 = vpop.trf.xlu0 }
  0x98   : > { %438 = vmatmul.mubr.msk.f32.gmra.mxu0 %vm192_vm1, %v179_v5 }
  0x9b   : > { %v180_v6 = vpop.trf.xlu0 }
  0x9c   : > { %440 = vmatprep.mubr.msk.f32.mxu1 %vm192_vm1, %v180_v6 }
  0x9f   : > { %v181_v7 = vpop.trf.xlu0 }
  0xa0   : > { %441 = vmatmul.mubr.msk.f32.vlgmr.msra.gmra.mxu1 %vm192_vm1, %v181_v7 }
  0xa3   : > { %v182_v8 = vpop.trf.xlu0 }
  0xa4   : > { %443 = vmatprep.mubr.msk.f32.mxu1 %vm192_vm1, %v182_v8 }
  0xa7   : > { %v183_v9 = vpop.trf.xlu0 }
  0xa8   : > { %444 = vmatmul.mubr.msk.f32.gmra.mxu1 %vm192_vm1, %v183_v9 }
 0x150   : > { %v436_v10 = vpop.f32.mrf.mxu0 }
 0x151   : > { %328 = vst.msk [vmem:[%s157_s21 + $0x8] sm:$0xff] %vm326_vm2, %v436_v10 }
 0x152   : > { %v287_v11 = vpop.f32.mrf.mxu0 }
 0x153   : > { %327 = vst.msk [vmem:[%s157_s21] sm:$0xff] %vm326_vm2, %v287_v11 }
 0x158   : > { %v439_v12 = vpop.f32.mrf.mxu0 }
 0x159   : > { %330 = vst.msk [vmem:[%s157_s21 + $0x18] sm:$0xff] %vm326_vm2, %v439_v12 }
 0x15a   : > { %v297_v13 = vpop.f32.mrf.mxu0 }
 0x15b   : > { %329 = vst.msk [vmem:[%s157_s21 + $0x10] sm:$0xff] %vm326_vm2, %v297_v13 }
 0x160   : > { %v442_v14 = vpop.f32.mrf.mxu1 }
 0x161   : > { %332 = vst.msk [vmem:[%s157_s21 + $0x28] sm:$0xff] %vm326_vm2, %v442_v14 }
 0x162   : > { %v307_v15 = vpop.f32.mrf.mxu1 }
 0x163   : > { %331 = vst.msk [vmem:[%s157_s21 + $0x20] sm:$0xff] %vm326_vm2, %v307_v15 }
 0x168   : > { %v445_v16 = vpop.f32.mrf.mxu1 }
 0x169   : > { %334 = vst.msk [vmem:[%s157_s21 + $0x38] sm:$0xff] %vm326_vm2, %v445_v16 }
 0x16a   : > { %v317_v17 = vpop.f32.mrf.mxu1 }
 0x16b   : > { %333 = vst.msk [vmem:[%s157_s21 + $0x30] sm:$0xff] %vm326_vm2, %v317_v17 }
 0x16c PF: > { %s12_s9 = sadd.s32 1, %s463_s9  }
 0x16d   : > { %p9_p4 = scmp.ge.s32.totalorder %s12_s9, 4  }
 0x16f   :  { %11 = sbr.rel (!%p9_p4) target bundleno = 1 (0x1), region = 61 }

// kernel: _lambda_.30
= control target key start
LH: loop header
LB: loop body
LE: loop exit
PB: predicated region body
PF: predicated region fallthrough
CT: control target
= control target key end

     0   :  { %v282_v0 = vmov 0   ;;  %vm137_vm0 = vcmask 261120   ;;  %s461_s0 = inlined_call_operand.vmem [shape: f32[160,128], index: 0, kind: input, shape index: {}]   ;;  %s462_s1 = inlined_call_operand.vmem [shape: bf16[64,160], index: 1, kind: input, shape index: {}]   ;;  %s463_s2 = inlined_call_operand.vmem [shape: f32[64,1], index: 2, kind: input, shape index: {}]   ;;  %s464_s3 = inlined_call_operand.vmem [shape: f32[64,128], index: 3, kind: output, shape index: {}]  }
   0x1   :  { %150 = vmatprep.subr.bf16.mxu0 %v282_v0  ;;  %247 = vmatprep.subr.bf16.mxu1 %v282_v0  ;;  %v29_v1 = vld [vmem:[%s461_s0 + $0x70] sm:$0xff]  ;;  %v30_v2 = vld [vmem:[%s461_s0 + $0x78] sm:$0xff]  ;;  %v27_v3 = vld [vmem:[%s461_s0 + $0x60] sm:$0xff] }
   0x2   :  { %v42_v4 = vpack.c.bf16 %v30_v2, %v29_v1  ;;  %v28_v5 = vld [vmem:[%s461_s0 + $0x68] sm:$0xff]  ;;  %269 = vset.pattern.permute.xlu1 %v282_v0  ;;  %268 = vset.pattern.permute.xlu0 %v282_v0  ;;  %v25_v7 = vld [vmem:[%s461_s0 + $0x50] sm:$0xff]  ;;  %v26_v8 = vld [vmem:[%s461_s0 + $0x58] sm:$0xff] }
   0x3   :  { %v41_v6 = vpack.c.bf16 %v28_v5, %v27_v3  ;;  %v40_v9 = vpack.c.bf16 %v26_v8, %v25_v7  ;;  %v23_v10 = vld [vmem:[%s461_s0 + $0x40] sm:$0xff]  ;;  %v24_v12 = vld [vmem:[%s461_s0 + $0x48] sm:$0xff]  ;;  %v21_v15 = vld [vmem:[%s461_s0 + $0x30] sm:$0xff] }
   0x4   :  { %151 = vmatpush1.bf16.msra.mxu0 %v42_v4  ;;  %257 = vmatpush1.bf16.msra.mxu1 %v42_v4  ;;  %v272_v11 = vld [vmem:[%s462_s1 + $0x4] ss:$8 sps:$4 sm:$0xff]   ;;  %v39_v14 = vpack.c.bf16 %v24_v12, %v23_v10  ;;  %v22_v16 = vld [vmem:[%s461_s0 + $0x38] sm:$0xff]  ;;  %v55_v17 = vld [vmem:[%s463_s2 + $0x10] sm:$0xff] }
   0x5   :  { %152 = vmatprep.subr.bf16.mxu0 %v282_v0  ;;  %248 = vmatprep.subr.bf16.mxu1 %v282_v0  ;;  %v275_v13 = vld [vmem:[%s462_s1 + $0x24] ss:$8 sps:$4 sm:$0xff]   ;;  %v56_v19 = vld [vmem:[%s463_s2 + $0x18] sm:$0xff]  ;;  %v38_v20 = vpack.c.bf16 %v22_v16, %v21_v15  ;;  %v17_v27 = vld [vmem:[%s461_s0 + $0x10] sm:$0xff] }
   0x6   :  { %243 = vmatprep.mubr.msk.bf16.mxu0 %vm137_vm0, %v272_v11  ;;  %v53_v18 = vld [vmem:[%s463_s2] sm:$0xff]  ;;  %245 = vmatprep.mubr.msk.bf16.mxu1 %vm137_vm0, %v275_v13  ;;  %v54_v21 = vld [vmem:[%s463_s2 + $0x8] sm:$0xff]  ;;  %v18_v28 = vld [vmem:[%s461_s0 + $0x18] sm:$0xff] }
   0x7   :  { %73 = vperm.xlu1 %269, %v55_v17   ;;  %63 = vperm.xlu0 %268, %v53_v18   ;;  %v19_v22 = vld [vmem:[%s461_s0 + $0x20] sm:$0xff]  ;;  %v20_v23 = vld [vmem:[%s461_s0 + $0x28] sm:$0xff]  ;;  %v60_v29 = vld [vmem:[%s463_s2 + $0x38] sm:$0xff]  ;;  %v36_v30 = vpack.c.bf16 %v18_v28, %v17_v27 }
   0x8   :  { %153 = vmatpush1.bf16.msra.mxu0 %v41_v6  ;;  %258 = vmatpush1.bf16.msra.mxu1 %v41_v6  ;;  %v58_v24 = vld [vmem:[%s463_s2 + $0x28] sm:$0xff]  ;;  %v37_v25 = vpack.c.bf16 %v20_v23, %v19_v22  ;;  %v57_v26 = vld [vmem:[%s463_s2 + $0x20] sm:$0xff]  ;;  %v59_v31 = vld [vmem:[%s463_s2 + $0x30] sm:$0xff] }
   0x9   :  { %154 = vmatprep.subr.bf16.mxu0 %v282_v0  ;;  %249 = vmatprep.subr.bf16.mxu1 %v282_v0  ;;  %v15_v32 = vld [vmem:[%s461_s0] sm:$0xff]  ;;  %v16_v33 = vld [vmem:[%s461_s0 + $0x8] sm:$0xff]  ;;  %v33_v35 = vld [vmem:[%s461_s0 + $0x90] sm:$0xff] }
   0xa   :  { %v35_v34 = vpack.c.bf16 %v16_v33, %v15_v32  ;;  %v34_v36 = vld [vmem:[%s461_s0 + $0x98] sm:$0xff]  ;;  %v31_v38 = vld [vmem:[%s461_s0 + $0x80] sm:$0xff]  ;;  %v32_v39 = vld [vmem:[%s461_s0 + $0x88] sm:$0xff] }
   0xb   :  { %78 = vperm.xlu1 %269, %v56_v19   ;;  %68 = vperm.xlu0 %268, %v54_v21   ;;  %v44_v37 = vpack.c.bf16 %v34_v36, %v33_v35  ;;  %v43_v40 = vpack.c.bf16 %v32_v39, %v31_v38  ;;  %v270_v41 = vld [vmem:[%s462_s1] ss:$8 sps:$4 sm:$0xff]   ;;  %v276_v43 = vld [vmem:[%s462_s1 + $0x14] ss:$8 sps:$4 sm:$0xff]   ;;  %v280_v45 = vld [vmem:[%s462_s1 + $0x10] ss:$8 sps:$4 sm:$0xff]  }
   0xc   :  { %155 = vmatpush1.bf16.msra.mxu0 %v40_v9  ;;  %259 = vmatpush1.bf16.msra.mxu1 %v40_v9  ;;  %v273_v42 = vld [vmem:[%s462_s1 + $0x20] ss:$8 sps:$4 sm:$0xff]   ;;  %v278_v44 = vld [vmem:[%s462_s1 + $0x34] ss:$8 sps:$4 sm:$0xff]   ;;  %v281_v46 = vld [vmem:[%s462_s1 + $0x30] ss:$8 sps:$4 sm:$0xff]  }
   0xd   :  { %156 = vmatprep.subr.bf16.mxu0 %v282_v0  ;;  %250 = vmatprep.subr.bf16.mxu1 %v282_v0 }
   0xf   :  { %88 = vperm.xlu1 %269, %v58_v24   ;;  %83 = vperm.xlu0 %268, %v57_v26  }
  0x10   :  { %157 = vmatpush1.bf16.msra.mxu0 %v39_v14  ;;  %260 = vmatpush1.bf16.msra.mxu1 %v39_v14 }
  0x11   :  { %158 = vmatprep.subr.bf16.mxu0 %v282_v0  ;;  %251 = vmatprep.subr.bf16.mxu1 %v282_v0 }
  0x13   :  { %98 = vperm.xlu1 %269, %v60_v29   ;;  %93 = vperm.xlu0 %268, %v59_v31  }
  0x14   :  { %159 = vmatpush1.bf16.msra.mxu0 %v38_v20  ;;  %261 = vmatpush1.bf16.msra.mxu1 %v38_v20 }
  0x15   :  { %160 = vmatprep.subr.bf16.mxu0 %v282_v0  ;;  %252 = vmatprep.subr.bf16.mxu1 %v282_v0 }
  0x18   :  { %161 = vmatpush1.bf16.msra.mxu0 %v37_v25  ;;  %262 = vmatpush1.bf16.msra.mxu1 %v37_v25 }
  0x19   :  { %162 = vmatprep.subr.bf16.mxu0 %v282_v0  ;;  %253 = vmatprep.subr.bf16.mxu1 %v282_v0 }
  0x1c   :  { %163 = vmatpush1.bf16.msra.mxu0 %v36_v30  ;;  %263 = vmatpush1.bf16.msra.mxu1 %v36_v30 }
  0x1d   :  { %164 = vmatprep.subr.bf16.mxu0 %v282_v0  ;;  %254 = vmatprep.subr.bf16.mxu1 %v282_v0 }
  0x20   :  { %165 = vmatpush1.bf16.msra.mxu0 %v35_v34  ;;  %264 = vmatpush1.bf16.msra.mxu1 %v35_v34 }
  0x21   :  { %178 = vmatprep.subr.bf16.mxu0 %v282_v0  ;;  %255 = vmatprep.subr.bf16.mxu1 %v282_v0 }
  0x24   :  { %179 = vmatpush2.bf16.msra.mxu0 %v44_v37  ;;  %265 = vmatpush2.bf16.msra.mxu1 %v44_v37 }
  0x25   :  { %180 = vmatprep.subr.bf16.mxu0 %v282_v0  ;;  %256 = vmatprep.subr.bf16.mxu1 %v282_v0 }
  0x28   :  { %181 = vmatpush2.bf16.msra.mxu0 %v43_v40  ;;  %266 = vmatpush2.bf16.msra.mxu1 %v43_v40 }
  0x2b   :  { %183 = vmatmul.mubr.bf16.vlgmr.msra.gmra.mxu0 %v270_v41  ;;  %199 = vmatmul.mubr.bf16.vlgmr.msra.gmra.mxu1 %v273_v42 }
  0x2c   :  { %244 = vmatprep.mubr.msk.bf16.mxu0 %vm137_vm0, %v276_v43  ;;  %246 = vmatprep.mubr.msk.bf16.mxu1 %vm137_vm0, %v278_v44 }
  0x33   :  { %191 = vmatmul.mubr.bf16.gmra.mxu0 %v280_v45  ;;  %207 = vmatmul.mubr.bf16.gmra.mxu1 %v281_v46 }
  0x82   :  { %v64_v47 = vpop.permute.xlu0 %63  ;;  %v74_v48 = vpop.permute.xlu1 %73 }
  0x86   :  { %v69_v49 = vpop.permute.xlu0 %68  ;;  %v79_v50 = vpop.permute.xlu1 %78 }
  0x8a   :  { %v84_v51 = vpop.permute.xlu0 %83  ;;  %v89_v58 = vpop.permute.xlu1 %88 }
  0x8e   :  { %v94_v3 = vpop.permute.xlu0 %93  ;;  %v99_v12 = vpop.permute.xlu1 %98 }
  0xeb   :  { %v184_v52 = vpop.f32.mrf.mxu0  ;;  %v200_v53 = vpop.f32.mrf.mxu1 }
  0xec   :  { %v185_v54 = vadd.f32 %v184_v52, %v64_v47  ;;  %v201_v55 = vadd.f32 %v200_v53, %v84_v51 }
  0xed   :  { %v186_v56 = vpop.f32.mrf.mxu0  ;;  %v202_v57 = vpop.f32.mrf.mxu1 }
  0xee   :  { %v215_v59 = vmax.f32 %v185_v54, 0.0  ;;  %v219_v60 = vmax.f32 %v201_v55, 0.0 }
  0xef   :  { %v187_v61 = vpop.f32.mrf.mxu0  ;;  %v203_v62 = vpop.f32.mrf.mxu1 }
  0xf0   :  { %223 = vst [vmem:[%s464_s3] sm:$0xff] %v215_v59  ;;  %227 = vst [vmem:[%s464_s3 + $0x20] sm:$0xff] %v219_v60  ;;  %v188_v63 = vadd.f32 %v187_v61, %v69_v49  ;;  %v204_v0 = vadd.f32 %v203_v62, %v89_v58 }
  0xf1   :  { %v189_v1 = vpop.f32.mrf.mxu0  ;;  %v205_v2 = vpop.f32.mrf.mxu1 }
  0xf2   :  { %v216_v4 = vmax.f32 %v188_v63, 0.0  ;;  %v220_v5 = vmax.f32 %v204_v0, 0.0 }
  0xf3   :  { %v192_v6 = vpop.f32.mrf.mxu0  ;;  %v208_v7 = vpop.f32.mrf.mxu1 }
  0xf4   :  { %224 = vst [vmem:[%s464_s3 + $0x8] sm:$0xff] %v216_v4  ;;  %228 = vst [vmem:[%s464_s3 + $0x28] sm:$0xff] %v220_v5  ;;  %v193_v8 = vadd.f32 %v192_v6, %v74_v48  ;;  %v209_v9 = vadd.f32 %v208_v7, %v94_v3 }
  0xf5   :  { %v194_v10 = vpop.f32.mrf.mxu0  ;;  %v210_v11 = vpop.f32.mrf.mxu1 }
  0xf6   :  { %v217_v13 = vmax.f32 %v193_v8, 0.0  ;;  %v221_v14 = vmax.f32 %v209_v9, 0.0 }
  0xf7   :  { %v195_v15 = vpop.f32.mrf.mxu0  ;;  %v211_v16 = vpop.f32.mrf.mxu1 }
  0xf8   :  { %225 = vst [vmem:[%s464_s3 + $0x10] sm:$0xff] %v217_v13  ;;  %229 = vst [vmem:[%s464_s3 + $0x30] sm:$0xff] %v221_v14  ;;  %v196_v17 = vadd.f32 %v195_v15, %v79_v50  ;;  %v212_v18 = vadd.f32 %v211_v16, %v99_v12 }
  0xf9   :  { %v197_v19 = vpop.f32.mrf.mxu0  ;;  %v213_v20 = vpop.f32.mrf.mxu1 }
  0xfa   :  { %v218_v21 = vmax.f32 %v196_v17, 0.0  ;;  %v222_v22 = vmax.f32 %v212_v18, 0.0 }
  0xfc   :  { %226 = vst [vmem:[%s464_s3 + $0x18] sm:$0xff] %v218_v21  ;;  %230 = vst [vmem:[%s464_s3 + $0x38] sm:$0xff] %v222_v22 }

// kernel: neg.10
= control target key start
LH: loop header
LB: loop body
LE: loop exit
PB: predicated region body
PF: predicated region fallthrough
CT: control target
= control target key end

     0   :  { %s2056_s0 = inlined_call_operand.vmem [shape: f32[2,512,64], index: 0, kind: input, shape index: {}]   ;;  %s2057_s1 = inlined_call_operand.vmem [shape: f32[2,512,64], index: 1, kind: output, shape index: {}]  }
   0x1   :  { %v2_v0 = vld [vmem:[%s2056_s0] sm:$0xff]  ;;  %v1026_v2 = vld [vmem:[%s2056_s0 + $0x8] sm:$0xff]  ;;  %v1030_v7 = vld [vmem:[%s2056_s0 + $0x10] sm:$0xff] }
   0x2   :  { %v1024_v1 = vld [vmem:[%s2056_s0 + $0x200] sm:$0xff]  ;;  %v5_v3 = vxor.u32 2147483648, %v2_v0  ;;  %v20_v5 = vxor.u32 2147483648, %v1026_v2  ;;  %v1028_v6 = vld [vmem:[%s2056_s0 + $0x208] sm:$0xff]  ;;  %v1032_v8 = vld [vmem:[%s2056_s0 + $0x210] sm:$0xff]  ;;  %v36_v10 = vxor.u32 2147483648, %v1030_v7 }
   0x3   :  { %v12_v4 = vxor.u32 2147483648, %v1024_v1  ;;  %v28_v9 = vxor.u32 2147483648, %v1028_v6  ;;  %v44_v11 = vxor.u32 2147483648, %v1032_v8  ;;  %v1034_v12 = vld [vmem:[%s2056_s0 + $0x18] sm:$0xff]  ;;  %v1038_v14 = vld [vmem:[%s2056_s0 + $0x20] sm:$0xff]  ;;  %v1042_v19 = vld [vmem:[%s2056_s0 + $0x28] sm:$0xff] }
   0x4   :  { %v1036_v13 = vld [vmem:[%s2056_s0 + $0x218] sm:$0xff]  ;;  %7 = vst [vmem:[%s2057_s1] sm:$0xff] %v5_v3  ;;  %1027 = vst [vmem:[%s2057_s1 + $0x8] sm:$0xff] %v20_v5  ;;  %v52_v15 = vxor.u32 2147483648, %v1034_v12  ;;  %v68_v17 = vxor.u32 2147483648, %v1038_v14  ;;  %v1040_v18 = vld [vmem:[%s2056_s0 + $0x220] sm:$0xff]  ;;  %v84_v22 = vxor.u32 2147483648, %v1042_v19 }
   0x5   :  { %1025 = vst [vmem:[%s2057_s1 + $0x200] sm:$0xff] %v12_v4  ;;  %v60_v16 = vxor.u32 2147483648, %v1036_v13  ;;  %v1044_v20 = vld [vmem:[%s2056_s0 + $0x228] sm:$0xff]  ;;  %1029 = vst [vmem:[%s2057_s1 + $0x208] sm:$0xff] %v28_v9  ;;  %v76_v21 = vxor.u32 2147483648, %v1040_v18  ;;  %v1046_v24 = vld [vmem:[%s2056_s0 + $0x30] sm:$0xff] }
   0x6   :  { %1031 = vst [vmem:[%s2057_s1 + $0x10] sm:$0xff] %v36_v10  ;;  %1033 = vst [vmem:[%s2057_s1 + $0x210] sm:$0xff] %v44_v11  ;;  %v92_v23 = vxor.u32 2147483648, %v1044_v20  ;;  %v1048_v25 = vld [vmem:[%s2056_s0 + $0x230] sm:$0xff]  ;;  %v1050_v26 = vld [vmem:[%s2056_s0 + $0x38] sm:$0xff]  ;;  %v100_v27 = vxor.u32 2147483648, %v1046_v24 }
   0x7   :  { %1035 = vst [vmem:[%s2057_s1 + $0x18] sm:$0xff] %v52_v15  ;;  %1037 = vst [vmem:[%s2057_s1 + $0x218] sm:$0xff] %v60_v16  ;;  %v108_v28 = vxor.u32 2147483648, %v1048_v25  ;;  %v116_v29 = vxor.u32 2147483648, %v1050_v26  ;;  %v1052_v30 = vld [vmem:[%s2056_s0 + $0x238] sm:$0xff]  ;;  %v1054_v31 = vld [vmem:[%s2056_s0 + $0x40] sm:$0xff] }
   0x8   :  { %1039 = vst [vmem:[%s2057_s1 + $0x20] sm:$0xff] %v68_v17  ;;  %v1056_v32 = vld [vmem:[%s2056_s0 + $0x240] sm:$0xff]  ;;  %1041 = vst [vmem:[%s2057_s1 + $0x220] sm:$0xff] %v76_v21  ;;  %v124_v33 = vxor.u32 2147483648, %v1052_v30  ;;  %v132_v34 = vxor.u32 2147483648, %v1054_v31  ;;  %v1058_v36 = vld [vmem:[%s2056_s0 + $0x48] sm:$0xff] }
   0x9   :  { %1043 = vst [vmem:[%s2057_s1 + $0x28] sm:$0xff] %v84_v22  ;;  %1045 = vst [vmem:[%s2057_s1 + $0x228] sm:$0xff] %v92_v23  ;;  %v140_v35 = vxor.u32 2147483648, %v1056_v32  ;;  %v1060_v37 = vld [vmem:[%s2056_s0 + $0x248] sm:$0xff]  ;;  %v1062_v38 = vld [vmem:[%s2056_s0 + $0x50] sm:$0xff]  ;;  %v148_v39 = vxor.u32 2147483648, %v1058_v36 }
   0xa   :  { %1047 = vst [vmem:[%s2057_s1 + $0x30] sm:$0xff] %v100_v27  ;;  %1049 = vst [vmem:[%s2057_s1 + $0x230] sm:$0xff] %v108_v28  ;;  %v156_v40 = vxor.u32 2147483648, %v1060_v37  ;;  %v164_v41 = vxor.u32 2147483648, %v1062_v38  ;;  %v1064_v42 = vld [vmem:[%s2056_s0 + $0x250] sm:$0xff]  ;;  %v1066_v43 = vld [vmem:[%s2056_s0 + $0x58] sm:$0xff] }
   0xb   :  { %1051 = vst [vmem:[%s2057_s1 + $0x38] sm:$0xff] %v116_v29  ;;  %v1068_v44 = vld [vmem:[%s2056_s0 + $0x258] sm:$0xff]  ;;  %1053 = vst [vmem:[%s2057_s1 + $0x238] sm:$0xff] %v124_v33  ;;  %v172_v45 = vxor.u32 2147483648, %v1064_v42  ;;  %v180_v46 = vxor.u32 2147483648, %v1066_v43  ;;  %v1070_v48 = vld [vmem:[%s2056_s0 + $0x60] sm:$0xff] }
   0xc   :  { %1055 = vst [vmem:[%s2057_s1 + $0x40] sm:$0xff] %v132_v34  ;;  %1057 = vst [vmem:[%s2057_s1 + $0x240] sm:$0xff] %v140_v35  ;;  %v188_v47 = vxor.u32 2147483648, %v1068_v44  ;;  %v1072_v49 = vld [vmem:[%s2056_s0 + $0x260] sm:$0xff]  ;;  %v1074_v50 = vld [vmem:[%s2056_s0 + $0x68] sm:$0xff]  ;;  %v196_v51 = vxor.u32 2147483648, %v1070_v48 }
   0xd   :  { %1059 = vst [vmem:[%s2057_s1 + $0x48] sm:$0xff] %v148_v39  ;;  %1061 = vst [vmem:[%s2057_s1 + $0x248] sm:$0xff] %v156_v40  ;;  %v204_v52 = vxor.u32 2147483648, %v1072_v49  ;;  %v212_v53 = vxor.u32 2147483648, %v1074_v50  ;;  %v1076_v54 = vld [vmem:[%s2056_s0 + $0x268] sm:$0xff]  ;;  %v1078_v55 = vld [vmem:[%s2056_s0 + $0x70] sm:$0xff] }
   0xe   :  { %1063 = vst [vmem:[%s2057_s1 + $0x50] sm:$0xff] %v164_v41  ;;  %v1080_v56 = vld [vmem:[%s2056_s0 + $0x270] sm:$0xff]  ;;  %1065 = vst [vmem:[%s2057_s1 + $0x250] sm:$0xff] %v172_v45  ;;  %v220_v57 = vxor.u32 2147483648, %v1076_v54  ;;  %v228_v58 = vxor.u32 2147483648, %v1078_v55  ;;  %v1082_v60 = vld [vmem:[%s2056_s0 + $0x78] sm:$0xff] }
   0xf   :  { %1067 = vst [vmem:[%s2057_s1 + $0x58] sm:$0xff] %v180_v46  ;;  %1069 = vst [vmem:[%s2057_s1 + $0x258] sm:$0xff] %v188_v47  ;;  %v236_v59 = vxor.u32 2147483648, %v1080_v56  ;;  %v1084_v61 = vld [vmem:[%s2056_s0 + $0x278] sm:$0xff]  ;;  %v1086_v62 = vld [vmem:[%s2056_s0 + $0x80] sm:$0xff]  ;;  %v244_v63 = vxor.u32 2147483648, %v1082_v60 }
  0x10   :  { %1071 = vst [vmem:[%s2057_s1 + $0x60] sm:$0xff] %v196_v51  ;;  %1073 = vst [vmem:[%s2057_s1 + $0x260] sm:$0xff] %v204_v52  ;;  %v252_v0 = vxor.u32 2147483648, %v1084_v61  ;;  %v260_v1 = vxor.u32 2147483648, %v1086_v62  ;;  %v1088_v2 = vld [vmem:[%s2056_s0 + $0x280] sm:$0xff]  ;;  %v1090_v3 = vld [vmem:[%s2056_s0 + $0x88] sm:$0xff] }
  0x11   :  { %1075 = vst [vmem:[%s2057_s1 + $0x68] sm:$0xff] %v212_v53  ;;  %v1092_v4 = vld [vmem:[%s2056_s0 + $0x288] sm:$0xff]  ;;  %1077 = vst [vmem:[%s2057_s1 + $0x268] sm:$0xff] %v220_v57  ;;  %v268_v5 = vxor.u32 2147483648, %v1088_v2  ;;  %v276_v6 = vxor.u32 2147483648, %v1090_v3  ;;  %v1094_v8 = vld [vmem:[%s2056_s0 + $0x90] sm:$0xff] }
  0x12   :  { %1079 = vst [vmem:[%s2057_s1 + $0x70] sm:$0xff] %v228_v58  ;;  %1081 = vst [vmem:[%s2057_s1 + $0x270] sm:$0xff] %v236_v59  ;;  %v284_v7 = vxor.u32 2147483648, %v1092_v4  ;;  %v1096_v9 = vld [vmem:[%s2056_s0 + $0x290] sm:$0xff]  ;;  %v1098_v10 = vld [vmem:[%s2056_s0 + $0x98] sm:$0xff]  ;;  %v292_v11 = vxor.u32 2147483648, %v1094_v8 }
  0x13   :  { %1083 = vst [vmem:[%s2057_s1 + $0x78] sm:$0xff] %v244_v63  ;;  %1085 = vst [vmem:[%s2057_s1 + $0x278] sm:$0xff] %v252_v0  ;;  %v300_v12 = vxor.u32 2147483648, %v1096_v9  ;;  %v308_v13 = vxor.u32 2147483648, %v1098_v10  ;;  %v1100_v14 = vld [vmem:[%s2056_s0 + $0x298] sm:$0xff]  ;;  %v1102_v15 = vld [vmem:[%s2056_s0 + $0xa0] sm:$0xff] }
  0x14   :  { %1087 = vst [vmem:[%s2057_s1 + $0x80] sm:$0xff] %v260_v1  ;;  %v1104_v16 = vld [vmem:[%s2056_s0 + $0x2a0] sm:$0xff]  ;;  %1089 = vst [vmem:[%s2057_s1 + $0x280] sm:$0xff] %v268_v5  ;;  %v316_v17 = vxor.u32 2147483648, %v1100_v14  ;;  %v324_v18 = vxor.u32 2147483648, %v1102_v15  ;;  %v1106_v20 = vld [vmem:[%s2056_s0 + $0xa8] sm:$0xff] }
  0x15   :  { %1091 = vst [vmem:[%s2057_s1 + $0x88] sm:$0xff] %v276_v6  ;;  %1093 = vst [vmem:[%s2057_s1 + $0x288] sm:$0xff] %v284_v7  ;;  %v332_v19 = vxor.u32 2147483648, %v1104_v16  ;;  %v1108_v21 = vld [vmem:[%s2056_s0 + $0x2a8] sm:$0xff]  ;;  %v1110_v22 = vld [vmem:[%s2056_s0 + $0xb0] sm:$0xff]  ;;  %v340_v23 = vxor.u32 2147483648, %v1106_v20 }
  0x16   :  { %1095 = vst [vmem:[%s2057_s1 + $0x90] sm:$0xff] %v292_v11  ;;  %1097 = vst [vmem:[%s2057_s1 + $0x290] sm:$0xff] %v300_v12  ;;  %v348_v24 = vxor.u32 2147483648, %v1108_v21  ;;  %v356_v25 = vxor.u32 2147483648, %v1110_v22  ;;  %v1112_v26 = vld [vmem:[%s2056_s0 + $0x2b0] sm:$0xff]  ;;  %v1114_v27 = vld [vmem:[%s2056_s0 + $0xb8] sm:$0xff] }
  0x17   :  { %1099 = vst [vmem:[%s2057_s1 + $0x98] sm:$0xff] %v308_v13  ;;  %v1116_v28 = vld [vmem:[%s2056_s0 + $0x2b8] sm:$0xff]  ;;  %1101 = vst [vmem:[%s2057_s1 + $0x298] sm:$0xff] %v316_v17  ;;  %v364_v29 = vxor.u32 2147483648, %v1112_v26  ;;  %v372_v30 = vxor.u32 2147483648, %v1114_v27  ;;  %v1118_v32 = vld [vmem:[%s2056_s0 + $0xc0] sm:$0xff] }
  0x18   :  { %1103 = vst [vmem:[%s2057_s1 + $0xa0] sm:$0xff] %v324_v18  ;;  %1105 = vst [vmem:[%s2057_s1 + $0x2a0] sm:$0xff] %v332_v19  ;;  %v380_v31 = vxor.u32 2147483648, %v1116_v28  ;;  %v1120_v33 = vld [vmem:[%s2056_s0 + $0x2c0] sm:$0xff]  ;;  %v1122_v34 = vld [vmem:[%s2056_s0 + $0xc8] sm:$0xff]  ;;  %v388_v35 = vxor.u32 2147483648, %v1118_v32 }
  0x19   :  { %1107 = vst [vmem:[%s2057_s1 + $0xa8] sm:$0xff] %v340_v23  ;;  %1109 = vst [vmem:[%s2057_s1 + $0x2a8] sm:$0xff] %v348_v24  ;;  %v396_v36 = vxor.u32 2147483648, %v1120_v33  ;;  %v404_v37 = vxor.u32 2147483648, %v1122_v34  ;;  %v1124_v38 = vld [vmem:[%s2056_s0 + $0x2c8] sm:$0xff]  ;;  %v1126_v39 = vld [vmem:[%s2056_s0 + $0xd0] sm:$0xff] }
  0x1a   :  { %1111 = vst [vmem:[%s2057_s1 + $0xb0] sm:$0xff] %v356_v25  ;;  %v1128_v40 = vld [vmem:[%s2056_s0 + $0x2d0] sm:$0xff]  ;;  %1113 = vst [vmem:[%s2057_s1 + $0x2b0] sm:$0xff] %v364_v29  ;;  %v412_v41 = vxor.u32 2147483648, %v1124_v38  ;;  %v420_v42 = vxor.u32 2147483648, %v1126_v39  ;;  %v1130_v44 = vld [vmem:[%s2056_s0 + $0xd8] sm:$0xff] }
  0x1b   :  { %1115 = vst [vmem:[%s2057_s1 + $0xb8] sm:$0xff] %v372_v30  ;;  %1117 = vst [vmem:[%s2057_s1 + $0x2b8] sm:$0xff] %v380_v31  ;;  %v428_v43 = vxor.u32 2147483648, %v1128_v40  ;;  %v1132_v45 = vld [vmem:[%s2056_s0 + $0x2d8] sm:$0xff]  ;;  %v1134_v46 = vld [vmem:[%s2056_s0 + $0xe0] sm:$0xff]  ;;  %v436_v47 = vxor.u32 2147483648, %v1130_v44 }
  0x1c   :  { %1119 = vst [vmem:[%s2057_s1 + $0xc0] sm:$0xff] %v388_v35  ;;  %1121 = vst [vmem:[%s2057_s1 + $0x2c0] sm:$0xff] %v396_v36  ;;  %v444_v48 = vxor.u32 2147483648, %v1132_v45  ;;  %v452_v49 = vxor.u32 2147483648, %v1134_v46  ;;  %v1136_v50 = vld [vmem:[%s2056_s0 + $0x2e0] sm:$0xff]  ;;  %v1138_v51 = vld [vmem:[%s2056_s0 + $0xe8] sm:$0xff] }
  0x1d   :  { %1123 = vst [vmem:[%s2057_s1 + $0xc8] sm:$0xff] %v404_v37  ;;  %v1140_v52 = vld [vmem:[%s2056_s0 + $0x2e8] sm:$0xff]  ;;  %1125 = vst [vmem:[%s2057_s1 + $0x2c8] sm:$0xff] %v412_v41  ;;  %v460_v53 = vxor.u32 2147483648, %v1136_v50  ;;  %v468_v54 = vxor.u32 2147483648, %v1138_v51  ;;  %v1142_v56 = vld [vmem:[%s2056_s0 + $0xf0] sm:$0xff] }
  0x1e   :  { %1127 = vst [vmem:[%s2057_s1 + $0xd0] sm:$0xff] %v420_v42  ;;  %1129 = vst [vmem:[%s2057_s1 + $0x2d0] sm:$0xff] %v428_v43  ;;  %v476_v55 = vxor.u32 2147483648, %v1140_v52  ;;  %v1144_v57 = vld [vmem:[%s2056_s0 + $0x2f0] sm:$0xff]  ;;  %v1146_v58 = vld [vmem:[%s2056_s0 + $0xf8] sm:$0xff]  ;;  %v484_v59 = vxor.u32 2147483648, %v1142_v56 }
  0x1f   :  { %1131 = vst [vmem:[%s2057_s1 + $0xd8] sm:$0xff] %v436_v47  ;;  %1133 = vst [vmem:[%s2057_s1 + $0x2d8] sm:$0xff] %v444_v48  ;;  %v492_v60 = vxor.u32 2147483648, %v1144_v57  ;;  %v500_v61 = vxor.u32 2147483648, %v1146_v58  ;;  %v1148_v62 = vld [vmem:[%s2056_s0 + $0x2f8] sm:$0xff]  ;;  %v1150_v63 = vld [vmem:[%s2056_s0 + $0x100] sm:$0xff] }
  0x20   :  { %1135 = vst [vmem:[%s2057_s1 + $0xe0] sm:$0xff] %v452_v49  ;;  %v1152_v0 = vld [vmem:[%s2056_s0 + $0x300] sm:$0xff]  ;;  %1137 = vst [vmem:[%s2057_s1 + $0x2e0] sm:$0xff] %v460_v53  ;;  %v508_v1 = vxor.u32 2147483648, %v1148_v62  ;;  %v516_v2 = vxor.u32 2147483648, %v1150_v63  ;;  %v1154_v4 = vld [vmem:[%s2056_s0 + $0x108] sm:$0xff] }
  0x21   :  { %1139 = vst [vmem:[%s2057_s1 + $0xe8] sm:$0xff] %v468_v54  ;;  %1141 = vst [vmem:[%s2057_s1 + $0x2e8] sm:$0xff] %v476_v55  ;;  %v524_v3 = vxor.u32 2147483648, %v1152_v0  ;;  %v1156_v5 = vld [vmem:[%s2056_s0 + $0x308] sm:$0xff]  ;;  %v1158_v6 = vld [vmem:[%s2056_s0 + $0x110] sm:$0xff]  ;;  %v532_v7 = vxor.u32 2147483648, %v1154_v4 }
  0x22   :  { %1143 = vst [vmem:[%s2057_s1 + $0xf0] sm:$0xff] %v484_v59  ;;  %1145 = vst [vmem:[%s2057_s1 + $0x2f0] sm:$0xff] %v492_v60  ;;  %v540_v8 = vxor.u32 2147483648, %v1156_v5  ;;  %v548_v9 = vxor.u32 2147483648, %v1158_v6  ;;  %v1160_v10 = vld [vmem:[%s2056_s0 + $0x310] sm:$0xff]  ;;  %v1162_v11 = vld [vmem:[%s2056_s0 + $0x118] sm:$0xff] }
  0x23   :  { %1147 = vst [vmem:[%s2057_s1 + $0xf8] sm:$0xff] %v500_v61  ;;  %v1164_v12 = vld [vmem:[%s2056_s0 + $0x318] sm:$0xff]  ;;  %1149 = vst [vmem:[%s2057_s1 + $0x2f8] sm:$0xff] %v508_v1  ;;  %v556_v13 = vxor.u32 2147483648, %v1160_v10  ;;  %v564_v14 = vxor.u32 2147483648, %v1162_v11  ;;  %v1166_v16 = vld [vmem:[%s2056_s0 + $0x120] sm:$0xff] }
  0x24   :  { %1151 = vst [vmem:[%s2057_s1 + $0x100] sm:$0xff] %v516_v2  ;;  %1153 = vst [vmem:[%s2057_s1 + $0x300] sm:$0xff] %v524_v3  ;;  %v572_v15 = vxor.u32 2147483648, %v1164_v12  ;;  %v1168_v17 = vld [vmem:[%s2056_s0 + $0x320] sm:$0xff]  ;;  %v1170_v18 = vld [vmem:[%s2056_s0 + $0x128] sm:$0xff]  ;;  %v580_v19 = vxor.u32 2147483648, %v1166_v16 }
  0x25   :  { %1155 = vst [vmem:[%s2057_s1 + $0x108] sm:$0xff] %v532_v7  ;;  %1157 = vst [vmem:[%s2057_s1 + $0x308] sm:$0xff] %v540_v8  ;;  %v588_v20 = vxor.u32 2147483648, %v1168_v17  ;;  %v596_v21 = vxor.u32 2147483648, %v1170_v18  ;;  %v1172_v22 = vld [vmem:[%s2056_s0 + $0x328] sm:$0xff]  ;;  %v1174_v23 = vld [vmem:[%s2056_s0 + $0x130] sm:$0xff] }
  0x26   :  { %1159 = vst [vmem:[%s2057_s1 + $0x110] sm:$0xff] %v548_v9  ;;  %v1176_v24 = vld [vmem:[%s2056_s0 + $0x330] sm:$0xff]  ;;  %1161 = vst [vmem:[%s2057_s1 + $0x310] sm:$0xff] %v556_v13  ;;  %v604_v25 = vxor.u32 2147483648, %v1172_v22  ;;  %v612_v26 = vxor.u32 2147483648, %v1174_v23  ;;  %v1178_v28 = vld [vmem:[%s2056_s0 + $0x138] sm:$0xff] }
  0x27   :  { %1163 = vst [vmem:[%s2057_s1 + $0x118] sm:$0xff] %v564_v14  ;;  %1165 = vst [vmem:[%s2057_s1 + $0x318] sm:$0xff] %v572_v15  ;;  %v620_v27 = vxor.u32 2147483648, %v1176_v24  ;;  %v1180_v29 = vld [vmem:[%s2056_s0 + $0x338] sm:$0xff]  ;;  %v1182_v30 = vld [vmem:[%s2056_s0 + $0x140] sm:$0xff]  ;;  %v628_v31 = vxor.u32 2147483648, %v1178_v28 }
  0x28   :  { %1167 = vst [vmem:[%s2057_s1 + $0x120] sm:$0xff] %v580_v19  ;;  %1169 = vst [vmem:[%s2057_s1 + $0x320] sm:$0xff] %v588_v20  ;;  %v636_v32 = vxor.u32 2147483648, %v1180_v29  ;;  %v644_v33 = vxor.u32 2147483648, %v1182_v30  ;;  %v1184_v34 = vld [vmem:[%s2056_s0 + $0x340] sm:$0xff]  ;;  %v1186_v35 = vld [vmem:[%s2056_s0 + $0x148] sm:$0xff] }
  0x29   :  { %1171 = vst [vmem:[%s2057_s1 + $0x128] sm:$0xff] %v596_v21  ;;  %v1188_v36 = vld [vmem:[%s2056_s0 + $0x348] sm:$0xff]  ;;  %1173 = vst [vmem:[%s2057_s1 + $0x328] sm:$0xff] %v604_v25  ;;  %v652_v37 = vxor.u32 2147483648, %v1184_v34  ;;  %v660_v38 = vxor.u32 2147483648, %v1186_v35  ;;  %v1190_v40 = vld [vmem:[%s2056_s0 + $0x150] sm:$0xff] }
  0x2a   :  { %1175 = vst [vmem:[%s2057_s1 + $0x130] sm:$0xff] %v612_v26  ;;  %1177 = vst [vmem:[%s2057_s1 + $0x330] sm:$0xff] %v620_v27  ;;  %v668_v39 = vxor.u32 2147483648, %v1188_v36  ;;  %v1192_v41 = vld [vmem:[%s2056_s0 + $0x350] sm:$0xff]  ;;  %v1194_v42 = vld [vmem:[%s2056_s0 + $0x158] sm:$0xff]  ;;  %v676_v43 = vxor.u32 2147483648, %v1190_v40 }
  0x2b   :  { %1179 = vst [vmem:[%s2057_s1 + $0x138] sm:$0xff] %v628_v31  ;;  %1181 = vst [vmem:[%s2057_s1 + $0x338] sm:$0xff] %v636_v32  ;;  %v684_v44 = vxor.u32 2147483648, %v1192_v41  ;;  %v692_v45 = vxor.u32 2147483648, %v1194_v42  ;;  %v1196_v46 = vld [vmem:[%s2056_s0 + $0x358] sm:$0xff]  ;;  %v1198_v47 = vld [vmem:[%s2056_s0 + $0x160] sm:$0xff] }
  0x2c   :  { %1183 = vst [vmem:[%s2057_s1 + $0x140] sm:$0xff] %v644_v33  ;;  %v1200_v48 = vld [vmem:[%s2056_s0 + $0x360] sm:$0xff]  ;;  %1185 = vst [vmem:[%s2057_s1 + $0x340] sm:$0xff] %v652_v37  ;;  %v700_v49 = vxor.u32 2147483648, %v1196_v46  ;;  %v708_v50 = vxor.u32 2147483648, %v1198_v47  ;;  %v1202_v52 = vld [vmem:[%s2056_s0 + $0x168] sm:$0xff] }
  0x2d   :  { %1187 = vst [vmem:[%s2057_s1 + $0x148] sm:$0xff] %v660_v38  ;;  %1189 = vst [vmem:[%s2057_s1 + $0x348] sm:$0xff] %v668_v39  ;;  %v716_v51 = vxor.u32 2147483648, %v1200_v48  ;;  %v1204_v53 = vld [vmem:[%s2056_s0 + $0x368] sm:$0xff]  ;;  %v1206_v54 = vld [vmem:[%s2056_s0 + $0x170] sm:$0xff]  ;;  %v724_v55 = vxor.u32 2147483648, %v1202_v52 }
  0x2e   :  { %1191 = vst [vmem:[%s2057_s1 + $0x150] sm:$0xff] %v676_v43  ;;  %1193 = vst [vmem:[%s2057_s1 + $0x350] sm:$0xff] %v684_v44  ;;  %v732_v56 = vxor.u32 2147483648, %v1204_v53  ;;  %v740_v57 = vxor.u32 2147483648, %v1206_v54  ;;  %v1208_v58 = vld [vmem:[%s2056_s0 + $0x370] sm:$0xff]  ;;  %v1210_v59 = vld [vmem:[%s2056_s0 + $0x178] sm:$0xff] }
  0x2f   :  { %1195 = vst [vmem:[%s2057_s1 + $0x158] sm:$0xff] %v692_v45  ;;  %v1212_v60 = vld [vmem:[%s2056_s0 + $0x378] sm:$0xff]  ;;  %1197 = vst [vmem:[%s2057_s1 + $0x358] sm:$0xff] %v700_v49  ;;  %v748_v61 = vxor.u32 2147483648, %v1208_v58  ;;  %v756_v62 = vxor.u32 2147483648, %v1210_v59  ;;  %v1214_v0 = vld [vmem:[%s2056_s0 + $0x180] sm:$0xff] }
  0x30   :  { %1199 = vst [vmem:[%s2057_s1 + $0x160] sm:$0xff] %v708_v50  ;;  %1201 = vst [vmem:[%s2057_s1 + $0x360] sm:$0xff] %v716_v51  ;;  %v764_v63 = vxor.u32 2147483648, %v1212_v60  ;;  %v1216_v1 = vld [vmem:[%s2056_s0 + $0x380] sm:$0xff]  ;;  %v1218_v2 = vld [vmem:[%s2056_s0 + $0x188] sm:$0xff]  ;;  %v772_v3 = vxor.u32 2147483648, %v1214_v0 }
  0x31   :  { %1203 = vst [vmem:[%s2057_s1 + $0x168] sm:$0xff] %v724_v55  ;;  %1205 = vst [vmem:[%s2057_s1 + $0x368] sm:$0xff] %v732_v56  ;;  %v780_v4 = vxor.u32 2147483648, %v1216_v1  ;;  %v788_v5 = vxor.u32 2147483648, %v1218_v2  ;;  %v1220_v6 = vld [vmem:[%s2056_s0 + $0x388] sm:$0xff]  ;;  %v1222_v7 = vld [vmem:[%s2056_s0 + $0x190] sm:$0xff] }
  0x32   :  { %1207 = vst [vmem:[%s2057_s1 + $0x170] sm:$0xff] %v740_v57  ;;  %v1224_v8 = vld [vmem:[%s2056_s0 + $0x390] sm:$0xff]  ;;  %1209 = vst [vmem:[%s2057_s1 + $0x370] sm:$0xff] %v748_v61  ;;  %v796_v9 = vxor.u32 2147483648, %v1220_v6  ;;  %v804_v10 = vxor.u32 2147483648, %v1222_v7  ;;  %v1226_v12 = vld [vmem:[%s2056_s0 + $0x198] sm:$0xff] }
  0x33   :  { %1211 = vst [vmem:[%s2057_s1 + $0x178] sm:$0xff] %v756_v62  ;;  %1213 = vst [vmem:[%s2057_s1 + $0x378] sm:$0xff] %v764_v63  ;;  %v812_v11 = vxor.u32 2147483648, %v1224_v8  ;;  %v1228_v13 = vld [vmem:[%s2056_s0 + $0x398] sm:$0xff]  ;;  %v1230_v14 = vld [vmem:[%s2056_s0 + $0x1a0] sm:$0xff]  ;;  %v820_v15 = vxor.u32 2147483648, %v1226_v12 }
  0x34   :  { %1215 = vst [vmem:[%s2057_s1 + $0x180] sm:$0xff] %v772_v3  ;;  %1217 = vst [vmem:[%s2057_s1 + $0x380] sm:$0xff] %v780_v4  ;;  %v828_v16 = vxor.u32 2147483648, %v1228_v13  ;;  %v836_v17 = vxor.u32 2147483648, %v1230_v14  ;;  %v1232_v18 = vld [vmem:[%s2056_s0 + $0x3a0] sm:$0xff]  ;;  %v1234_v19 = vld [vmem:[%s2056_s0 + $0x1a8] sm:$0xff] }
  0x35   :  { %1219 = vst [vmem:[%s2057_s1 + $0x188] sm:$0xff] %v788_v5  ;;  %v1236_v20 = vld [vmem:[%s2056_s0 + $0x3a8] sm:$0xff]  ;;  %1221 = vst [vmem:[%s2057_s1 + $0x388] sm:$0xff] %v796_v9  ;;  %v844_v21 = vxor.u32 2147483648, %v1232_v18  ;;  %v852_v22 = vxor.u32 2147483648, %v1234_v19  ;;  %v1238_v24 = vld [vmem:[%s2056_s0 + $0x1b0] sm:$0xff] }
  0x36   :  { %1223 = vst [vmem:[%s2057_s1 + $0x190] sm:$0xff] %v804_v10  ;;  %1225 = vst [vmem:[%s2057_s1 + $0x390] sm:$0xff] %v812_v11  ;;  %v860_v23 = vxor.u32 2147483648, %v1236_v20  ;;  %v1240_v25 = vld [vmem:[%s2056_s0 + $0x3b0] sm:$0xff]  ;;  %v1242_v26 = vld [vmem:[%s2056_s0 + $0x1b8] sm:$0xff]  ;;  %v868_v27 = vxor.u32 2147483648, %v1238_v24 }
  0x37   :  { %1227 = vst [vmem:[%s2057_s1 + $0x198] sm:$0xff] %v820_v15  ;;  %1229 = vst [vmem:[%s2057_s1 + $0x398] sm:$0xff] %v828_v16  ;;  %v876_v28 = vxor.u32 2147483648, %v1240_v25  ;;  %v884_v29 = vxor.u32 2147483648, %v1242_v26  ;;  %v1244_v30 = vld [vmem:[%s2056_s0 + $0x3b8] sm:$0xff]  ;;  %v1246_v31 = vld [vmem:[%s2056_s0 + $0x1c0] sm:$0xff] }
  0x38   :  { %1231 = vst [vmem:[%s2057_s1 + $0x1a0] sm:$0xff] %v836_v17  ;;  %v1248_v32 = vld [vmem:[%s2056_s0 + $0x3c0] sm:$0xff]  ;;  %1233 = vst [vmem:[%s2057_s1 + $0x3a0] sm:$0xff] %v844_v21  ;;  %v892_v33 = vxor.u32 2147483648, %v1244_v30  ;;  %v900_v34 = vxor.u32 2147483648, %v1246_v31  ;;  %v1250_v36 = vld [vmem:[%s2056_s0 + $0x1c8] sm:$0xff] }
  0x39   :  { %1235 = vst [vmem:[%s2057_s1 + $0x1a8] sm:$0xff] %v852_v22  ;;  %1237 = vst [vmem:[%s2057_s1 + $0x3a8] sm:$0xff] %v860_v23  ;;  %v908_v35 = vxor.u32 2147483648, %v1248_v32  ;;  %v1252_v37 = vld [vmem:[%s2056_s0 + $0x3c8] sm:$0xff]  ;;  %v1254_v38 = vld [vmem:[%s2056_s0 + $0x1d0] sm:$0xff]  ;;  %v916_v39 = vxor.u32 2147483648, %v1250_v36 }
  0x3a   :  { %1239 = vst [vmem:[%s2057_s1 + $0x1b0] sm:$0xff] %v868_v27  ;;  %1241 = vst [vmem:[%s2057_s1 + $0x3b0] sm:$0xff] %v876_v28  ;;  %v924_v40 = vxor.u32 2147483648, %v1252_v37  ;;  %v932_v41 = vxor.u32 2147483648, %v1254_v38  ;;  %v1256_v42 = vld [vmem:[%s2056_s0 + $0x3d0] sm:$0xff]  ;;  %v1258_v43 = vld [vmem:[%s2056_s0 + $0x1d8] sm:$0xff] }
  0x3b   :  { %1243 = vst [vmem:[%s2057_s1 + $0x1b8] sm:$0xff] %v884_v29  ;;  %v1260_v44 = vld [vmem:[%s2056_s0 + $0x3d8] sm:$0xff]  ;;  %1245 = vst [vmem:[%s2057_s1 + $0x3b8] sm:$0xff] %v892_v33  ;;  %v940_v45 = vxor.u32 2147483648, %v1256_v42  ;;  %v948_v46 = vxor.u32 2147483648, %v1258_v43  ;;  %v1262_v48 = vld [vmem:[%s2056_s0 + $0x1e0] sm:$0xff] }
  0x3c   :  { %1247 = vst [vmem:[%s2057_s1 + $0x1c0] sm:$0xff] %v900_v34  ;;  %1249 = vst [vmem:[%s2057_s1 + $0x3c0] sm:$0xff] %v908_v35  ;;  %v956_v47 = vxor.u32 2147483648, %v1260_v44  ;;  %v1264_v49 = vld [vmem:[%s2056_s0 + $0x3e0] sm:$0xff]  ;;  %v1266_v50 = vld [vmem:[%s2056_s0 + $0x1e8] sm:$0xff]  ;;  %v964_v51 = vxor.u32 2147483648, %v1262_v48 }
  0x3d   :  { %1251 = vst [vmem:[%s2057_s1 + $0x1c8] sm:$0xff] %v916_v39  ;;  %1253 = vst [vmem:[%s2057_s1 + $0x3c8] sm:$0xff] %v924_v40  ;;  %v972_v52 = vxor.u32 2147483648, %v1264_v49  ;;  %v980_v53 = vxor.u32 2147483648, %v1266_v50  ;;  %v1268_v54 = vld [vmem:[%s2056_s0 + $0x3e8] sm:$0xff]  ;;  %v1270_v55 = vld [vmem:[%s2056_s0 + $0x1f0] sm:$0xff] }
  0x3e   :  { %1255 = vst [vmem:[%s2057_s1 + $0x1d0] sm:$0xff] %v932_v41  ;;  %v1272_v56 = vld [vmem:[%s2056_s0 + $0x3f0] sm:$0xff]  ;;  %1257 = vst [vmem:[%s2057_s1 + $0x3d0] sm:$0xff] %v940_v45  ;;  %v988_v57 = vxor.u32 2147483648, %v1268_v54  ;;  %v996_v58 = vxor.u32 2147483648, %v1270_v55  ;;  %v1274_v60 = vld [vmem:[%s2056_s0 + $0x1f8] sm:$0xff] }
  0x3f   :  { %1259 = vst [vmem:[%s2057_s1 + $0x1d8] sm:$0xff] %v948_v46  ;;  %1261 = vst [vmem:[%s2057_s1 + $0x3d8] sm:$0xff] %v956_v47  ;;  %v1004_v59 = vxor.u32 2147483648, %v1272_v56  ;;  %v1276_v61 = vld [vmem:[%s2056_s0 + $0x3f8] sm:$0xff]  ;;  %v1012_v62 = vxor.u32 2147483648, %v1274_v60 }
  0x40   :  { %1263 = vst [vmem:[%s2057_s1 + $0x1e0] sm:$0xff] %v964_v51  ;;  %1265 = vst [vmem:[%s2057_s1 + $0x3e0] sm:$0xff] %v972_v52  ;;  %v1020_v63 = vxor.u32 2147483648, %v1276_v61 }
  0x41   :  { %1267 = vst [vmem:[%s2057_s1 + $0x1e8] sm:$0xff] %v980_v53  ;;  %1269 = vst [vmem:[%s2057_s1 + $0x3e8] sm:$0xff] %v988_v57 }
  0x42   :  { %1271 = vst [vmem:[%s2057_s1 + $0x1f0] sm:$0xff] %v996_v58  ;;  %1273 = vst [vmem:[%s2057_s1 + $0x3f0] sm:$0xff] %v1004_v59 }
  0x43   :  { %1275 = vst [vmem:[%s2057_s1 + $0x1f8] sm:$0xff] %v1012_v62  ;;  %1277 = vst [vmem:[%s2057_s1 + $0x3f8] sm:$0xff] %v1020_v63 }

// kernel: _lambda_.31
= control target key start
LH: loop header
LB: loop body
LE: loop exit
PB: predicated region body
PF: predicated region fallthrough
CT: control target
= control target key end

     0   :  { %s1284_s9 = smov 0   ;;  %s1503_s0 = inlined_call_operand.vmem [shape: f32[2,5,512], index: 0, kind: input, shape index: {}]   ;;  %s1504_s1 = inlined_call_operand.vmem [shape: f32[2,5,64], index: 1, kind: input, shape index: {}]   ;;  %s1505_s2 = inlined_call_operand.vmem [shape: f32[2,512,64], index: 2, kind: output, shape index: {}]  }
   0x1 LB: > { %s1008_s10 = sadd.s32 4294967295, %s1267_s9   ;;  %p1012_p0 = scmp.ge.s32.totalorder %s1267_s9, 1  ;;  %s1267_s9 = sphi %s1284_s9, %s12_s9  }
   0x2   : > { %p121_p1 = scmp.lt.s32.totalorder %s1267_s9, 3 }
   0x4   : > { %p122_p2 = pnand %p1012_p0, %p121_p1 }
   0x5   : > { %p147_p3 = scmp.lt.s32.totalorder (!%p122_p2), %s1008_s10, 1 }
   0x6   : > { %125 = sbr.rel (%p122_p2) target bundleno = 492 (0x1ec), region = 28 }
   0xb   : > { %s1507_s10 = smov (!%p147_p3, %s1008_s10), 1  ;;  %vm487_vm0 = vcmask 1044480   ;;  %vm294_vm1 = vcmask 39936   ;;  %vm876_vm2 = vcmask 523264  }
   0xc   : > { %s1085_s11 = sshll.u32 %s1507_s10, 5  ;;  %s1015_s15 = sshll.u32 %s1507_s10, 3 }
   0xd   : > { %s151_s14 = scalar_lea.vmem %s1503_s0, %s1085_s11  ;;  %s155_s18 = scalar_lea.vmem %s1504_s1, %s1015_s15 }
   0xe   : > { %v161_v0 = vld [vmem:[%s151_s14] sm:$0x1f]  ;;  %v162_v1 = vld [vmem:[%s151_s14 + $0x8] sm:$0x1f]  ;;  %v163_v3 = vld [vmem:[%s151_s14 + $0x10] sm:$0x1f] }
   0xf   : > { %166 = vxpose.xlu0.b32.start.end [1/1] (short) %v161_v0, 128  ;;  %198 = vxpose.xlu1.b32.start.end [1/1] (short) %v162_v1, 128  ;;  %v165_v2 = vld [vmem:[%s155_s18] sm:$0x1f]  ;;  %v164_v4 = vld [vmem:[%s151_s14 + $0x18] sm:$0x1f]  ;;  %s1086_s19 = sshll.u32 %s1507_s10, 9 }
  0x10   : > { %1152 = vmatprep.subr.msk.mxu0 %vm487_vm0, %v165_v2  ;;  %1250 = vmatprep.subr.msk.mxu1 %vm487_vm0, %v165_v2  ;;  %s1370_s22 = scalar_lea.vmem %s1505_s2, %s1086_s19 }
  0x11   : > { %1153 = vmatpush3.msk.msra.mxu0 %vm487_vm0, %v165_v2  ;;  %1251 = vmatpush3.msk.msra.mxu1 %vm487_vm0, %v165_v2 }
  0x4c   : > { %230 = vxpose.xlu0.b32.start.end [1/1] (short) %v163_v3, 128  ;;  %262 = vxpose.xlu1.b32.start.end [1/1] (short) %v164_v4, 128 }
  0x8b   : > { %v182_v5 = vpop.trf.xlu0  ;;  %v214_v6 = vpop.trf.xlu1 }
  0x8c   : > { %1154 = vmatprep.mubr.msk.f32.mxu0 %vm294_vm1, %v182_v5 }
  0x8f   : > { %v183_v7 = vpop.trf.xlu0  ;;  %v215_v8 = vpop.trf.xlu1 }
  0x90   : > { %1155 = vmatmul.mubr.msk.f32.vlgmr.msra.gmra.mxu0 %vm294_vm1, %v183_v7 }
  0x93   : > { %v184_v9 = vpop.trf.xlu0  ;;  %v216_v10 = vpop.trf.xlu1 }
  0x94   : > { %1157 = vmatprep.mubr.msk.f32.mxu0 %vm294_vm1, %v184_v9 }
  0x97   : > { %v185_v11 = vpop.trf.xlu0  ;;  %v217_v12 = vpop.trf.xlu1 }
  0x98   : > { %1158 = vmatmul.mubr.msk.f32.gmra.mxu0 %vm294_vm1, %v185_v11 }
  0x9b   : > { %v186_v13 = vpop.trf.xlu0  ;;  %v218_v14 = vpop.trf.xlu1 }
  0x9c   : > { %1160 = vmatprep.mubr.msk.f32.mxu0 %vm294_vm1, %v186_v13 }
  0x9f   : > { %v187_v15 = vpop.trf.xlu0  ;;  %v219_v16 = vpop.trf.xlu1 }
  0xa0   : > { %1161 = vmatmul.mubr.msk.f32.gmra.mxu0 %vm294_vm1, %v187_v15 }
  0xa3   : > { %v188_v17 = vpop.trf.xlu0  ;;  %v220_v18 = vpop.trf.xlu1 }
  0xa4   : > { %1163 = vmatprep.mubr.msk.f32.mxu0 %vm294_vm1, %v188_v17 }
  0xa7   : > { %v189_v19 = vpop.trf.xlu0  ;;  %v221_v20 = vpop.trf.xlu1 }
  0xa8   : > { %1164 = vmatmul.mubr.msk.f32.gmra.mxu0 %vm294_vm1, %v189_v19 }
  0xab   : > { %v190_v21 = vpop.trf.xlu0  ;;  %v222_v22 = vpop.trf.xlu1 }
  0xac   : > { %1166 = vmatprep.mubr.msk.f32.mxu0 %vm294_vm1, %v190_v21 }
  0xaf   : > { %v191_v23 = vpop.trf.xlu0  ;;  %v223_v24 = vpop.trf.xlu1 }
  0xb0   : > { %1167 = vmatmul.mubr.msk.f32.gmra.mxu0 %vm294_vm1, %v191_v23 }
  0xb3   : > { %v192_v25 = vpop.trf.xlu0  ;;  %v224_v26 = vpop.trf.xlu1 }
  0xb4   : > { %1169 = vmatprep.mubr.msk.f32.mxu0 %vm294_vm1, %v192_v25 }
  0xb7   : > { %v193_v27 = vpop.trf.xlu0  ;;  %v225_v28 = vpop.trf.xlu1 }
  0xb8   : > { %1170 = vmatmul.mubr.msk.f32.gmra.mxu0 %vm294_vm1, %v193_v27 }
  0xbb   : > { %v194_v29 = vpop.trf.xlu0  ;;  %v226_v30 = vpop.trf.xlu1 }
  0xbc   : > { %1172 = vmatprep.mubr.msk.f32.mxu0 %vm294_vm1, %v194_v29 }
  0xbf   : > { %v195_v31 = vpop.trf.xlu0  ;;  %v227_v32 = vpop.trf.xlu1 }
  0xc0   : > { %1173 = vmatmul.mubr.msk.f32.gmra.mxu0 %vm294_vm1, %v195_v31 }
  0xc3   : > { %v196_v33 = vpop.trf.xlu0  ;;  %v228_v34 = vpop.trf.xlu1 }
  0xc4   : > { %1175 = vmatprep.mubr.msk.f32.mxu0 %vm294_vm1, %v196_v33 }
  0xc7   : > { %v197_v35 = vpop.trf.xlu0  ;;  %v229_v36 = vpop.trf.xlu1 }
  0xc8   : > { %1176 = vmatmul.mubr.msk.f32.gmra.mxu0 %vm294_vm1, %v197_v35 }
  0xc9   : > { %1178 = vmatprep.mubr.msk.f32.mxu0 %vm294_vm1, %v214_v6 }
  0xcb   : > { %v246_v37 = vpop.trf.xlu0  ;;  %v278_v38 = vpop.trf.xlu1 }
  0xcc   : > { %1179 = vmatmul.mubr.msk.f32.gmra.mxu0 %vm294_vm1, %v215_v8  ;;  %1202 = vmatprep.mubr.msk.f32.mxu1 %vm294_vm1, %v246_v37 }
  0xcd   : > { %1181 = vmatprep.mubr.msk.f32.mxu0 %vm294_vm1, %v216_v10 }
  0xcf   : > { %v247_v39 = vpop.trf.xlu0  ;;  %v279_v40 = vpop.trf.xlu1 }
  0xd0   : > { %1182 = vmatmul.mubr.msk.f32.gmra.mxu0 %vm294_vm1, %v217_v12  ;;  %1203 = vmatmul.mubr.msk.f32.vlgmr.msra.gmra.mxu1 %vm294_vm1, %v247_v39 }
  0xd1   : > { %1184 = vmatprep.mubr.msk.f32.mxu0 %vm294_vm1, %v218_v14 }
  0xd3   : > { %v248_v41 = vpop.trf.xlu0  ;;  %v280_v43 = vpop.trf.xlu1 }
  0xd4   : > { %1185 = vmatmul.mubr.msk.f32.gmra.mxu0 %vm294_vm1, %v219_v16  ;;  %1205 = vmatprep.mubr.msk.f32.mxu1 %vm294_vm1, %v248_v41 }
  0xd5   : > { %1187 = vmatprep.mubr.msk.f32.mxu0 %vm294_vm1, %v220_v18 }
  0xd7   : > { %v249_v42 = vpop.trf.xlu0  ;;  %v281_v45 = vpop.trf.xlu1 }
  0xd8   : > { %1188 = vmatmul.mubr.msk.f32.gmra.mxu0 %vm294_vm1, %v221_v20  ;;  %1206 = vmatmul.mubr.msk.f32.gmra.mxu1 %vm294_vm1, %v249_v42 }
  0xd9   : > { %1190 = vmatprep.mubr.msk.f32.mxu0 %vm294_vm1, %v222_v22 }
  0xdb   : > { %v250_v44 = vpop.trf.xlu0  ;;  %v282_v48 = vpop.trf.xlu1 }
  0xdc   : > { %1191 = vmatmul.mubr.msk.f32.gmra.mxu0 %vm294_vm1, %v223_v24  ;;  %1208 = vmatprep.mubr.msk.f32.mxu1 %vm294_vm1, %v250_v44 }
  0xdd   : > { %1193 = vmatprep.mubr.msk.f32.mxu0 %vm294_vm1, %v224_v26 }
  0xdf   : > { %v251_v46 = vpop.trf.xlu0  ;;  %v283_v50 = vpop.trf.xlu1 }
  0xe0   : > { %1194 = vmatmul.mubr.msk.f32.gmra.mxu0 %vm294_vm1, %v225_v28  ;;  %1209 = vmatmul.mubr.msk.f32.gmra.mxu1 %vm294_vm1, %v251_v46 }
  0xe1   : > { %1196 = vmatprep.mubr.msk.f32.mxu0 %vm294_vm1, %v226_v30 }
  0xe3   : > { %v252_v47 = vpop.trf.xlu0  ;;  %v284_v53 = vpop.trf.xlu1 }
  0xe4   : > { %1197 = vmatmul.mubr.msk.f32.gmra.mxu0 %vm294_vm1, %v227_v32  ;;  %1211 = vmatprep.mubr.msk.f32.mxu1 %vm294_vm1, %v252_v47 }
  0xe5   : > { %1199 = vmatprep.mubr.msk.f32.mxu0 %vm294_vm1, %v228_v34 }
  0xe7   : > { %v253_v49 = vpop.trf.xlu0  ;;  %v285_v55 = vpop.trf.xlu1 }
  0xe8   : > { %1200 = vmatmul.mubr.msk.f32.gmra.mxu0 %vm294_vm1, %v229_v36  ;;  %1212 = vmatmul.mubr.msk.f32.gmra.mxu1 %vm294_vm1, %v253_v49 }
  0xeb   : > { %v254_v51 = vpop.trf.xlu0  ;;  %v286_v58 = vpop.trf.xlu1 }
  0xec   : > { %1214 = vmatprep.mubr.msk.f32.mxu1 %vm294_vm1, %v254_v51 }
  0xef   : > { %v255_v52 = vpop.trf.xlu0  ;;  %v287_v60 = vpop.trf.xlu1 }
  0xf0   : > { %1215 = vmatmul.mubr.msk.f32.gmra.mxu1 %vm294_vm1, %v255_v52 }
  0xf3   : > { %v256_v54 = vpop.trf.xlu0  ;;  %v288_v63 = vpop.trf.xlu1 }
  0xf4   : > { %1217 = vmatprep.mubr.msk.f32.mxu1 %vm294_vm1, %v256_v54 }
  0xf7   : > { %v257_v56 = vpop.trf.xlu0  ;;  %v289_v0 = vpop.trf.xlu1 }
  0xf8   : > { %1218 = vmatmul.mubr.msk.f32.gmra.mxu1 %vm294_vm1, %v257_v56 }
  0xfb   : > { %v258_v57 = vpop.trf.xlu0  ;;  %v290_v1 = vpop.trf.xlu1 }
  0xfc   : > { %1220 = vmatprep.mubr.msk.f32.mxu1 %vm294_vm1, %v258_v57 }
  0xff   : > { %v259_v59 = vpop.trf.xlu0  ;;  %v291_v2 = vpop.trf.xlu1 }
 0x100   : > { %1221 = vmatmul.mubr.msk.f32.gmra.mxu1 %vm294_vm1, %v259_v59 }
 0x103   : > { %v260_v61 = vpop.trf.xlu0  ;;  %v292_v3 = vpop.trf.xlu1 }
 0x104   : > { %1223 = vmatprep.mubr.msk.f32.mxu1 %vm294_vm1, %v260_v61 }
 0x107   : > { %v261_v62 = vpop.trf.xlu0  ;;  %v293_v4 = vpop.trf.xlu1 }
 0x108   : > { %1224 = vmatmul.mubr.msk.f32.gmra.mxu1 %vm294_vm1, %v261_v62 }
 0x109   : > { %1226 = vmatprep.mubr.msk.f32.mxu1 %vm294_vm1, %v278_v38 }
 0x10c   : > { %1227 = vmatmul.mubr.msk.f32.gmra.mxu1 %vm294_vm1, %v279_v40 }
 0x10d   : > { %1229 = vmatprep.mubr.msk.f32.mxu1 %vm294_vm1, %v280_v43 }
 0x110   : > { %1230 = vmatmul.mubr.msk.f32.gmra.mxu1 %vm294_vm1, %v281_v45 }
 0x111   : > { %1232 = vmatprep.mubr.msk.f32.mxu1 %vm294_vm1, %v282_v48 }
 0x114   : > { %1233 = vmatmul.mubr.msk.f32.gmra.mxu1 %vm294_vm1, %v283_v50 }
 0x115   : > { %1235 = vmatprep.mubr.msk.f32.mxu1 %vm294_vm1, %v284_v53 }
 0x118   : > { %1236 = vmatmul.mubr.msk.f32.gmra.mxu1 %vm294_vm1, %v285_v55 }
 0x119   : > { %1238 = vmatprep.mubr.msk.f32.mxu1 %vm294_vm1, %v286_v58 }
 0x11c   : > { %1239 = vmatmul.mubr.msk.f32.gmra.mxu1 %vm294_vm1, %v287_v60 }
 0x11d   : > { %1241 = vmatprep.mubr.msk.f32.mxu1 %vm294_vm1, %v288_v63 }
 0x120   : > { %1242 = vmatmul.mubr.msk.f32.gmra.mxu1 %vm294_vm1, %v289_v0 }
 0x121   : > { %1244 = vmatprep.mubr.msk.f32.mxu1 %vm294_vm1, %v290_v1 }
 0x124   : > { %1245 = vmatmul.mubr.msk.f32.gmra.mxu1 %vm294_vm1, %v291_v2 }
 0x125   : > { %1247 = vmatprep.mubr.msk.f32.mxu1 %vm294_vm1, %v292_v3 }
 0x128   : > { %1248 = vmatmul.mubr.msk.f32.gmra.mxu1 %vm294_vm1, %v293_v4 }
 0x150   : > { %v1156_v5 = vpop.f32.mrf.mxu0 }
 0x151   : > { %878 = vst.msk [vmem:[%s1370_s22 + $0x8] sm:$0xff] %vm876_vm2, %v1156_v5 }
 0x152   : > { %v557_v6 = vpop.f32.mrf.mxu0 }
 0x153   : > { %877 = vst.msk [vmem:[%s1370_s22] sm:$0xff] %vm876_vm2, %v557_v6 }
 0x158   : > { %v1159_v7 = vpop.f32.mrf.mxu0 }
 0x159   : > { %880 = vst.msk [vmem:[%s1370_s22 + $0x18] sm:$0xff] %vm876_vm2, %v1159_v7 }
 0x15a   : > { %v567_v8 = vpop.f32.mrf.mxu0 }
 0x15b   : > { %879 = vst.msk [vmem:[%s1370_s22 + $0x10] sm:$0xff] %vm876_vm2, %v567_v8 }
 0x160   : > { %v1162_v9 = vpop.f32.mrf.mxu0 }
 0x161   : > { %882 = vst.msk [vmem:[%s1370_s22 + $0x28] sm:$0xff] %vm876_vm2, %v1162_v9 }
 0x162   : > { %v577_v10 = vpop.f32.mrf.mxu0 }
 0x163   : > { %881 = vst.msk [vmem:[%s1370_s22 + $0x20] sm:$0xff] %vm876_vm2, %v577_v10 }
 0x168   : > { %v1165_v11 = vpop.f32.mrf.mxu0 }
 0x169   : > { %884 = vst.msk [vmem:[%s1370_s22 + $0x38] sm:$0xff] %vm876_vm2, %v1165_v11 }
 0x16a   : > { %v587_v12 = vpop.f32.mrf.mxu0 }
 0x16b   : > { %883 = vst.msk [vmem:[%s1370_s22 + $0x30] sm:$0xff] %vm876_vm2, %v587_v12 }
 0x170   : > { %v1168_v13 = vpop.f32.mrf.mxu0 }
 0x171   : > { %886 = vst.msk [vmem:[%s1370_s22 + $0x48] sm:$0xff] %vm876_vm2, %v1168_v13 }
 0x172   : > { %v597_v14 = vpop.f32.mrf.mxu0 }
 0x173   : > { %885 = vst.msk [vmem:[%s1370_s22 + $0x40] sm:$0xff] %vm876_vm2, %v597_v14 }
 0x178   : > { %v1171_v15 = vpop.f32.mrf.mxu0 }
 0x179   : > { %888 = vst.msk [vmem:[%s1370_s22 + $0x58] sm:$0xff] %vm876_vm2, %v1171_v15 }
 0x17a   : > { %v607_v16 = vpop.f32.mrf.mxu0 }
 0x17b   : > { %887 = vst.msk [vmem:[%s1370_s22 + $0x50] sm:$0xff] %vm876_vm2, %v607_v16 }
 0x180   : > { %v1174_v17 = vpop.f32.mrf.mxu0 }
 0x181   : > { %890 = vst.msk [vmem:[%s1370_s22 + $0x68] sm:$0xff] %vm876_vm2, %v1174_v17 }
 0x182   : > { %v617_v18 = vpop.f32.mrf.mxu0 }
 0x183   : > { %889 = vst.msk [vmem:[%s1370_s22 + $0x60] sm:$0xff] %vm876_vm2, %v617_v18 }
 0x188   : > { %v1177_v19 = vpop.f32.mrf.mxu0 }
 0x189   : > { %892 = vst.msk [vmem:[%s1370_s22 + $0x78] sm:$0xff] %vm876_vm2, %v1177_v19 }
 0x18a   : > { %v627_v20 = vpop.f32.mrf.mxu0 }
 0x18b   : > { %891 = vst.msk [vmem:[%s1370_s22 + $0x70] sm:$0xff] %vm876_vm2, %v627_v20 }
 0x18c   : > { %v1180_v21 = vpop.f32.mrf.mxu0 }
 0x18d   : > { %894 = vst.msk [vmem:[%s1370_s22 + $0x88] sm:$0xff] %vm876_vm2, %v1180_v21 }
 0x18e   : > { %v637_v22 = vpop.f32.mrf.mxu0 }
 0x18f   : > { %893 = vst.msk [vmem:[%s1370_s22 + $0x80] sm:$0xff] %vm876_vm2, %v637_v22 }
 0x190   : > { %v1183_v23 = vpop.f32.mrf.mxu0  ;;  %v1204_v24 = vpop.f32.mrf.mxu1 }
 0x191   : > { %896 = vst.msk [vmem:[%s1370_s22 + $0x98] sm:$0xff] %vm876_vm2, %v1183_v23  ;;  %910 = vst.msk [vmem:[%s1370_s22 + $0x108] sm:$0xff] %vm876_vm2, %v1204_v24 }
 0x192   : > { %v647_v25 = vpop.f32.mrf.mxu0  ;;  %v717_v26 = vpop.f32.mrf.mxu1 }
 0x193   : > { %895 = vst.msk [vmem:[%s1370_s22 + $0x90] sm:$0xff] %vm876_vm2, %v647_v25  ;;  %909 = vst.msk [vmem:[%s1370_s22 + $0x100] sm:$0xff] %vm876_vm2, %v717_v26 }
 0x194   : > { %v1186_v27 = vpop.f32.mrf.mxu0 }
 0x195   : > { %898 = vst.msk [vmem:[%s1370_s22 + $0xa8] sm:$0xff] %vm876_vm2, %v1186_v27 }
 0x196   : > { %v657_v28 = vpop.f32.mrf.mxu0 }
 0x197   : > { %897 = vst.msk [vmem:[%s1370_s22 + $0xa0] sm:$0xff] %vm876_vm2, %v657_v28 }
 0x198   : > { %v1189_v29 = vpop.f32.mrf.mxu0  ;;  %v1207_v30 = vpop.f32.mrf.mxu1 }
 0x199   : > { %900 = vst.msk [vmem:[%s1370_s22 + $0xb8] sm:$0xff] %vm876_vm2, %v1189_v29  ;;  %912 = vst.msk [vmem:[%s1370_s22 + $0x118] sm:$0xff] %vm876_vm2, %v1207_v30 }
 0x19a   : > { %v667_v31 = vpop.f32.mrf.mxu0  ;;  %v727_v32 = vpop.f32.mrf.mxu1 }
 0x19b   : > { %899 = vst.msk [vmem:[%s1370_s22 + $0xb0] sm:$0xff] %vm876_vm2, %v667_v31  ;;  %911 = vst.msk [vmem:[%s1370_s22 + $0x110] sm:$0xff] %vm876_vm2, %v727_v32 }
 0x19c   : > { %v1192_v33 = vpop.f32.mrf.mxu0 }
 0x19d   : > { %902 = vst.msk [vmem:[%s1370_s22 + $0xc8] sm:$0xff] %vm876_vm2, %v1192_v33 }
 0x19e   : > { %v677_v34 = vpop.f32.mrf.mxu0 }
 0x19f   : > { %901 = vst.msk [vmem:[%s1370_s22 + $0xc0] sm:$0xff] %vm876_vm2, %v677_v34 }
 0x1a0   : > { %v1195_v35 = vpop.f32.mrf.mxu0  ;;  %v1210_v36 = vpop.f32.mrf.mxu1 }
 0x1a1   : > { %904 = vst.msk [vmem:[%s1370_s22 + $0xd8] sm:$0xff] %vm876_vm2, %v1195_v35  ;;  %914 = vst.msk [vmem:[%s1370_s22 + $0x128] sm:$0xff] %vm876_vm2, %v1210_v36 }
 0x1a2   : > { %v687_v37 = vpop.f32.mrf.mxu0  ;;  %v737_v38 = vpop.f32.mrf.mxu1 }
 0x1a3   : > { %903 = vst.msk [vmem:[%s1370_s22 + $0xd0] sm:$0xff] %vm876_vm2, %v687_v37  ;;  %913 = vst.msk [vmem:[%s1370_s22 + $0x120] sm:$0xff] %vm876_vm2, %v737_v38 }
 0x1a4   : > { %v1198_v39 = vpop.f32.mrf.mxu0 }
 0x1a5   : > { %906 = vst.msk [vmem:[%s1370_s22 + $0xe8] sm:$0xff] %vm876_vm2, %v1198_v39 }
 0x1a6   : > { %v697_v40 = vpop.f32.mrf.mxu0 }
 0x1a7   : > { %905 = vst.msk [vmem:[%s1370_s22 + $0xe0] sm:$0xff] %vm876_vm2, %v697_v40 }
 0x1a8   : > { %v1201_v41 = vpop.f32.mrf.mxu0  ;;  %v1213_v42 = vpop.f32.mrf.mxu1 }
 0x1a9   : > { %908 = vst.msk [vmem:[%s1370_s22 + $0xf8] sm:$0xff] %vm876_vm2, %v1201_v41  ;;  %916 = vst.msk [vmem:[%s1370_s22 + $0x138] sm:$0xff] %vm876_vm2, %v1213_v42 }
 0x1aa   : > { %v707_v43 = vpop.f32.mrf.mxu0  ;;  %v747_v44 = vpop.f32.mrf.mxu1 }
 0x1ab   : > { %907 = vst.msk [vmem:[%s1370_s22 + $0xf0] sm:$0xff] %vm876_vm2, %v707_v43  ;;  %915 = vst.msk [vmem:[%s1370_s22 + $0x130] sm:$0xff] %vm876_vm2, %v747_v44 }
 0x1b0   : > { %v1216_v45 = vpop.f32.mrf.mxu1 }
 0x1b1   : > { %918 = vst.msk [vmem:[%s1370_s22 + $0x148] sm:$0xff] %vm876_vm2, %v1216_v45 }
 0x1b2   : > { %v757_v46 = vpop.f32.mrf.mxu1 }
 0x1b3   : > { %917 = vst.msk [vmem:[%s1370_s22 + $0x140] sm:$0xff] %vm876_vm2, %v757_v46 }
 0x1b8   : > { %v1219_v47 = vpop.f32.mrf.mxu1 }
 0x1b9   : > { %920 = vst.msk [vmem:[%s1370_s22 + $0x158] sm:$0xff] %vm876_vm2, %v1219_v47 }
 0x1ba   : > { %v767_v48 = vpop.f32.mrf.mxu1 }
 0x1bb   : > { %919 = vst.msk [vmem:[%s1370_s22 + $0x150] sm:$0xff] %vm876_vm2, %v767_v48 }
 0x1c0   : > { %v1222_v49 = vpop.f32.mrf.mxu1 }
 0x1c1   : > { %922 = vst.msk [vmem:[%s1370_s22 + $0x168] sm:$0xff] %vm876_vm2, %v1222_v49 }
 0x1c2   : > { %v777_v50 = vpop.f32.mrf.mxu1 }
 0x1c3   : > { %921 = vst.msk [vmem:[%s1370_s22 + $0x160] sm:$0xff] %vm876_vm2, %v777_v50 }
 0x1c8   : > { %v1225_v51 = vpop.f32.mrf.mxu1 }
 0x1c9   : > { %924 = vst.msk [vmem:[%s1370_s22 + $0x178] sm:$0xff] %vm876_vm2, %v1225_v51 }
 0x1ca   : > { %v787_v52 = vpop.f32.mrf.mxu1 }
 0x1cb   : > { %923 = vst.msk [vmem:[%s1370_s22 + $0x170] sm:$0xff] %vm876_vm2, %v787_v52 }
 0x1cc   : > { %v1228_v53 = vpop.f32.mrf.mxu1 }
 0x1cd   : > { %926 = vst.msk [vmem:[%s1370_s22 + $0x188] sm:$0xff] %vm876_vm2, %v1228_v53 }
 0x1ce   : > { %v797_v54 = vpop.f32.mrf.mxu1 }
 0x1cf   : > { %925 = vst.msk [vmem:[%s1370_s22 + $0x180] sm:$0xff] %vm876_vm2, %v797_v54 }
 0x1d0   : > { %v1231_v55 = vpop.f32.mrf.mxu1 }
 0x1d1   : > { %928 = vst.msk [vmem:[%s1370_s22 + $0x198] sm:$0xff] %vm876_vm2, %v1231_v55 }
 0x1d2   : > { %v807_v56 = vpop.f32.mrf.mxu1 }
 0x1d3   : > { %927 = vst.msk [vmem:[%s1370_s22 + $0x190] sm:$0xff] %vm876_vm2, %v807_v56 }
 0x1d4   : > { %v1234_v57 = vpop.f32.mrf.mxu1 }
 0x1d5   : > { %930 = vst.msk [vmem:[%s1370_s22 + $0x1a8] sm:$0xff] %vm876_vm2, %v1234_v57 }
 0x1d6   : > { %v817_v58 = vpop.f32.mrf.mxu1 }
 0x1d7   : > { %929 = vst.msk [vmem:[%s1370_s22 + $0x1a0] sm:$0xff] %vm876_vm2, %v817_v58 }
 0x1d8   : > { %v1237_v59 = vpop.f32.mrf.mxu1 }
 0x1d9   : > { %932 = vst.msk [vmem:[%s1370_s22 + $0x1b8] sm:$0xff] %vm876_vm2, %v1237_v59 }
 0x1da   : > { %v827_v60 = vpop.f32.mrf.mxu1 }
 0x1db   : > { %931 = vst.msk [vmem:[%s1370_s22 + $0x1b0] sm:$0xff] %vm876_vm2, %v827_v60 }
 0x1dc   : > { %v1240_v61 = vpop.f32.mrf.mxu1 }
 0x1dd   : > { %934 = vst.msk [vmem:[%s1370_s22 + $0x1c8] sm:$0xff] %vm876_vm2, %v1240_v61 }
 0x1de   : > { %v837_v62 = vpop.f32.mrf.mxu1 }
 0x1df   : > { %933 = vst.msk [vmem:[%s1370_s22 + $0x1c0] sm:$0xff] %vm876_vm2, %v837_v62 }
 0x1e0   : > { %v1243_v63 = vpop.f32.mrf.mxu1 }
 0x1e1   : > { %936 = vst.msk [vmem:[%s1370_s22 + $0x1d8] sm:$0xff] %vm876_vm2, %v1243_v63 }
 0x1e2   : > { %v847_v0 = vpop.f32.mrf.mxu1 }
 0x1e3   : > { %935 = vst.msk [vmem:[%s1370_s22 + $0x1d0] sm:$0xff] %vm876_vm2, %v847_v0 }
 0x1e4   : > { %v1246_v1 = vpop.f32.mrf.mxu1 }
 0x1e5   : > { %938 = vst.msk [vmem:[%s1370_s22 + $0x1e8] sm:$0xff] %vm876_vm2, %v1246_v1 }
 0x1e6   : > { %v857_v2 = vpop.f32.mrf.mxu1 }
 0x1e7   : > { %937 = vst.msk [vmem:[%s1370_s22 + $0x1e0] sm:$0xff] %vm876_vm2, %v857_v2 }
 0x1e8   : > { %v1249_v3 = vpop.f32.mrf.mxu1 }
 0x1e9   : > { %940 = vst.msk [vmem:[%s1370_s22 + $0x1f8] sm:$0xff] %vm876_vm2, %v1249_v3 }
 0x1ea   : > { %v867_v4 = vpop.f32.mrf.mxu1 }
 0x1eb   : > { %939 = vst.msk [vmem:[%s1370_s22 + $0x1f0] sm:$0xff] %vm876_vm2, %v867_v4 }
 0x1ec PF: > { %s12_s9 = sadd.s32 1, %s1267_s9  }
 0x1ed   : > { %p9_p4 = scmp.ge.s32.totalorder %s12_s9, 4  }
 0x1ef   :  { %11 = sbr.rel (!%p9_p4) target bundleno = 1 (0x1), region = 61 }

// kernel: _lambda_.32
= control target key start
LH: loop header
LB: loop body
LE: loop exit
PB: predicated region body
PF: predicated region fallthrough
CT: control target
= control target key end

     0   :  { %s719_s12 = smov 0   ;;  %s721_s13 = smov 0   ;;  %s967_s0 = inlined_call_operand.vmem [shape: f32[80,1024], index: 0, kind: input, shape index: {}]   ;;  %s968_s1 = inlined_call_operand.vmem [shape: bf16[32,80], index: 1, kind: input, shape index: {}]   ;;  %s969_s2 = inlined_call_operand.vmem [shape: f32[32,1], index: 2, kind: input, shape index: {}]   ;;  %s970_s3 = inlined_call_operand.vmem [shape: f32[32,1024], index: 3, kind: output, shape index: {}]  }
   0x1   :  { %s723_s14 = smov 0  }
   0x2 LB: > { %s622_s15 = sadd.s32 4294967295, %s696_s14   ;;  %s736_s16 = sadd.s32 1, %s696_s14   ;;  %s696_s14 = sphi %s723_s14, %s974_s14   ;;  %s692_s13 = sphi %s721_s13, %s973_s13   ;;  %s688_s12 = sphi %s719_s12, %s972_s12  }
   0x3   : > { %s17_s17 = ssub.s32 %s696_s14, %s736_s16  ;;  %s20_s18 = sadd.s32 1, %s692_s13 }
   0x4   : > { %p18_p0 = scmp.eq.s32.totalorder %s17_s17, 0  ;;  %p27_p1 = scmp.ne.s32.totalorder %s692_s13, %s688_s12 }
   0x5   : > { %p28_p2 = scmp.eq.s32.totalorder %s696_s14, 0  ;;  %p99_p3 = scmp.eq.s32.totalorder %s622_s15, 1 }
   0x6   : > { %s747_s19 = scalar_select %p18_p0, %s692_s13, %s20_s18  }
   0x7   : > { %p29_p4 = por %p28_p2, %p27_p1  ;;  %p749_p5 = por %p99_p3, %p27_p1 }
   0x8   : > { %p625_p6 = scmp.ge.s32.totalorder %s696_s14, 2 }
   0xa   : > { %127 = sbr.rel (%p625_p6) target bundleno = 40 (0x28), region = 24 }
   0xf   : > { %130 = sbr.rel (!%p29_p4) target bundleno = 40 (0x28), region = 28  ;;  %s132_s21 = sand.u32 (%p29_p4), 1, %s692_s13  }
  0x10   : > { %s641_s22 = sshll.u32 (%p29_p4), %s696_s14, 5  ;;  %s643_s23 = smul.u32 (%p29_p4), 320, %s132_s21 }
  0x11   : > { %s759_s26 = scalar_lea.vmem (%p29_p4), %s967_s0, %s641_s22 }
  0x12   : > { %v150_v0 = vld [vmem:[%s759_s26] sm:$0xff] (%p29_p4)  ;;  %v152_v1 = vld [vmem:[%s759_s26 + $0x8] sm:$0xff] (%p29_p4)  ;;  %v154_v2 = vld [vmem:[%s759_s26 + $0x10] sm:$0xff] (%p29_p4)  ;;  %s767_s27 = scalar_lea.vmem (%p29_p4), [#allocation2], %s643_s23 }
  0x13   : > { %v156_v3 = vld [vmem:[%s759_s26 + $0x18] sm:$0xff] (%p29_p4)  ;;  %v158_v4 = vld [vmem:[%s759_s26 + $0x40] sm:$0xff] (%p29_p4)  ;;  %v160_v5 = vld [vmem:[%s759_s26 + $0x48] sm:$0xff] (%p29_p4)  ;;  %151 = vst [vmem:[%s767_s27] sm:$0xff] (%p29_p4), %v150_v0 }
  0x14   : > { %153 = vst [vmem:[%s767_s27 + $0x8] sm:$0xff] %v152_v1  ;;  %155 = vst [vmem:[%s767_s27 + $0x10] sm:$0xff] %v154_v2  ;;  %v162_v6 = vld [vmem:[%s759_s26 + $0x50] sm:$0xff]  ;;  %v164_v7 = vld [vmem:[%s759_s26 + $0x58] sm:$0xff] }
  0x15   : > { %157 = vst [vmem:[%s767_s27 + $0x18] sm:$0xff] %v156_v3  ;;  %159 = vst [vmem:[%s767_s27 + $0x20] sm:$0xff] %v158_v4  ;;  %v166_v8 = vld [vmem:[%s759_s26 + $0x80] sm:$0xff]  ;;  %v168_v9 = vld [vmem:[%s759_s26 + $0x88] sm:$0xff] }
  0x16   : > { %161 = vst [vmem:[%s767_s27 + $0x28] sm:$0xff] %v160_v5  ;;  %163 = vst [vmem:[%s767_s27 + $0x30] sm:$0xff] %v162_v6  ;;  %v170_v10 = vld [vmem:[%s759_s26 + $0x90] sm:$0xff]  ;;  %v172_v11 = vld [vmem:[%s759_s26 + $0x98] sm:$0xff] }
  0x17   : > { %165 = vst [vmem:[%s767_s27 + $0x38] sm:$0xff] %v164_v7  ;;  %167 = vst [vmem:[%s767_s27 + $0x40] sm:$0xff] %v166_v8  ;;  %v174_v12 = vld [vmem:[%s759_s26 + $0xc0] sm:$0xff]  ;;  %v176_v13 = vld [vmem:[%s759_s26 + $0xc8] sm:$0xff] }
  0x18   : > { %169 = vst [vmem:[%s767_s27 + $0x48] sm:$0xff] %v168_v9  ;;  %171 = vst [vmem:[%s767_s27 + $0x50] sm:$0xff] %v170_v10  ;;  %v178_v14 = vld [vmem:[%s759_s26 + $0xd0] sm:$0xff]  ;;  %v180_v15 = vld [vmem:[%s759_s26 + $0xd8] sm:$0xff] }
  0x19   : > { %173 = vst [vmem:[%s767_s27 + $0x58] sm:$0xff] %v172_v11  ;;  %175 = vst [vmem:[%s767_s27 + $0x60] sm:$0xff] %v174_v12  ;;  %v182_v16 = vld [vmem:[%s759_s26 + $0x100] sm:$0xff]  ;;  %v184_v17 = vld [vmem:[%s759_s26 + $0x108] sm:$0xff] }
  0x1a   : > { %177 = vst [vmem:[%s767_s27 + $0x68] sm:$0xff] %v176_v13  ;;  %179 = vst [vmem:[%s767_s27 + $0x70] sm:$0xff] %v178_v14  ;;  %v186_v18 = vld [vmem:[%s759_s26 + $0x110] sm:$0xff]  ;;  %v188_v19 = vld [vmem:[%s759_s26 + $0x118] sm:$0xff] }
  0x1b   : > { %181 = vst [vmem:[%s767_s27 + $0x78] sm:$0xff] %v180_v15  ;;  %183 = vst [vmem:[%s767_s27 + $0x80] sm:$0xff] %v182_v16  ;;  %v190_v20 = vld [vmem:[%s759_s26 + $0x140] sm:$0xff]  ;;  %v192_v21 = vld [vmem:[%s759_s26 + $0x148] sm:$0xff] }
  0x1c   : > { %185 = vst [vmem:[%s767_s27 + $0x88] sm:$0xff] %v184_v17  ;;  %187 = vst [vmem:[%s767_s27 + $0x90] sm:$0xff] %v186_v18  ;;  %v194_v22 = vld [vmem:[%s759_s26 + $0x150] sm:$0xff]  ;;  %v196_v23 = vld [vmem:[%s759_s26 + $0x158] sm:$0xff] }
  0x1d   : > { %189 = vst [vmem:[%s767_s27 + $0x98] sm:$0xff] %v188_v19  ;;  %191 = vst [vmem:[%s767_s27 + $0xa0] sm:$0xff] %v190_v20  ;;  %v198_v24 = vld [vmem:[%s759_s26 + $0x180] sm:$0xff]  ;;  %v200_v25 = vld [vmem:[%s759_s26 + $0x188] sm:$0xff] }
  0x1e   : > { %193 = vst [vmem:[%s767_s27 + $0xa8] sm:$0xff] %v192_v21  ;;  %195 = vst [vmem:[%s767_s27 + $0xb0] sm:$0xff] %v194_v22  ;;  %v202_v26 = vld [vmem:[%s759_s26 + $0x190] sm:$0xff]  ;;  %v204_v27 = vld [vmem:[%s759_s26 + $0x198] sm:$0xff] }
  0x1f   : > { %197 = vst [vmem:[%s767_s27 + $0xb8] sm:$0xff] %v196_v23  ;;  %199 = vst [vmem:[%s767_s27 + $0xc0] sm:$0xff] %v198_v24  ;;  %v206_v28 = vld [vmem:[%s759_s26 + $0x1c0] sm:$0xff]  ;;  %v208_v29 = vld [vmem:[%s759_s26 + $0x1c8] sm:$0xff] }
  0x20   : > { %201 = vst [vmem:[%s767_s27 + $0xc8] sm:$0xff] %v200_v25  ;;  %203 = vst [vmem:[%s767_s27 + $0xd0] sm:$0xff] %v202_v26  ;;  %v210_v30 = vld [vmem:[%s759_s26 + $0x1d0] sm:$0xff]  ;;  %v212_v31 = vld [vmem:[%s759_s26 + $0x1d8] sm:$0xff] }
  0x21   : > { %205 = vst [vmem:[%s767_s27 + $0xd8] sm:$0xff] %v204_v27  ;;  %207 = vst [vmem:[%s767_s27 + $0xe0] sm:$0xff] %v206_v28  ;;  %v214_v32 = vld [vmem:[%s759_s26 + $0x200] sm:$0xff]  ;;  %v216_v33 = vld [vmem:[%s759_s26 + $0x208] sm:$0xff] }
  0x22   : > { %209 = vst [vmem:[%s767_s27 + $0xe8] sm:$0xff] %v208_v29  ;;  %211 = vst [vmem:[%s767_s27 + $0xf0] sm:$0xff] %v210_v30  ;;  %v218_v34 = vld [vmem:[%s759_s26 + $0x210] sm:$0xff]  ;;  %v220_v35 = vld [vmem:[%s759_s26 + $0x218] sm:$0xff] }
  0x23   : > { %213 = vst [vmem:[%s767_s27 + $0xf8] sm:$0xff] %v212_v31  ;;  %215 = vst [vmem:[%s767_s27 + $0x100] sm:$0xff] %v214_v32  ;;  %v222_v36 = vld [vmem:[%s759_s26 + $0x240] sm:$0xff]  ;;  %v224_v37 = vld [vmem:[%s759_s26 + $0x248] sm:$0xff] }
  0x24   : > { %217 = vst [vmem:[%s767_s27 + $0x108] sm:$0xff] %v216_v33  ;;  %219 = vst [vmem:[%s767_s27 + $0x110] sm:$0xff] %v218_v34  ;;  %v226_v38 = vld [vmem:[%s759_s26 + $0x250] sm:$0xff]  ;;  %v228_v39 = vld [vmem:[%s759_s26 + $0x258] sm:$0xff] }
  0x25   : > { %221 = vst [vmem:[%s767_s27 + $0x118] sm:$0xff] %v220_v35  ;;  %223 = vst [vmem:[%s767_s27 + $0x120] sm:$0xff] %v222_v36 }
  0x26   : > { %225 = vst [vmem:[%s767_s27 + $0x128] sm:$0xff] %v224_v37  ;;  %227 = vst [vmem:[%s767_s27 + $0x130] sm:$0xff] %v226_v38 }
  0x27   : > { %229 = vst [vmem:[%s767_s27 + $0x138] sm:$0xff] %v228_v39 }
  0x28 PF: > { %p628_p7 = scmp.ge.s32.totalorder %s696_s14, 1  ;;  %p234_p8 = scmp.lt.s32.totalorder %s696_s14, 3 }
  0x2a   : > { %p235_p9 = pnand %p628_p7, %p234_p8 }
  0x2b   : > { %s241_s28 = sand.u32 (!%p235_p9), 1, %s688_s12  }
  0x2c   : > { %238 = sbr.rel (%p235_p9) target bundleno = 295 (0x127), region = 51  ;;  %s629_s23 = sshll.u32 (!%p235_p9), %s241_s28, 7 }
  0x2d   : > { %s644_s29 = smul.u32 (!%p235_p9), 320, %s241_s28  ;;  %s916_s24 = scalar_lea.vmem (!%p235_p9), [#allocation3], %s629_s23 }
  0x2f   : > { %s861_s9 = scalar_lea.vmem (!%p235_p9), [#allocation2], %s644_s29 }
  0x31   : > { %v698_v40 = vmov 0   ;;  %v330_v41 = vld [vmem:[%s969_s2] sm:$0xff]  ;;  %v331_v42 = vld [vmem:[%s969_s2 + $0x8] sm:$0xff]  ;;  %v332_v43 = vld [vmem:[%s969_s2 + $0x10] sm:$0xff]  ;;  %vm364_vm0 = vcmask 654336   ;;  %s642_s12 = sshll.u32 (%p749_p5), %s622_s15, 5 }
  0x32   : > { %403 = vmatprep.mubr.bf16.mxu0 %v698_v40  ;;  %456 = vmatprep.mubr.bf16.mxu1 %v698_v40  ;;  %v299_v44 = vld [vmem:[%s861_s9 + $0x108] sm:$0xff]  ;;  %v301_v46 = vld [vmem:[%s861_s9 + $0x118] sm:$0xff]  ;;  %v298_v50 = vld [vmem:[%s861_s9 + $0x100] sm:$0xff]  ;;  %s518_s20 = scalar_lea.vmem (%p749_p5), %s970_s3, %s642_s12 }
  0x33   : > { %670 = vset.pattern.permute.xlu0 %v698_v40  ;;  %671 = vset.pattern.permute.xlu1 %v698_v40  ;;  %v303_v45 = vld [vmem:[%s861_s9 + $0x128] sm:$0xff]  ;;  %v333_v47 = vld [vmem:[%s969_s2 + $0x18] sm:$0xff]  ;;  %v302_v51 = vld [vmem:[%s861_s9 + $0x120] sm:$0xff] }
  0x34   : > { %336 = vperm.xlu0 %670, %v330_v41   ;;  %346 = vperm.xlu1 %671, %v332_v43   ;;  %v323_v48 = vpack.c.bf16 %v303_v45, %v299_v44  ;;  %v305_v49 = vld [vmem:[%s861_s9 + $0x138] sm:$0xff]  ;;  %v322_v53 = vpack.c.bf16 %v302_v51, %v298_v50  ;;  %v300_v54 = vld [vmem:[%s861_s9 + $0x110] sm:$0xff]  ;;  %v291_v56 = vld [vmem:[%s861_s9 + $0xc8] sm:$0xff] }
  0x35   : > { %v325_v52 = vpack.c.bf16 %v305_v49, %v301_v46  ;;  %v304_v55 = vld [vmem:[%s861_s9 + $0x130] sm:$0xff]  ;;  %v295_v58 = vld [vmem:[%s861_s9 + $0xe8] sm:$0xff]  ;;  %v293_v59 = vld [vmem:[%s861_s9 + $0xd8] sm:$0xff] }
  0x36   : > { %377 = vmatprep.subr.bf16.mxu0 %v323_v48  ;;  %v324_v57 = vpack.c.bf16 %v304_v55, %v300_v54  ;;  %v297_v60 = vld [vmem:[%s861_s9 + $0xf8] sm:$0xff]  ;;  %v319_v61 = vpack.c.bf16 %v295_v58, %v291_v56  ;;  %v290_v63 = vld [vmem:[%s861_s9 + $0xc0] sm:$0xff]  ;;  %v292_v1 = vld [vmem:[%s861_s9 + $0xd0] sm:$0xff] }
  0x37   : > { %430 = vmatprep.subr.bf16.mxu1 %v325_v52  ;;  %378 = vmatpush1.bf16.msra.mxu0 %v322_v53  ;;  %v321_v62 = vpack.c.bf16 %v297_v60, %v293_v59  ;;  %v294_v0 = vld [vmem:[%s861_s9 + $0xe0] sm:$0xff]  ;;  %v296_v3 = vld [vmem:[%s861_s9 + $0xf0] sm:$0xff]  ;;  %v283_v4 = vld [vmem:[%s861_s9 + $0x88] sm:$0xff] }
  0x38   : > { %341 = vperm.xlu0 %670, %v331_v42   ;;  %431 = vmatpush1.bf16.msra.mxu1 %v324_v57  ;;  %v318_v2 = vpack.c.bf16 %v294_v0, %v290_v63  ;;  %v287_v5 = vld [vmem:[%s861_s9 + $0xa8] sm:$0xff]  ;;  %v320_v6 = vpack.c.bf16 %v296_v3, %v292_v1  ;;  %v285_v8 = vld [vmem:[%s861_s9 + $0x98] sm:$0xff]  ;;  %v282_v10 = vld [vmem:[%s861_s9 + $0x80] sm:$0xff] }
  0x39   : > { %351 = vperm.xlu1 %671, %v333_v47   ;;  %379 = vmatprep.subr.bf16.mxu0 %v319_v61  ;;  %v315_v7 = vpack.c.bf16 %v287_v5, %v283_v4  ;;  %v289_v9 = vld [vmem:[%s861_s9 + $0xb8] sm:$0xff]  ;;  %v286_v12 = vld [vmem:[%s861_s9 + $0xa0] sm:$0xff]  ;;  %v284_v13 = vld [vmem:[%s861_s9 + $0x90] sm:$0xff] }
  0x3a   : > { %432 = vmatprep.subr.bf16.mxu1 %v321_v62  ;;  %v317_v11 = vpack.c.bf16 %v289_v9, %v285_v8  ;;  %v288_v14 = vld [vmem:[%s861_s9 + $0xb0] sm:$0xff]  ;;  %v314_v15 = vpack.c.bf16 %v286_v12, %v282_v10  ;;  %v275_v16 = vld [vmem:[%s861_s9 + $0x48] sm:$0xff]  ;;  %v277_v18 = vld [vmem:[%s861_s9 + $0x58] sm:$0xff] }
  0x3b   : > { %380 = vmatpush1.bf16.msra.mxu0 %v318_v2  ;;  %v279_v17 = vld [vmem:[%s861_s9 + $0x68] sm:$0xff]  ;;  %v316_v19 = vpack.c.bf16 %v288_v14, %v284_v13  ;;  %v281_v21 = vld [vmem:[%s861_s9 + $0x78] sm:$0xff]  ;;  %v274_v22 = vld [vmem:[%s861_s9 + $0x40] sm:$0xff] }
  0x3c   : > { %433 = vmatpush1.bf16.msra.mxu1 %v320_v6  ;;  %381 = vmatprep.subr.bf16.mxu0 %v315_v7  ;;  %v311_v20 = vpack.c.bf16 %v279_v17, %v275_v16  ;;  %v278_v23 = vld [vmem:[%s861_s9 + $0x60] sm:$0xff]  ;;  %v313_v24 = vpack.c.bf16 %v281_v21, %v277_v18  ;;  %v276_v25 = vld [vmem:[%s861_s9 + $0x50] sm:$0xff]  ;;  %v267_v27 = vld [vmem:[%s861_s9 + $0x8] sm:$0xff] }
  0x3d   : > { %434 = vmatprep.subr.bf16.mxu1 %v317_v11  ;;  %v280_v26 = vld [vmem:[%s861_s9 + $0x70] sm:$0xff]  ;;  %v271_v28 = vld [vmem:[%s861_s9 + $0x28] sm:$0xff]  ;;  %v269_v29 = vld [vmem:[%s861_s9 + $0x18] sm:$0xff]  ;;  %v310_v31 = vpack.c.bf16 %v278_v23, %v274_v22 }
  0x3e   : > { %v273_v30 = vld [vmem:[%s861_s9 + $0x38] sm:$0xff]  ;;  %v312_v32 = vpack.c.bf16 %v280_v26, %v276_v25  ;;  %v307_v33 = vpack.c.bf16 %v271_v28, %v267_v27  ;;  %v266_v34 = vld [vmem:[%s861_s9] sm:$0xff]  ;;  %v268_v37 = vld [vmem:[%s861_s9 + $0x10] sm:$0xff] }
  0x3f   : > { %382 = vmatpush1.bf16.msra.mxu0 %v314_v15  ;;  %v270_v35 = vld [vmem:[%s861_s9 + $0x20] sm:$0xff]  ;;  %v309_v36 = vpack.c.bf16 %v273_v30, %v269_v29  ;;  %v272_v38 = vld [vmem:[%s861_s9 + $0x30] sm:$0xff]  ;;  %v673_v43 = vld [vmem:[%s968_s1 + $0x8] sm:$0xff]  }
  0x40   : > { %435 = vmatpush1.bf16.msra.mxu1 %v316_v19  ;;  %383 = vmatprep.subr.bf16.mxu0 %v311_v20  ;;  %v306_v39 = vpack.c.bf16 %v270_v35, %v266_v34  ;;  %v308_v41 = vpack.c.bf16 %v272_v38, %v268_v37  ;;  %v672_v42 = vld [vmem:[%s968_s1] sm:$0xff]  }
  0x41   : > { %436 = vmatprep.subr.bf16.mxu1 %v313_v24 }
  0x43   : > { %384 = vmatpush1.bf16.msra.mxu0 %v310_v31 }
  0x44   : > { %437 = vmatpush1.bf16.msra.mxu1 %v312_v32  ;;  %385 = vmatprep.subr.bf16.mxu0 %v307_v33 }
  0x45   : > { %438 = vmatprep.subr.bf16.mxu1 %v309_v36 }
  0x47   : > { %386 = vmatpush1.bf16.msra.mxu0 %v306_v39 }
  0x48   : > { %439 = vmatpush1.bf16.msra.mxu1 %v308_v41 }
  0x4a   : > { %632 = vmatmul.mubr.msk.bf16.vlgmr.msra.gmra.mxu0 %vm364_vm0, %v672_v42 }
  0x4b   : > { %634 = vmatmul.mubr.msk.bf16.vlgmr.msra.gmra.mxu1 %vm364_vm0, %v672_v42  ;;  %413 = vmatprep.mubr.bf16.mxu0 %v698_v40 }
  0x4c   : > { %466 = vmatprep.mubr.bf16.mxu1 %v698_v40 }
  0x52   : > { %633 = vmatmul.mubr.msk.bf16.gmra.mxu0 %vm364_vm0, %v673_v43 }
  0x53   : > { %635 = vmatmul.mubr.msk.bf16.gmra.mxu1 %vm364_vm0, %v673_v43 }
  0xaf   : > { %v337_v44 = vpop.permute.xlu0 %336  ;;  %v347_v61 = vpop.permute.xlu1 %346 }
  0xb3   : > { %v342_v50 = vpop.permute.xlu0 %341 }
  0xb4   : > { %v352_v15 = vpop.permute.xlu1 %351 }
 0x10a   : > { %v405_v45 = vpop.f32.mrf.mxu0 }
 0x10b   : > { %v406_v46 = vadd.f32 %v405_v45, %v337_v44  ;;  %v458_v47 = vpop.f32.mrf.mxu1 }
 0x10c   : > { %v459_v48 = vadd.f32 %v458_v47, %v337_v44  ;;  %v407_v49 = vpop.f32.mrf.mxu0 }
 0x10d   : > { %v477_v51 = vmax.f32 %v406_v46, 0.0  ;;  %v408_v52 = vadd.f32 %v407_v49, %v337_v44  ;;  %v460_v53 = vpop.f32.mrf.mxu1 }
 0x10e   : > { %v479_v54 = vmax.f32 %v459_v48, 0.0  ;;  %v461_v40 = vadd.f32 %v460_v53, %v337_v44  ;;  %v409_v55 = vpop.f32.mrf.mxu0 }
 0x10f   : > { %493 = vst [vmem:[%s916_s24] sm:$0xff] %v477_v51  ;;  %v478_v56 = vmax.f32 %v408_v52, 0.0  ;;  %v410_v57 = vadd.f32 %v409_v55, %v342_v50  ;;  %v462_v58 = vpop.f32.mrf.mxu1 }
 0x110   : > { %495 = vst [vmem:[%s916_s24 + $0x10] sm:$0xff] %v479_v54  ;;  %v480_v59 = vmax.f32 %v461_v40, 0.0  ;;  %v463_v60 = vadd.f32 %v462_v58, %v342_v50  ;;  %v411_v62 = vpop.f32.mrf.mxu0 }
 0x111   : > { %494 = vst [vmem:[%s916_s24 + $0x8] sm:$0xff] %v478_v56  ;;  %v481_v63 = vmax.f32 %v410_v57, 0.0  ;;  %v412_v0 = vadd.f32 %v411_v62, %v342_v50  ;;  %v464_v1 = vpop.f32.mrf.mxu1 }
 0x112   : > { %496 = vst [vmem:[%s916_s24 + $0x18] sm:$0xff] %v480_v59  ;;  %v483_v2 = vmax.f32 %v463_v60, 0.0  ;;  %v465_v3 = vadd.f32 %v464_v1, %v342_v50  ;;  %v415_v4 = vpop.f32.mrf.mxu0 }
 0x113   : > { %497 = vst [vmem:[%s916_s24 + $0x20] sm:$0xff] %v481_v63  ;;  %v482_v5 = vmax.f32 %v412_v0, 0.0  ;;  %v416_v6 = vadd.f32 %v415_v4, %v347_v61  ;;  %v468_v7 = vpop.f32.mrf.mxu1 }
 0x114   : > { %499 = vst [vmem:[%s916_s24 + $0x30] sm:$0xff] %v483_v2  ;;  %v484_v8 = vmax.f32 %v465_v3, 0.0  ;;  %v469_v9 = vadd.f32 %v468_v7, %v347_v61  ;;  %v417_v10 = vpop.f32.mrf.mxu0 }
 0x115   : > { %498 = vst [vmem:[%s916_s24 + $0x28] sm:$0xff] %v482_v5  ;;  %v485_v11 = vmax.f32 %v416_v6, 0.0  ;;  %v418_v12 = vadd.f32 %v417_v10, %v347_v61  ;;  %v470_v13 = vpop.f32.mrf.mxu1 }
 0x116   : > { %500 = vst [vmem:[%s916_s24 + $0x38] sm:$0xff] %v484_v8  ;;  %v487_v14 = vmax.f32 %v469_v9, 0.0  ;;  %v471_v16 = vadd.f32 %v470_v13, %v347_v61  ;;  %v419_v17 = vpop.f32.mrf.mxu0  ;;  %v531_v31 = vld [vmem:[%s916_s24] sm:$0xff] (%p749_p5) }
 0x117   : > { %501 = vst [vmem:[%s916_s24 + $0x40] sm:$0xff] %v485_v11  ;;  %v486_v18 = vmax.f32 %v418_v12, 0.0  ;;  %v420_v19 = vadd.f32 %v419_v17, %v352_v15  ;;  %v472_v20 = vpop.f32.mrf.mxu1  ;;  %v535_v33 = vld [vmem:[%s916_s24 + $0x10] sm:$0xff] (%p749_p5)  ;;  %532 = vst [vmem:[%s518_s20] sm:$0xff] (%p749_p5), %v531_v31 }
 0x118   : > { %503 = vst [vmem:[%s916_s24 + $0x50] sm:$0xff] %v487_v14  ;;  %v488_v21 = vmax.f32 %v471_v16, 0.0  ;;  %v473_v22 = vadd.f32 %v472_v20, %v352_v15  ;;  %v421_v23 = vpop.f32.mrf.mxu0  ;;  %v533_v32 = vld [vmem:[%s916_s24 + $0x8] sm:$0xff] (%p749_p5)  ;;  %536 = vst [vmem:[%s518_s20 + $0x10] sm:$0xff] (%p749_p5), %v535_v33 }
 0x119   : > { %502 = vst [vmem:[%s916_s24 + $0x48] sm:$0xff] %v486_v18  ;;  %v489_v24 = vmax.f32 %v420_v19, 0.0  ;;  %v422_v25 = vadd.f32 %v421_v23, %v352_v15  ;;  %v474_v26 = vpop.f32.mrf.mxu1  ;;  %v537_v34 = vld [vmem:[%s916_s24 + $0x18] sm:$0xff] (%p749_p5)  ;;  %534 = vst [vmem:[%s518_s20 + $0x8] sm:$0xff] (%p749_p5), %v533_v32 }
 0x11a   : > { %504 = vst [vmem:[%s916_s24 + $0x58] sm:$0xff] %v488_v21  ;;  %v491_v27 = vmax.f32 %v473_v22, 0.0  ;;  %v475_v28 = vadd.f32 %v474_v26, %v352_v15  ;;  %515 = sbr.rel (!%p749_p5) target bundleno = 295 (0x127), region = 59  ;;  %v539_v35 = vld [vmem:[%s916_s24 + $0x20] sm:$0xff] (%p749_p5)  ;;  %538 = vst [vmem:[%s518_s20 + $0x18] sm:$0xff] (%p749_p5), %v537_v34 }
 0x11b   : > { %505 = vst [vmem:[%s916_s24 + $0x60] sm:$0xff] %v489_v24  ;;  %v490_v29 = vmax.f32 %v422_v25, 0.0  ;;  %540 = vst [vmem:[%s518_s20 + $0x40] sm:$0xff] (%p749_p5), %v539_v35  ;;  %v543_v37 = vld [vmem:[%s916_s24 + $0x30] sm:$0xff] (%p749_p5) }
 0x11c   : > { %507 = vst [vmem:[%s916_s24 + $0x70] sm:$0xff] %v491_v27  ;;  %v492_v30 = vmax.f32 %v475_v28, 0.0  ;;  %v541_v36 = vld [vmem:[%s916_s24 + $0x28] sm:$0xff] (%p749_p5)  ;;  %544 = vst [vmem:[%s518_s20 + $0x50] sm:$0xff] (%p749_p5), %v543_v37 }
 0x11d   : > { %506 = vst [vmem:[%s916_s24 + $0x68] sm:$0xff] %v490_v29  ;;  %542 = vst [vmem:[%s518_s20 + $0x48] sm:$0xff] (%p749_p5), %v541_v36  ;;  %v545_v38 = vld [vmem:[%s916_s24 + $0x38] sm:$0xff] (%p749_p5) }
 0x11e   : > { %508 = vst [vmem:[%s916_s24 + $0x78] sm:$0xff] %v492_v30  ;;  %v547_v39 = vld [vmem:[%s916_s24 + $0x40] sm:$0xff] (%p749_p5)  ;;  %546 = vst [vmem:[%s518_s20 + $0x58] sm:$0xff] (%p749_p5), %v545_v38 }
 0x11f   : > { %548 = vst [vmem:[%s518_s20 + $0x80] sm:$0xff] %v547_v39  ;;  %v551_v42 = vld [vmem:[%s916_s24 + $0x50] sm:$0xff] }
 0x120   : > { %v549_v41 = vld [vmem:[%s916_s24 + $0x48] sm:$0xff]  ;;  %552 = vst [vmem:[%s518_s20 + $0x90] sm:$0xff] %v551_v42 }
 0x121   : > { %v553_v43 = vld [vmem:[%s916_s24 + $0x58] sm:$0xff]  ;;  %550 = vst [vmem:[%s518_s20 + $0x88] sm:$0xff] %v549_v41 }
 0x122   : > { %554 = vst [vmem:[%s518_s20 + $0x98] sm:$0xff] %v553_v43  ;;  %v555_v44 = vld [vmem:[%s916_s24 + $0x60] sm:$0xff] }
 0x123   : > { %v559_v46 = vld [vmem:[%s916_s24 + $0x70] sm:$0xff]  ;;  %556 = vst [vmem:[%s518_s20 + $0xc0] sm:$0xff] %v555_v44 }
 0x124   : > { %v557_v45 = vld [vmem:[%s916_s24 + $0x68] sm:$0xff]  ;;  %560 = vst [vmem:[%s518_s20 + $0xd0] sm:$0xff] %v559_v46 }
 0x125   : > { %558 = vst [vmem:[%s518_s20 + $0xc8] sm:$0xff] %v557_v45  ;;  %v561_v47 = vld [vmem:[%s916_s24 + $0x78] sm:$0xff] }
 0x126   : > { %562 = vst [vmem:[%s518_s20 + $0xd8] sm:$0xff] %v561_v47 }
 0x127 PF: > { %p10_p10 = scmp.ge.s32.totalorder %s736_s16, 4   ;;  %s972_s12 = smov %s692_s13 }
 0x128   : > { %s973_s13 = smov %s747_s19  ;;  %s974_s14 = smov %s736_s16 }
 0x129   :  { %12 = sbr.rel (!%p10_p10) target bundleno = 2 (0x2), region = 113 }

// kernel: _lambda_.33
= control target key start
LH: loop header
LB: loop body
LE: loop exit
PB: predicated region body
PF: predicated region fallthrough
CT: control target
= control target key end

     0   :  { %8 = vsyncpa [#allocation4], 0  ;;  %s699_s0 = inlined_call_operand.vmem [shape: f32[32,1024], index: 0, kind: input, shape index: {}]   ;;  %s700_s1 = inlined_call_operand.vmem [shape: bf16[8,32], index: 1, kind: input, shape index: {}]   ;;  %s701_s2 = inlined_call_operand.vmem [shape: f32[8,1], index: 2, kind: input, shape index: {}]   ;;  %s702_s3 = inlined_call_operand.hbm [shape: f32[8,1024], index: 3, kind: output, shape index: {}]  }
   0x1   :  { %10 = vsyncpa [#allocation4 + $0x1], 0  ;;  %s566_s12 = smov 0   ;;  %s568_s13 = smov 0  }
   0x2   :  { %s570_s14 = smov 0   ;;  %s572_s15 = smov 0  }
   0x3 LB: > { %s422_s16 = sadd.s32 4294967295, %s542_s15   ;;  %s423_s17 = sadd.s32 4294967294, %s542_s15   ;;  %s542_s15 = sphi %s572_s15, %s708_s15   ;;  %s538_s14 = sphi %s570_s14, %s707_s14   ;;  %s534_s13 = sphi %s568_s13, %s706_s13   ;;  %s530_s12 = sphi %s566_s12, %s705_s12  }
   0x4   : > { %s589_s18 = sadd.s32 1, %s542_s15   ;;  %s23_s19 = sadd.s32 1, %s538_s14 }
   0x5   : > { %s20_s20 = ssub.s32 %s542_s15, %s589_s18  ;;  %p30_p0 = scmp.ne.s32.totalorder %s538_s14, %s534_s13 }
   0x6   : > { %p21_p1 = scmp.eq.s32.totalorder %s20_s20, 0  ;;  %p31_p2 = scmp.eq.s32.totalorder %s542_s15, 0 }
   0x7   : > { %p102_p3 = scmp.eq.s32.totalorder %s422_s16, 1  ;;  %p107_p4 = scmp.ne.s32.totalorder %s534_s13, %s530_s12 }
   0x8   : > { %s602_s21 = scalar_select %p21_p1, %s538_s14, %s23_s19  }
   0x9   : > { %p32_p5 = por %p31_p2, %p30_p0  ;;  %p604_p6 = por %p102_p3, %p30_p0 }
   0xa   : > { %p108_p7 = scmp.eq.s32.totalorder %s423_s17, 1  ;;  %p425_p9 = scmp.ge.s32.totalorder %s542_s15, 2 }
   0xc   : > { %p608_p8 = por %p108_p7, %p107_p4  ;;  %130 = sbr.rel (%p425_p9) target bundleno = 29 (0x1d), region = 24 }
  0x11   : > { %133 = sbr.rel (!%p32_p5) target bundleno = 29 (0x1d), region = 28  ;;  %s135_s24 = sand.u32 (%p32_p5), 1, %s538_s14  }
  0x12   : > { %s439_s25 = sshll.u32 (%p32_p5), %s542_s15, 5  ;;  %s426_s26 = sshll.u32 (%p32_p5), %s135_s24, 7 }
  0x13   : > { %s620_s29 = scalar_lea.vmem (%p32_p5), %s699_s0, %s439_s25  ;;  %s137_s30 = scalar_lea.vmem (%p32_p5), [#allocation2], %s426_s26 }
  0x14   : > { %v153_v0 = vld [vmem:[%s620_s29] sm:$0xff] (%p32_p5)  ;;  %v155_v1 = vld [vmem:[%s620_s29 + $0x8] sm:$0xff] (%p32_p5)  ;;  %v157_v2 = vld [vmem:[%s620_s29 + $0x10] sm:$0xff] (%p32_p5) }
  0x15   : > { %154 = vst [vmem:[%s137_s30] sm:$0xff] (%p32_p5), %v153_v0  ;;  %156 = vst [vmem:[%s137_s30 + $0x8] sm:$0xff] (%p32_p5), %v155_v1  ;;  %v159_v3 = vld [vmem:[%s620_s29 + $0x18] sm:$0xff] (%p32_p5)  ;;  %v161_v4 = vld [vmem:[%s620_s29 + $0x40] sm:$0xff] (%p32_p5) }
  0x16   : > { %158 = vst [vmem:[%s137_s30 + $0x10] sm:$0xff] %v157_v2  ;;  %v163_v5 = vld [vmem:[%s620_s29 + $0x48] sm:$0xff]  ;;  %160 = vst [vmem:[%s137_s30 + $0x18] sm:$0xff] %v159_v3  ;;  %v165_v6 = vld [vmem:[%s620_s29 + $0x50] sm:$0xff] }
  0x17   : > { %162 = vst [vmem:[%s137_s30 + $0x20] sm:$0xff] %v161_v4  ;;  %164 = vst [vmem:[%s137_s30 + $0x28] sm:$0xff] %v163_v5  ;;  %v167_v7 = vld [vmem:[%s620_s29 + $0x58] sm:$0xff]  ;;  %v169_v8 = vld [vmem:[%s620_s29 + $0x80] sm:$0xff] }
  0x18   : > { %166 = vst [vmem:[%s137_s30 + $0x30] sm:$0xff] %v165_v6  ;;  %168 = vst [vmem:[%s137_s30 + $0x38] sm:$0xff] %v167_v7  ;;  %v171_v9 = vld [vmem:[%s620_s29 + $0x88] sm:$0xff]  ;;  %v173_v10 = vld [vmem:[%s620_s29 + $0x90] sm:$0xff] }
  0x19   : > { %170 = vst [vmem:[%s137_s30 + $0x40] sm:$0xff] %v169_v8  ;;  %v175_v11 = vld [vmem:[%s620_s29 + $0x98] sm:$0xff]  ;;  %172 = vst [vmem:[%s137_s30 + $0x48] sm:$0xff] %v171_v9  ;;  %v177_v12 = vld [vmem:[%s620_s29 + $0xc0] sm:$0xff] }
  0x1a   : > { %174 = vst [vmem:[%s137_s30 + $0x50] sm:$0xff] %v173_v10  ;;  %176 = vst [vmem:[%s137_s30 + $0x58] sm:$0xff] %v175_v11  ;;  %v179_v13 = vld [vmem:[%s620_s29 + $0xc8] sm:$0xff]  ;;  %v181_v14 = vld [vmem:[%s620_s29 + $0xd0] sm:$0xff] }
  0x1b   : > { %178 = vst [vmem:[%s137_s30 + $0x60] sm:$0xff] %v177_v12  ;;  %180 = vst [vmem:[%s137_s30 + $0x68] sm:$0xff] %v179_v13  ;;  %v183_v15 = vld [vmem:[%s620_s29 + $0xd8] sm:$0xff] }
  0x1c   : > { %182 = vst [vmem:[%s137_s30 + $0x70] sm:$0xff] %v181_v14  ;;  %184 = vst [vmem:[%s137_s30 + $0x78] sm:$0xff] %v183_v15 }
  0x1d PF: > { %p429_p10 = scmp.ge.s32.totalorder %s542_s15, 1  ;;  %p189_p11 = scmp.lt.s32.totalorder %s542_s15, 3 }
  0x1f   : > { %p190_p12 = pnand %p429_p10, %p189_p11 }
  0x20   : > { %s641_s4 = sand.u32 (!%p190_p12), 1, %s534_s13   ;;  %s440_s17 = sshll.u32 (!%p190_p12), %s422_s16, 9 }
  0x21   : > { %193 = sbr.rel (%p190_p12) target bundleno = 262 (0x106), region = 51  ;;  %s430_s7 = sshll.u32 (!%p190_p12), %s641_s4, 7 }
  0x22   : > { %s198_s8 = scalar_lea.vmem (!%p190_p12), [#allocation2], %s430_s7  ;;  %s431_s11 = sshll.u32 (!%p190_p12), %s641_s4, 5 }
  0x23   : > { %s218_s19 = scalar_lea.vmem (!%p190_p12), [#allocation3], %s431_s11  ;;  %s656_s26 = scalar_lea.hbm (!%p190_p12), %s702_s3, %s440_s17 }
  0x24   : > { %s358_s20 = sshll.u32 (!%p190_p12), %s218_s19, 4  ;;  %s344_s16 = scalar_lea.sflag (!%p190_p12), [#allocation4], %s641_s4  ;;  %s658_s20 = int_to_ptr.vmem [resolvable:$true] %s358_s20 }
  0x25   : > { %s482_s27 = scalar_lea.vmem (!%p190_p12), %s658_s20, 512  ;;  %s545_s28 = smov (!%p190_p12), [#allocation3]  }
  0x26   : > { %v247_v16 = vld [vmem:[%s701_s2] sm:$0xff]  ;;  %v544_v17 = vmov 0   ;;  %v231_v18 = vld [vmem:[%s198_s8 + $0x48] sm:$0xff]  ;;  %v233_v20 = vld [vmem:[%s198_s8 + $0x58] sm:$0xff]  ;;  %vm253_vm0 = vcmask 261120   ;;  %p483_p13 = scmp.ne.s32.totalorder %s658_s20, %s482_s27  ;;  %s486_s29 = sshll.u32 %s545_s28, 4  ;;  %s487_s29 = int_to_ptr.vmem [resolvable:$false] %s486_s29 }
  0x27   : > { %289 = vmatprep.mubr.bf16.mxu0 %v544_v17  ;;  %330 = vmatprep.mubr.bf16.mxu1 %v544_v17  ;;  %v235_v19 = vld [vmem:[%s198_s8 + $0x68] sm:$0xff]  ;;  %v237_v22 = vld [vmem:[%s198_s8 + $0x78] sm:$0xff]  ;;  %v230_v23 = vld [vmem:[%s198_s8 + $0x40] sm:$0xff]  ;;  %s488_s30 = scalar_lea.vmem %s487_s29, 1024  ;;  %p489_p2 = scmp.lt.s32.totalorder %s658_s20, %s487_s29 }
  0x28   : > { %481 = vset.pattern.permute.xlu0 %v544_v17  ;;  %v243_v21 = vpack.c.bf16 %v235_v19, %v231_v18  ;;  %v234_v24 = vld [vmem:[%s198_s8 + $0x60] sm:$0xff]  ;;  %v245_v25 = vpack.c.bf16 %v237_v22, %v233_v20  ;;  %v232_v27 = vld [vmem:[%s198_s8 + $0x50] sm:$0xff]  ;;  %v223_v29 = vld [vmem:[%s198_s8 + $0x8] sm:$0xff]  ;;  %p484_p0 = pnand %p483_p13, %p604_p6  ;;  %p490_p3 = scmp.lt.s32.totalorder %s488_s30, %s482_s27 }
  0x29   : > { %250 = vperm.xlu0 %481, %v247_v16   ;;  %v242_v26 = vpack.c.bf16 %v234_v24, %v230_v23  ;;  %v236_v28 = vld [vmem:[%s198_s8 + $0x70] sm:$0xff]  ;;  %v227_v31 = vld [vmem:[%s198_s8 + $0x28] sm:$0xff]  ;;  %v225_v32 = vld [vmem:[%s198_s8 + $0x18] sm:$0xff] }
  0x2a   : > { %269 = vmatprep.subr.bf16.mxu0 %v243_v21  ;;  %v244_v30 = vpack.c.bf16 %v236_v28, %v232_v27  ;;  %v229_v33 = vld [vmem:[%s198_s8 + $0x38] sm:$0xff]  ;;  %310 = vmatprep.subr.bf16.mxu1 %v245_v25  ;;  %v239_v34 = vpack.c.bf16 %v227_v31, %v223_v29  ;;  %v222_v36 = vld [vmem:[%s198_s8] sm:$0xff]  ;;  %v224_v38 = vld [vmem:[%s198_s8 + $0x10] sm:$0xff]  ;;  %p485_p1 = pneg %p484_p0  ;;  %p491_p4 = por %p490_p3, %p489_p2 }
  0x2b   : > { %270 = vmatpush1.bf16.msra.mxu0 %v242_v26  ;;  %v241_v35 = vpack.c.bf16 %v229_v33, %v225_v32  ;;  %v226_v37 = vld [vmem:[%s198_s8 + $0x20] sm:$0xff]  ;;  %v228_v40 = vld [vmem:[%s198_s8 + $0x30] sm:$0xff] }
  0x2c   : > { %311 = vmatpush1.bf16.msra.mxu1 %v244_v30  ;;  %v238_v39 = vpack.c.bf16 %v226_v37, %v222_v36  ;;  %271 = vmatprep.subr.bf16.mxu0 %v239_v34  ;;  %v240_v41 = vpack.c.bf16 %v228_v40, %v224_v38  ;;  %v246_v42 = vld [vmem:[%s700_s1] sm:$0xf]  ;;  %p492_p5 = pnand %p491_p4, %p485_p1 }
  0x2d   : > { %312 = vmatprep.subr.bf16.mxu1 %v241_v35 }
  0x2f   : > { %272 = vmatpush1.bf16.msra.mxu0 %v238_v39 }
  0x30   : > { %313 = vmatpush1.bf16.msra.mxu1 %v240_v41 }
  0x32   : > { %432 = vmatmul.mubr.msk.bf16.vlgmr.msra.gmra.mxu0 %vm253_vm0, %v246_v42 }
  0x33   : > { %433 = vmatmul.mubr.msk.bf16.vlgmr.msra.gmra.mxu1 %vm253_vm0, %v246_v42 }
  0xa4   : > { %v251_v43 = vpop.permute.xlu0 %250 }
  0xf2   : > { %v291_v44 = vpop.f32.mrf.mxu0 }
  0xf3   : > { %v292_v45 = vadd.f32 %v291_v44, %v251_v43  ;;  %v332_v46 = vpop.f32.mrf.mxu1 }
  0xf4   : > { %v333_v47 = vadd.f32 %v332_v46, %v251_v43  ;;  %v293_v48 = vpop.f32.mrf.mxu0 }
  0xf5   : > { %339 = vst [vmem:[%s218_s19] sm:$0xff] %v292_v45  ;;  %v294_v49 = vadd.f32 %v293_v48, %v251_v43  ;;  %v334_v50 = vpop.f32.mrf.mxu1 }
  0xf6   : > { %341 = vst [vmem:[%s218_s19 + $0x10] sm:$0xff] %v333_v47  ;;  %v335_v51 = vadd.f32 %v334_v50, %v251_v43  ;;  %v295_v52 = vpop.f32.mrf.mxu0 }
  0xf7   : > { %340 = vst [vmem:[%s218_s19 + $0x8] sm:$0xff] %v294_v49  ;;  %v336_v53 = vpop.f32.mrf.mxu1 }
  0xf8   : > { %342 = vst [vmem:[%s218_s19 + $0x18] sm:$0xff] %v335_v51  ;;  %v296_v54 = vpop.f32.mrf.mxu0 }
  0xf9   : > { %v337_v55 = vpop.f32.mrf.mxu1 }
  0xfa   : > { %495 = shalt.err (!%p492_p5)
}
  0xfb   : > { %s496_s5 = scalar_lea.hbm %s656_s26, 512  ;;  %s500_s7 = scalar_lea.hbm %s702_s3, 1024 }
  0xfc   : > { %p497_p7 = scmp.ne.s32.totalorder %s656_s26, %s496_s5  ;;  %p501_p12 = scmp.lt.s32.totalorder %s656_s26, %s702_s3 }
  0xfd   : > { %p502_p13 = scmp.lt.s32.totalorder %s500_s7, %s496_s5 }
  0xfe   : > { %p498_p10 = pnand %p497_p7, %p604_p6 }
  0xff   : > { %p503_p0 = por %p502_p13, %p501_p12 }
 0x100   : > { %p499_p11 = pneg %p498_p10 }
 0x102   : > { %p504_p1 = pnand %p503_p0, %p499_p11 }
 0x104   : > { %507 = shalt.err (!%p504_p1)
}
 0x105   : > { %441 = dma.vmem_to_hbm [thread:$0]  (%p604_p6), %s658_s20, 512, %s656_s26, %s344_s16  }
 0x106 PF: > { %s370_s10 = sand.u32 1, %s530_s12   ;;  %p444_p2 = pnand %p425_p9, %p608_p8 }
 0x107   : > { %s371_s11 = scalar_lea.sflag [#allocation4], %s370_s10 }
 0x108   : > { %p445_p3 = pneg %p444_p2 }
 0x10a   : > { %525 = dma.done.wait (%p445_p3), %s371_s11, 512  }
 0x10b   : > { %527 = vsyncadd (%p445_p3), %s371_s11, 4294966784  ;;  %p13_p4 = scmp.ge.s32.totalorder %s589_s18, 4   ;;  %s705_s12 = smov %s534_s13 }
 0x10c   : > { %s706_s13 = smov %s538_s14  ;;  %s707_s14 = smov %s602_s21 }
 0x10d   : > { %s708_s15 = smov %s589_s18  ;;  %15 = sbr.rel (!%p13_p4) target bundleno = 3 (0x3), region = 95 }
 0x112   :  { %376 = vsyncpa [#allocation4], 1 }
 0x113   :  { %378 = vsyncpa [#allocation4 + $0x1], 1 }

</bundles_post_ra>
